<compile_context>
chip_gen: v5e
topology: v5e:2x2
jax: 0.10.0
libtpu: 0.0.40
codegen_flags: <defaults>
</compile_context>

<pallas_src>
from functools import partial

import jax
import jax.numpy as jnp
from jax import lax
from jax.experimental import pallas as pl
from jax.experimental.pallas import tpu as pltpu


def gru_classifier_kernel(emb_ref,
                          wih1_ref, whh_ref, bx1_ref, bn1_ref,
                          wih2_ref, bx2_ref, bn2_ref,
                          wfc_ref, bfc_ref,
                          out_ref,
                          gx1_ref):
    """Two-layer GRU recurrence + final linear layer, fully in VMEM.

    emb_ref : (T, B, E) bf16  time-major embedded input (B = batch block)
    wih1    : (E, 3H)  bf16   layer-1 input->hidden weight (pre-transposed, gates r,z,n)
    whh     : (2H, 6H) bf16   block-diag of layer-1/layer-2 hidden->hidden weights
    bx1/bx2 : (1, 3H)  f32    b_ih with b_hh folded in for the r,z gates
    bn1/bn2 : (1, H)   f32    n-gate hidden bias (stays inside the r-multiplied term)
    wih2    : (H, 3H)  bf16   layer-2 input->hidden weight
    wfc     : (H, O_pad) bf16 fc weight (transposed, lane-padded);  bfc : (1, O_pad) f32
    out_ref : (B, O_pad) f32  padded logits
    gx1_ref : (T, B, 3H) f32  VMEM scratch: precomputed layer-1 input projections
    """
    T, B, E = emb_ref.shape
    H = wih2_ref.shape[0]
    mm_dtype = whh_ref.dtype  # bf16 MXU operands, f32 accumulation

    # --- Hoisted layer-1 input projection for all timesteps: one big MXU matmul
    #     (M = T*B) instead of T serial M=B matmuls.  emb is already bf16.
    x_all = emb_ref[...].reshape(T * B, E)
    gx1_ref[...] = (jnp.dot(x_all, wih1_ref[...],
                            preferred_element_type=jnp.float32)
                    + bx1_ref[...]).reshape(T, B, 3 * H)

    bx2 = bx2_ref[...]
    bn1 = bn1_ref[...]
    bn2 = bn2_ref[...]

    def gru_gates(gx, gh_raw, bn, h):
        # PyTorch GRU, gate order (r, z, n).  r/z hidden biases are pre-folded into gx,
        # so gh_raw is the raw h @ Whh^T product.  One wide sigmoid covers r and z.
        rz = jax.nn.sigmoid(gx[:, :2 * H] + gh_raw[:, :2 * H])
        r, z = rz[:, :H], rz[:, H:]
        n = jnp.tanh(gx[:, 2 * H:] + r * (gh_raw[:, 2 * H:] + bn))
        return (1.0 - z) * n + z * h

    h1 = jnp.zeros((B, H), jnp.float32)
    h2 = jnp.zeros((B, H), jnp.float32)
    h1_mm = jnp.zeros((B, H), mm_dtype)
    h2_mm = jnp.zeros((B, H), mm_dtype)

    # Static unroll (T is small & static): gives the LLO scheduler cross-iteration
    # visibility so MXU pushes overlap EUP/VPU gate math.
    for t in range(T):
        # One block-diagonal matmul yields BOTH hidden projections (gh1 | gh2).
        # K = 2H fills the 256-deep MXU on v6e/v7x; 2 serial MXU issues/step (was 3).
        h_cat = jnp.concatenate([h1_mm, h2_mm], axis=1)          # (B, 2H) bf16
        gh = jnp.dot(h_cat, whh_ref[...], preferred_element_type=jnp.float32)
        gh1, gh2 = gh[:, :3 * H], gh[:, 3 * H:]

        # Layer 1 (input projection precomputed into gx1_ref).
        h1 = gru_gates(gx1_ref[t], gh1, bn1, h1)
        h1_mm = h1.astype(mm_dtype)

        # Layer 2.
        gx2 = jnp.dot(h1_mm, wih2_ref[...],
                      preferred_element_type=jnp.float32) + bx2
        h2 = gru_gates(gx2, gh2, bn2, h2)
        h2_mm = h2.astype(mm_dtype)

    # Final FC on layer-2's last hidden state; lane-dense (padded to 128) output slab.
    out_ref[...] = (jnp.dot(h2_mm, wfc_ref[...],
                            preferred_element_type=jnp.float32)
                    + bfc_ref[...])


def prepare_params(params, matmul_dtype=jnp.bfloat16):
    """One-time weight prep: transposes, block-diag merge, bias folding, lane padding."""
    H = params["w_hh_l0"].shape[1]
    O = params["fc_w"].shape[0]
    O_pad = max(128, ((O + 127) // 128) * 128)

    # fc: transpose + lane-pad to a full 128-lane slab (unmasked full-vreg stores).
    fc_w_t = params["fc_w"].T.astype(matmul_dtype)                       # (H, O)
    wfc = jnp.zeros((H, O_pad), matmul_dtype).at[:, :O].set(fc_w_t)
    bfc = jnp.zeros((1, O_pad), jnp.float32).at[0, :O].set(params["fc_b"])

    # Block-diagonal hidden->hidden weight: [h1|h2] @ whh_bd = [gh1_raw | gh2_raw].
    whh_bd = jnp.zeros((2 * H, 6 * H), jnp.float32)
    whh_bd = whh_bd.at[:H, :3 * H].set(params["w_hh_l0"].T)
    whh_bd = whh_bd.at[H:, 3 * H:].set(params["w_hh_l1"].T)

    def fold_bias(bih, bhh):
        # r/z: b_ih + b_hh folded into the input-side bias; n: b_hh kept separate
        # (it must sit inside the r-multiplied term).
        bx = bih.astype(jnp.float32).at[:2 * H].add(bhh[:2 * H].astype(jnp.float32))
        bn = bhh[2 * H:].astype(jnp.float32)
        return bx[None, :], bn[None, :]

    bx1, bn1 = fold_bias(params["b_ih_l0"], params["b_hh_l0"])
    bx2, bn2 = fold_bias(params["b_ih_l1"], params["b_hh_l1"])

    prep = {
        # bf16 table: halves HBM read + VMEM footprint of the embedded activations
        # (the kernel would cast to bf16 before the MXU anyway -> numerically identical).
        "emb_table": params["embedding"].astype(matmul_dtype),
        "wih1": params["w_ih_l0"].T.astype(matmul_dtype),                # (E, 3H)
        "whh_bd": whh_bd.astype(matmul_dtype),                           # (2H, 6H)
        "bx1": bx1, "bn1": bn1,                                          # (1,3H), (1,H)
        "wih2": params["w_ih_l1"].T.astype(matmul_dtype),                # (H, 3H)
        "bx2": bx2, "bn2": bn2,
        "wfc": wfc,                                                      # (H, O_pad)
        "bfc": bfc,                                                      # (1, O_pad)
    }
    return prep, O


def _round_up(x, m):
    return ((x + m - 1) // m) * m


def _default_batch_block(B):
    """Generation-aware grid policy.

    v7x: 2 TensorCores/chip -> split the batch into 2 'parallel' blocks when B >= 16.
    v5e/v6e: single TC -> one block as large as possible (grid steps are pure overhead).
    Blocks are multiples of 16 for full bf16 sublane packing.
    """
    try:
        kind = jax.devices()[0].device_kind.lower()
    except Exception:
        kind = ""
    two_core = "v7" in kind
    if two_core and B >= 16:
        return min(256, _round_up(pl.cdiv(B, 2), 16))
    return min(256, _round_up(B, 16))


def _vmem_limit_bytes(prep, T, batch_block, E, H, O_pad):
    """Explicit VMEM budget: double-buffered inputs/outputs + f32 gx1 scratch."""
    weight_names = ["wih1", "whh_bd", "bx1", "bn1", "wih2", "bx2", "bn2", "wfc", "bfc"]
    w_bytes = sum(prep[k].size * prep[k].dtype.itemsize for k in weight_names)
    emb_blk = T * batch_block * E * 2          # bf16 embedded block
    scratch = T * batch_block * 3 * H * 4      # f32 gx1 scratch (bf16 option for big H)
    out_blk = batch_block * O_pad * 4
    need = 2 * (w_bytes + emb_blk + out_blk) + scratch
    # 2x safety margin, clamped to stay within every generation's scoped VMEM.
    return int(min(max(2 * need, 4 << 20), 32 << 20))


@partial(jax.jit, static_argnames=("out_dim", "batch_block"))
def rnn_classifier_forward(x_tokens, prep, *, out_dim, batch_block=None):
    """x_tokens: (B, T) int32 token ids. Returns logits (B, out_dim)."""
    B, T = x_tokens.shape
    H = prep["wih2"].shape[0]
    E = prep["emb_table"].shape[1]
    O_pad = prep["wfc"].shape[1]

    if batch_block is None:
        batch_block = _default_batch_block(B)
    B_pad = pl.cdiv(B, batch_block) * batch_block
    num_blocks = B_pad // batch_block

    # Pad the tiny (B, T) token matrix, NOT the embedded activations.
    toks = x_tokens
    if B_pad != B:
        toks = jnp.pad(toks, ((0, B_pad - B), (0, 0)))

    # Gather time-major directly (transpose the int32 token matrix, not the (B,T,E)
    # activation tensor) from the bf16 table; eval-mode dropout is an identity.
    emb_tm = jnp.take(prep["emb_table"], toks.T, axis=0)                 # (T, B_pad, E) bf16

    full = lambda i: (0, 0)  # weights/biases: constant block index -> DMA'd once
    # NOTE: constant-index weight blocks could be single-buffered (pipeline_mode=
    # pl.Buffered(1)) for scaled-up configs; footprint here is tiny, so left default.
    grid_spec = pltpu.PrefetchScalarGridSpec(
        num_scalar_prefetch=0,
        grid=(num_blocks,),
        in_specs=[
            pl.BlockSpec((T, batch_block, E), lambda i: (0, i, 0)),      # embedded seq
            pl.BlockSpec(prep["wih1"].shape, full),
            pl.BlockSpec(prep["whh_bd"].shape, full),
            pl.BlockSpec(prep["bx1"].shape, full),
            pl.BlockSpec(prep["bn1"].shape, full),
            pl.BlockSpec(prep["wih2"].shape, full),
            pl.BlockSpec(prep["bx2"].shape, full),
            pl.BlockSpec(prep["bn2"].shape, full),
            pl.BlockSpec(prep["wfc"].shape, full),
            pl.BlockSpec(prep["bfc"].shape, full),
        ],
        out_specs=pl.BlockSpec((batch_block, O_pad), lambda i: (i, 0)),
        scratch_shapes=[pltpu.VMEM((T, batch_block, 3 * H), jnp.float32)],
    )

    out_padded = pl.pallas_call(
        gru_classifier_kernel,
        out_shape=jax.ShapeDtypeStruct((B_pad, O_pad), jnp.float32),
        grid_spec=grid_spec,
        compiler_params=pltpu.CompilerParams(
            dimension_semantics=("parallel",),
            vmem_limit_bytes=_vmem_limit_bytes(prep, T, batch_block, E, H, O_pad)),
    )(emb_tm,
      prep["wih1"], prep["whh_bd"], prep["bx1"], prep["bn1"],
      prep["wih2"], prep["bx2"], prep["bn2"],
      prep["wfc"], prep["bfc"])

    return out_padded[:B, :out_dim]


def init_params(key, vocab_size, embedding_dim, hidden_dim, output_dim):
    ks = jax.random.split(key, 12)
    s_gru = 1.0 / jnp.sqrt(hidden_dim)
    s_fc = 1.0 / jnp.sqrt(hidden_dim)

    def u(k, shape, scale):
        return jax.random.uniform(k, shape, jnp.float32, -scale, scale)

    return {
        "embedding": jax.random.normal(ks[0], (vocab_size, embedding_dim), jnp.float32),
        # GRU layer 0 (gate order r, z, n -- PyTorch convention)
        "w_ih_l0": u(ks[1], (3 * hidden_dim, embedding_dim), s_gru),
        "w_hh_l0": u(ks[2], (3 * hidden_dim, hidden_dim), s_gru),
        "b_ih_l0": u(ks[3], (3 * hidden_dim,), s_gru),
        "b_hh_l0": u(ks[4], (3 * hidden_dim,), s_gru),
        # GRU layer 1
        "w_ih_l1": u(ks[5], (3 * hidden_dim, hidden_dim), s_gru),
        "w_hh_l1": u(ks[6], (3 * hidden_dim, hidden_dim), s_gru),
        "b_ih_l1": u(ks[7], (3 * hidden_dim,), s_gru),
        "b_hh_l1": u(ks[8], (3 * hidden_dim,), s_gru),
        # fc
        "fc_w": u(ks[9], (output_dim, hidden_dim), s_fc),
        "fc_b": u(ks[10], (output_dim,), s_fc),
    }


def reference_forward(x_tokens, params):
    """Pure-JAX f32 reference replicating torch.nn.GRU + Linear (eval mode)."""
    H = params["w_hh_l0"].shape[1]
    emb = params["embedding"][x_tokens]                   # (B, T, E)
    B, T, _ = emb.shape

    def cell(x, h, wih, whh, bih, bhh):
        gx = x @ wih.T + bih
        gh = h @ whh.T + bhh
        r = jax.nn.sigmoid(gx[:, :H] + gh[:, :H])
        z = jax.nn.sigmoid(gx[:, H:2 * H] + gh[:, H:2 * H])
        n = jnp.tanh(gx[:, 2 * H:] + r * gh[:, 2 * H:])
        return (1.0 - z) * n + z * h

    def scan_step(carry, x_t):
        h1, h2 = carry
        h1 = cell(x_t, h1, params["w_ih_l0"], params["w_hh_l0"],
                  params["b_ih_l0"], params["b_hh_l0"])
        h2 = cell(h1, h2, params["w_ih_l1"], params["w_hh_l1"],
                  params["b_ih_l1"], params["b_hh_l1"])
        return (h1, h2), None

    h0 = jnp.zeros((B, H), jnp.float32)
    (_, h2), _ = lax.scan(scan_step, (h0, h0), jnp.transpose(emb, (1, 0, 2)))
    return h2 @ params["fc_w"].T + params["fc_b"]


if __name__ == "__main__":
    vocab_size = 27       # character vocabulary
    embedding_dim = 128
    hidden_dim = 128
    output_dim = 2        # consonant / vowel
    batch = 8
    seq_len = 8

    key = jax.random.PRNGKey(0)
    k_params, k_tokens = jax.random.split(key)
    params = init_params(k_params, vocab_size, embedding_dim, hidden_dim, output_dim)
    x_tokens = jax.random.randint(k_tokens, (batch, seq_len), 0, vocab_size, jnp.int32)

    # One-time weight prep (transposes / block-diag merge / bias fold / bf16 cast).
    matmul_dtype = jnp.bfloat16
    prep, out_dim = prepare_params(params, matmul_dtype=matmul_dtype)

    logits = jax.block_until_ready(
        rnn_classifier_forward(x_tokens, prep, out_dim=out_dim))
    ref = jax.block_until_ready(reference_forward(x_tokens, params))

    # bf16 MXU operands (f32 accumulation) vs f32 reference -> loosened tolerance.
    tol = 5e-2 if matmul_dtype == jnp.bfloat16 else 1e-4
    assert logits.shape == (batch, output_dim)
    assert jnp.allclose(logits, ref, rtol=tol, atol=tol), (logits, ref)
    print("KERNEL_OK")
</pallas_src>

<mosaic_0001>
module attributes {stable_mosaic.version = 11 : i64} {
  func.func @gru_classifier_kernel(%arg0: i32, %arg1: memref<8x16x128xbf16, #tpu.memory_space<vmem>>, %arg2: memref<128x384xbf16, #tpu.memory_space<vmem>>, %arg3: memref<256x768xbf16, #tpu.memory_space<vmem>>, %arg4: memref<1x384xf32, #tpu.memory_space<vmem>>, %arg5: memref<1x128xf32, #tpu.memory_space<vmem>>, %arg6: memref<128x384xbf16, #tpu.memory_space<vmem>>, %arg7: memref<1x384xf32, #tpu.memory_space<vmem>>, %arg8: memref<1x128xf32, #tpu.memory_space<vmem>>, %arg9: memref<128x128xbf16, #tpu.memory_space<vmem>>, %arg10: memref<1x128xf32, #tpu.memory_space<vmem>>, %arg11: memref<16x128xf32, #tpu.memory_space<vmem>>, %arg12: memref<8x16x384xf32, #tpu.memory_space<vmem>>) attributes {dimension_semantics = [#tpu.dimension_semantics<parallel>], iteration_bounds = array<i64: 1>, scalar_prefetch = 0 : i64, scratch_operands = 1 : i64, tpu.core_type = #tpu.core_type<tc>, window_params = [{transform_indices = @transform_0, window_bounds = array<i64: 8, 16, 128>}, {pipeline_mode = #tpu.pipeline_mode<synchronous>, transform_indices = @transform_1, window_bounds = array<i64: 128, 384>}, {pipeline_mode = #tpu.pipeline_mode<synchronous>, transform_indices = @transform_2, window_bounds = array<i64: 256, 768>}, {pipeline_mode = #tpu.pipeline_mode<synchronous>, transform_indices = @transform_3, window_bounds = array<i64: 1, 384>}, {pipeline_mode = #tpu.pipeline_mode<synchronous>, transform_indices = @transform_4, window_bounds = array<i64: 1, 128>}, {pipeline_mode = #tpu.pipeline_mode<synchronous>, transform_indices = @transform_5, window_bounds = array<i64: 128, 384>}, {pipeline_mode = #tpu.pipeline_mode<synchronous>, transform_indices = @transform_6, window_bounds = array<i64: 1, 384>}, {pipeline_mode = #tpu.pipeline_mode<synchronous>, transform_indices = @transform_7, window_bounds = array<i64: 1, 128>}, {pipeline_mode = #tpu.pipeline_mode<synchronous>, transform_indices = @transform_8, window_bounds = array<i64: 128, 128>}, {pipeline_mode = #tpu.pipeline_mode<synchronous>, transform_indices = @transform_9, window_bounds = array<i64: 1, 128>}, {transform_indices = @transform_10, window_bounds = array<i64: 16, 128>}]} {
    %c0 = arith.constant 0 : index
    %c0_0 = arith.constant 0 : index
    %c0_1 = arith.constant 0 : index
    %0 = vector.load %arg1[%c0, %c0_0, %c0_1] : memref<8x16x128xbf16, #tpu.memory_space<vmem>>, vector<8x16x128xbf16>
    %1 = vector.shape_cast %0 : vector<8x16x128xbf16> to vector<128x128xbf16>
    %c0_2 = arith.constant 0 : index
    %c0_3 = arith.constant 0 : index
    %2 = vector.load %arg2[%c0_2, %c0_3] : memref<128x384xbf16, #tpu.memory_space<vmem>>, vector<128x384xbf16>
    %cst = arith.constant dense<0.000000e+00> : vector<128x384xf32>
    %3 = tpu.matmul %1, %2, %cst {dimension_numbers = #tpu.dot_dimension_numbers<[1], [0], [0], [1], [0, 0, 1, 1], [], []>} : vector<128x128xbf16>, vector<128x384xbf16>, vector<128x384xf32> -> vector<128x384xf32>
    %c0_4 = arith.constant 0 : index
    %c0_5 = arith.constant 0 : index
    %4 = vector.load %arg4[%c0_4, %c0_5] : memref<1x384xf32, #tpu.memory_space<vmem>>, vector<1x384xf32>
    %5 = vector.broadcast %4 : vector<1x384xf32> to vector<128x384xf32>
    %6 = arith.addf %3, %5 : vector<128x384xf32>
    %7 = vector.shape_cast %6 : vector<128x384xf32> to vector<8x16x384xf32>
    %c0_6 = arith.constant 0 : index
    %c0_7 = arith.constant 0 : index
    %c0_8 = arith.constant 0 : index
    %8 = vector.load %arg12[%c0_6, %c0_7, %c0_8] : memref<8x16x384xf32, #tpu.memory_space<vmem>>, vector<8x16x384xf32>
    tpu.vector_store %arg12[%c0_6, %c0_7, %c0_8], %7 {strides = array<i32>} : memref<8x16x384xf32, #tpu.memory_space<vmem>>, vector<8x16x384xf32>,
    %c0_9 = arith.constant 0 : index
    %c0_10 = arith.constant 0 : index
    %9 = vector.load %arg7[%c0_9, %c0_10] : memref<1x384xf32, #tpu.memory_space<vmem>>, vector<1x384xf32>
    %c0_11 = arith.constant 0 : index
    %c0_12 = arith.constant 0 : index
    %10 = vector.load %arg5[%c0_11, %c0_12] : memref<1x128xf32, #tpu.memory_space<vmem>>, vector<1x128xf32>
    %c0_13 = arith.constant 0 : index
    %c0_14 = arith.constant 0 : index
    %11 = vector.load %arg8[%c0_13, %c0_14] : memref<1x128xf32, #tpu.memory_space<vmem>>, vector<1x128xf32>
    %cst_15 = arith.constant 0.000000e+00 : f32
    %12 = vector.broadcast %cst_15 : f32 to vector<16x128xf32>
    %cst_16 = arith.constant 0.000000e+00 : f32
    %13 = vector.broadcast %cst_16 : f32 to vector<16x128xf32>
    %cst_17 = arith.constant 0.000000e+00 : bf16
    %14 = vector.broadcast %cst_17 : bf16 to vector<16x128xbf16>
    %cst_18 = arith.constant 0.000000e+00 : bf16
    %15 = vector.broadcast %cst_18 : bf16 to vector<16x128xbf16>
    %16 = tpu.concatenate %14, %15 in 1 : vector<16x128xbf16>, vector<16x128xbf16> -> vector<16x256xbf16>
    %c0_19 = arith.constant 0 : index
    %c0_20 = arith.constant 0 : index
    %17 = vector.load %arg3[%c0_19, %c0_20] : memref<256x768xbf16, #tpu.memory_space<vmem>>, vector<256x768xbf16>
    %cst_21 = arith.constant dense<0.000000e+00> : vector<16x768xf32>
    %18 = tpu.matmul %16, %17, %cst_21 {dimension_numbers = #tpu.dot_dimension_numbers<[1], [0], [0], [1], [0, 0, 1, 1], [], []>} : vector<16x256xbf16>, vector<256x768xbf16>, vector<16x768xf32> -> vector<16x768xf32>
    %19 = vector.extract_strided_slice %18 {offsets = [0, 0], sizes = [16, 384], strides = [1, 1]} : vector<16x768xf32> to vector<16x384xf32>
    %20 = vector.extract_strided_slice %18 {offsets = [0, 384], sizes = [16, 384], strides = [1, 1]} : vector<16x768xf32> to vector<16x384xf32>
    %c0_22 = arith.constant 0 : index
    %c0_23 = arith.constant 0 : index
    %c0_24 = arith.constant 0 : index
    %21 = vector.load %arg12[%c0_22, %c0_23, %c0_24] : memref<8x16x384xf32, #tpu.memory_space<vmem>>, vector<1x16x384xf32>
    %22 = vector.shape_cast %21 : vector<1x16x384xf32> to vector<16x384xf32>
    %23 = vector.extract_strided_slice %22 {offsets = [0, 0], sizes = [16, 256], strides = [1, 1]} : vector<16x384xf32> to vector<16x256xf32>
    %24 = vector.extract_strided_slice %19 {offsets = [0, 0], sizes = [16, 256], strides = [1, 1]} : vector<16x384xf32> to vector<16x256xf32>
    %25 = arith.addf %23, %24 : vector<16x256xf32>
    %26 = arith.negf %25 : vector<16x256xf32>
    %27 = math.exp %26 : vector<16x256xf32>
    %cst_25 = arith.constant 1.000000e+00 : f32
    %28 = vector.broadcast %cst_25 : f32 to vector<16x256xf32>
    %29 = arith.addf %28, %27 : vector<16x256xf32>
    %30 = arith.divf %28, %29 : vector<16x256xf32>
    %31 = vector.extract_strided_slice %30 {offsets = [0, 0], sizes = [16, 128], strides = [1, 1]} : vector<16x256xf32> to vector<16x128xf32>
    %32 = vector.extract_strided_slice %30 {offsets = [0, 128], sizes = [16, 128], strides = [1, 1]} : vector<16x256xf32> to vector<16x128xf32>
    %33 = vector.extract_strided_slice %22 {offsets = [0, 256], sizes = [16, 128], strides = [1, 1]} : vector<16x384xf32> to vector<16x128xf32>
    %34 = vector.extract_strided_slice %19 {offsets = [0, 256], sizes = [16, 128], strides = [1, 1]} : vector<16x384xf32> to vector<16x128xf32>
    %35 = vector.broadcast %10 : vector<1x128xf32> to vector<16x128xf32>
    %36 = arith.addf %34, %35 : vector<16x128xf32>
    %37 = arith.mulf %31, %36 : vector<16x128xf32>
    %38 = arith.addf %33, %37 : vector<16x128xf32>
    %39 = math.tanh %38 : vector<16x128xf32>
    %cst_26 = arith.constant 1.000000e+00 : f32
    %40 = vector.broadcast %cst_26 : f32 to vector<16x128xf32>
    %41 = arith.subf %40, %32 : vector<16x128xf32>
    %42 = arith.mulf %41, %39 : vector<16x128xf32>
    %43 = arith.mulf %32, %12 : vector<16x128xf32>
    %44 = arith.addf %42, %43 : vector<16x128xf32>
    %45 = arith.truncf %44 : vector<16x128xf32> to vector<16x128xbf16>
    %c0_27 = arith.constant 0 : index
    %c0_28 = arith.constant 0 : index
    %46 = vector.load %arg6[%c0_27, %c0_28] : memref<128x384xbf16, #tpu.memory_space<vmem>>, vector<128x384xbf16>
    %cst_29 = arith.constant dense<0.000000e+00> : vector<16x384xf32>
    %47 = tpu.matmul %45, %46, %cst_29 {dimension_numbers = #tpu.dot_dimension_numbers<[1], [0], [0], [1], [0, 0, 1, 1], [], []>} : vector<16x128xbf16>, vector<128x384xbf16>, vector<16x384xf32> -> vector<16x384xf32>
    %48 = vector.broadcast %9 : vector<1x384xf32> to vector<16x384xf32>
    %49 = arith.addf %47, %48 : vector<16x384xf32>
    %50 = vector.extract_strided_slice %49 {offsets = [0, 0], sizes = [16, 256], strides = [1, 1]} : vector<16x384xf32> to vector<16x256xf32>
    %51 = vector.extract_strided_slice %20 {offsets = [0, 0], sizes = [16, 256], strides = [1, 1]} : vector<16x384xf32> to vector<16x256xf32>
    %52 = arith.addf %50, %51 : vector<16x256xf32>
    %53 = arith.negf %52 : vector<16x256xf32>
    %54 = math.exp %53 : vector<16x256xf32>
    %cst_30 = arith.constant 1.000000e+00 : f32
    %55 = vector.broadcast %cst_30 : f32 to vector<16x256xf32>
    %56 = arith.addf %55, %54 : vector<16x256xf32>
    %57 = arith.divf %55, %56 : vector<16x256xf32>
    %58 = vector.extract_strided_slice %57 {offsets = [0, 0], sizes = [16, 128], strides = [1, 1]} : vector<16x256xf32> to vector<16x128xf32>
    %59 = vector.extract_strided_slice %57 {offsets = [0, 128], sizes = [16, 128], strides = [1, 1]} : vector<16x256xf32> to vector<16x128xf32>
    %60 = vector.extract_strided_slice %49 {offsets = [0, 256], sizes = [16, 128], strides = [1, 1]} : vector<16x384xf32> to vector<16x128xf32>
    %61 = vector.extract_strided_slice %20 {offsets = [0, 256], sizes = [16, 128], strides = [1, 1]} : vector<16x384xf32> to vector<16x128xf32>
    %62 = vector.broadcast %11 : vector<1x128xf32> to vector<16x128xf32>
    %63 = arith.addf %61, %62 : vector<16x128xf32>
    %64 = arith.mulf %58, %63 : vector<16x128xf32>
    %65 = arith.addf %60, %64 : vector<16x128xf32>
    %66 = math.tanh %65 : vector<16x128xf32>
    %cst_31 = arith.constant 1.000000e+00 : f32
    %67 = vector.broadcast %cst_31 : f32 to vector<16x128xf32>
    %68 = arith.subf %67, %59 : vector<16x128xf32>
    %69 = arith.mulf %68, %66 : vector<16x128xf32>
    %70 = arith.mulf %59, %13 : vector<16x128xf32>
    %71 = arith.addf %69, %70 : vector<16x128xf32>
    %72 = arith.truncf %71 : vector<16x128xf32> to vector<16x128xbf16>
    %73 = tpu.concatenate %45, %72 in 1 : vector<16x128xbf16>, vector<16x128xbf16> -> vector<16x256xbf16>
    %c0_32 = arith.constant 0 : index
    %c0_33 = arith.constant 0 : index
    %74 = vector.load %arg3[%c0_32, %c0_33] : memref<256x768xbf16, #tpu.memory_space<vmem>>, vector<256x768xbf16>
    %cst_34 = arith.constant dense<0.000000e+00> : vector<16x768xf32>
    %75 = tpu.matmul %73, %74, %cst_34 {dimension_numbers = #tpu.dot_dimension_numbers<[1], [0], [0], [1], [0, 0, 1, 1], [], []>} : vector<16x256xbf16>, vector<256x768xbf16>, vector<16x768xf32> -> vector<16x768xf32>
    %76 = vector.extract_strided_slice %75 {offsets = [0, 0], sizes = [16, 384], strides = [1, 1]} : vector<16x768xf32> to vector<16x384xf32>
    %77 = vector.extract_strided_slice %75 {offsets = [0, 384], sizes = [16, 384], strides = [1, 1]} : vector<16x768xf32> to vector<16x384xf32>
    %c1 = arith.constant 1 : index
    %c0_35 = arith.constant 0 : index
    %c0_36 = arith.constant 0 : index
    %78 = vector.load %arg12[%c1, %c0_35, %c0_36] : memref<8x16x384xf32, #tpu.memory_space<vmem>>, vector<1x16x384xf32>
    %79 = vector.shape_cast %78 : vector<1x16x384xf32> to vector<16x384xf32>
    %80 = vector.extract_strided_slice %79 {offsets = [0, 0], sizes = [16, 256], strides = [1, 1]} : vector<16x384xf32> to vector<16x256xf32>
    %81 = vector.extract_strided_slice %76 {offsets = [0, 0], sizes = [16, 256], strides = [1, 1]} : vector<16x384xf32> to vector<16x256xf32>
    %82 = arith.addf %80, %81 : vector<16x256xf32>
    %83 = arith.negf %82 : vector<16x256xf32>
    %84 = math.exp %83 : vector<16x256xf32>
    %cst_37 = arith.constant 1.000000e+00 : f32
    %85 = vector.broadcast %cst_37 : f32 to vector<16x256xf32>
    %86 = arith.addf %85, %84 : vector<16x256xf32>
    %87 = arith.divf %85, %86 : vector<16x256xf32>
    %88 = vector.extract_strided_slice %87 {offsets = [0, 0], sizes = [16, 128], strides = [1, 1]} : vector<16x256xf32> to vector<16x128xf32>
    %89 = vector.extract_strided_slice %87 {offsets = [0, 128], sizes = [16, 128], strides = [1, 1]} : vector<16x256xf32> to vector<16x128xf32>
    %90 = vector.extract_strided_slice %79 {offsets = [0, 256], sizes = [16, 128], strides = [1, 1]} : vector<16x384xf32> to vector<16x128xf32>
    %91 = vector.extract_strided_slice %76 {offsets = [0, 256], sizes = [16, 128], strides = [1, 1]} : vector<16x384xf32> to vector<16x128xf32>
    %92 = vector.broadcast %10 : vector<1x128xf32> to vector<16x128xf32>
    %93 = arith.addf %91, %92 : vector<16x128xf32>
    %94 = arith.mulf %88, %93 : vector<16x128xf32>
    %95 = arith.addf %90, %94 : vector<16x128xf32>
    %96 = math.tanh %95 : vector<16x128xf32>
    %cst_38 = arith.constant 1.000000e+00 : f32
    %97 = vector.broadcast %cst_38 : f32 to vector<16x128xf32>
    %98 = arith.subf %97, %89 : vector<16x128xf32>
    %99 = arith.mulf %98, %96 : vector<16x128xf32>
    %100 = arith.mulf %89, %44 : vector<16x128xf32>
    %101 = arith.addf %99, %100 : vector<16x128xf32>
    %102 = arith.truncf %101 : vector<16x128xf32> to vector<16x128xbf16>
    %c0_39 = arith.constant 0 : index
    %c0_40 = arith.constant 0 : index
    %103 = vector.load %arg6[%c0_39, %c0_40] : memref<128x384xbf16, #tpu.memory_space<vmem>>, vector<128x384xbf16>
    %cst_41 = arith.constant dense<0.000000e+00> : vector<16x384xf32>
    %104 = tpu.matmul %102, %103, %cst_41 {dimension_numbers = #tpu.dot_dimension_numbers<[1], [0], [0], [1], [0, 0, 1, 1], [], []>} : vector<16x128xbf16>, vector<128x384xbf16>, vector<16x384xf32> -> vector<16x384xf32>
    %105 = vector.broadcast %9 : vector<1x384xf32> to vector<16x384xf32>
    %106 = arith.addf %104, %105 : vector<16x384xf32>
    %107 = vector.extract_strided_slice %106 {offsets = [0, 0], sizes = [16, 256], strides = [1, 1]} : vector<16x384xf32> to vector<16x256xf32>
    %108 = vector.extract_strided_slice %77 {offsets = [0, 0], sizes = [16, 256], strides = [1, 1]} : vector<16x384xf32> to vector<16x256xf32>
    %109 = arith.addf %107, %108 : vector<16x256xf32>
    %110 = arith.negf %109 : vector<16x256xf32>
    %111 = math.exp %110 : vector<16x256xf32>
    %cst_42 = arith.constant 1.000000e+00 : f32
    %112 = vector.broadcast %cst_42 : f32 to vector<16x256xf32>
    %113 = arith.addf %112, %111 : vector<16x256xf32>
    %114 = arith.divf %112, %113 : vector<16x256xf32>
    %115 = vector.extract_strided_slice %114 {offsets = [0, 0], sizes = [16, 128], strides = [1, 1]} : vector<16x256xf32> to vector<16x128xf32>
    %116 = vector.extract_strided_slice %114 {offsets = [0, 128], sizes = [16, 128], strides = [1, 1]} : vector<16x256xf32> to vector<16x128xf32>
    %117 = vector.extract_strided_slice %106 {offsets = [0, 256], sizes = [16, 128], strides = [1, 1]} : vector<16x384xf32> to vector<16x128xf32>
    %118 = vector.extract_strided_slice %77 {offsets = [0, 256], sizes = [16, 128], strides = [1, 1]} : vector<16x384xf32> to vector<16x128xf32>
    %119 = vector.broadcast %11 : vector<1x128xf32> to vector<16x128xf32>
    %120 = arith.addf %118, %119 : vector<16x128xf32>
    %121 = arith.mulf %115, %120 : vector<16x128xf32>
    %122 = arith.addf %117, %121 : vector<16x128xf32>
    %123 = math.tanh %122 : vector<16x128xf32>
    %cst_43 = arith.constant 1.000000e+00 : f32
    %124 = vector.broadcast %cst_43 : f32 to vector<16x128xf32>
    %125 = arith.subf %124, %116 : vector<16x128xf32>
    %126 = arith.mulf %125, %123 : vector<16x128xf32>
    %127 = arith.mulf %116, %71 : vector<16x128xf32>
    %128 = arith.addf %126, %127 : vector<16x128xf32>
    %129 = arith.truncf %128 : vector<16x128xf32> to vector<16x128xbf16>
    %130 = tpu.concatenate %102, %129 in 1 : vector<16x128xbf16>, vector<16x128xbf16> -> vector<16x256xbf16>
    %c0_44 = arith.constant 0 : index
    %c0_45 = arith.constant 0 : index
    %131 = vector.load %arg3[%c0_44, %c0_45] : memref<256x768xbf16, #tpu.memory_space<vmem>>, vector<256x768xbf16>
    %cst_46 = arith.constant dense<0.000000e+00> : vector<16x768xf32>
    %132 = tpu.matmul %130, %131, %cst_46 {dimension_numbers = #tpu.dot_dimension_numbers<[1], [0], [0], [1], [0, 0, 1, 1], [], []>} : vector<16x256xbf16>, vector<256x768xbf16>, vector<16x768xf32> -> vector<16x768xf32>
    %133 = vector.extract_strided_slice %132 {offsets = [0, 0], sizes = [16, 384], strides = [1, 1]} : vector<16x768xf32> to vector<16x384xf32>
    %134 = vector.extract_strided_slice %132 {offsets = [0, 384], sizes = [16, 384], strides = [1, 1]} : vector<16x768xf32> to vector<16x384xf32>
    %c2 = arith.constant 2 : index
    %c0_47 = arith.constant 0 : index
    %c0_48 = arith.constant 0 : index
    %135 = vector.load %arg12[%c2, %c0_47, %c0_48] : memref<8x16x384xf32, #tpu.memory_space<vmem>>, vector<1x16x384xf32>
    %136 = vector.shape_cast %135 : vector<1x16x384xf32> to vector<16x384xf32>
    %137 = vector.extract_strided_slice %136 {offsets = [0, 0], sizes = [16, 256], strides = [1, 1]} : vector<16x384xf32> to vector<16x256xf32>
    %138 = vector.extract_strided_slice %133 {offsets = [0, 0], sizes = [16, 256], strides = [1, 1]} : vector<16x384xf32> to vector<16x256xf32>
    %139 = arith.addf %137, %138 : vector<16x256xf32>
    %140 = arith.negf %139 : vector<16x256xf32>
    %141 = math.exp %140 : vector<16x256xf32>
    %cst_49 = arith.constant 1.000000e+00 : f32
    %142 = vector.broadcast %cst_49 : f32 to vector<16x256xf32>
    %143 = arith.addf %142, %141 : vector<16x256xf32>
    %144 = arith.divf %142, %143 : vector<16x256xf32>
    %145 = vector.extract_strided_slice %144 {offsets = [0, 0], sizes = [16, 128], strides = [1, 1]} : vector<16x256xf32> to vector<16x128xf32>
    %146 = vector.extract_strided_slice %144 {offsets = [0, 128], sizes = [16, 128], strides = [1, 1]} : vector<16x256xf32> to vector<16x128xf32>
    %147 = vector.extract_strided_slice %136 {offsets = [0, 256], sizes = [16, 128], strides = [1, 1]} : vector<16x384xf32> to vector<16x128xf32>
    %148 = vector.extract_strided_slice %133 {offsets = [0, 256], sizes = [16, 128], strides = [1, 1]} : vector<16x384xf32> to vector<16x128xf32>
    %149 = vector.broadcast %10 : vector<1x128xf32> to vector<16x128xf32>
    %150 = arith.addf %148, %149 : vector<16x128xf32>
    %151 = arith.mulf %145, %150 : vector<16x128xf32>
    %152 = arith.addf %147, %151 : vector<16x128xf32>
    %153 = math.tanh %152 : vector<16x128xf32>
    %cst_50 = arith.constant 1.000000e+00 : f32
    %154 = vector.broadcast %cst_50 : f32 to vector<16x128xf32>
    %155 = arith.subf %154, %146 : vector<16x128xf32>
    %156 = arith.mulf %155, %153 : vector<16x128xf32>
    %157 = arith.mulf %146, %101 : vector<16x128xf32>
    %158 = arith.addf %156, %157 : vector<16x128xf32>
    %159 = arith.truncf %158 : vector<16x128xf32> to vector<16x128xbf16>
    %c0_51 = arith.constant 0 : index
    %c0_52 = arith.constant 0 : index
    %160 = vector.load %arg6[%c0_51, %c0_52] : memref<128x384xbf16, #tpu.memory_space<vmem>>, vector<128x384xbf16>
    %cst_53 = arith.constant dense<0.000000e+00> : vector<16x384xf32>
    %161 = tpu.matmul %159, %160, %cst_53 {dimension_numbers = #tpu.dot_dimension_numbers<[1], [0], [0], [1], [0, 0, 1, 1], [], []>} : vector<16x128xbf16>, vector<128x384xbf16>, vector<16x384xf32> -> vector<16x384xf32>
    %162 = vector.broadcast %9 : vector<1x384xf32> to vector<16x384xf32>
    %163 = arith.addf %161, %162 : vector<16x384xf32>
    %164 = vector.extract_strided_slice %163 {offsets = [0, 0], sizes = [16, 256], strides = [1, 1]} : vector<16x384xf32> to vector<16x256xf32>
    %165 = vector.extract_strided_slice %134 {offsets = [0, 0], sizes = [16, 256], strides = [1, 1]} : vector<16x384xf32> to vector<16x256xf32>
    %166 = arith.addf %164, %165 : vector<16x256xf32>
    %167 = arith.negf %166 : vector<16x256xf32>
    %168 = math.exp %167 : vector<16x256xf32>
    %cst_54 = arith.constant 1.000000e+00 : f32
    %169 = vector.broadcast %cst_54 : f32 to vector<16x256xf32>
    %170 = arith.addf %169, %168 : vector<16x256xf32>
    %171 = arith.divf %169, %170 : vector<16x256xf32>
    %172 = vector.extract_strided_slice %171 {offsets = [0, 0], sizes = [16, 128], strides = [1, 1]} : vector<16x256xf32> to vector<16x128xf32>
    %173 = vector.extract_strided_slice %171 {offsets = [0, 128], sizes = [16, 128], strides = [1, 1]} : vector<16x256xf32> to vector<16x128xf32>
    %174 = vector.extract_strided_slice %163 {offsets = [0, 256], sizes = [16, 128], strides = [1, 1]} : vector<16x384xf32> to vector<16x128xf32>
    %175 = vector.extract_strided_slice %134 {offsets = [0, 256], sizes = [16, 128], strides = [1, 1]} : vector<16x384xf32> to vector<16x128xf32>
    %176 = vector.broadcast %11 : vector<1x128xf32> to vector<16x128xf32>
    %177 = arith.addf %175, %176 : vector<16x128xf32>
    %178 = arith.mulf %172, %177 : vector<16x128xf32>
    %179 = arith.addf %174, %178 : vector<16x128xf32>
    %180 = math.tanh %179 : vector<16x128xf32>
    %cst_55 = arith.constant 1.000000e+00 : f32
    %181 = vector.broadcast %cst_55 : f32 to vector<16x128xf32>
    %182 = arith.subf %181, %173 : vector<16x128xf32>
    %183 = arith.mulf %182, %180 : vector<16x128xf32>
    %184 = arith.mulf %173, %128 : vector<16x128xf32>
    %185 = arith.addf %183, %184 : vector<16x128xf32>
    %186 = arith.truncf %185 : vector<16x128xf32> to vector<16x128xbf16>
    %187 = tpu.concatenate %159, %186 in 1 : vector<16x128xbf16>, vector<16x128xbf16> -> vector<16x256xbf16>
    %c0_56 = arith.constant 0 : index
    %c0_57 = arith.constant 0 : index
    %188 = vector.load %arg3[%c0_56, %c0_57] : memref<256x768xbf16, #tpu.memory_space<vmem>>, vector<256x768xbf16>
    %cst_58 = arith.constant dense<0.000000e+00> : vector<16x768xf32>
    %189 = tpu.matmul %187, %188, %cst_58 {dimension_numbers = #tpu.dot_dimension_numbers<[1], [0], [0], [1], [0, 0, 1, 1], [], []>} : vector<16x256xbf16>, vector<256x768xbf16>, vector<16x768xf32> -> vector<16x768xf32>
    %190 = vector.extract_strided_slice %189 {offsets = [0, 0], sizes = [16, 384], strides = [1, 1]} : vector<16x768xf32> to vector<16x384xf32>
    %191 = vector.extract_strided_slice %189 {offsets = [0, 384], sizes = [16, 384], strides = [1, 1]} : vector<16x768xf32> to vector<16x384xf32>
    %c3 = arith.constant 3 : index
    %c0_59 = arith.constant 0 : index
    %c0_60 = arith.constant 0 : index
    %192 = vector.load %arg12[%c3, %c0_59, %c0_60] : memref<8x16x384xf32, #tpu.memory_space<vmem>>, vector<1x16x384xf32>
    %193 = vector.shape_cast %192 : vector<1x16x384xf32> to vector<16x384xf32>
    %194 = vector.extract_strided_slice %193 {offsets = [0, 0], sizes = [16, 256], strides = [1, 1]} : vector<16x384xf32> to vector<16x256xf32>
    %195 = vector.extract_strided_slice %190 {offsets = [0, 0], sizes = [16, 256], strides = [1, 1]} : vector<16x384xf32> to vector<16x256xf32>
    %196 = arith.addf %194, %195 : vector<16x256xf32>
    %197 = arith.negf %196 : vector<16x256xf32>
    %198 = math.exp %197 : vector<16x256xf32>
    %cst_61 = arith.constant 1.000000e+00 : f32
    %199 = vector.broadcast %cst_61 : f32 to vector<16x256xf32>
    %200 = arith.addf %199, %198 : vector<16x256xf32>
    %201 = arith.divf %199, %200 : vector<16x256xf32>
    %202 = vector.extract_strided_slice %201 {offsets = [0, 0], sizes = [16, 128], strides = [1, 1]} : vector<16x256xf32> to vector<16x128xf32>
    %203 = vector.extract_strided_slice %201 {offsets = [0, 128], sizes = [16, 128], strides = [1, 1]} : vector<16x256xf32> to vector<16x128xf32>
    %204 = vector.extract_strided_slice %193 {offsets = [0, 256], sizes = [16, 128], strides = [1, 1]} : vector<16x384xf32> to vector<16x128xf32>
    %205 = vector.extract_strided_slice %190 {offsets = [0, 256], sizes = [16, 128], strides = [1, 1]} : vector<16x384xf32> to vector<16x128xf32>
    %206 = vector.broadcast %10 : vector<1x128xf32> to vector<16x128xf32>
    %207 = arith.addf %205, %206 : vector<16x128xf32>
    %208 = arith.mulf %202, %207 : vector<16x128xf32>
    %209 = arith.addf %204, %208 : vector<16x128xf32>
    %210 = math.tanh %209 : vector<16x128xf32>
    %cst_62 = arith.constant 1.000000e+00 : f32
    %211 = vector.broadcast %cst_62 : f32 to vector<16x128xf32>
    %212 = arith.subf %211, %203 : vector<16x128xf32>
    %213 = arith.mulf %212, %210 : vector<16x128xf32>
    %214 = arith.mulf %203, %158 : vector<16x128xf32>
    %215 = arith.addf %213, %214 : vector<16x128xf32>
    %216 = arith.truncf %215 : vector<16x128xf32> to vector<16x128xbf16>
    %c0_63 = arith.constant 0 : index
    %c0_64 = arith.constant 0 : index
    %217 = vector.load %arg6[%c0_63, %c0_64] : memref<128x384xbf16, #tpu.memory_space<vmem>>, vector<128x384xbf16>
    %cst_65 = arith.constant dense<0.000000e+00> : vector<16x384xf32>
    %218 = tpu.matmul %216, %217, %cst_65 {dimension_numbers = #tpu.dot_dimension_numbers<[1], [0], [0], [1], [0, 0, 1, 1], [], []>} : vector<16x128xbf16>, vector<128x384xbf16>, vector<16x384xf32> -> vector<16x384xf32>
    %219 = vector.broadcast %9 : vector<1x384xf32> to vector<16x384xf32>
    %220 = arith.addf %218, %219 : vector<16x384xf32>
    %221 = vector.extract_strided_slice %220 {offsets = [0, 0], sizes = [16, 256], strides = [1, 1]} : vector<16x384xf32> to vector<16x256xf32>
    %222 = vector.extract_strided_slice %191 {offsets = [0, 0], sizes = [16, 256], strides = [1, 1]} : vector<16x384xf32> to vector<16x256xf32>
    %223 = arith.addf %221, %222 : vector<16x256xf32>
    %224 = arith.negf %223 : vector<16x256xf32>
    %225 = math.exp %224 : vector<16x256xf32>
    %cst_66 = arith.constant 1.000000e+00 : f32
    %226 = vector.broadcast %cst_66 : f32 to vector<16x256xf32>
    %227 = arith.addf %226, %225 : vector<16x256xf32>
    %228 = arith.divf %226, %227 : vector<16x256xf32>
    %229 = vector.extract_strided_slice %228 {offsets = [0, 0], sizes = [16, 128], strides = [1, 1]} : vector<16x256xf32> to vector<16x128xf32>
    %230 = vector.extract_strided_slice %228 {offsets = [0, 128], sizes = [16, 128], strides = [1, 1]} : vector<16x256xf32> to vector<16x128xf32>
    %231 = vector.extract_strided_slice %220 {offsets = [0, 256], sizes = [16, 128], strides = [1, 1]} : vector<16x384xf32> to vector<16x128xf32>
    %232 = vector.extract_strided_slice %191 {offsets = [0, 256], sizes = [16, 128], strides = [1, 1]} : vector<16x384xf32> to vector<16x128xf32>
    %233 = vector.broadcast %11 : vector<1x128xf32> to vector<16x128xf32>
    %234 = arith.addf %232, %233 : vector<16x128xf32>
    %235 = arith.mulf %229, %234 : vector<16x128xf32>
    %236 = arith.addf %231, %235 : vector<16x128xf32>
    %237 = math.tanh %236 : vector<16x128xf32>
    %cst_67 = arith.constant 1.000000e+00 : f32
    %238 = vector.broadcast %cst_67 : f32 to vector<16x128xf32>
    %239 = arith.subf %238, %230 : vector<16x128xf32>
    %240 = arith.mulf %239, %237 : vector<16x128xf32>
    %241 = arith.mulf %230, %185 : vector<16x128xf32>
    %242 = arith.addf %240, %241 : vector<16x128xf32>
    %243 = arith.truncf %242 : vector<16x128xf32> to vector<16x128xbf16>
    %244 = tpu.concatenate %216, %243 in 1 : vector<16x128xbf16>, vector<16x128xbf16> -> vector<16x256xbf16>
    %c0_68 = arith.constant 0 : index
    %c0_69 = arith.constant 0 : index
    %245 = vector.load %arg3[%c0_68, %c0_69] : memref<256x768xbf16, #tpu.memory_space<vmem>>, vector<256x768xbf16>
    %cst_70 = arith.constant dense<0.000000e+00> : vector<16x768xf32>
    %246 = tpu.matmul %244, %245, %cst_70 {dimension_numbers = #tpu.dot_dimension_numbers<[1], [0], [0], [1], [0, 0, 1, 1], [], []>} : vector<16x256xbf16>, vector<256x768xbf16>, vector<16x768xf32> -> vector<16x768xf32>
    %247 = vector.extract_strided_slice %246 {offsets = [0, 0], sizes = [16, 384], strides = [1, 1]} : vector<16x768xf32> to vector<16x384xf32>
    %248 = vector.extract_strided_slice %246 {offsets = [0, 384], sizes = [16, 384], strides = [1, 1]} : vector<16x768xf32> to vector<16x384xf32>
    %c4 = arith.constant 4 : index
    %c0_71 = arith.constant 0 : index
    %c0_72 = arith.constant 0 : index
    %249 = vector.load %arg12[%c4, %c0_71, %c0_72] : memref<8x16x384xf32, #tpu.memory_space<vmem>>, vector<1x16x384xf32>
    %250 = vector.shape_cast %249 : vector<1x16x384xf32> to vector<16x384xf32>
    %251 = vector.extract_strided_slice %250 {offsets = [0, 0], sizes = [16, 256], strides = [1, 1]} : vector<16x384xf32> to vector<16x256xf32>
    %252 = vector.extract_strided_slice %247 {offsets = [0, 0], sizes = [16, 256], strides = [1, 1]} : vector<16x384xf32> to vector<16x256xf32>
    %253 = arith.addf %251, %252 : vector<16x256xf32>
    %254 = arith.negf %253 : vector<16x256xf32>
    %255 = math.exp %254 : vector<16x256xf32>
    %cst_73 = arith.constant 1.000000e+00 : f32
    %256 = vector.broadcast %cst_73 : f32 to vector<16x256xf32>
    %257 = arith.addf %256, %255 : vector<16x256xf32>
    %258 = arith.divf %256, %257 : vector<16x256xf32>
    %259 = vector.extract_strided_slice %258 {offsets = [0, 0], sizes = [16, 128], strides = [1, 1]} : vector<16x256xf32> to vector<16x128xf32>
    %260 = vector.extract_strided_slice %258 {offsets = [0, 128], sizes = [16, 128], strides = [1, 1]} : vector<16x256xf32> to vector<16x128xf32>
    %261 = vector.extract_strided_slice %250 {offsets = [0, 256], sizes = [16, 128], strides = [1, 1]} : vector<16x384xf32> to vector<16x128xf32>
    %262 = vector.extract_strided_slice %247 {offsets = [0, 256], sizes = [16, 128], strides = [1, 1]} : vector<16x384xf32> to vector<16x128xf32>
    %263 = vector.broadcast %10 : vector<1x128xf32> to vector<16x128xf32>
    %264 = arith.addf %262, %263 : vector<16x128xf32>
    %265 = arith.mulf %259, %264 : vector<16x128xf32>
    %266 = arith.addf %261, %265 : vector<16x128xf32>
    %267 = math.tanh %266 : vector<16x128xf32>
    %cst_74 = arith.constant 1.000000e+00 : f32
    %268 = vector.broadcast %cst_74 : f32 to vector<16x128xf32>
    %269 = arith.subf %268, %260 : vector<16x128xf32>
    %270 = arith.mulf %269, %267 : vector<16x128xf32>
    %271 = arith.mulf %260, %215 : vector<16x128xf32>
    %272 = arith.addf %270, %271 : vector<16x128xf32>
    %273 = arith.truncf %272 : vector<16x128xf32> to vector<16x128xbf16>
    %c0_75 = arith.constant 0 : index
    %c0_76 = arith.constant 0 : index
    %274 = vector.load %arg6[%c0_75, %c0_76] : memref<128x384xbf16, #tpu.memory_space<vmem>>, vector<128x384xbf16>
    %cst_77 = arith.constant dense<0.000000e+00> : vector<16x384xf32>
    %275 = tpu.matmul %273, %274, %cst_77 {dimension_numbers = #tpu.dot_dimension_numbers<[1], [0], [0], [1], [0, 0, 1, 1], [], []>} : vector<16x128xbf16>, vector<128x384xbf16>, vector<16x384xf32> -> vector<16x384xf32>
    %276 = vector.broadcast %9 : vector<1x384xf32> to vector<16x384xf32>
    %277 = arith.addf %275, %276 : vector<16x384xf32>
    %278 = vector.extract_strided_slice %277 {offsets = [0, 0], sizes = [16, 256], strides = [1, 1]} : vector<16x384xf32> to vector<16x256xf32>
    %279 = vector.extract_strided_slice %248 {offsets = [0, 0], sizes = [16, 256], strides = [1, 1]} : vector<16x384xf32> to vector<16x256xf32>
    %280 = arith.addf %278, %279 : vector<16x256xf32>
    %281 = arith.negf %280 : vector<16x256xf32>
    %282 = math.exp %281 : vector<16x256xf32>
    %cst_78 = arith.constant 1.000000e+00 : f32
    %283 = vector.broadcast %cst_78 : f32 to vector<16x256xf32>
    %284 = arith.addf %283, %282 : vector<16x256xf32>
    %285 = arith.divf %283, %284 : vector<16x256xf32>
    %286 = vector.extract_strided_slice %285 {offsets = [0, 0], sizes = [16, 128], strides = [1, 1]} : vector<16x256xf32> to vector<16x128xf32>
    %287 = vector.extract_strided_slice %285 {offsets = [0, 128], sizes = [16, 128], strides = [1, 1]} : vector<16x256xf32> to vector<16x128xf32>
    %288 = vector.extract_strided_slice %277 {offsets = [0, 256], sizes = [16, 128], strides = [1, 1]} : vector<16x384xf32> to vector<16x128xf32>
    %289 = vector.extract_strided_slice %248 {offsets = [0, 256], sizes = [16, 128], strides = [1, 1]} : vector<16x384xf32> to vector<16x128xf32>
    %290 = vector.broadcast %11 : vector<1x128xf32> to vector<16x128xf32>
    %291 = arith.addf %289, %290 : vector<16x128xf32>
    %292 = arith.mulf %286, %291 : vector<16x128xf32>
    %293 = arith.addf %288, %292 : vector<16x128xf32>
    %294 = math.tanh %293 : vector<16x128xf32>
    %cst_79 = arith.constant 1.000000e+00 : f32
    %295 = vector.broadcast %cst_79 : f32 to vector<16x128xf32>
    %296 = arith.subf %295, %287 : vector<16x128xf32>
    %297 = arith.mulf %296, %294 : vector<16x128xf32>
    %298 = arith.mulf %287, %242 : vector<16x128xf32>
    %299 = arith.addf %297, %298 : vector<16x128xf32>
    %300 = arith.truncf %299 : vector<16x128xf32> to vector<16x128xbf16>
    %301 = tpu.concatenate %273, %300 in 1 : vector<16x128xbf16>, vector<16x128xbf16> -> vector<16x256xbf16>
    %c0_80 = arith.constant 0 : index
    %c0_81 = arith.constant 0 : index
    %302 = vector.load %arg3[%c0_80, %c0_81] : memref<256x768xbf16, #tpu.memory_space<vmem>>, vector<256x768xbf16>
    %cst_82 = arith.constant dense<0.000000e+00> : vector<16x768xf32>
    %303 = tpu.matmul %301, %302, %cst_82 {dimension_numbers = #tpu.dot_dimension_numbers<[1], [0], [0], [1], [0, 0, 1, 1], [], []>} : vector<16x256xbf16>, vector<256x768xbf16>, vector<16x768xf32> -> vector<16x768xf32>
    %304 = vector.extract_strided_slice %303 {offsets = [0, 0], sizes = [16, 384], strides = [1, 1]} : vector<16x768xf32> to vector<16x384xf32>
    %305 = vector.extract_strided_slice %303 {offsets = [0, 384], sizes = [16, 384], strides = [1, 1]} : vector<16x768xf32> to vector<16x384xf32>
    %c5 = arith.constant 5 : index
    %c0_83 = arith.constant 0 : index
    %c0_84 = arith.constant 0 : index
    %306 = vector.load %arg12[%c5, %c0_83, %c0_84] : memref<8x16x384xf32, #tpu.memory_space<vmem>>, vector<1x16x384xf32>
    %307 = vector.shape_cast %306 : vector<1x16x384xf32> to vector<16x384xf32>
    %308 = vector.extract_strided_slice %307 {offsets = [0, 0], sizes = [16, 256], strides = [1, 1]} : vector<16x384xf32> to vector<16x256xf32>
    %309 = vector.extract_strided_slice %304 {offsets = [0, 0], sizes = [16, 256], strides = [1, 1]} : vector<16x384xf32> to vector<16x256xf32>
    %310 = arith.addf %308, %309 : vector<16x256xf32>
    %311 = arith.negf %310 : vector<16x256xf32>
    %312 = math.exp %311 : vector<16x256xf32>
    %cst_85 = arith.constant 1.000000e+00 : f32
    %313 = vector.broadcast %cst_85 : f32 to vector<16x256xf32>
    %314 = arith.addf %313, %312 : vector<16x256xf32>
    %315 = arith.divf %313, %314 : vector<16x256xf32>
    %316 = vector.extract_strided_slice %315 {offsets = [0, 0], sizes = [16, 128], strides = [1, 1]} : vector<16x256xf32> to vector<16x128xf32>
    %317 = vector.extract_strided_slice %315 {offsets = [0, 128], sizes = [16, 128], strides = [1, 1]} : vector<16x256xf32> to vector<16x128xf32>
    %318 = vector.extract_strided_slice %307 {offsets = [0, 256], sizes = [16, 128], strides = [1, 1]} : vector<16x384xf32> to vector<16x128xf32>
    %319 = vector.extract_strided_slice %304 {offsets = [0, 256], sizes = [16, 128], strides = [1, 1]} : vector<16x384xf32> to vector<16x128xf32>
    %320 = vector.broadcast %10 : vector<1x128xf32> to vector<16x128xf32>
    %321 = arith.addf %319, %320 : vector<16x128xf32>
    %322 = arith.mulf %316, %321 : vector<16x128xf32>
    %323 = arith.addf %318, %322 : vector<16x128xf32>
    %324 = math.tanh %323 : vector<16x128xf32>
    %cst_86 = arith.constant 1.000000e+00 : f32
    %325 = vector.broadcast %cst_86 : f32 to vector<16x128xf32>
    %326 = arith.subf %325, %317 : vector<16x128xf32>
    %327 = arith.mulf %326, %324 : vector<16x128xf32>
    %328 = arith.mulf %317, %272 : vector<16x128xf32>
    %329 = arith.addf %327, %328 : vector<16x128xf32>
    %330 = arith.truncf %329 : vector<16x128xf32> to vector<16x128xbf16>
    %c0_87 = arith.constant 0 : index
    %c0_88 = arith.constant 0 : index
    %331 = vector.load %arg6[%c0_87, %c0_88] : memref<128x384xbf16, #tpu.memory_space<vmem>>, vector<128x384xbf16>
    %cst_89 = arith.constant dense<0.000000e+00> : vector<16x384xf32>
    %332 = tpu.matmul %330, %331, %cst_89 {dimension_numbers = #tpu.dot_dimension_numbers<[1], [0], [0], [1], [0, 0, 1, 1], [], []>} : vector<16x128xbf16>, vector<128x384xbf16>, vector<16x384xf32> -> vector<16x384xf32>
    %333 = vector.broadcast %9 : vector<1x384xf32> to vector<16x384xf32>
    %334 = arith.addf %332, %333 : vector<16x384xf32>
    %335 = vector.extract_strided_slice %334 {offsets = [0, 0], sizes = [16, 256], strides = [1, 1]} : vector<16x384xf32> to vector<16x256xf32>
    %336 = vector.extract_strided_slice %305 {offsets = [0, 0], sizes = [16, 256], strides = [1, 1]} : vector<16x384xf32> to vector<16x256xf32>
    %337 = arith.addf %335, %336 : vector<16x256xf32>
    %338 = arith.negf %337 : vector<16x256xf32>
    %339 = math.exp %338 : vector<16x256xf32>
    %cst_90 = arith.constant 1.000000e+00 : f32
    %340 = vector.broadcast %cst_90 : f32 to vector<16x256xf32>
    %341 = arith.addf %340, %339 : vector<16x256xf32>
    %342 = arith.divf %340, %341 : vector<16x256xf32>
    %343 = vector.extract_strided_slice %342 {offsets = [0, 0], sizes = [16, 128], strides = [1, 1]} : vector<16x256xf32> to vector<16x128xf32>
    %344 = vector.extract_strided_slice %342 {offsets = [0, 128], sizes = [16, 128], strides = [1, 1]} : vector<16x256xf32> to vector<16x128xf32>
    %345 = vector.extract_strided_slice %334 {offsets = [0, 256], sizes = [16, 128], strides = [1, 1]} : vector<16x384xf32> to vector<16x128xf32>
    %346 = vector.extract_strided_slice %305 {offsets = [0, 256], sizes = [16, 128], strides = [1, 1]} : vector<16x384xf32> to vector<16x128xf32>
    %347 = vector.broadcast %11 : vector<1x128xf32> to vector<16x128xf32>
    %348 = arith.addf %346, %347 : vector<16x128xf32>
    %349 = arith.mulf %343, %348 : vector<16x128xf32>
    %350 = arith.addf %345, %349 : vector<16x128xf32>
    %351 = math.tanh %350 : vector<16x128xf32>
    %cst_91 = arith.constant 1.000000e+00 : f32
    %352 = vector.broadcast %cst_91 : f32 to vector<16x128xf32>
    %353 = arith.subf %352, %344 : vector<16x128xf32>
    %354 = arith.mulf %353, %351 : vector<16x128xf32>
    %355 = arith.mulf %344, %299 : vector<16x128xf32>
    %356 = arith.addf %354, %355 : vector<16x128xf32>
    %357 = arith.truncf %356 : vector<16x128xf32> to vector<16x128xbf16>
    %358 = tpu.concatenate %330, %357 in 1 : vector<16x128xbf16>, vector<16x128xbf16> -> vector<16x256xbf16>
    %c0_92 = arith.constant 0 : index
    %c0_93 = arith.constant 0 : index
    %359 = vector.load %arg3[%c0_92, %c0_93] : memref<256x768xbf16, #tpu.memory_space<vmem>>, vector<256x768xbf16>
    %cst_94 = arith.constant dense<0.000000e+00> : vector<16x768xf32>
    %360 = tpu.matmul %358, %359, %cst_94 {dimension_numbers = #tpu.dot_dimension_numbers<[1], [0], [0], [1], [0, 0, 1, 1], [], []>} : vector<16x256xbf16>, vector<256x768xbf16>, vector<16x768xf32> -> vector<16x768xf32>
    %361 = vector.extract_strided_slice %360 {offsets = [0, 0], sizes = [16, 384], strides = [1, 1]} : vector<16x768xf32> to vector<16x384xf32>
    %362 = vector.extract_strided_slice %360 {offsets = [0, 384], sizes = [16, 384], strides = [1, 1]} : vector<16x768xf32> to vector<16x384xf32>
    %c6 = arith.constant 6 : index
    %c0_95 = arith.constant 0 : index
    %c0_96 = arith.constant 0 : index
    %363 = vector.load %arg12[%c6, %c0_95, %c0_96] : memref<8x16x384xf32, #tpu.memory_space<vmem>>, vector<1x16x384xf32>
    %364 = vector.shape_cast %363 : vector<1x16x384xf32> to vector<16x384xf32>
    %365 = vector.extract_strided_slice %364 {offsets = [0, 0], sizes = [16, 256], strides = [1, 1]} : vector<16x384xf32> to vector<16x256xf32>
    %366 = vector.extract_strided_slice %361 {offsets = [0, 0], sizes = [16, 256], strides = [1, 1]} : vector<16x384xf32> to vector<16x256xf32>
    %367 = arith.addf %365, %366 : vector<16x256xf32>
    %368 = arith.negf %367 : vector<16x256xf32>
    %369 = math.exp %368 : vector<16x256xf32>
    %cst_97 = arith.constant 1.000000e+00 : f32
    %370 = vector.broadcast %cst_97 : f32 to vector<16x256xf32>
    %371 = arith.addf %370, %369 : vector<16x256xf32>
    %372 = arith.divf %370, %371 : vector<16x256xf32>
    %373 = vector.extract_strided_slice %372 {offsets = [0, 0], sizes = [16, 128], strides = [1, 1]} : vector<16x256xf32> to vector<16x128xf32>
    %374 = vector.extract_strided_slice %372 {offsets = [0, 128], sizes = [16, 128], strides = [1, 1]} : vector<16x256xf32> to vector<16x128xf32>
    %375 = vector.extract_strided_slice %364 {offsets = [0, 256], sizes = [16, 128], strides = [1, 1]} : vector<16x384xf32> to vector<16x128xf32>
    %376 = vector.extract_strided_slice %361 {offsets = [0, 256], sizes = [16, 128], strides = [1, 1]} : vector<16x384xf32> to vector<16x128xf32>
    %377 = vector.broadcast %10 : vector<1x128xf32> to vector<16x128xf32>
    %378 = arith.addf %376, %377 : vector<16x128xf32>
    %379 = arith.mulf %373, %378 : vector<16x128xf32>
    %380 = arith.addf %375, %379 : vector<16x128xf32>
    %381 = math.tanh %380 : vector<16x128xf32>
    %cst_98 = arith.constant 1.000000e+00 : f32
    %382 = vector.broadcast %cst_98 : f32 to vector<16x128xf32>
    %383 = arith.subf %382, %374 : vector<16x128xf32>
    %384 = arith.mulf %383, %381 : vector<16x128xf32>
    %385 = arith.mulf %374, %329 : vector<16x128xf32>
    %386 = arith.addf %384, %385 : vector<16x128xf32>
    %387 = arith.truncf %386 : vector<16x128xf32> to vector<16x128xbf16>
    %c0_99 = arith.constant 0 : index
    %c0_100 = arith.constant 0 : index
    %388 = vector.load %arg6[%c0_99, %c0_100] : memref<128x384xbf16, #tpu.memory_space<vmem>>, vector<128x384xbf16>
    %cst_101 = arith.constant dense<0.000000e+00> : vector<16x384xf32>
    %389 = tpu.matmul %387, %388, %cst_101 {dimension_numbers = #tpu.dot_dimension_numbers<[1], [0], [0], [1], [0, 0, 1, 1], [], []>} : vector<16x128xbf16>, vector<128x384xbf16>, vector<16x384xf32> -> vector<16x384xf32>
    %390 = vector.broadcast %9 : vector<1x384xf32> to vector<16x384xf32>
    %391 = arith.addf %389, %390 : vector<16x384xf32>
    %392 = vector.extract_strided_slice %391 {offsets = [0, 0], sizes = [16, 256], strides = [1, 1]} : vector<16x384xf32> to vector<16x256xf32>
    %393 = vector.extract_strided_slice %362 {offsets = [0, 0], sizes = [16, 256], strides = [1, 1]} : vector<16x384xf32> to vector<16x256xf32>
    %394 = arith.addf %392, %393 : vector<16x256xf32>
    %395 = arith.negf %394 : vector<16x256xf32>
    %396 = math.exp %395 : vector<16x256xf32>
    %cst_102 = arith.constant 1.000000e+00 : f32
    %397 = vector.broadcast %cst_102 : f32 to vector<16x256xf32>
    %398 = arith.addf %397, %396 : vector<16x256xf32>
    %399 = arith.divf %397, %398 : vector<16x256xf32>
    %400 = vector.extract_strided_slice %399 {offsets = [0, 0], sizes = [16, 128], strides = [1, 1]} : vector<16x256xf32> to vector<16x128xf32>
    %401 = vector.extract_strided_slice %399 {offsets = [0, 128], sizes = [16, 128], strides = [1, 1]} : vector<16x256xf32> to vector<16x128xf32>
    %402 = vector.extract_strided_slice %391 {offsets = [0, 256], sizes = [16, 128], strides = [1, 1]} : vector<16x384xf32> to vector<16x128xf32>
    %403 = vector.extract_strided_slice %362 {offsets = [0, 256], sizes = [16, 128], strides = [1, 1]} : vector<16x384xf32> to vector<16x128xf32>
    %404 = vector.broadcast %11 : vector<1x128xf32> to vector<16x128xf32>
    %405 = arith.addf %403, %404 : vector<16x128xf32>
    %406 = arith.mulf %400, %405 : vector<16x128xf32>
    %407 = arith.addf %402, %406 : vector<16x128xf32>
    %408 = math.tanh %407 : vector<16x128xf32>
    %cst_103 = arith.constant 1.000000e+00 : f32
    %409 = vector.broadcast %cst_103 : f32 to vector<16x128xf32>
    %410 = arith.subf %409, %401 : vector<16x128xf32>
    %411 = arith.mulf %410, %408 : vector<16x128xf32>
    %412 = arith.mulf %401, %356 : vector<16x128xf32>
    %413 = arith.addf %411, %412 : vector<16x128xf32>
    %414 = arith.truncf %413 : vector<16x128xf32> to vector<16x128xbf16>
    %415 = tpu.concatenate %387, %414 in 1 : vector<16x128xbf16>, vector<16x128xbf16> -> vector<16x256xbf16>
    %c0_104 = arith.constant 0 : index
    %c0_105 = arith.constant 0 : index
    %416 = vector.load %arg3[%c0_104, %c0_105] : memref<256x768xbf16, #tpu.memory_space<vmem>>, vector<256x768xbf16>
    %cst_106 = arith.constant dense<0.000000e+00> : vector<16x768xf32>
    %417 = tpu.matmul %415, %416, %cst_106 {dimension_numbers = #tpu.dot_dimension_numbers<[1], [0], [0], [1], [0, 0, 1, 1], [], []>} : vector<16x256xbf16>, vector<256x768xbf16>, vector<16x768xf32> -> vector<16x768xf32>
    %418 = vector.extract_strided_slice %417 {offsets = [0, 0], sizes = [16, 384], strides = [1, 1]} : vector<16x768xf32> to vector<16x384xf32>
    %419 = vector.extract_strided_slice %417 {offsets = [0, 384], sizes = [16, 384], strides = [1, 1]} : vector<16x768xf32> to vector<16x384xf32>
    %c7 = arith.constant 7 : index
    %c0_107 = arith.constant 0 : index
    %c0_108 = arith.constant 0 : index
    %420 = vector.load %arg12[%c7, %c0_107, %c0_108] : memref<8x16x384xf32, #tpu.memory_space<vmem>>, vector<1x16x384xf32>
    %421 = vector.shape_cast %420 : vector<1x16x384xf32> to vector<16x384xf32>
    %422 = vector.extract_strided_slice %421 {offsets = [0, 0], sizes = [16, 256], strides = [1, 1]} : vector<16x384xf32> to vector<16x256xf32>
    %423 = vector.extract_strided_slice %418 {offsets = [0, 0], sizes = [16, 256], strides = [1, 1]} : vector<16x384xf32> to vector<16x256xf32>
    %424 = arith.addf %422, %423 : vector<16x256xf32>
    %425 = arith.negf %424 : vector<16x256xf32>
    %426 = math.exp %425 : vector<16x256xf32>
    %cst_109 = arith.constant 1.000000e+00 : f32
    %427 = vector.broadcast %cst_109 : f32 to vector<16x256xf32>
    %428 = arith.addf %427, %426 : vector<16x256xf32>
    %429 = arith.divf %427, %428 : vector<16x256xf32>
    %430 = vector.extract_strided_slice %429 {offsets = [0, 0], sizes = [16, 128], strides = [1, 1]} : vector<16x256xf32> to vector<16x128xf32>
    %431 = vector.extract_strided_slice %429 {offsets = [0, 128], sizes = [16, 128], strides = [1, 1]} : vector<16x256xf32> to vector<16x128xf32>
    %432 = vector.extract_strided_slice %421 {offsets = [0, 256], sizes = [16, 128], strides = [1, 1]} : vector<16x384xf32> to vector<16x128xf32>
    %433 = vector.extract_strided_slice %418 {offsets = [0, 256], sizes = [16, 128], strides = [1, 1]} : vector<16x384xf32> to vector<16x128xf32>
    %434 = vector.broadcast %10 : vector<1x128xf32> to vector<16x128xf32>
    %435 = arith.addf %433, %434 : vector<16x128xf32>
    %436 = arith.mulf %430, %435 : vector<16x128xf32>
    %437 = arith.addf %432, %436 : vector<16x128xf32>
    %438 = math.tanh %437 : vector<16x128xf32>
    %cst_110 = arith.constant 1.000000e+00 : f32
    %439 = vector.broadcast %cst_110 : f32 to vector<16x128xf32>
    %440 = arith.subf %439, %431 : vector<16x128xf32>
    %441 = arith.mulf %440, %438 : vector<16x128xf32>
    %442 = arith.mulf %431, %386 : vector<16x128xf32>
    %443 = arith.addf %441, %442 : vector<16x128xf32>
    %444 = arith.truncf %443 : vector<16x128xf32> to vector<16x128xbf16>
    %c0_111 = arith.constant 0 : index
    %c0_112 = arith.constant 0 : index
    %445 = vector.load %arg6[%c0_111, %c0_112] : memref<128x384xbf16, #tpu.memory_space<vmem>>, vector<128x384xbf16>
    %cst_113 = arith.constant dense<0.000000e+00> : vector<16x384xf32>
    %446 = tpu.matmul %444, %445, %cst_113 {dimension_numbers = #tpu.dot_dimension_numbers<[1], [0], [0], [1], [0, 0, 1, 1], [], []>} : vector<16x128xbf16>, vector<128x384xbf16>, vector<16x384xf32> -> vector<16x384xf32>
    %447 = vector.broadcast %9 : vector<1x384xf32> to vector<16x384xf32>
    %448 = arith.addf %446, %447 : vector<16x384xf32>
    %449 = vector.extract_strided_slice %448 {offsets = [0, 0], sizes = [16, 256], strides = [1, 1]} : vector<16x384xf32> to vector<16x256xf32>
    %450 = vector.extract_strided_slice %419 {offsets = [0, 0], sizes = [16, 256], strides = [1, 1]} : vector<16x384xf32> to vector<16x256xf32>
    %451 = arith.addf %449, %450 : vector<16x256xf32>
    %452 = arith.negf %451 : vector<16x256xf32>
    %453 = math.exp %452 : vector<16x256xf32>
    %cst_114 = arith.constant 1.000000e+00 : f32
    %454 = vector.broadcast %cst_114 : f32 to vector<16x256xf32>
    %455 = arith.addf %454, %453 : vector<16x256xf32>
    %456 = arith.divf %454, %455 : vector<16x256xf32>
    %457 = vector.extract_strided_slice %456 {offsets = [0, 0], sizes = [16, 128], strides = [1, 1]} : vector<16x256xf32> to vector<16x128xf32>
    %458 = vector.extract_strided_slice %456 {offsets = [0, 128], sizes = [16, 128], strides = [1, 1]} : vector<16x256xf32> to vector<16x128xf32>
    %459 = vector.extract_strided_slice %448 {offsets = [0, 256], sizes = [16, 128], strides = [1, 1]} : vector<16x384xf32> to vector<16x128xf32>
    %460 = vector.extract_strided_slice %419 {offsets = [0, 256], sizes = [16, 128], strides = [1, 1]} : vector<16x384xf32> to vector<16x128xf32>
    %461 = vector.broadcast %11 : vector<1x128xf32> to vector<16x128xf32>
    %462 = arith.addf %460, %461 : vector<16x128xf32>
    %463 = arith.mulf %457, %462 : vector<16x128xf32>
    %464 = arith.addf %459, %463 : vector<16x128xf32>
    %465 = math.tanh %464 : vector<16x128xf32>
    %cst_115 = arith.constant 1.000000e+00 : f32
    %466 = vector.broadcast %cst_115 : f32 to vector<16x128xf32>
    %467 = arith.subf %466, %458 : vector<16x128xf32>
    %468 = arith.mulf %467, %465 : vector<16x128xf32>
    %469 = arith.mulf %458, %413 : vector<16x128xf32>
    %470 = arith.addf %468, %469 : vector<16x128xf32>
    %471 = arith.truncf %470 : vector<16x128xf32> to vector<16x128xbf16>
    %c0_116 = arith.constant 0 : index
    %c0_117 = arith.constant 0 : index
    %472 = vector.load %arg9[%c0_116, %c0_117] : memref<128x128xbf16, #tpu.memory_space<vmem>>, vector<128x128xbf16>
    %cst_118 = arith.constant dense<0.000000e+00> : vector<16x128xf32>
    %473 = tpu.matmul %471, %472, %cst_118 {dimension_numbers = #tpu.dot_dimension_numbers<[1], [0], [0], [1], [0, 0, 1, 1], [], []>} : vector<16x128xbf16>, vector<128x128xbf16>, vector<16x128xf32> -> vector<16x128xf32>
    %c0_119 = arith.constant 0 : index
    %c0_120 = arith.constant 0 : index
    %474 = vector.load %arg10[%c0_119, %c0_120] : memref<1x128xf32, #tpu.memory_space<vmem>>, vector<1x128xf32>
    %475 = vector.broadcast %474 : vector<1x128xf32> to vector<16x128xf32>
    %476 = arith.addf %473, %475 : vector<16x128xf32>
    %c0_121 = arith.constant 0 : index
    %c0_122 = arith.constant 0 : index
    %477 = vector.load %arg11[%c0_121, %c0_122] : memref<16x128xf32, #tpu.memory_space<vmem>>, vector<16x128xf32>
    tpu.vector_store %arg11[%c0_121, %c0_122], %476 {strides = array<i32>} : memref<16x128xf32, #tpu.memory_space<vmem>>, vector<16x128xf32>,
    return
  }
  func.func @transform_0(%arg0: i32) -> (i32, i32, i32) {
    %c0_i32 = arith.constant 0 : i32
    %c0_i32_0 = arith.constant 0 : i32
    %c0_i32_1 = arith.constant 0 : i32
    return %c0_i32, %arg0, %c0_i32_0 : i32, i32, i32
  }
  func.func @transform_1(%arg0: i32) -> (i32, i32) {
    %c0_i32 = arith.constant 0 : i32
    %c0_i32_0 = arith.constant 0 : i32
    %c0_i32_1 = arith.constant 0 : i32
    return %c0_i32, %c0_i32_0 : i32, i32
  }
  func.func @transform_2(%arg0: i32) -> (i32, i32) {
    %c0_i32 = arith.constant 0 : i32
    %c0_i32_0 = arith.constant 0 : i32
    %c0_i32_1 = arith.constant 0 : i32
    return %c0_i32, %c0_i32_0 : i32, i32
  }
  func.func @transform_3(%arg0: i32) -> (i32, i32) {
    %c0_i32 = arith.constant 0 : i32
    %c0_i32_0 = arith.constant 0 : i32
    %c0_i32_1 = arith.constant 0 : i32
    return %c0_i32, %c0_i32_0 : i32, i32
  }
  func.func @transform_4(%arg0: i32) -> (i32, i32) {
    %c0_i32 = arith.constant 0 : i32
    %c0_i32_0 = arith.constant 0 : i32
    %c0_i32_1 = arith.constant 0 : i32
    return %c0_i32, %c0_i32_0 : i32, i32
  }
  func.func @transform_5(%arg0: i32) -> (i32, i32) {
    %c0_i32 = arith.constant 0 : i32
    %c0_i32_0 = arith.constant 0 : i32
    %c0_i32_1 = arith.constant 0 : i32
    return %c0_i32, %c0_i32_0 : i32, i32
  }
  func.func @transform_6(%arg0: i32) -> (i32, i32) {
    %c0_i32 = arith.constant 0 : i32
    %c0_i32_0 = arith.constant 0 : i32
    %c0_i32_1 = arith.constant 0 : i32
    return %c0_i32, %c0_i32_0 : i32, i32
  }
  func.func @transform_7(%arg0: i32) -> (i32, i32) {
    %c0_i32 = arith.constant 0 : i32
    %c0_i32_0 = arith.constant 0 : i32
    %c0_i32_1 = arith.constant 0 : i32
    return %c0_i32, %c0_i32_0 : i32, i32
  }
  func.func @transform_8(%arg0: i32) -> (i32, i32) {
    %c0_i32 = arith.constant 0 : i32
    %c0_i32_0 = arith.constant 0 : i32
    %c0_i32_1 = arith.constant 0 : i32
    return %c0_i32, %c0_i32_0 : i32, i32
  }
  func.func @transform_9(%arg0: i32) -> (i32, i32) {
    %c0_i32 = arith.constant 0 : i32
    %c0_i32_0 = arith.constant 0 : i32
    %c0_i32_1 = arith.constant 0 : i32
    return %c0_i32, %c0_i32_0 : i32, i32
  }
  func.func @transform_10(%arg0: i32) -> (i32, i32) {
    %c0_i32 = arith.constant 0 : i32
    %c0_i32_0 = arith.constant 0 : i32
    return %arg0, %c0_i32 : i32, i32
  }
}

</mosaic_0001>

<bundles_post_ra>
// kernel: rnn_classifier_forward.1
= control target key start
LH: loop header
LB: loop body
LE: loop exit
PB: predicated region body
PF: predicated region fallthrough
CT: control target
= control target key end

     0   :  { %15 = vsyncpa [#allocation4], 0  ;;  %s8838_s0 = inlined_call_operand.vmem [shape: bf16[8,16,128], index: 0, kind: input, shape index: {}]   ;;  %s8839_s1 = inlined_call_operand.hbm [shape: bf16[128,384], index: 1, kind: input, shape index: {}]   ;;  %s8840_s2 = inlined_call_operand.vmem [shape: bf16[256,768], index: 2, kind: input, shape index: {}]   ;;  %s8841_s3 = inlined_call_operand.vmem [shape: f32[1,384], index: 3, kind: input, shape index: {}]   ;;  %s8842_s4 = inlined_call_operand.vmem [shape: f32[1,128], index: 4, kind: input, shape index: {}]   ;;  %s8843_s5 = inlined_call_operand.hbm [shape: bf16[128,384], index: 5, kind: input, shape index: {}]   ;;  %s8844_s6 = inlined_call_operand.vmem [shape: f32[1,384], index: 6, kind: input, shape index: {}]   ;;  %s8845_s7 = inlined_call_operand.vmem [shape: f32[1,128], index: 7, kind: input, shape index: {}]   ;;  %s8846_s8 = inlined_call_operand.hbm [shape: bf16[128,128], index: 8, kind: input, shape index: {}]   ;;  %s8847_s9 = inlined_call_operand.vmem [shape: f32[1,128], index: 9, kind: input, shape index: {}]   ;;  %s8848_s10 = inlined_call_operand.vmem [shape: f32[16,128], index: 10, kind: output, shape index: {}]  }
   0x1   :  { %16 = vsyncpa [#allocation6], 0  ;;  %s42_s15 = sshll.u32 %s8843_s5, 4  ;;  %s6014_s16 = smov [#allocation5]   ;;  %s43_s15 = int_to_ptr.hbm [resolvable:$true] %s42_s15 }
   0x2   :  { %s44_s17 = sshll.u32 %s6014_s16, 4  ;;  %s23_s20 = sshll.u32 %s8839_s1, 4  ;;  %s45_s17 = int_to_ptr.vmem [resolvable:$true] %s44_s17  ;;  %s24_s20 = int_to_ptr.hbm [resolvable:$true] %s23_s20 }
   0x3   :  { %s6015_s21 = smov 192   ;;  %s6016_s22 = smov 12  }
   0x4   :  { %50 = dma.hbm_to_vmem [thread:$0]  %s43_s15, 3072, %s45_s17, [#allocation6], %s6015_s21, %s6015_s21, %s6016_s22  }
   0x5   :  { %s6017_s23 = smov [#allocation3]   ;;  %s59_s27 = sshll.u32 %s8846_s8, 4  ;;  %s60_s27 = int_to_ptr.hbm [resolvable:$true] %s59_s27 }
   0x6   :  { %s25_s24 = sshll.u32 %s6017_s23, 4  ;;  %s6018_s5 = smov [#allocation7]   ;;  %s26_s24 = int_to_ptr.vmem [resolvable:$true] %s25_s24 }
   0x7   :  { %31 = dma.hbm_to_vmem [thread:$0]  %s24_s20, 3072, %s26_s24, [#allocation4], %s6015_s21, %s6015_s21, %s6016_s22  }
   0x8   :  { %s61_s28 = sshll.u32 %s6018_s5, 4  ;;  %s6019_s29 = smov 64   ;;  %s62_s28 = int_to_ptr.vmem [resolvable:$true] %s61_s28 }
   0x9   :  { %s6020_s30 = smov 4  }
   0xa   :  { %67 = dma.hbm_to_vmem [thread:$0]  %s60_s27, 1024, %s62_s28, [#allocation6], %s6019_s29, %s6019_s29, %s6020_s30  }
   0xb   :  { %6010 = dma.done.wait [#allocation4], 3072  }
   0xc   :  { %6011 = vsyncadd [#allocation4], 4294964224 }
   0xd   :  { %6012 = dma.done.wait [#allocation6], 4096  }
   0xe   :  { %6013 = vsyncadd [#allocation6], 4294963200  ;;  %v4855_v0 = vld [vmem:[#allocation3 + $0xa8] sm:$0xf]  ;;  %v5471_v1 = vld [vmem:[#allocation3 + $0xb0] sm:$0xf0] }
   0xf   :  { %v5470_v2 = vld [vmem:[#allocation3 + $0xac] sm:$0xf]  ;;  %v4856_v3 = vor.u32 %v5471_v1, %v4855_v0  ;;  %v4857_v4 = vld [vmem:[#allocation3 + $0xb4] sm:$0xf0]  ;;  %v5035_v5 = vld [vmem:[%s8840_s2 + $0x150] sm:$0xf] }
  0x10   :  { %v5518_v6 = vld [vmem:[%s8840_s2 + $0x164] sm:$0xf0]  ;;  %v4860_v7 = vor.u32 %v5470_v2, %v4857_v4  ;;  %v4843_v9 = vld [vmem:[#allocation3 + $0x90] sm:$0xf]  ;;  %v5468_v10 = vld [vmem:[#allocation3 + $0x98] sm:$0xf0] }
  0x11   :  { %v6092_v8 = vor.u32 %v5518_v6, %v5035_v5  ;;  %v5467_v11 = vld [vmem:[#allocation3 + $0x94] sm:$0xf]  ;;  %315 = vmatpush.bf16.msra.mxu0 %v4856_v3  ;;  %v4844_v12 = vor.u32 %v5468_v10, %v4843_v9  ;;  %v4845_v13 = vld [vmem:[#allocation3 + $0x9c] sm:$0xf0]  ;;  %v5512_v15 = vld [vmem:[%s8840_s2 + $0x134] sm:$0xf0] }
  0x12   :  { %v5011_v14 = vld [vmem:[%s8840_s2 + $0x120] sm:$0xf]  ;;  %364 = vmatpush.bf16.msra.mxu1 %v4860_v7  ;;  %v4848_v16 = vor.u32 %v5467_v11, %v4845_v13  ;;  %v4831_v18 = vld [vmem:[#allocation3 + $0x78] sm:$0xf]  ;;  %v5465_v19 = vld [vmem:[#allocation3 + $0x80] sm:$0xf0] }
  0x13   :  { %9121 = vst [vmem:[#allocation10_spill] sm:$0xff] %v6092_v8  ;;  %1089 = vmatpush.bf16.msra.mxu3 %v6092_v8  ;;  %v6101_v17 = vor.u32 %v5512_v15, %v5011_v14  ;;  %v5464_v20 = vld [vmem:[#allocation3 + $0x7c] sm:$0xf]  ;;  %v4833_v21 = vld [vmem:[#allocation3 + $0x84] sm:$0xf0]  ;;  %v4832_v24 = vor.u32 %v5465_v19, %v4831_v18 }
  0x14   :  { %v4987_v22 = vld [vmem:[%s8840_s2 + $0xf0] sm:$0xf]  ;;  %v5506_v23 = vld [vmem:[%s8840_s2 + $0x104] sm:$0xf0]  ;;  %v4836_v25 = vor.u32 %v5464_v20, %v4833_v21  ;;  %v4819_v27 = vld [vmem:[#allocation3 + $0x60] sm:$0xf] }
  0x15   :  { %9122 = vst [vmem:[#allocation11_spill] sm:$0xff] %v6101_v17  ;;  %316 = vmatpush.bf16.msra.mxu0 %v4844_v12  ;;  %v6110_v26 = vor.u32 %v5506_v23, %v4987_v22  ;;  %v5462_v28 = vld [vmem:[#allocation3 + $0x68] sm:$0xf0]  ;;  %v5461_v29 = vld [vmem:[#allocation3 + $0x64] sm:$0xf] }
  0x16   :  { %365 = vmatpush.bf16.msra.mxu1 %v4848_v16  ;;  %v4821_v30 = vld [vmem:[#allocation3 + $0x6c] sm:$0xf0]  ;;  %v4963_v31 = vld [vmem:[%s8840_s2 + $0xc0] sm:$0xf]  ;;  %v5500_v32 = vld [vmem:[%s8840_s2 + $0xd4] sm:$0xf0]  ;;  %v4820_v33 = vor.u32 %v5462_v28, %v4819_v27 }
  0x17   :  { %1090 = vmatpush.bf16.msra.mxu3 %v6101_v17  ;;  %9123 = vst [vmem:[#allocation12_spill] sm:$0xff] %v6110_v26  ;;  %v4824_v34 = vor.u32 %v5461_v29, %v4821_v30  ;;  %v6119_v35 = vor.u32 %v5500_v32, %v4963_v31  ;;  %v4807_v36 = vld [vmem:[#allocation3 + $0x48] sm:$0xf]  ;;  %v5459_v37 = vld [vmem:[#allocation3 + $0x50] sm:$0xf0]  ;;  %v6180_v16 = vld [vmem:[%s8838_s0] sm:$0xff] }
  0x18   :  { %v5458_v38 = vld [vmem:[#allocation3 + $0x4c] sm:$0xf]  ;;  %v4809_v39 = vld [vmem:[#allocation3 + $0x54] sm:$0xf0]  ;;  %v4939_v40 = vld [vmem:[%s8840_s2 + $0x90] sm:$0xf]  ;;  %v4808_v42 = vor.u32 %v5459_v37, %v4807_v36 }
  0x19   :  { %317 = vmatpush.bf16.msra.mxu0 %v4832_v24  ;;  %9124 = vst [vmem:[#allocation13_spill] sm:$0xff] %v6119_v35  ;;  %v5494_v41 = vld [vmem:[%s8840_s2 + $0xa4] sm:$0xf0]  ;;  %v4812_v43 = vor.u32 %v5458_v38, %v4809_v39  ;;  %v4795_v45 = vld [vmem:[#allocation3 + $0x30] sm:$0xf]  ;;  %v8849_v32 = vmov 0  }
  0x1a   :  { %366 = vmatpush.bf16.msra.mxu1 %v4836_v25  ;;  %v6128_v44 = vor.u32 %v5494_v41, %v4939_v40  ;;  %v5456_v46 = vld [vmem:[#allocation3 + $0x38] sm:$0xf0]  ;;  %v5455_v47 = vld [vmem:[#allocation3 + $0x34] sm:$0xf]  ;;  %v4797_v48 = vld [vmem:[#allocation3 + $0x3c] sm:$0xf0] }
  0x1b   :  { %1091 = vmatpush.bf16.msra.mxu3 %v6110_v26  ;;  %v4915_v49 = vld [vmem:[%s8840_s2 + $0x60] sm:$0xf]  ;;  %v5488_v50 = vld [vmem:[%s8840_s2 + $0x74] sm:$0xf0]  ;;  %v4796_v51 = vor.u32 %v5456_v46, %v4795_v45  ;;  %v4800_v52 = vor.u32 %v5455_v47, %v4797_v48  ;;  %v5453_v55 = vld [vmem:[#allocation3 + $0x20] sm:$0xf0] }
  0x1c   :  { %9125 = vst [vmem:[#allocation14_spill] sm:$0xff] %v6128_v44  ;;  %v6137_v53 = vor.u32 %v5488_v50, %v4915_v49  ;;  %v4783_v54 = vld [vmem:[#allocation3 + $0x18] sm:$0xf]  ;;  %v5452_v56 = vld [vmem:[#allocation3 + $0x1c] sm:$0xf]  ;;  %v6267_v48 = vld [vmem:[%s8838_s0 + $0x8] sm:$0xff] }
  0x1d   :  { %318 = vmatpush.bf16.msra.mxu0 %v4820_v33  ;;  %v4785_v57 = vld [vmem:[#allocation3 + $0x24] sm:$0xf0]  ;;  %v4891_v58 = vld [vmem:[%s8840_s2 + $0x30] sm:$0xf]  ;;  %v4771_v60 = vld [vmem:[#allocation3] sm:$0xf]  ;;  %v4784_v61 = vor.u32 %v5453_v55, %v4783_v54 }
  0x1e   :  { %367 = vmatpush.bf16.msra.mxu1 %v4824_v34  ;;  %9126 = vst [vmem:[#allocation15_spill] sm:$0xff] %v6137_v53  ;;  %v5482_v59 = vld [vmem:[%s8840_s2 + $0x44] sm:$0xf0]  ;;  %v5450_v62 = vld [vmem:[#allocation3 + $0x8] sm:$0xf0]  ;;  %v4788_v1 = vor.u32 %v5452_v56, %v4785_v57 }
  0x1f   :  { %1092 = vmatpush.bf16.msra.mxu3 %v6119_v35  ;;  %v5449_v63 = vld [vmem:[#allocation3 + $0x4] sm:$0xf]  ;;  %v4773_v0 = vld [vmem:[#allocation3 + $0xc] sm:$0xf0]  ;;  %v6146_v2 = vor.u32 %v5482_v59, %v4891_v58  ;;  %v4867_v3 = vld [vmem:[%s8840_s2] sm:$0xf]  ;;  %v4772_v10 = vor.u32 %v5450_v62, %v4771_v60 }
  0x20   :  { %v5476_v4 = vld [vmem:[%s8840_s2 + $0x14] sm:$0xf0]  ;;  %v5227_v5 = vld [vmem:[%s8840_s2 + $0x2d0] sm:$0xf]  ;;  %v5566_v6 = vld [vmem:[%s8840_s2 + $0x2e4] sm:$0xf0]  ;;  %v4776_v13 = vor.u32 %v5449_v63, %v4773_v0 }
  0x21   :  { %319 = vmatpush.bf16.msra.mxu0 %v4808_v42  ;;  %9127 = vst [vmem:[#allocation16_spill] sm:$0xff] %v6146_v2  ;;  %v5043_v7 = vld [vmem:[%s8840_s2 + $0x158] sm:$0xf]  ;;  %v5519_v9 = vld [vmem:[%s8840_s2 + $0x16c] sm:$0xf0]  ;;  %v6173_v14 = vor.u32 %v5476_v4, %v4867_v3  ;;  %v6175_v15 = vor.u32 %v5566_v6, %v5227_v5 }
  0x22   :  { %368 = vmatpush.bf16.msra.mxu1 %v4812_v43  ;;  %v5235_v11 = vld [vmem:[%s8840_s2 + $0x2d8] sm:$0xf]  ;;  %v5567_v12 = vld [vmem:[%s8840_s2 + $0x2ec] sm:$0xf0]  ;;  %v6182_v18 = vor.u32 %v5519_v9, %v5043_v7  ;;  %v5203_v19 = vld [vmem:[%s8840_s2 + $0x2a0] sm:$0xf] }
  0x23   :  { %1093 = vmatpush.bf16.msra.mxu3 %v6128_v44  ;;  %9128 = vst [vmem:[#allocation17_spill] sm:$0xff] %v6173_v14  ;;  %v6187_v20 = vor.u32 %v5567_v12, %v5235_v11  ;;  %v5560_v21 = vld [vmem:[%s8840_s2 + $0x2b4] sm:$0xf0]  ;;  %v5019_v22 = vld [vmem:[%s8840_s2 + $0x128] sm:$0xf]  ;;  %v6337_v9 = vld [vmem:[%s8838_s0 + $0x10] sm:$0xff] }
  0x24   :  { %9129 = vst [vmem:[#allocation18_spill] sm:$0xff] %v6175_v15  ;;  %v5513_v23 = vld [vmem:[%s8840_s2 + $0x13c] sm:$0xf0]  ;;  %v5211_v24 = vld [vmem:[%s8840_s2 + $0x2a8] sm:$0xf]  ;;  %v6207_v27 = vor.u32 %v5560_v21, %v5203_v19 }
  0x25   :  { %320 = vmatpush.bf16.msra.mxu0 %v4796_v51  ;;  %9130 = vst [vmem:[#allocation19_spill] sm:$0xff] %v6182_v18  ;;  %v5561_v25 = vld [vmem:[%s8840_s2 + $0x2bc] sm:$0xf0]  ;;  %v6209_v28 = vor.u32 %v5513_v23, %v5019_v22  ;;  %v5179_v29 = vld [vmem:[%s8840_s2 + $0x270] sm:$0xf] }
  0x26   :  { %369 = vmatpush.bf16.msra.mxu1 %v4800_v52  ;;  %9131 = vst [vmem:[#allocation20_spill] sm:$0xff] %v6187_v20  ;;  %v5554_v30 = vld [vmem:[%s8840_s2 + $0x284] sm:$0xf0]  ;;  %v6219_v31 = vor.u32 %v5561_v25, %v5211_v24  ;;  %v4995_v33 = vld [vmem:[%s8840_s2 + $0xf8] sm:$0xf] }
  0x27   :  { %1094 = vmatpush.bf16.msra.mxu3 %v6137_v53  ;;  %9132 = vst [vmem:[#allocation21_spill] sm:$0xff] %v6207_v27  ;;  %v5507_v34 = vld [vmem:[%s8840_s2 + $0x10c] sm:$0xf0]  ;;  %v5187_v36 = vld [vmem:[%s8840_s2 + $0x278] sm:$0xf]  ;;  %v6236_v38 = vor.u32 %v5554_v30, %v5179_v29 }
  0x28   :  { %9133 = vst [vmem:[#allocation22_spill] sm:$0xff] %v6209_v28  ;;  %v5555_v37 = vld [vmem:[%s8840_s2 + $0x28c] sm:$0xf0]  ;;  %v6239_v39 = vor.u32 %v5507_v34, %v4995_v33  ;;  %v5155_v40 = vld [vmem:[%s8840_s2 + $0x240] sm:$0xf] }
  0x29   :  { %321 = vmatpush.bf16.msra.mxu0 %v4784_v61  ;;  %9134 = vst [vmem:[#allocation23_spill] sm:$0xff] %v6219_v31  ;;  %v5548_v41 = vld [vmem:[%s8840_s2 + $0x254] sm:$0xf0]  ;;  %v6248_v42 = vor.u32 %v5555_v37, %v5187_v36  ;;  %v5131_v45 = vld [vmem:[%s8840_s2 + $0x210] sm:$0xf] }
  0x2a   :  { %370 = vmatpush.bf16.msra.mxu1 %v4788_v1  ;;  %9135 = vst [vmem:[#allocation24_spill] sm:$0xff] %v6236_v38  ;;  %v6251_v43 = vor.u32 %v5548_v41, %v5155_v40  ;;  %v5542_v46 = vld [vmem:[%s8840_s2 + $0x224] sm:$0xf0]  ;;  %v5107_v49 = vld [vmem:[%s8840_s2 + $0x1e0] sm:$0xf] }
  0x2b   :  { %1095 = vmatpush.bf16.msra.mxu3 %v6146_v2  ;;  %9136 = vst [vmem:[#allocation25_spill] sm:$0xff] %v6239_v39  ;;  %v6262_v47 = vor.u32 %v5542_v46, %v5131_v45  ;;  %v5536_v50 = vld [vmem:[%s8840_s2 + $0x1f4] sm:$0xf0]  ;;  %v5083_v52 = vld [vmem:[%s8840_s2 + $0x1b0] sm:$0xf] }
  0x2c   :  { %9137 = vst [vmem:[#allocation26_spill] sm:$0xff] %v6248_v42  ;;  %v6276_v51 = vor.u32 %v5536_v50, %v5107_v49  ;;  %v5530_v54 = vld [vmem:[%s8840_s2 + $0x1c4] sm:$0xf0]  ;;  %v5501_v56 = vld [vmem:[%s8840_s2 + $0xdc] sm:$0xf0]  ;;  %v6399_v45 = vld [vmem:[%s8838_s0 + $0x18] sm:$0xff] }
  0x2d   :  { %322 = vmatpush.bf16.msra.mxu0 %v4772_v10  ;;  %9138 = vst [vmem:[#allocation27_spill] sm:$0xff] %v6251_v43  ;;  %v4971_v55 = vld [vmem:[%s8840_s2 + $0xc8] sm:$0xf]  ;;  %v5549_v59 = vld [vmem:[%s8840_s2 + $0x25c] sm:$0xf0]  ;;  %v6301_v60 = vor.u32 %v5530_v54, %v5083_v52 }
  0x2e   :  { %371 = vmatpush.bf16.msra.mxu1 %v4776_v13  ;;  %9139 = vst [vmem:[#allocation28_spill] sm:$0xff] %v6262_v47  ;;  %v5163_v57 = vld [vmem:[%s8840_s2 + $0x248] sm:$0xf]  ;;  %v6295_v58 = vor.u32 %v5501_v56, %v4971_v55  ;;  %v5059_v62 = vld [vmem:[%s8840_s2 + $0x180] sm:$0xf] }
  0x2f   :  { %1096 = vmatpush.bf16.msra.mxu3 %v6173_v14  ;;  %9140 = vst [vmem:[#allocation29_spill] sm:$0xff] %v6276_v51  ;;  %v6303_v61 = vor.u32 %v5549_v59, %v5163_v57  ;;  %v5524_v63 = vld [vmem:[%s8840_s2 + $0x194] sm:$0xf0]  ;;  %v5515_v0 = vld [vmem:[%s8840_s2 + $0x154] sm:$0xf] }
  0x30   :  { %323 = vmatmul.bf16.vlgmr.msra.gmra.mxu0 %v6180_v16  ;;  %9141 = vst [vmem:[#allocation30_spill] sm:$0xff] %v6295_v58  ;;  %v5037_v1 = vld [vmem:[%s8840_s2 + $0x168] sm:$0xf0]  ;;  %v6320_v3 = vor.u32 %v5524_v63, %v5059_v62  ;;  %v5509_v5 = vld [vmem:[%s8840_s2 + $0x124] sm:$0xf] }
  0x31   :  { %1145 = vmatpush.bf16.msrb.mxu0 %v6182_v18  ;;  %372 = vmatmul.bf16.vlgmr.msra.gmra.mxu1 %v6180_v16  ;;  %9142 = vst [vmem:[#allocation31_spill] sm:$0xff] %v6301_v60  ;;  %v6322_v4 = vor.u32 %v5515_v0, %v5037_v1  ;;  %v5013_v6 = vld [vmem:[%s8840_s2 + $0x138] sm:$0xf0]  ;;  %v5503_v10 = vld [vmem:[%s8840_s2 + $0xf4] sm:$0xf] }
  0x32   :  { %1159 = vmatpush.bf16.msrb.mxu1 %v6187_v20  ;;  %1097 = vmatmul.bf16.vlgmr.msra.gmra.mxu3 %v8849_v32  ;;  %9143 = vst [vmem:[#allocation32_spill] sm:$0xff] %v6303_v61  ;;  %v6332_v7 = vor.u32 %v5509_v5, %v5013_v6  ;;  %v4989_v11 = vld [vmem:[%s8840_s2 + $0x108] sm:$0xf0]  ;;  %v5497_v13 = vld [vmem:[%s8840_s2 + $0xc4] sm:$0xf] }
  0x33   :  { %1103 = vmatpush.bf16.msrb.mxu3 %v6175_v15  ;;  %9144 = vst [vmem:[#allocation33_spill] sm:$0xff] %v6320_v3  ;;  %v6348_v12 = vor.u32 %v5503_v10, %v4989_v11  ;;  %v4965_v19 = vld [vmem:[%s8840_s2 + $0xd8] sm:$0xf0]  ;;  %v4947_v21 = vld [vmem:[%s8840_s2 + $0x98] sm:$0xf] }
  0x34   :  { %9145 = vst [vmem:[#allocation34_spill] sm:$0xff] %v6322_v4  ;;  %v5495_v22 = vld [vmem:[%s8840_s2 + $0xac] sm:$0xf0]  ;;  %v5139_v23 = vld [vmem:[%s8840_s2 + $0x218] sm:$0xf]  ;;  %v6374_v30 = vor.u32 %v5497_v13, %v4965_v19 }
  0x35   :  { %1146 = vmatpush.bf16.msrb.mxu0 %v6209_v28  ;;  %9146 = vst [vmem:[#allocation35_spill] sm:$0xff] %v6332_v7  ;;  %v6366_v24 = vor.u32 %v5495_v22, %v4947_v21  ;;  %v5543_v25 = vld [vmem:[%s8840_s2 + $0x22c] sm:$0xf0]  ;;  %v5491_v33 = vld [vmem:[%s8840_s2 + $0x94] sm:$0xf] }
  0x36   :  { %1160 = vmatpush.bf16.msrb.mxu1 %v6219_v31  ;;  %9147 = vst [vmem:[#allocation36_spill] sm:$0xff] %v6348_v12  ;;  %v6371_v29 = vor.u32 %v5543_v25, %v5139_v23  ;;  %v4941_v34 = vld [vmem:[%s8840_s2 + $0xa8] sm:$0xf0]  ;;  %v5485_v37 = vld [vmem:[%s8840_s2 + $0x64] sm:$0xf] }
  0x37   :  { %1104 = vmatpush.bf16.msrb.mxu3 %v6207_v27  ;;  %9148 = vst [vmem:[#allocation37_spill] sm:$0xff] %v6366_v24  ;;  %v6385_v36 = vor.u32 %v5491_v33, %v4941_v34  ;;  %v4917_v40 = vld [vmem:[%s8840_s2 + $0x78] sm:$0xf0]  ;;  %v5479_v46 = vld [vmem:[%s8840_s2 + $0x34] sm:$0xf] }
  0x38   :  { %9149 = vst [vmem:[#allocation38_spill] sm:$0xff] %v6371_v29  ;;  %v6394_v41 = vor.u32 %v5485_v37, %v4917_v40  ;;  %v4893_v49 = vld [vmem:[%s8840_s2 + $0x48] sm:$0xf0]  ;;  %v5473_v52 = vld [vmem:[%s8840_s2 + $0x4] sm:$0xf] }
  0x39   :  { %1147 = vmatpush.bf16.msrb.mxu0 %v6239_v39  ;;  %9150 = vst [vmem:[#allocation39_spill] sm:$0xff] %v6374_v30  ;;  %v6409_v50 = vor.u32 %v5479_v46, %v4893_v49  ;;  %v4869_v54 = vld [vmem:[%s8840_s2 + $0x18] sm:$0xf0]  ;;  %v4923_v55 = vld [vmem:[%s8840_s2 + $0x68] sm:$0xf]  ;;  %v6467_v49 = vld [vmem:[%s8838_s0 + $0x20] sm:$0xff] }
  0x3a   :  { %1161 = vmatpush.bf16.msrb.mxu1 %v6248_v42  ;;  %9151 = vst [vmem:[#allocation40_spill] sm:$0xff] %v6385_v36  ;;  %v5489_v56 = vld [vmem:[%s8840_s2 + $0x7c] sm:$0xf0]  ;;  %v5115_v57 = vld [vmem:[%s8840_s2 + $0x1e8] sm:$0xf]  ;;  %v6441_v5 = vor.u32 %v5473_v52, %v4869_v54 }
  0x3b   :  { %1105 = vmatpush.bf16.msrb.mxu3 %v6236_v38  ;;  %9152 = vst [vmem:[#allocation41_spill] sm:$0xff] %v6394_v41  ;;  %v5563_v59 = vld [vmem:[%s8840_s2 + $0x2d4] sm:$0xf]  ;;  %v5229_v62 = vld [vmem:[%s8840_s2 + $0x2e8] sm:$0xf0]  ;;  %v6433_v63 = vor.u32 %v5489_v56, %v4923_v55 }
  0x3c   :  { %9153 = vst [vmem:[#allocation42_spill] sm:$0xff] %v6409_v50  ;;  %v5537_v0 = vld [vmem:[%s8840_s2 + $0x1fc] sm:$0xf0]  ;;  %v6444_v6 = vor.u32 %v5563_v59, %v5229_v62  ;;  %v4863_v10 = vld [vmem:[#allocation3 + $0xb0] sm:$0xf] }
  0x3d   :  { %1148 = vmatpush.bf16.msrb.mxu0 %v6295_v58  ;;  %9154 = vst [vmem:[#allocation43_spill] sm:$0xff] %v6433_v63  ;;  %v6438_v1 = vor.u32 %v5537_v0, %v5115_v57  ;;  %v5472_v11 = vld [vmem:[#allocation3 + $0xb8] sm:$0xf0]  ;;  %v5557_v13 = vld [vmem:[%s8840_s2 + $0x2a4] sm:$0xf] }
  0x3e   :  { %1162 = vmatpush.bf16.msrb.mxu1 %v6303_v61  ;;  %9156 = vst [vmem:[#allocation45_spill] sm:$0xff] %v6441_v5  ;;  %v5205_v19 = vld [vmem:[%s8840_s2 + $0x2b8] sm:$0xf0]  ;;  %v4864_v21 = vor.u32 %v5472_v11, %v4863_v10  ;;  %v4851_v22 = vld [vmem:[#allocation3 + $0x98] sm:$0xf] }
  0x3f   :  { %1106 = vmatpush.bf16.msrb.mxu3 %v6251_v43  ;;  %9155 = vst [vmem:[#allocation44_spill] sm:$0xff] %v6438_v1  ;;  %v5469_v23 = vld [vmem:[#allocation3 + $0xa0] sm:$0xf0]  ;;  %v6455_v25 = vor.u32 %v5557_v13, %v5205_v19  ;;  %v4839_v34 = vld [vmem:[#allocation3 + $0x80] sm:$0xf] }
  0x40   :  { %328 = vmatmul.bf16.gmra.mxu0 %v6267_v48  ;;  %9157 = vst [vmem:[#allocation46_spill] sm:$0xff] %v6444_v6  ;;  %413 = vmatpush.bf16.msra.mxu2 %v4864_v21  ;;  %v4852_v33 = vor.u32 %v5469_v23, %v4851_v22  ;;  %v5466_v37 = vld [vmem:[#allocation3 + $0x88] sm:$0xf0]  ;;  %v5551_v40 = vld [vmem:[%s8840_s2 + $0x274] sm:$0xf] }
  0x41   :  { %377 = vmatmul.bf16.gmra.mxu1 %v6267_v48  ;;  %1149 = vmatpush.bf16.msrb.mxu0 %v6366_v24  ;;  %9158 = vst [vmem:[#allocation47_spill] sm:$0xff] %v6455_v25  ;;  %v5181_v46 = vld [vmem:[%s8840_s2 + $0x288] sm:$0xf0]  ;;  %v4840_v52 = vor.u32 %v5466_v37, %v4839_v34  ;;  %v5545_v55 = vld [vmem:[%s8840_s2 + $0x244] sm:$0xf] }
  0x42   :  { %1163 = vmatpush.bf16.msrb.mxu1 %v6371_v29  ;;  %v6470_v54 = vor.u32 %v5551_v40, %v5181_v46  ;;  %v5157_v56 = vld [vmem:[%s8840_s2 + $0x258] sm:$0xf0]  ;;  %v5539_v57 = vld [vmem:[%s8840_s2 + $0x214] sm:$0xf]  ;;  %v5133_v59 = vld [vmem:[%s8840_s2 + $0x228] sm:$0xf0] }
  0x43   :  { %1107 = vmatpush.bf16.msrb.mxu3 %v6262_v47  ;;  %v6487_v62 = vor.u32 %v5545_v55, %v5157_v56  ;;  %v4899_v0 = vld [vmem:[%s8840_s2 + $0x38] sm:$0xf]  ;;  %v5483_v10 = vld [vmem:[%s8840_s2 + $0x4c] sm:$0xf0]  ;;  %v4827_v21 = vld [vmem:[#allocation3 + $0x68] sm:$0xf]  ;;  %v6507_v40 = vor.u32 %v5539_v57, %v5133_v59 }
  0x44   :  { %414 = vmatpush.bf16.msra.mxu2 %v4852_v33  ;;  %9159 = vst [vmem:[#allocation48_spill] sm:$0xff] %v6470_v54  ;;  %v5091_v11 = vld [vmem:[%s8840_s2 + $0x1b8] sm:$0xf]  ;;  %v6498_v13 = vor.u32 %v5483_v10, %v4899_v0  ;;  %v5531_v19 = vld [vmem:[%s8840_s2 + $0x1cc] sm:$0xf0] }
  0x45   :  { %1150 = vmatpush.bf16.msrb.mxu0 %v6433_v63  ;;  %9160 = vst [vmem:[#allocation49_spill] sm:$0xff] %v6487_v62  ;;  %v5463_v22 = vld [vmem:[#allocation3 + $0x70] sm:$0xf0]  ;;  %v6503_v23 = vor.u32 %v5531_v19, %v5091_v11  ;;  %v4815_v34 = vld [vmem:[#allocation3 + $0x50] sm:$0xf] }
  0x46   :  { %1164 = vmatpush.bf16.msrb.mxu1 %v6438_v1  ;;  %9161 = vst [vmem:[#allocation50_spill] sm:$0xff] %v6498_v13  ;;  %v4828_v33 = vor.u32 %v5463_v22, %v4827_v21  ;;  %v5460_v37 = vld [vmem:[#allocation3 + $0x58] sm:$0xf0]  ;;  %v5533_v46 = vld [vmem:[%s8840_s2 + $0x1e4] sm:$0xf]  ;;  %v6528_v22 = vld [vmem:[%s8838_s0 + $0x28] sm:$0xff] }
  0x47   :  { %1108 = vmatpush.bf16.msrb.mxu3 %v6276_v51  ;;  %9162 = vst [vmem:[#allocation51_spill] sm:$0xff] %v6503_v23  ;;  %v4816_v55 = vor.u32 %v5460_v37, %v4815_v34  ;;  %v4803_v56 = vld [vmem:[#allocation3 + $0x38] sm:$0xf]  ;;  %v5457_v0 = vld [vmem:[#allocation3 + $0x40] sm:$0xf0] }
  0x48   :  { %415 = vmatpush.bf16.msra.mxu2 %v4840_v52  ;;  %9163 = vst [vmem:[#allocation52_spill] sm:$0xff] %v6507_v40  ;;  %v5109_v52 = vld [vmem:[%s8840_s2 + $0x1f8] sm:$0xf0]  ;;  %v5527_v57 = vld [vmem:[%s8840_s2 + $0x1b4] sm:$0xf]  ;;  %v4804_v11 = vor.u32 %v5457_v0, %v4803_v56 }
  0x49   :  { %1151 = vmatpush.bf16.msrb.mxu0 %v6498_v13  ;;  %v6517_v10 = vor.u32 %v5533_v46, %v5109_v52  ;;  %v5085_v59 = vld [vmem:[%s8840_s2 + $0x1c8] sm:$0xf0]  ;;  %v4791_v19 = vld [vmem:[#allocation3 + $0x20] sm:$0xf]  ;;  %v5521_v34 = vld [vmem:[%s8840_s2 + $0x184] sm:$0xf] }
  0x4a   :  { %1165 = vmatpush.bf16.msrb.mxu1 %v6503_v23  ;;  %v5454_v21 = vld [vmem:[#allocation3 + $0x28] sm:$0xf0]  ;;  %v5061_v37 = vld [vmem:[%s8840_s2 + $0x198] sm:$0xf0]  ;;  %v5477_v56 = vld [vmem:[%s8840_s2 + $0x1c] sm:$0xf0] }
  0x4b   :  { %1109 = vmatpush.bf16.msrb.mxu3 %v6301_v60  ;;  %9164 = vst [vmem:[#allocation53_spill] sm:$0xff] %v6517_v10  ;;  %v4792_v46 = vor.u32 %v5454_v21, %v4791_v19  ;;  %v6542_v52 = vor.u32 %v5521_v34, %v5061_v37  ;;  %v5067_v0 = vld [vmem:[%s8840_s2 + $0x188] sm:$0xf]  ;;  %v5451_v19 = vld [vmem:[#allocation3 + $0x10] sm:$0xf0] }
  0x4c   :  { %416 = vmatpush.bf16.msra.mxu2 %v4828_v33  ;;  %v6531_v33 = vor.u32 %v5527_v57, %v5085_v59  ;;  %v5525_v59 = vld [vmem:[%s8840_s2 + $0x19c] sm:$0xf0]  ;;  %v6568_v37 = vld [vmem:[%s8838_s0 + $0x30] sm:$0xff] }
  0x4d   :  { %9166 = vst [vmem:[#allocation55_spill] sm:$0xff] %v6542_v52  ;;  %v6558_v21 = vor.u32 %v5525_v59, %v5067_v0  ;;  %v5141_v29 = vld [vmem:[%s8840_s2 + $0x230] sm:$0xf0] }
  0x4e   :  { %9165 = vst [vmem:[#allocation54_spill] sm:$0xff] %v6531_v33 }
  0x4f   :  { %1110 = vmatpush.bf16.msrb.mxu3 %v6320_v3  ;;  %9168 = vst [vmem:[#allocation57_spill] sm:$0xff] %v6558_v21  ;;  %1166 = vmatpush.bf16.msrb.mxu1 %v6558_v21 }
  0x50   :  { %333 = vmatmul.bf16.gmra.mxu0 %v6337_v9  ;;  %417 = vmatpush.bf16.msra.mxu2 %v4816_v55  ;;  %v4875_v55 = vld [vmem:[%s8840_s2 + $0x8] sm:$0xf] }
  0x51   :  { %382 = vmatmul.bf16.gmra.mxu1 %v6337_v9  ;;  %v6553_v57 = vor.u32 %v5477_v56, %v4875_v55  ;;  %v5045_v55 = vld [vmem:[%s8840_s2 + $0x170] sm:$0xf0] }
  0x52   :  { %1111 = vmatmul.bf16.vlgmr.msrb.gmra.mxu3 %v8849_v32 }
  0x53   :  { %1117 = vmatpush.bf16.msra.mxu3 %v6322_v4  ;;  %9167 = vst [vmem:[#allocation56_spill] sm:$0xff] %v6553_v57  ;;  %1152 = vmatpush.bf16.msrb.mxu0 %v6553_v57 }
  0x54   :  { %418 = vmatpush.bf16.msra.mxu2 %v4804_v11  ;;  %v4779_v11 = vld [vmem:[#allocation3 + $0x8] sm:$0xf] }
  0x55   :  { %v4780_v34 = vor.u32 %v5451_v19, %v4779_v11  ;;  %v5237_v19 = vld [vmem:[%s8840_s2 + $0x2f0] sm:$0xf0] }
  0x57   :  { %1118 = vmatpush.bf16.msra.mxu3 %v6332_v7 }
  0x58   :  { %419 = vmatpush.bf16.msra.mxu2 %v4792_v46  ;;  %v6576_v46 = vld [vmem:[%s8838_s0 + $0x38] sm:$0xff] }
  0x5b   :  { %1119 = vmatpush.bf16.msra.mxu3 %v6348_v12 }
  0x5c   :  { %420 = vmatpush.bf16.msra.mxu2 %v4780_v34 }
  0x5f   :  { %1120 = vmatpush.bf16.msra.mxu3 %v6374_v30  ;;  %421 = vmatmul.bf16.vlgmr.msra.gmra.mxu2 %v6180_v16  ;;  %v5516_v16 = vld [vmem:[%s8840_s2 + $0x15c] sm:$0xf] }
  0x60   :  { %338 = vmatmul.bf16.gmra.mxu0 %v6399_v45  ;;  %v6586_v56 = vor.u32 %v5516_v16, %v5045_v55 }
  0x61   :  { %387 = vmatmul.bf16.gmra.mxu1 %v6399_v45 }
  0x62   :  { %9169 = vst [vmem:[#allocation58_spill] sm:$0xff] %v6586_v56  ;;  %1173 = vmatpush.bf16.msrb.mxu2 %v6586_v56 }
  0x63   :  { %1121 = vmatpush.bf16.msra.mxu3 %v6385_v36 }
  0x67   :  { %1122 = vmatpush.bf16.msra.mxu3 %v6394_v41 }
  0x6b   :  { %1123 = vmatpush.bf16.msra.mxu3 %v6409_v50 }
  0x6f   :  { %1124 = vmatpush.bf16.msra.mxu3 %v6441_v5  ;;  %426 = vmatmul.bf16.gmra.mxu2 %v6267_v48 }
  0x70   :  { %343 = vmatmul.bf16.gmra.mxu0 %v6467_v49 }
  0x71   :  { %392 = vmatmul.bf16.gmra.mxu1 %v6467_v49 }
  0x72   :  { %1125 = vmatmul.bf16.vlgmr.msra.gmra.mxu3 %v8849_v32 }
  0x73   :  { %1131 = vmatpush.bf16.msrb.mxu3 %v6444_v6 }
  0x77   :  { %1132 = vmatpush.bf16.msrb.mxu3 %v6455_v25 }
  0x7b   :  { %1133 = vmatpush.bf16.msrb.mxu3 %v6470_v54 }
  0x7f   :  { %1134 = vmatpush.bf16.msrb.mxu3 %v6487_v62  ;;  %431 = vmatmul.bf16.gmra.mxu2 %v6337_v9  ;;  %v5564_v9 = vld [vmem:[%s8840_s2 + $0x2dc] sm:$0xf] }
  0x80   :  { %348 = vmatmul.bf16.gmra.mxu0 %v6528_v22  ;;  %v6607_v34 = vor.u32 %v5564_v9, %v5237_v19  ;;  %v5552_v9 = vld [vmem:[%s8840_s2 + $0x27c] sm:$0xf]  ;;  %v5189_v19 = vld [vmem:[%s8840_s2 + $0x290] sm:$0xf0] }
  0x81   :  { %397 = vmatmul.bf16.gmra.mxu1 %v6528_v22 }
  0x82   :  { %9170 = vst [vmem:[#allocation59_spill] sm:$0xff] %v6607_v34 }
  0x83   :  { %1135 = vmatpush.bf16.msrb.mxu3 %v6507_v40 }
  0x87   :  { %1136 = vmatpush.bf16.msrb.mxu3 %v6517_v10 }
  0x8b   :  { %1137 = vmatpush.bf16.msrb.mxu3 %v6531_v33 }
  0x8f   :  { %1138 = vmatpush.bf16.msrb.mxu3 %v6542_v52  ;;  %436 = vmatmul.bf16.gmra.mxu2 %v6399_v45  ;;  %v5558_v45 = vld [vmem:[%s8840_s2 + $0x2ac] sm:$0xf] }
  0x90   :  { %353 = vmatmul.bf16.gmra.mxu0 %v6568_v37 }
  0x91   :  { %402 = vmatmul.bf16.gmra.mxu1 %v6568_v37 }
  0x92   :  { %1139 = vmatmul.bf16.vlgmr.msrb.gmra.mxu3 %v8849_v32 }
  0x93   :  { %1187 = vmatpush.bf16.msra.mxu3 %v6607_v34  ;;  %v5590_v34 = vld [vmem:[#allocation5 + $0xac] sm:$0xf] }
  0x9f   :  { %441 = vmatmul.bf16.gmra.mxu2 %v6467_v49 }
  0xa0   :  { %358 = vmatmul.bf16.gmra.mxu0 %v6576_v46 }
  0xa1   :  { %407 = vmatmul.bf16.gmra.mxu1 %v6576_v46 }
  0xad   :  { %v6590_v48 = vpop.f32.mrf.mxu0 }
  0xae   :  { %v6592_v0 = vpop.f32.mrf.mxu1 }
  0xaf   :  { %446 = vmatmul.bf16.gmra.mxu2 %v6528_v22  ;;  %v9193_v22 = vmov 0  }
  0xb0   :  { %1153 = vmatmul.bf16.vlgmr.msrb.gmra.mxu0 %v8849_v32 }
  0xb1   :  { %1167 = vmatmul.bf16.vlgmr.msrb.gmra.mxu1 %v8849_v32  ;;  %v5213_v32 = vld [vmem:[%s8840_s2 + $0x2c0] sm:$0xf0] }
  0xb2   :  { %v6620_v21 = vor.u32 %v5558_v45, %v5213_v32  ;;  %v5546_v32 = vld [vmem:[%s8840_s2 + $0x24c] sm:$0xf]  ;;  %v5165_v45 = vld [vmem:[%s8840_s2 + $0x260] sm:$0xf0] }
  0xb3   :  { %v6642_v1 = vor.u32 %v5546_v32, %v5165_v45  ;;  %v4997_v32 = vld [vmem:[%s8840_s2 + $0x110] sm:$0xf0]  ;;  %v5540_v45 = vld [vmem:[%s8840_s2 + $0x21c] sm:$0xf] }
  0xb4   :  { %9173 = vst [vmem:[#allocation62_spill] sm:$0xff] %v6620_v21  ;;  %1188 = vmatpush.bf16.msra.mxu3 %v6620_v21 }
  0xb5   :  { %v6596_v59 = vpop.f32.mrf.mxu0  ;;  %9177 = vst [vmem:[#allocation66_spill] sm:$0xff] %v6642_v1 }
  0xb6   :  { %v6598_v11 = vpop.f32.mrf.mxu1 }
  0xbd   :  { %v6609_v16 = vpop.f32.mrf.mxu0 }
  0xbe   :  { %9171 = vst [vmem:[#allocation60_spill] sm:$0xff] %v6609_v16  ;;  %v6612_v55 = vpop.f32.mrf.mxu1 }
  0xbf   :  { %9172 = vst [vmem:[#allocation61_spill] sm:$0xff] %v6612_v55  ;;  %v6629_v55 = vor.u32 %v5552_v9, %v5189_v19  ;;  %v5510_v9 = vld [vmem:[%s8840_s2 + $0x12c] sm:$0xf]  ;;  %v5021_v19 = vld [vmem:[%s8840_s2 + $0x140] sm:$0xf0]  ;;  %451 = vmatmul.bf16.gmra.mxu2 %v6568_v37 }
  0xc0   :  { %v5125_v37 = vld [vmem:[%s8840_s2 + $0x208] sm:$0xf0] }
  0xc1   :  { %9174 = vst [vmem:[#allocation63_spill] sm:$0xff] %v6629_v55  ;;  %1189 = vmatpush.bf16.msra.mxu3 %v6629_v55  ;;  %v5117_v55 = vld [vmem:[%s8840_s2 + $0x200] sm:$0xf0] }
  0xc5   :  { %v6631_v16 = vpop.f32.mrf.mxu0  ;;  %1190 = vmatpush.bf16.msra.mxu3 %v6642_v1  ;;  %v6666_v1 = vor.u32 %v5540_v45, %v5141_v29  ;;  %v6691_v45 = vpop.f32.mrf.mxu3 }
  0xc6   :  { %9175 = vst [vmem:[#allocation64_spill] sm:$0xff] %v6631_v16  ;;  %v6634_v23 = vpop.f32.mrf.mxu1  ;;  %v6655_v16 = vor.u32 %v5510_v9, %v5021_v19  ;;  %v5534_v19 = vld [vmem:[%s8840_s2 + $0x1ec] sm:$0xf] }
  0xc7   :  { %9176 = vst [vmem:[#allocation65_spill] sm:$0xff] %v6634_v23  ;;  %v5504_v23 = vld [vmem:[%s8840_s2 + $0xfc] sm:$0xf]  ;;  %v6682_v29 = vor.u32 %v5534_v19, %v5117_v55  ;;  %v5522_v19 = vld [vmem:[%s8840_s2 + $0x18c] sm:$0xf] }
  0xc8   :  { %9178 = vst [vmem:[#allocation67_spill] sm:$0xff] %v6655_v16  ;;  %1174 = vmatpush.bf16.msrb.mxu2 %v6655_v16  ;;  %v6669_v61 = vor.u32 %v5504_v23, %v4997_v32  ;;  %v5528_v23 = vld [vmem:[%s8840_s2 + $0x1bc] sm:$0xf]  ;;  %v5093_v32 = vld [vmem:[%s8840_s2 + $0x1d0] sm:$0xf0] }
  0xc9   :  { %9179 = vst [vmem:[#allocation68_spill] sm:$0xff] %v6666_v1  ;;  %1191 = vmatpush.bf16.msra.mxu3 %v6666_v1  ;;  %v5069_v1 = vld [vmem:[%s8840_s2 + $0x1a0] sm:$0xf0] }
  0xca   :  { %9180 = vst [vmem:[#allocation69_spill] sm:$0xff] %v6669_v61  ;;  %v6707_v42 = vor.u32 %v5522_v19, %v5069_v1  ;;  %v5565_v1 = vld [vmem:[%s8840_s2 + $0x2e4] sm:$0xf]  ;;  %v5245_v19 = vld [vmem:[%s8840_s2 + $0x2f8] sm:$0xf0] }
  0xcb   :  { %9183 = vst [vmem:[#allocation72_spill] sm:$0xff] %v6682_v29 }
  0xcc   :  { %1175 = vmatpush.bf16.msrb.mxu2 %v6669_v61  ;;  %9187 = vst [vmem:[#allocation76_spill] sm:$0xff] %v6707_v42  ;;  %v6732_v61 = vor.u32 %v5565_v1, %v5245_v19 }
  0xcd   :  { %v6671_v49 = vpop.f32.mrf.mxu0  ;;  %1192 = vmatpush.bf16.msra.mxu3 %v6682_v29  ;;  %v6744_v31 = vpop.f32.mrf.mxu3 }
  0xce   :  { %9181 = vst [vmem:[#allocation70_spill] sm:$0xff] %v6671_v49  ;;  %v6674_v9 = vpop.f32.mrf.mxu1  ;;  %v6694_v49 = vor.u32 %v5528_v23, %v5093_v32  ;;  %v5243_v23 = vld [vmem:[%s8840_s2 + $0x2e0] sm:$0xf]  ;;  %v5568_v32 = vld [vmem:[%s8840_s2 + $0x2f4] sm:$0xf0] }
  0xcf   :  { %9182 = vst [vmem:[#allocation71_spill] sm:$0xff] %v6674_v9  ;;  %456 = vmatmul.bf16.gmra.mxu2 %v6576_v46  ;;  %v4979_v46 = vld [vmem:[%s8840_s2 + $0xd0] sm:$0xf] }
  0xd0   :  { %9184 = vst [vmem:[#allocation73_spill] sm:$0xff] %v6694_v49 }
  0xd1   :  { %1193 = vmatpush.bf16.msra.mxu3 %v6694_v49  ;;  %v4973_v49 = vld [vmem:[%s8840_s2 + $0xe0] sm:$0xf0]  ;;  %9190 = vst [vmem:[#allocation79_spill] sm:$0xff] %v6732_v61 }
  0xd5   :  { %v6696_v9 = vpop.f32.mrf.mxu0  ;;  %1194 = vmatpush.bf16.msra.mxu3 %v6707_v42 }
  0xd6   :  { %9185 = vst [vmem:[#allocation74_spill] sm:$0xff] %v6696_v9  ;;  %v6699_v55 = vpop.f32.mrf.mxu1  ;;  %v5498_v9 = vld [vmem:[%s8840_s2 + $0xcc] sm:$0xf] }
  0xd7   :  { %9186 = vst [vmem:[#allocation75_spill] sm:$0xff] %v6699_v55  ;;  %v6718_v55 = vor.u32 %v5568_v32, %v5243_v23  ;;  %v6730_v29 = vor.u32 %v5498_v9, %v4973_v49  ;;  %v5219_v23 = vld [vmem:[%s8840_s2 + $0x2b0] sm:$0xf]  ;;  %v5562_v32 = vld [vmem:[%s8840_s2 + $0x2c4] sm:$0xf0] }
  0xd8   :  { %v6742_v21 = vor.u32 %v5562_v32, %v5219_v23  ;;  %v5559_v49 = vld [vmem:[%s8840_s2 + $0x2b4] sm:$0xf]  ;;  %v5221_v9 = vld [vmem:[%s8840_s2 + $0x2c8] sm:$0xf0]  ;;  %1195 = vmatmul.bf16.vlgmr.msra.gmra.mxu3 %v9193_v22  ;;  %v5195_v32 = vld [vmem:[%s8840_s2 + $0x280] sm:$0xf] }
  0xd9   :  { %9188 = vst [vmem:[#allocation77_spill] sm:$0xff] %v6718_v55  ;;  %1215 = vmatpush.bf16.msra.mxu1 %v6718_v55  ;;  %1176 = vmatpush.bf16.msrb.mxu2 %v6730_v29  ;;  %v6754_v1 = vor.u32 %v5559_v49, %v5221_v9  ;;  %v5553_v9 = vld [vmem:[%s8840_s2 + $0x284] sm:$0xf]  ;;  %v5492_v55 = vld [vmem:[%s8840_s2 + $0x9c] sm:$0xf] }
  0xda   :  { %9189 = vst [vmem:[#allocation78_spill] sm:$0xff] %v6730_v29  ;;  %1243 = vmatpush.bf16.msrb.mxu3 %v6732_v61  ;;  %v5556_v61 = vld [vmem:[%s8840_s2 + $0x294] sm:$0xf0] }
  0xdb   :  { %9191 = vst [vmem:[#allocation80_spill] sm:$0xff] %v6742_v21  ;;  %v6769_v49 = vor.u32 %v5556_v61, %v5195_v32  ;;  %v5547_v32 = vld [vmem:[%s8840_s2 + $0x254] sm:$0xf] }
  0xdc   :  { %9192 = vst [vmem:[#allocation81_spill] sm:$0xff] %v6754_v1 }
  0xdd   :  { %v6757_v19 = vpop.f32.mrf.mxu0  ;;  %1216 = vmatpush.bf16.msra.mxu1 %v6742_v21  ;;  %9196 = vst [vmem:[#allocation84_spill] sm:$0xff] %v6769_v49  ;;  %v5171_v21 = vld [vmem:[%s8840_s2 + $0x250] sm:$0xf] }
  0xde   :  { %9194 = vst [vmem:[#allocation82_spill] sm:$0xff] %v6757_v19  ;;  %v6759_v23 = vpop.f32.mrf.mxu1  ;;  %1244 = vmatpush.bf16.msrb.mxu3 %v6754_v1  ;;  %v5197_v19 = vld [vmem:[%s8840_s2 + $0x298] sm:$0xf0]  ;;  %v5550_v1 = vld [vmem:[%s8840_s2 + $0x264] sm:$0xf0] }
  0xdf   :  { %9195 = vst [vmem:[#allocation83_spill] sm:$0xff] %v6759_v23  ;;  %v6777_v23 = vor.u32 %v5553_v9, %v5197_v19  ;;  %v6786_v61 = vor.u32 %v5550_v1, %v5171_v21  ;;  %v5173_v19 = vld [vmem:[%s8840_s2 + $0x268] sm:$0xf0]  ;;  %v4949_v21 = vld [vmem:[%s8840_s2 + $0xb0] sm:$0xf0]  ;;  %v6803_v1 = vpop.f32.mrf.mxu3 }
  0xe0   :  { %v6795_v9 = vor.u32 %v5547_v32, %v5173_v19  ;;  %v5147_v32 = vld [vmem:[%s8840_s2 + $0x220] sm:$0xf]  ;;  %v5544_v19 = vld [vmem:[%s8840_s2 + $0x234] sm:$0xf0] }
  0xe1   :  { %9197 = vst [vmem:[#allocation85_spill] sm:$0xff] %v6777_v23  ;;  %1217 = vmatpush.bf16.msra.mxu1 %v6769_v49  ;;  %v6807_v49 = vor.u32 %v5492_v55, %v4949_v21  ;;  %v6820_v29 = vor.u32 %v5544_v19, %v5147_v32  ;;  %v5541_v55 = vld [vmem:[%s8840_s2 + $0x224] sm:$0xf]  ;;  %v5149_v21 = vld [vmem:[%s8840_s2 + $0x238] sm:$0xf0] }
  0xe2   :  { %9198 = vst [vmem:[#allocation86_spill] sm:$0xff] %v6786_v61  ;;  %1245 = vmatpush.bf16.msrb.mxu3 %v6777_v23  ;;  %v5123_v19 = vld [vmem:[%s8840_s2 + $0x1f0] sm:$0xf] }
  0xe3   :  { %9199 = vst [vmem:[#allocation87_spill] sm:$0xff] %v6795_v9  ;;  %1177 = vmatpush.bf16.msrb.mxu2 %v6807_v49 }
  0xe4   :  { %9201 = vst [vmem:[#allocation89_spill] sm:$0xff] %v6807_v49  ;;  %v5526_v49 = vld [vmem:[%s8840_s2 + $0x1a4] sm:$0xf0] }
  0xe5   :  { %v6805_v23 = vpop.f32.mrf.mxu0  ;;  %1218 = vmatpush.bf16.msra.mxu1 %v6786_v61  ;;  %9203 = vst [vmem:[#allocation91_spill] sm:$0xff] %v6820_v29 }
  0xe6   :  { %9200 = vst [vmem:[#allocation88_spill] sm:$0xff] %v6805_v23  ;;  %v6809_v42 = vpop.f32.mrf.mxu1  ;;  %1246 = vmatpush.bf16.msrb.mxu3 %v6795_v9  ;;  %v6828_v23 = vor.u32 %v5541_v55, %v5149_v21  ;;  %v4925_v9 = vld [vmem:[%s8840_s2 + $0x80] sm:$0xf0]  ;;  %v5538_v55 = vld [vmem:[%s8840_s2 + $0x204] sm:$0xf0] }
  0xe7   :  { %9202 = vst [vmem:[#allocation90_spill] sm:$0xff] %v6809_v42  ;;  %v5486_v42 = vld [vmem:[%s8840_s2 + $0x6c] sm:$0xf]  ;;  %v6848_v21 = vor.u32 %v5538_v55, %v5123_v19 }
  0xe8   :  { %9204 = vst [vmem:[#allocation92_spill] sm:$0xff] %v6828_v23  ;;  %v6836_v32 = vor.u32 %v5486_v42, %v4925_v9  ;;  %v5535_v42 = vld [vmem:[%s8840_s2 + $0x1f4] sm:$0xf] }
  0xe9   :  { %1219 = vmatpush.bf16.msra.mxu1 %v6820_v29  ;;  %9206 = vst [vmem:[#allocation94_spill] sm:$0xff] %v6848_v21  ;;  %v6856_v9 = vor.u32 %v5535_v42, %v5125_v37  ;;  %v5480_v29 = vld [vmem:[%s8840_s2 + $0x3c] sm:$0xf]  ;;  %v5099_v42 = vld [vmem:[%s8840_s2 + $0x1c0] sm:$0xf] }
  0xea   :  { %9205 = vst [vmem:[#allocation93_spill] sm:$0xff] %v6836_v32  ;;  %1247 = vmatpush.bf16.msrb.mxu3 %v6828_v23  ;;  %1178 = vmatpush.bf16.msrb.mxu2 %v6836_v32  ;;  %v4901_v23 = vld [vmem:[%s8840_s2 + $0x50] sm:$0xf0]  ;;  %v5532_v37 = vld [vmem:[%s8840_s2 + $0x1d4] sm:$0xf0]  ;;  %v6877_v32 = vpop.f32.mrf.mxu3 }
  0xeb   :  { %9207 = vst [vmem:[#allocation95_spill] sm:$0xff] %v6856_v9  ;;  %v6866_v55 = vor.u32 %v5480_v29, %v4901_v23  ;;  %v6881_v29 = vor.u32 %v5532_v37, %v5099_v42  ;;  %v5529_v23 = vld [vmem:[%s8840_s2 + $0x1c4] sm:$0xf]  ;;  %v5051_v37 = vld [vmem:[%s8840_s2 + $0x160] sm:$0xf] }
  0xed   :  { %v6864_v19 = vpop.f32.mrf.mxu0  ;;  %9209 = vst [vmem:[#allocation97_spill] sm:$0xff] %v6866_v55  ;;  %1220 = vmatpush.bf16.msra.mxu1 %v6848_v21  ;;  %v5474_v21 = vld [vmem:[%s8840_s2 + $0xc] sm:$0xf] }
  0xee   :  { %9208 = vst [vmem:[#allocation96_spill] sm:$0xff] %v6864_v19  ;;  %v6868_v61 = vpop.f32.mrf.mxu1  ;;  %1248 = vmatpush.bf16.msrb.mxu3 %v6856_v9  ;;  %1179 = vmatpush.bf16.msrb.mxu2 %v6866_v55  ;;  %v4877_v9 = vld [vmem:[%s8840_s2 + $0x20] sm:$0xf0]  ;;  %v5520_v55 = vld [vmem:[%s8840_s2 + $0x174] sm:$0xf0] }
  0xef   :  { %9210 = vst [vmem:[#allocation98_spill] sm:$0xff] %v6868_v61  ;;  %v5101_v61 = vld [vmem:[%s8840_s2 + $0x1d8] sm:$0xf0]  ;;  %v6897_v42 = vor.u32 %v5474_v21, %v4877_v9  ;;  %v5075_v9 = vld [vmem:[%s8840_s2 + $0x190] sm:$0xf] }
  0xf0   :  { %9211 = vst [vmem:[#allocation99_spill] sm:$0xff] %v6881_v29  ;;  %v6889_v19 = vor.u32 %v5529_v23, %v5101_v61  ;;  %v5517_v61 = vld [vmem:[%s8840_s2 + $0x164] sm:$0xf]  ;;  %v6909_v23 = vor.u32 %v5520_v55, %v5051_v37  ;;  %v5053_v21 = vld [vmem:[%s8840_s2 + $0x178] sm:$0xf0]  ;;  %v6924_v55 = vor.u32 %v5526_v49, %v5075_v9 }
  0xf1   :  { %9213 = vst [vmem:[#allocation101_spill] sm:$0xff] %v6897_v42  ;;  %1221 = vmatpush.bf16.msra.mxu1 %v6881_v29  ;;  %v6922_v16 = vor.u32 %v5517_v61, %v5053_v21  ;;  %v5523_v37 = vld [vmem:[%s8840_s2 + $0x194] sm:$0xf]  ;;  %v5077_v29 = vld [vmem:[%s8840_s2 + $0x1a8] sm:$0xf0] }
  0xf2   :  { %9212 = vst [vmem:[#allocation100_spill] sm:$0xff] %v6889_v19  ;;  %1249 = vmatpush.bf16.msrb.mxu3 %v6889_v19  ;;  %1180 = vmatpush.bf16.msrb.mxu2 %v6897_v42  ;;  %v6933_v20 = vor.u32 %v5523_v37, %v5077_v29  ;;  %v5341_v19 = vld [vmem:[#allocation5 + $0xb4] sm:$0xf0]  ;;  %v5027_v61 = vld [vmem:[%s8840_s2 + $0x130] sm:$0xf]  ;;  %v1113_v42 = vadd.f32 %v6803_v1, %v6691_v45 }
  0xf3   :  { %9214 = vst [vmem:[#allocation102_spill] sm:$0xff] %v6922_v16  ;;  %1201 = vmatpush.bf16.msra.mxu0 %v6909_v23  ;;  %v6938_v49 = vor.u32 %v5590_v34, %v5341_v19  ;;  %v5514_v21 = vld [vmem:[%s8840_s2 + $0x144] sm:$0xf0]  ;;  %v5511_v29 = vld [vmem:[%s8840_s2 + $0x134] sm:$0xf] }
  0xf4   :  { %9215 = vst [vmem:[#allocation103_spill] sm:$0xff] %v6924_v55  ;;  %v6952_v37 = vor.u32 %v5514_v21, %v5027_v61  ;;  %v5029_v34 = vld [vmem:[%s8840_s2 + $0x148] sm:$0xf0]  ;;  %v6960_v19 = vld [vmem:[%s8841_s3] sm:$0x7] }
  0xf5   :  { %9216 = vst [vmem:[#allocation104_spill] sm:$0xff] %v6933_v20  ;;  %v6935_v56 = vpop.f32.mrf.mxu0  ;;  %1222 = vmatpush.bf16.msra.mxu1 %v6924_v55  ;;  %v5587_v55 = vld [vmem:[#allocation5 + $0x94] sm:$0xf]  ;;  %v5329_v61 = vld [vmem:[#allocation5 + $0x9c] sm:$0xf0]  ;;  %1181 = vmatmul.bf16.vlgmr.msrb.gmra.mxu2 %v9193_v22 }
  0xf6   :  { %9217 = vst [vmem:[#allocation105_spill] sm:$0xff] %v6935_v56  ;;  %1229 = vmatpush.bf16.msra.mxu2 %v6922_v16  ;;  %v6949_v9 = vpop.f32.mrf.mxu1  ;;  %v6962_v56 = vpop.f32.mrf.mxu3  ;;  %1250 = vmatpush.bf16.msrb.mxu3 %v6933_v20  ;;  %v6970_v21 = vor.u32 %v5587_v55, %v5329_v61  ;;  %v5003_v16 = vld [vmem:[%s8840_s2 + $0x100] sm:$0xf]  ;;  %v5005_v61 = vld [vmem:[%s8840_s2 + $0x118] sm:$0xf0] }
  0xf7   :  { %9218 = vst [vmem:[#allocation106_spill] sm:$0xff] %v6938_v49  ;;  %1202 = vmatpush.bf16.msra.mxu0 %v6952_v37  ;;  %v5584_v20 = vld [vmem:[#allocation5 + $0x7c] sm:$0xf]  ;;  %v5499_v45 = vld [vmem:[%s8840_s2 + $0xd4] sm:$0xf] }
  0xf8   :  { %9219 = vst [vmem:[#allocation107_spill] sm:$0xff] %v6949_v9  ;;  %v6966_v9 = vor.u32 %v5511_v29, %v5029_v34  ;;  %v5505_v29 = vld [vmem:[%s8840_s2 + $0x104] sm:$0xf]  ;;  %1223 = vmatmul.bf16.vlgmr.msra.gmra.mxu1 %v9193_v22  ;;  %v6984_v34 = vperm.slane %v6960_v19, 0 }
  0xf9   :  { %1551 = vmatpush.bf16.msrb.mxu1 %v6938_v49  ;;  %9221 = vst [vmem:[#allocation109_spill] sm:$0xff] %v6970_v21  ;;  %v5508_v49 = vld [vmem:[%s8840_s2 + $0x114] sm:$0xf0]  ;;  %1251 = vmatmul.bf16.vlgmr.msrb.gmra.mxu3 %v9193_v22 }
  0xfa   :  { %9220 = vst [vmem:[#allocation108_spill] sm:$0xff] %v6966_v9  ;;  %1686 = vmatpush.bf16.msra.mxu3 %v6092_v8  ;;  %1230 = vmatpush.bf16.msra.mxu2 %v6966_v9  ;;  %v6986_v55 = vor.u32 %v5508_v49, %v5003_v16  ;;  %v6994_v8 = vor.u32 %v5505_v29, %v5005_v61  ;;  %v5317_v9 = vld [vmem:[#allocation5 + $0x84] sm:$0xf0]  ;;  %v4981_v61 = vld [vmem:[%s8840_s2 + $0xe8] sm:$0xf0] }
  0xfb   :  { %9222 = vst [vmem:[#allocation110_spill] sm:$0xff] %v6984_v34  ;;  %v7000_v16 = vor.u32 %v5584_v20, %v5317_v9  ;;  %v5502_v29 = vld [vmem:[%s8840_s2 + $0xe4] sm:$0xf0]  ;;  %v325_v20 = vadd.f32 %v6590_v48, %v6984_v34 }
  0xfc   :  { %9223 = vst [vmem:[#allocation111_spill] sm:$0xff] %v6994_v8  ;;  %1203 = vmatpush.bf16.msra.mxu0 %v6986_v55  ;;  %v7018_v9 = vor.u32 %v5502_v29, %v4979_v46  ;;  %v4955_v46 = vld [vmem:[%s8840_s2 + $0xa0] sm:$0xf]  ;;  %v5496_v29 = vld [vmem:[%s8840_s2 + $0xb4] sm:$0xf0] }
  0xfd   :  { %1552 = vmatpush.bf16.msrb.mxu1 %v6970_v21  ;;  %9224 = vst [vmem:[#allocation112_spill] sm:$0xff] %v7000_v16  ;;  %v7002_v49 = vpop.f32.mrf.mxu0  ;;  %v5305_v21 = vld [vmem:[#allocation5 + $0x6c] sm:$0xf0] }
  0xfe   :  { %1687 = vmatpush.bf16.msra.mxu3 %v6101_v17  ;;  %9225 = vst [vmem:[#allocation113_spill] sm:$0xff] %v7002_v49  ;;  %1231 = vmatpush.bf16.msra.mxu2 %v6994_v8  ;;  %v7016_v1 = vpop.f32.mrf.mxu1  ;;  %v7024_v49 = vor.u32 %v5499_v45, %v4981_v61  ;;  %v5581_v17 = vld [vmem:[#allocation5 + $0x64] sm:$0xf]  ;;  %v1263_v8 = vadd.f32 %v1113_v42, %v325_v20  ;;  %v5578_v20 = vld [vmem:[#allocation5 + $0x4c] sm:$0xf] }
  0xff   :  { %9226 = vst [vmem:[#allocation114_spill] sm:$0xff] %v7016_v1  ;;  %v7028_v48 = vor.u32 %v5581_v17, %v5305_v21  ;;  %v7030_v1 = vpop.f32.mrf.mxu3  ;;  %v5493_v42 = vld [vmem:[%s8840_s2 + $0xa4] sm:$0xf]  ;;  %v7042_v45 = vor.u32 %v5496_v29, %v4955_v46  ;;  %v4957_v17 = vld [vmem:[%s8840_s2 + $0xb8] sm:$0xf0]  ;;  %v1115_v46 = vadd.f32 %v6877_v32, %v6744_v31  ;;  %v327_v32 = vadd.f32 %v6596_v59, %v6984_v34 }
 0x100   :  { %9227 = vst [vmem:[#allocation115_spill] sm:$0xff] %v7024_v49  ;;  %1204 = vmatpush.bf16.msra.mxu0 %v7018_v9  ;;  %v7048_v21 = vor.u32 %v5493_v42, %v4957_v17  ;;  %v5293_v61 = vld [vmem:[#allocation5 + $0x54] sm:$0xf0]  ;;  %v4931_v42 = vld [vmem:[%s8840_s2 + $0x70] sm:$0xf] }
 0x101   :  { %1553 = vmatpush.bf16.msrb.mxu1 %v7000_v16  ;;  %9228 = vst [vmem:[#allocation116_spill] sm:$0xff] %v7028_v48  ;;  %v7052_v16 = vor.u32 %v5578_v20, %v5293_v61  ;;  %v5487_v17 = vld [vmem:[%s8840_s2 + $0x74] sm:$0xf]  ;;  %v4933_v31 = vld [vmem:[%s8840_s2 + $0x88] sm:$0xf0] }
 0x102   :  { %1688 = vmatpush.bf16.msra.mxu3 %v6110_v26  ;;  %1232 = vmatpush.bf16.msra.mxu2 %v7024_v49  ;;  %9229 = vst [vmem:[#allocation117_spill] sm:$0xff] %v7042_v45  ;;  %v5249_v26 = vmul.f32 -1.442695, %v1263_v8  ;;  %v5490_v8 = vld [vmem:[%s8840_s2 + $0x84] sm:$0xf0] }
 0x103   :  { %9230 = vst [vmem:[#allocation118_spill] sm:$0xff] %v7048_v21  ;;  %v7070_v61 = vor.u32 %v5490_v8, %v4931_v42  ;;  %v1265_v8 = vadd.f32 %v1115_v46, %v327_v32  ;;  %v4907_v59 = vld [vmem:[%s8840_s2 + $0x40] sm:$0xf] }
 0x104   :  { %1205 = vmatpush.bf16.msra.mxu0 %v7042_v45  ;;  %9231 = vst [vmem:[#allocation119_spill] sm:$0xff] %v7052_v16  ;;  %5612 = vpow2.f32 %v5249_v26  ;;  %v4909_v26 = vld [vmem:[%s8840_s2 + $0x58] sm:$0xf0] }
 0x105   :  { %1554 = vmatpush.bf16.msrb.mxu1 %v7028_v48  ;;  %v7056_v29 = vpop.f32.mrf.mxu0  ;;  %9234 = vst [vmem:[#allocation122_spill] sm:$0xff] %v7070_v61  ;;  %v5281_v48 = vld [vmem:[#allocation5 + $0x3c] sm:$0xf0]  ;;  %v5251_v34 = vmul.f32 -1.442695, %v1265_v8 }
 0x106   :  { %1689 = vmatpush.bf16.msra.mxu3 %v6119_v35  ;;  %9232 = vst [vmem:[#allocation120_spill] sm:$0xff] %v7056_v29  ;;  %1233 = vmatpush.bf16.msra.mxu2 %v7048_v21  ;;  %v7068_v20 = vpop.f32.mrf.mxu1  ;;  %v7078_v29 = vor.u32 %v5487_v17, %v4933_v31  ;;  %v5575_v35 = vld [vmem:[#allocation5 + $0x34] sm:$0xf]  ;;  %v7081_v21 = vperm.slane %v6960_v19, 1  ;;  %v5484_v17 = vld [vmem:[%s8840_s2 + $0x54] sm:$0xf0] }
 0x107   :  { %9233 = vst [vmem:[#allocation121_spill] sm:$0xff] %v7068_v20  ;;  %v7085_v42 = vor.u32 %v5575_v35, %v5281_v48  ;;  %v5481_v31 = vld [vmem:[%s8840_s2 + $0x44] sm:$0xf]  ;;  %v7097_v20 = vor.u32 %v5484_v17, %v4907_v59  ;;  %v5572_v59 = vld [vmem:[#allocation5 + $0x1c] sm:$0xf]  ;;  %5614 = vpow2.f32 %v5251_v34 }
 0x108   :  { %9235 = vst [vmem:[#allocation123_spill] sm:$0xff] %v7078_v29  ;;  %1206 = vmatpush.bf16.msra.mxu0 %v7070_v61  ;;  %v7104_v48 = vor.u32 %v5481_v31, %v4909_v26  ;;  %v374_v46 = vadd.f32 %v6592_v0, %v7081_v21  ;;  %v5269_v17 = vld [vmem:[#allocation5 + $0x24] sm:$0xf0]  ;;  %v5475_v8 = vld [vmem:[%s8840_s2 + $0x14] sm:$0xf] }
 0x109   :  { %1555 = vmatpush.bf16.msrb.mxu1 %v7052_v16  ;;  %9236 = vst [vmem:[#allocation124_spill] sm:$0xff] %v7081_v21  ;;  %v7114_v16 = vor.u32 %v5572_v59, %v5269_v17  ;;  %v5478_v0 = vld [vmem:[%s8840_s2 + $0x24] sm:$0xf0]  ;;  %v5591_v17 = vld [vmem:[#allocation5 + $0xb0] sm:$0xf0] }
 0x10a   :  { %1690 = vmatpush.bf16.msra.mxu3 %v6128_v44  ;;  %9237 = vst [vmem:[#allocation125_spill] sm:$0xff] %v7085_v42  ;;  %1234 = vmatpush.bf16.msra.mxu2 %v7078_v29  ;;  %v5588_v34 = vld [vmem:[#allocation5 + $0x98] sm:$0xf0] }
 0x10b   :  { %9238 = vst [vmem:[#allocation126_spill] sm:$0xff] %v7097_v20 }
 0x10c   :  { %9239 = vst [vmem:[#allocation127_spill] sm:$0xff] %v7104_v48  ;;  %1207 = vmatpush.bf16.msra.mxu0 %v7097_v20 }
 0x10d   :  { %1556 = vmatpush.bf16.msrb.mxu1 %v7085_v42  ;;  %v7111_v44 = vpop.f32.mrf.mxu0  ;;  %9241 = vst [vmem:[#allocation129_spill] sm:$0xff] %v7114_v16  ;;  %v5347_v42 = vld [vmem:[#allocation5 + $0xb0] sm:$0xf] }
 0x10e   :  { %1691 = vmatpush.bf16.msra.mxu3 %v6137_v53  ;;  %9240 = vst [vmem:[#allocation128_spill] sm:$0xff] %v7111_v44  ;;  %1235 = vmatpush.bf16.msra.mxu2 %v7104_v48  ;;  %v7116_v26 = vpop.f32.mrf.mxu1  ;;  %v376_v48 = vadd.f32 %v6598_v11, %v7081_v21 }
 0x10f   :  { %9242 = vst [vmem:[#allocation130_spill] sm:$0xff] %v7116_v26 }
 0x111   :  { %1557 = vmatpush.bf16.msrb.mxu1 %v7114_v16  ;;  %v5592_v16 = vld [vmem:[#allocation5 + $0xb8] sm:$0xf0] }
 0x112   :  { %1692 = vmatpush.bf16.msra.mxu3 %v6146_v2  ;;  %v5257_v2 = vld [vmem:[#allocation5 + $0xc] sm:$0xf0] }
 0x115   :  { %v1140_v35 = vpop.f32.mrf.mxu3 }
 0x116   :  { %v1141_v32 = vadd.f32 %v1140_v35, %v6962_v56  ;;  %v4883_v56 = vld [vmem:[%s8840_s2 + $0x10] sm:$0xf]  ;;  %v5613_v35 = vpop.eup %5612  ;;  %1693 = vmatpush.bf16.msra.mxu3 %v6173_v14 }
 0x117   :  { %v7128_v59 = vor.u32 %v5478_v0, %v4883_v56  ;;  %v5569_v56 = vld [vmem:[#allocation5 + $0x4] sm:$0xf]  ;;  %v7139_v0 = vadd.f32 1.0, %v5613_v35 }
 0x118   :  { %v1264_v31 = vadd.f32 %v1141_v32, %v374_v46  ;;  %v4885_v46 = vld [vmem:[%s8840_s2 + $0x28] sm:$0xf0]  ;;  %v5339_v32 = vld [vmem:[#allocation5 + $0xa8] sm:$0xf] }
 0x119   :  { %9243 = vst [vmem:[#allocation131_spill] sm:$0xff] %v7128_v59  ;;  %v7134_v26 = vor.u32 %v5475_v8, %v4885_v46  ;;  %v7136_v53 = vor.u32 %v5591_v17, %v5339_v32  ;;  %1208 = vmatpush.bf16.msra.mxu0 %v7128_v59  ;;  %v7145_v46 = vor.u32 %v5569_v56, %v5257_v2  ;;  %v5327_v32 = vld [vmem:[#allocation5 + $0x90] sm:$0xf]  ;;  %v5335_v17 = vld [vmem:[#allocation5 + $0x98] sm:$0xf]  ;;  %v7161_v56 = vpop.f32.mrf.mxu1  ;;  %vm1288_vm1 = vweird.f32 %v7139_v0 }
 0x11a   :  { %v5250_v44 = vmul.f32 -1.442695, %v1264_v31  ;;  %v7143_v31 = vor.u32 %v5592_v16, %v5347_v42  ;;  %v5589_v16 = vld [vmem:[#allocation5 + $0xa0] sm:$0xf0]  ;;  %v7154_v42 = vpop.f32.mrf.mxu0  ;;  %1742 = vmatpush.bf16.msrb.mxu3 %v6182_v18  ;;  %9251 = vst [vmem:[#allocation139_spill] sm:$0xff] %v7161_v56  ;;  %v7200_v18 = vpop.f32.mrf.mxu2 }
 0x11b   :  { %9244 = vst [vmem:[#allocation132_spill] sm:$0xff] %v7134_v26  ;;  %1236 = vmatpush.bf16.msra.mxu2 %v7134_v26  ;;  %1558 = vmatpush.bf16.msrb.mxu1 %v7145_v46  ;;  %v7158_v2 = vor.u32 %v5589_v16, %v5335_v17  ;;  %v5315_v17 = vld [vmem:[#allocation5 + $0x78] sm:$0xf]  ;;  %v5585_v16 = vld [vmem:[#allocation5 + $0x80] sm:$0xf0] }
 0x11c   :  { %9245 = vst [vmem:[#allocation133_spill] sm:$0xff] %v7136_v53  ;;  %5616 = vpow2.f32 %v5250_v44  ;;  %v7152_v44 = vor.u32 %v5588_v34, %v5327_v32  ;;  %1209 = vmatmul.bf16.vlgmr.msra.gmra.mxu0 %v9193_v22  ;;  %v5586_v56 = vld [vmem:[#allocation5 + $0x88] sm:$0xf0] }
 0x11d   :  { %1537 = vmatpush.bf16.msrb.mxu0 %v7136_v53  ;;  %9246 = vst [vmem:[#allocation134_spill] sm:$0xff] %v7143_v31  ;;  %v1142_v8 = vpop.f32.mrf.mxu3  ;;  %5618 = vrcp.f32 %v7139_v0 }
 0x11e   :  { %9247 = vst [vmem:[#allocation135_spill] sm:$0xff] %v7145_v46  ;;  %v1143_v35 = vadd.f32 %v1142_v8, %v7030_v1  ;;  %v5615_v1 = vpop.eup %5614  ;;  %1743 = vmatpush.bf16.msrb.mxu3 %v6209_v28  ;;  %1237 = vmatmul.bf16.vlgmr.msra.gmra.mxu2 %v9193_v22 }
 0x11f   :  { %1565 = vmatpush.bf16.msrb.mxu2 %v7143_v31  ;;  %9248 = vst [vmem:[#allocation136_spill] sm:$0xff] %v7152_v44  ;;  %1714 = vmatpush.bf16.msra.mxu1 %v6322_v4 }
 0x120   :  { %9249 = vst [vmem:[#allocation137_spill] sm:$0xff] %v7154_v42  ;;  %v1266_v11 = vadd.f32 %v1143_v35, %v376_v48  ;;  %v7170_v48 = vadd.f32 1.0, %v5615_v1  ;;  %v7173_v35 = vor.u32 %v5585_v16, %v5315_v17  ;;  %v5323_v42 = vld [vmem:[#allocation5 + $0x80] sm:$0xf] }
 0x121   :  { %9250 = vst [vmem:[#allocation138_spill] sm:$0xff] %v7158_v2  ;;  %1538 = vmatpush.bf16.msrb.mxu0 %v7152_v44  ;;  %v5303_v1 = vld [vmem:[#allocation5 + $0x60] sm:$0xf]  ;;  %v7186_v17 = vpop.f32.mrf.mxu1 }
 0x122   :  { %v5617_v8 = vpop.eup %5616  ;;  %v5252_v32 = vmul.f32 -1.442695, %v1266_v11  ;;  %9252 = vst [vmem:[#allocation140_spill] sm:$0xff] %v7173_v35  ;;  %v7182_v21 = vpop.f32.mrf.mxu0  ;;  %1744 = vmatpush.bf16.msrb.mxu3 %v6239_v39  ;;  %vm1318_vm8 = vweird.f32 %v7170_v48 }
 0x123   :  { %1566 = vmatpush.bf16.msrb.mxu2 %v7158_v2  ;;  %v7167_v34 = vadd.f32 1.0, %v5617_v8  ;;  %1715 = vmatpush.bf16.msra.mxu1 %v6332_v7  ;;  %v7176_v11 = vpop.eup %5618  ;;  %v7179_v8 = vor.u32 %v5586_v56, %v5323_v42  ;;  %9254 = vst [vmem:[#allocation142_spill] sm:$0xff] %v7182_v21  ;;  %v5311_v42 = vld [vmem:[#allocation5 + $0x68] sm:$0xf]  ;;  %v5583_v56 = vld [vmem:[#allocation5 + $0x70] sm:$0xf0] }
 0x124   :  { %5620 = vpow2.f32 %v5252_v32  ;;  %v5582_v32 = vld [vmem:[#allocation5 + $0x68] sm:$0xf0]  ;;  %9255 = vst [vmem:[#allocation143_spill] sm:$0xff] %v7186_v17  ;;  %v1284_v16 = vmul.f32 %v7176_v11, %v7139_v0  ;;  %v7194_v21 = vor.u32 %v5583_v56, %v5311_v42  ;;  %v5291_v17 = vld [vmem:[#allocation5 + $0x48] sm:$0xf]  ;;  %vm1289_vm0 = vweird.f32 %v7176_v11 }
 0x125   :  { %1539 = vmatpush.bf16.msrb.mxu0 %v7173_v35  ;;  %9253 = vst [vmem:[#allocation141_spill] sm:$0xff] %v7179_v8  ;;  %5622 = vrcp.f32 %v7167_v34  ;;  %v7190_v22 = vor.u32 %v5582_v32, %v5303_v1  ;;  %v5579_v7 = vld [vmem:[#allocation5 + $0x50] sm:$0xf0]  ;;  %v5299_v32 = vld [vmem:[#allocation5 + $0x50] sm:$0xf]  ;;  %vm7262_vm2 = vmor %vm1288_vm1, %vm1289_vm0  ;;  %vm1303_vm6 = vweird.f32 %v7167_v34 }
 0x126   :  { %5624 = vrcp.f32 %v7170_v48  ;;  %9257 = vst [vmem:[#allocation145_spill] sm:$0xff] %v7194_v21  ;;  %1745 = vmatpush.bf16.msrb.mxu3 %v6295_v58  ;;  %v7204_v1 = vor.u32 %v5579_v7, %v5291_v17  ;;  %v5580_v42 = vld [vmem:[#allocation5 + $0x58] sm:$0xf0] }
 0x127   :  { %1567 = vmatpush.bf16.msrb.mxu2 %v7179_v8  ;;  %1716 = vmatpush.bf16.msra.mxu1 %v6348_v12  ;;  %9256 = vst [vmem:[#allocation144_spill] sm:$0xff] %v7190_v22  ;;  %v1285_v12 = vsub.f32 1.0, %v1284_v16  ;;  %v5576_v7 = vld [vmem:[#allocation5 + $0x38] sm:$0xf0] }
 0x128   :  { %9258 = vst [vmem:[#allocation146_spill] sm:$0xff] %v7204_v1 }
 0x129   :  { %1540 = vmatpush.bf16.msrb.mxu0 %v7190_v22  ;;  %v7219_v14 = vpop.f32.mrf.mxu1  ;;  %v1286_v46 = vmul.f32 %v7176_v11, %v1285_v12  ;;  %v5574_v12 = vld [vmem:[#allocation5 + $0x28] sm:$0xf0] }
 0x12a   :  { %v5621_v39 = vpop.eup %5620  ;;  %v7214_v58 = vpop.f32.mrf.mxu0  ;;  %1746 = vmatpush.bf16.msrb.mxu3 %v6366_v24  ;;  %9261 = vst [vmem:[#allocation149_spill] sm:$0xff] %v7219_v14  ;;  %v5267_v14 = vld [vmem:[#allocation5 + $0x18] sm:$0xf] }
 0x12b   :  { %v7197_v28 = vadd.f32 1.0, %v5621_v39  ;;  %1568 = vmatpush.bf16.msrb.mxu2 %v7194_v21  ;;  %1717 = vmatpush.bf16.msra.mxu1 %v6374_v30  ;;  %v7206_v56 = vpop.eup %5622  ;;  %v7211_v39 = vor.u32 %v5580_v42, %v5299_v32  ;;  %9260 = vst [vmem:[#allocation148_spill] sm:$0xff] %v7214_v58  ;;  %v5279_v30 = vld [vmem:[#allocation5 + $0x30] sm:$0xf]  ;;  %v5287_v32 = vld [vmem:[#allocation5 + $0x38] sm:$0xf] }
 0x12c   :  { %v7208_v4 = vpop.eup %5624  ;;  %v1299_v17 = vmul.f32 %v7206_v56, %v7167_v34  ;;  %v7223_v16 = vor.u32 %v5576_v7, %v5279_v30  ;;  %v5577_v42 = vld [vmem:[#allocation5 + $0x40] sm:$0xf0]  ;;  %vm1304_vm4 = vweird.f32 %v7206_v56 }
 0x12d   :  { %1541 = vmatpush.bf16.msrb.mxu0 %v7204_v1  ;;  %9259 = vst [vmem:[#allocation147_spill] sm:$0xff] %v7211_v39  ;;  %5626 = vrcp.f32 %v7197_v28  ;;  %v1314_v58 = vmul.f32 %v7208_v4, %v7170_v48  ;;  %v7228_v24 = vor.u32 %v5577_v42, %v5287_v32  ;;  %v5573_v21 = vld [vmem:[#allocation5 + $0x20] sm:$0xf0]  ;;  %v1287_v32 = vadd.f32 %v7176_v11, %v1286_v46  ;;  %vm7295_vm7 = vmor %vm1303_vm6, %vm1304_vm4 }
 0x12e   :  { %9262 = vst [vmem:[#allocation150_spill] sm:$0xff] %v7223_v16  ;;  %1747 = vmatpush.bf16.msrb.mxu3 %v6433_v63  ;;  %v1300_v8 = vsub.f32 1.0, %v1299_v17  ;;  %v7234_v30 = vor.u32 %v5573_v21, %v5267_v14  ;;  %v7243_v63 = vperm.slane %v6960_v19, 2  ;;  %v1292_v17 = vand.u32 2147483647, %v7139_v0  ;;  %v7252_v21 = vpop.f32.mrf.mxu2 }
 0x12f   :  { %1569 = vmatpush.bf16.msrb.mxu2 %v7211_v39  ;;  %1718 = vmatpush.bf16.msra.mxu1 %v6385_v36  ;;  %9263 = vst [vmem:[#allocation151_spill] sm:$0xff] %v7228_v24  ;;  %v5275_v39 = vld [vmem:[#allocation5 + $0x20] sm:$0xf]  ;;  %v1315_v42 = vsub.f32 1.0, %v1314_v58  ;;  %v5570_v19 = vld [vmem:[#allocation5 + $0x8] sm:$0xf0]  ;;  %vm1319_vm5 = vweird.f32 %v7208_v4  ;;  %vm1333_vm13 = vweird.f32 %v7197_v28 }
 0x130   :  { %9264 = vst [vmem:[#allocation152_spill] sm:$0xff] %v7234_v30  ;;  %v7240_v36 = vor.u32 %v5574_v12, %v5275_v39  ;;  %v7250_v14 = vld [vmem:[%s8842_s4] ss:$0 sm:$0xff]  ;;  %v5263_v39 = vld [vmem:[#allocation5 + $0x8] sm:$0xf]  ;;  %v1301_v12 = vmul.f32 %v7206_v56, %v1300_v8  ;;  %v1291_v8 = vsel %vm7262_vm2, %v7176_v11, %v1287_v32  ;;  %vm1293_vm3 = vcmp.eq.f32.partialorder %v1292_v17, 8.507059e+37  ;;  %vm1320_vm9 = vmor %vm1318_vm8, %vm1319_vm5 }
 0x131   :  { %1542 = vmatpush.bf16.msrb.mxu0 %v7223_v16  ;;  %v5255_v58 = vld [vmem:[#allocation5] sm:$0xf]  ;;  %v1168_v2 = vpop.f32.mrf.mxu1 }
 0x132   :  { %9265 = vst [vmem:[#allocation153_spill] sm:$0xff] %v7240_v36  ;;  %v1154_v46 = vpop.f32.mrf.mxu0  ;;  %1748 = vmatpush.bf16.msrb.mxu3 %v6498_v13  ;;  %v5571_v13 = vld [vmem:[#allocation5 + $0x10] sm:$0xf0]  ;;  %v1302_v31 = vadd.f32 %v7206_v56, %v1301_v12 }
 0x133   :  { %1570 = vmatpush.bf16.msrb.mxu2 %v7228_v24  ;;  %1719 = vmatpush.bf16.msra.mxu1 %v6394_v41  ;;  %v7236_v7 = vpop.eup %5626  ;;  %v1294_v24 = vand.u32 2147483648, %v7139_v0  ;;  %v7268_v0 = vor.u32 %v5570_v19, %v5255_v58  ;;  %v1169_v26 = vadd.f32 %v1168_v2, %v1154_v46  ;;  %v7274_v16 = vor.u32 %v5571_v13, %v5263_v39 }
 0x134   :  { %v1329_v41 = vmul.f32 %v7236_v7, %v7197_v28  ;;  %vm1334_vm12 = vweird.f32 %v7236_v7 }
 0x135   :  { %1543 = vmatpush.bf16.msrb.mxu0 %v7234_v30  ;;  %9268 = vst [vmem:[#allocation154_spill] sm:$0xff] %v7268_v0  ;;  %v1316_v30 = vmul.f32 %v7208_v4, %v1315_v42  ;;  %v1295_v29 = vor.u32 1.1754944e-38, %v1294_v24  ;;  %v1346_v58 = vadd.f32 %v7250_v14, %v1169_v26  ;;  %v1309_v24 = vand.u32 2147483648, %v7167_v34  ;;  %vm1335_vm14 = vmor %vm1333_vm13, %vm1334_vm12 }
 0x136   :  { %9269 = vst [vmem:[#allocation155_spill] sm:$0xff] %v7274_v16  ;;  %1749 = vmatpush.bf16.msrb.mxu3 %v6553_v57  ;;  %v1330_v2 = vsub.f32 1.0, %v1329_v41  ;;  %v1307_v26 = vand.u32 2147483647, %v7167_v34  ;;  %v1324_v41 = vand.u32 2147483648, %v7170_v48  ;;  %v1306_v34 = vsel %vm7295_vm7, %v7206_v56, %v1302_v31 }
 0x137   :  { %1571 = vmatpush.bf16.msrb.mxu2 %v7240_v36  ;;  %1720 = vmatpush.bf16.msra.mxu1 %v6409_v50  ;;  %v423_v36 = vadd.f32 %v7200_v18, %v7243_v63  ;;  %v1296_v13 = vsel %vm1293_vm3, %v1295_v29, %v1291_v8  ;;  %v1317_v11 = vadd.f32 %v7208_v4, %v1316_v30  ;;  %v7293_v29 = vpop.f32.mrf.mxu2  ;;  %v1322_v30 = vand.u32 2147483647, %v7170_v48 }
 0x138   :  { %v1348_v18 = vmul.f32 %v1346_v58, %v1296_v13  ;;  %v1331_v46 = vmul.f32 %v7236_v7, %v1330_v2  ;;  %v1310_v39 = vor.u32 1.1754944e-38, %v1309_v24  ;;  %vm1308_vm10 = vcmp.eq.f32.partialorder %v1307_v26, 8.507059e+37 }
 0x139   :  { %1544 = vmatpush.bf16.msrb.mxu0 %v7268_v0  ;;  %v1170_v19 = vpop.f32.mrf.mxu1  ;;  %v1321_v12 = vsel %vm1320_vm9, %v7208_v4, %v1317_v11  ;;  %v1325_v48 = vor.u32 1.1754944e-38, %v1324_v41  ;;  %vm1323_vm11 = vcmp.eq.f32.partialorder %v1322_v30, 8.507059e+37  ;;  %v1339_v2 = vand.u32 2147483648, %v7197_v28 }
 0x13a   :  { %v1350_v42 = vadd.f32 %v1348_v18, %v423_v36  ;;  %v1156_v17 = vpop.f32.mrf.mxu0  ;;  %v1311_v8 = vsel %vm1308_vm10, %v1310_v39, %v1306_v34  ;;  %v1332_v56 = vadd.f32 %v7236_v7, %v1331_v46  ;;  %v425_v4 = vadd.f32 %v7252_v21, %v7243_v63 }
 0x13b   :  { %1572 = vmatpush.bf16.msrb.mxu2 %v7274_v16  ;;  %1721 = vmatpush.bf16.msra.mxu1 %v6441_v5  ;;  %v1171_v36 = vadd.f32 %v1170_v19, %v1156_v17  ;;  %v1326_v31 = vsel %vm1323_vm11, %v1325_v48, %v1321_v12  ;;  %v1337_v24 = vand.u32 2147483647, %v7197_v28  ;;  %v1354_v18 = vsub.f32 1.0, %v1311_v8 }
 0x13c   :  { %5628 = vtanh.f32 %v1350_v42  ;;  %v1358_v32 = vmul.f32 0.0, %v1311_v8  ;;  %v1336_v42 = vsel %vm1335_vm14, %v7236_v7, %v1332_v56  ;;  %v1340_v21 = vor.u32 1.1754944e-38, %v1339_v2 }
 0x13d   :  { %1700 = vmatpush.bf16.msra.mxu0 %v6175_v15  ;;  %v1347_v58 = vadd.f32 %v7250_v14, %v1171_v36  ;;  %vm1338_vm15 = vcmp.eq.f32.partialorder %v1337_v24, 8.507059e+37  ;;  %v9277_v24 = vld [vmem:[#allocation67_spill] sm:$0xff] }
 0x13e   :  { %v1341_v28 = vsel %vm1338_vm15, %v1340_v21, %v1336_v42  ;;  %v9284_v21 = vld [vmem:[#allocation78_spill] sm:$0xff] }
 0x13f   :  { %1728 = vmatpush.bf16.msra.mxu2 %v6444_v6  ;;  %v1349_v13 = vmul.f32 %v1347_v58, %v1326_v31  ;;  %v7322_v17 = vpop.f32.mrf.mxu2  ;;  %v1355_v46 = vsub.f32 1.0, %v1341_v28  ;;  %v1359_v7 = vmul.f32 0.0, %v1341_v28  ;;  %v9273_v31 = vld [vmem:[#allocation58_spill] sm:$0xff]  ;;  %v9285_v28 = vld [vmem:[#allocation32_spill] sm:$0xff] }
 0x141   :  { %1701 = vmatpush.bf16.msra.mxu0 %v6207_v27  ;;  %v1351_v26 = vadd.f32 %v1349_v13, %v425_v4  ;;  %v9275_v4 = vld [vmem:[#allocation20_spill] sm:$0xff]  ;;  %v9276_v13 = vld [vmem:[#allocation59_spill] sm:$0xff] }
 0x142   :  { %v5629_v11 = vpop.eup %5628 }
 0x143   :  { %1729 = vmatpush.bf16.msra.mxu2 %v6455_v25  ;;  %v1356_v41 = vmul.f32 %v5629_v11, %v1354_v18  ;;  %5630 = vtanh.f32 %v1351_v26  ;;  %v9278_v18 = vld [vmem:[#allocation23_spill] sm:$0xff]  ;;  %v9279_v11 = vld [vmem:[#allocation62_spill] sm:$0xff]  ;;  %v9280_v26 = vld [vmem:[#allocation69_spill] sm:$0xff] }
 0x145   :  { %1702 = vmatpush.bf16.msra.mxu0 %v6236_v38  ;;  %v7325_v30 = vadd.f32 %v1358_v32, %v1356_v41  ;;  %v9281_v41 = vld [vmem:[#allocation26_spill] sm:$0xff]  ;;  %v9282_v32 = vld [vmem:[#allocation63_spill] sm:$0xff] }
 0x147   :  { %1730 = vmatpush.bf16.msra.mxu2 %v6470_v54  ;;  %v1362_v39 = vpack.c.bf16 %v7325_v30, %v7325_v30  ;;  %v7335_v12 = vpop.f32.mrf.mxu2 }
 0x148   :  { %9272 = vst [vmem:[#allocation156_spill] sm:$0xff] %v7335_v12  ;;  %v9296_v12 = vld [vmem:[#allocation73_spill] sm:$0xff] }
 0x149   :  { %1703 = vmatpush.bf16.msra.mxu0 %v6251_v43  ;;  %v5631_v34 = vpop.eup %5630  ;;  %v1405_v8 = vunpack.c.l.b16 %v1362_v39  ;;  %v9290_v39 = vld [vmem:[#allocation93_spill] sm:$0xff] }
 0x14a   :  { %v1357_v19 = vmul.f32 %v5631_v34, %v1355_v46  ;;  %v9286_v46 = vld [vmem:[#allocation66_spill] sm:$0xff]  ;;  %v9287_v34 = vld [vmem:[#allocation89_spill] sm:$0xff] }
 0x14b   :  { %1731 = vmatpush.bf16.msra.mxu2 %v6487_v62 }
 0x14c   :  { %v7333_v36 = vadd.f32 %v1359_v7, %v1357_v19  ;;  %v9288_v19 = vld [vmem:[#allocation38_spill] sm:$0xff]  ;;  %v9289_v7 = vld [vmem:[#allocation68_spill] sm:$0xff] }
 0x14d   :  { %1704 = vmatpush.bf16.msra.mxu0 %v6262_v47 }
 0x14e   :  { %v1363_v48 = vpack.c.bf16 %v7333_v36, %v7333_v36 }
 0x14f   :  { %1732 = vmatpush.bf16.msra.mxu2 %v6507_v40  ;;  %v7351_v2 = vpop.f32.mrf.mxu2 }
 0x150   :  { %v1406_v58 = vunpack.c.l.b16 %v1363_v48  ;;  %9274 = vst [vmem:[#allocation58_spill] sm:$0xff] %v7351_v2  ;;  %v9295_v2 = vld [vmem:[#allocation51_spill] sm:$0xff] }
 0x151   :  { %1705 = vmatpush.bf16.msra.mxu0 %v6276_v51 }
 0x152   :  { %v7342_v56 = vpack.c.b16 %v1406_v58, %v1405_v8  ;;  %v9292_v8 = vld [vmem:[#allocation44_spill] sm:$0xff] }
 0x153   :  { %1733 = vmatpush.bf16.msra.mxu2 %v6517_v10  ;;  %v9293_v58 = vld [vmem:[#allocation72_spill] sm:$0xff] }
 0x154   :  { %1545 = vmatmul.bf16.vlgmr.msrb.gmra.mxu0 %v7342_v56  ;;  %1559 = vmatmul.bf16.vlgmr.msrb.gmra.mxu1 %v7342_v56 }
 0x155   :  { %1706 = vmatpush.bf16.msra.mxu0 %v6301_v60  ;;  %1573 = vmatmul.bf16.vlgmr.msrb.gmra.mxu2 %v7342_v56 }
 0x156   :  { %1694 = vmatmul.bf16.vlgmr.msra.gmra.mxu3 %v7342_v56  ;;  %1770 = vmatpush.bf16.msrb.mxu1 %v9273_v31 }
 0x157   :  { %1734 = vmatpush.bf16.msra.mxu2 %v6531_v33  ;;  %1798 = vmatpush.bf16.msra.mxu3 %v6909_v23  ;;  %v7363_v42 = vpop.f32.mrf.mxu2 }
 0x158   :  { %9283 = vst [vmem:[#allocation20_spill] sm:$0xff] %v7363_v42  ;;  %v9294_v42 = vld [vmem:[#allocation97_spill] sm:$0xff] }
 0x159   :  { %1707 = vmatpush.bf16.msra.mxu0 %v6320_v3 }
 0x15a   :  { %1771 = vmatpush.bf16.msrb.mxu1 %v9277_v24 }
 0x15b   :  { %1735 = vmatpush.bf16.msra.mxu2 %v6542_v52  ;;  %1799 = vmatpush.bf16.msra.mxu3 %v6952_v37 }
 0x15d   :  { %1756 = vmatpush.bf16.msrb.mxu0 %v9275_v4 }
 0x15e   :  { %1772 = vmatpush.bf16.msrb.mxu1 %v9280_v26 }
 0x15f   :  { %1784 = vmatpush.bf16.msrb.mxu2 %v9276_v13  ;;  %1800 = vmatpush.bf16.msra.mxu3 %v6986_v55  ;;  %v7377_v48 = vpop.f32.mrf.mxu2 }
 0x160   :  { %9291 = vst [vmem:[#allocation59_spill] sm:$0xff] %v7377_v48 }
 0x161   :  { %1757 = vmatpush.bf16.msrb.mxu0 %v9278_v18 }
 0x162   :  { %1773 = vmatpush.bf16.msrb.mxu1 %v9284_v21 }
 0x163   :  { %1785 = vmatpush.bf16.msrb.mxu2 %v9279_v11  ;;  %1801 = vmatpush.bf16.msra.mxu3 %v7018_v9 }
 0x164   :  { %1722 = vmatmul.bf16.vlgmr.msra.gmra.mxu1 %v7342_v56 }
 0x165   :  { %1758 = vmatpush.bf16.msrb.mxu0 %v9281_v41 }
 0x166   :  { %1750 = vmatmul.bf16.vlgmr.msrb.gmra.mxu3 %v7342_v56  ;;  %1774 = vmatpush.bf16.msrb.mxu1 %v9287_v34 }
 0x167   :  { %1786 = vmatpush.bf16.msrb.mxu2 %v9282_v32  ;;  %1802 = vmatpush.bf16.msra.mxu3 %v7042_v45  ;;  %v7389_v48 = vpop.f32.mrf.mxu2 }
 0x168   :  { %9300 = vst [vmem:[#allocation67_spill] sm:$0xff] %v7389_v48  ;;  %v9305_v48 = vld [vmem:[#allocation118_spill] sm:$0xff] }
 0x169   :  { %1759 = vmatpush.bf16.msrb.mxu0 %v9285_v28 }
 0x16a   :  { %1775 = vmatpush.bf16.msrb.mxu1 %v9290_v39  ;;  %v9298_v39 = vld [vmem:[#allocation102_spill] sm:$0xff] }
 0x16b   :  { %1787 = vmatpush.bf16.msrb.mxu2 %v9286_v46  ;;  %1803 = vmatpush.bf16.msra.mxu3 %v7070_v61  ;;  %v9299_v61 = vld [vmem:[#allocation57_spill] sm:$0xff] }
 0x16d   :  { %1760 = vmatpush.bf16.msrb.mxu0 %v9288_v19  ;;  %v9297_v19 = vld [vmem:[#allocation101_spill] sm:$0xff] }
 0x16e   :  { %1776 = vmatpush.bf16.msrb.mxu1 %v9294_v42 }
 0x16f   :  { %1788 = vmatpush.bf16.msrb.mxu2 %v9289_v7  ;;  %1804 = vmatpush.bf16.msra.mxu3 %v7097_v20 }
 0x171   :  { %1761 = vmatpush.bf16.msrb.mxu0 %v9292_v8  ;;  %v9301_v8 = vld [vmem:[#allocation76_spill] sm:$0xff] }
 0x172   :  { %1777 = vmatpush.bf16.msrb.mxu1 %v9297_v19  ;;  %v9303_v19 = vld [vmem:[#allocation111_spill] sm:$0xff] }
 0x173   :  { %1789 = vmatpush.bf16.msrb.mxu2 %v9293_v58  ;;  %1805 = vmatpush.bf16.msra.mxu3 %v7128_v59 }
 0x175   :  { %1762 = vmatpush.bf16.msrb.mxu0 %v9295_v2  ;;  %1778 = vmatmul.bf16.vlgmr.msrb.gmra.mxu1 %v7342_v56  ;;  %v9302_v2 = vld [vmem:[#allocation108_spill] sm:$0xff] }
 0x176   :  { %1826 = vmatpush.bf16.msra.mxu1 %v9298_v39  ;;  %1806 = vmatmul.bf16.vlgmr.msra.gmra.mxu3 %v7342_v56  ;;  %v7399_v39 = vpop.f32.mrf.mxu2 }
 0x177   :  { %1790 = vmatpush.bf16.msrb.mxu2 %v9296_v12  ;;  %1965 = vmatpush.bf16.msrb.mxu3 %v7136_v53  ;;  %9304 = vst [vmem:[#allocation23_spill] sm:$0xff] %v7399_v39  ;;  %v9306_v53 = vld [vmem:[#allocation123_spill] sm:$0xff]  ;;  %v9312_v39 = vld [vmem:[#allocation134_spill] sm:$0xff] }
 0x179   :  { %1763 = vmatpush.bf16.msrb.mxu0 %v9299_v61 }
 0x17a   :  { %1827 = vmatpush.bf16.msra.mxu1 %v9302_v2  ;;  %v9308_v2 = vld [vmem:[#allocation150_spill] sm:$0xff] }
 0x17b   :  { %1791 = vmatpush.bf16.msrb.mxu2 %v9301_v8  ;;  %1966 = vmatpush.bf16.msrb.mxu3 %v7152_v44  ;;  %v9309_v44 = vld [vmem:[#allocation127_spill] sm:$0xff] }
 0x17e   :  { %1828 = vmatpush.bf16.msra.mxu1 %v9303_v19  ;;  %v7406_v8 = vpop.f32.mrf.mxu2  ;;  %v9310_v19 = vld [vmem:[#allocation152_spill] sm:$0xff] }
 0x17f   :  { %1967 = vmatpush.bf16.msrb.mxu3 %v7173_v35  ;;  %9307 = vst [vmem:[#allocation62_spill] sm:$0xff] %v7406_v8  ;;  %v9311_v35 = vld [vmem:[#allocation132_spill] sm:$0xff]  ;;  %v9315_v8 = vld [vmem:[#allocation141_spill] sm:$0xff] }
 0x182   :  { %1829 = vmatpush.bf16.msra.mxu1 %v7024_v49 }
 0x183   :  { %1968 = vmatpush.bf16.msrb.mxu3 %v7190_v22 }
 0x186   :  { %1830 = vmatpush.bf16.msra.mxu1 %v9305_v48  ;;  %v7415_v48 = vpop.f32.mrf.mxu2 }
 0x187   :  { %1969 = vmatpush.bf16.msrb.mxu3 %v7204_v1  ;;  %9313 = vst [vmem:[#allocation69_spill] sm:$0xff] %v7415_v48  ;;  %v9319_v48 = vld [vmem:[#allocation151_spill] sm:$0xff] }
 0x18a   :  { %1831 = vmatpush.bf16.msra.mxu1 %v9306_v53  ;;  %v9314_v53 = vld [vmem:[#allocation138_spill] sm:$0xff] }
 0x18b   :  { %1970 = vmatpush.bf16.msrb.mxu3 %v9308_v2 }
 0x18e   :  { %1832 = vmatpush.bf16.msra.mxu1 %v9309_v44 }
 0x18f   :  { %1971 = vmatpush.bf16.msrb.mxu3 %v9310_v19  ;;  %v7422_v19 = vpop.f32.mrf.mxu2 }
 0x190   :  { %9316 = vst [vmem:[#allocation26_spill] sm:$0xff] %v7422_v19 }
 0x192   :  { %1833 = vmatpush.bf16.msra.mxu1 %v9311_v35  ;;  %v9317_v35 = vld [vmem:[#allocation145_spill] sm:$0xff] }
 0x193   :  { %1972 = vmatpush.bf16.msrb.mxu3 %v7268_v0  ;;  %v9318_v0 = vld [vmem:[#allocation147_spill] sm:$0xff] }
 0x195   :  { %1834 = vmatmul.bf16.vlgmr.msra.gmra.mxu1 %v7342_v56 }
 0x196   :  { %1993 = vmatpush.bf16.msrb.mxu1 %v9312_v39 }
 0x197   :  { %2125 = vmatpush.bf16.msra.mxu3 %v6175_v15  ;;  %v7430_v56 = vpop.f32.mrf.mxu2 }
 0x198   :  { %9320 = vst [vmem:[#allocation63_spill] sm:$0xff] %v7430_v56 }
 0x199   :  { %v1210_v56 = vpop.f32.mrf.mxu0 }
 0x19a   :  { %1994 = vmatpush.bf16.msrb.mxu1 %v9314_v53 }
 0x19b   :  { %2126 = vmatpush.bf16.msra.mxu3 %v6207_v27  ;;  %v9321_v27 = vld [vmem:[#allocation153_spill] sm:$0xff] }
 0x19e   :  { %1995 = vmatpush.bf16.msrb.mxu1 %v9315_v8 }
 0x19f   :  { %2127 = vmatpush.bf16.msra.mxu3 %v6236_v38  ;;  %v7437_v19 = vpop.f32.mrf.mxu2 }
 0x1a0   :  { %9322 = vst [vmem:[#allocation78_spill] sm:$0xff] %v7437_v19  ;;  %v510_v19 = vld [vmem:[%s8844_s6] sm:$0x7] }
 0x1a2   :  { %1996 = vmatpush.bf16.msrb.mxu1 %v9317_v35 }
 0x1a3   :  { %2128 = vmatpush.bf16.msra.mxu3 %v6251_v43 }
 0x1a6   :  { %1997 = vmatpush.bf16.msrb.mxu1 %v9318_v0 }
 0x1a7   :  { %2129 = vmatpush.bf16.msra.mxu3 %v6262_v47 }
 0x1aa   :  { %1998 = vmatpush.bf16.msrb.mxu1 %v9319_v48 }
 0x1ab   :  { %2130 = vmatpush.bf16.msra.mxu3 %v6276_v51  ;;  %v7442_v51 = vpop.f32.mrf.mxu2 }
 0x1ac   :  { %9323 = vst [vmem:[#allocation32_spill] sm:$0xff] %v7442_v51  ;;  %v7451_v51 = vperm.slane %v510_v19, 0 }
 0x1ae   :  { %1999 = vmatpush.bf16.msrb.mxu1 %v9321_v27  ;;  %9324 = vst [vmem:[#allocation66_spill] sm:$0xff] %v7451_v51 }
 0x1af   :  { %2131 = vmatpush.bf16.msra.mxu3 %v6301_v60  ;;  %v1224_v60 = vpop.f32.mrf.mxu1 }
 0x1b0   :  { %v1225_v48 = vadd.f32 %v1224_v60, %v1210_v56 }
 0x1b2   :  { %2000 = vmatpush.bf16.msrb.mxu1 %v7274_v16 }
 0x1b3   :  { %2132 = vmatpush.bf16.msra.mxu3 %v6320_v3  ;;  %v1182_v16 = vpop.f32.mrf.mxu2  ;;  %v1212_v3 = vpop.f32.mrf.mxu0 }
 0x1b6   :  { %2153 = vmatpush.bf16.msra.mxu1 %v6444_v6 }
 0x1b7   :  { %v1226_v6 = vpop.f32.mrf.mxu1 }
 0x1b8   :  { %v1227_v44 = vadd.f32 %v1226_v6, %v1212_v3 }
 0x1ba   :  { %2154 = vmatpush.bf16.msra.mxu1 %v6455_v25 }
 0x1be   :  { %2155 = vmatpush.bf16.msra.mxu1 %v6470_v54  ;;  %v1184_v54 = vpop.f32.mrf.mxu2 }
 0x1c2   :  { %2156 = vmatpush.bf16.msra.mxu1 %v6487_v62  ;;  %v1196_v62 = vpop.f32.mrf.mxu3 }
 0x1c3   :  { %v1197_v25 = vadd.f32 %v1196_v62, %v1182_v16 }
 0x1c6   :  { %2157 = vmatpush.bf16.msra.mxu1 %v6507_v40  ;;  %v7453_v40 = vperm.slane %v510_v19, 1  ;;  %v1238_v8 = vpop.f32.mrf.mxu2 }
 0x1c8   :  { %9325 = vst [vmem:[#allocation89_spill] sm:$0xff] %v7453_v40 }
 0x1ca   :  { %2158 = vmatpush.bf16.msra.mxu1 %v6517_v10  ;;  %v1198_v38 = vpop.f32.mrf.mxu3 }
 0x1cb   :  { %v1199_v39 = vadd.f32 %v1198_v38, %v1184_v54 }
 0x1ce   :  { %2159 = vmatpush.bf16.msra.mxu1 %v6531_v33 }
 0x1d1   :  { %v1546_v27 = vpop.f32.mrf.mxu0  ;;  %v1560_v10 = vpop.f32.mrf.mxu1 }
 0x1d2   :  { %2160 = vmatpush.bf16.msra.mxu1 %v6542_v52  ;;  %v1547_v33 = vadd.f32 %v1546_v27, %v7451_v51  ;;  %v1561_v47 = vadd.f32 %v1560_v10, %v7453_v40  ;;  %v1252_v3 = vpop.f32.mrf.mxu3 }
 0x1d4   :  { %v1579_v0 = vadd.f32 %v1547_v33, %v1197_v25  ;;  %v1580_v52 = vadd.f32 %v1561_v47, %v1225_v48  ;;  %v1253_v48 = vadd.f32 %v1252_v3, %v1238_v8 }
 0x1d6   :  { %v5349_v43 = vmul.f32 -1.442695, %v1579_v0  ;;  %v5350_v35 = vmul.f32 -1.442695, %v1580_v52 }
 0x1d8   :  { %5632 = vpow2.f32 %v5349_v43  ;;  %v1240_v43 = vpop.f32.mrf.mxu2 }
 0x1d9   :  { %5634 = vpow2.f32 %v5350_v35  ;;  %v1548_v53 = vpop.f32.mrf.mxu0  ;;  %v1562_v15 = vpop.f32.mrf.mxu1 }
 0x1da   :  { %v1549_v62 = vadd.f32 %v1548_v53, %v7451_v51  ;;  %v1563_v60 = vadd.f32 %v1562_v15, %v7453_v40 }
 0x1dc   :  { %v1581_v16 = vadd.f32 %v1549_v62, %v1199_v39  ;;  %v1582_v27 = vadd.f32 %v1563_v60, %v1227_v44 }
 0x1de   :  { %v5633_v56 = vpop.eup %5632  ;;  %v5351_v10 = vmul.f32 -1.442695, %v1581_v16  ;;  %v5352_v33 = vmul.f32 -1.442695, %v1582_v27  ;;  %v7471_v16 = vld [vmem:[%s8845_s7] ss:$0 sm:$0xff] }
 0x1df   :  { %v5635_v25 = vpop.eup %5634  ;;  %v1595_v47 = vadd.f32 1.0, %v5633_v56 }
 0x1e0   :  { %v7459_v52 = vadd.f32 1.0, %v5635_v25  ;;  %5636 = vpow2.f32 %v5351_v10  ;;  %v1574_v10 = vpop.f32.mrf.mxu2  ;;  %v7474_v25 = vperm.slane %v510_v19, 2 }
 0x1e1   :  { %5638 = vrcp.f32 %v1595_v47  ;;  %v1610_v60 = vand.u32 2147483648, %v1595_v47  ;;  %v1608_v56 = vand.u32 2147483647, %v1595_v47  ;;  %vm1604_vm1 = vweird.f32 %v1595_v47 }
 0x1e2   :  { %5640 = vrcp.f32 %v7459_v52  ;;  %v1625_v1 = vand.u32 2147483648, %v7459_v52  ;;  %v1575_v19 = vadd.f32 %v1574_v10, %v7474_v25  ;;  %vm1619_vm6 = vweird.f32 %v7459_v52 }
 0x1e3   :  { %5642 = vpow2.f32 %v5352_v33  ;;  %v1611_v3 = vor.u32 1.1754944e-38, %v1610_v60  ;;  %vm1609_vm3 = vcmp.eq.f32.partialorder %v1608_v56, 8.507059e+37 }
 0x1e6   :  { %v5637_v38 = vpop.eup %5636 }
 0x1e7   :  { %v5639_v53 = vpop.eup %5638  ;;  %v1597_v6 = vadd.f32 1.0, %v5637_v38 }
 0x1e8   :  { %v7462_v15 = vpop.eup %5640  ;;  %v1600_v54 = vmul.f32 %v5639_v53, %v1595_v47  ;;  %vm1605_vm0 = vweird.f32 %v5639_v53 }
 0x1e9   :  { %v5643_v44 = vpop.eup %5642  ;;  %v1615_v35 = vmul.f32 %v7462_v15, %v7459_v52  ;;  %5644 = vrcp.f32 %v1597_v6  ;;  %vm1606_vm2 = vmor %vm1604_vm1, %vm1605_vm0  ;;  %vm1620_vm4 = vweird.f32 %v7462_v15  ;;  %v1638_v56 = vand.u32 2147483647, %v1597_v6 }
 0x1ea   :  { %v1601_v0 = vsub.f32 1.0, %v1600_v54  ;;  %v7466_v39 = vadd.f32 1.0, %v5643_v44  ;;  %v1662_v54 = vadd.f32 %v7471_v16, %v1253_v48  ;;  %v1254_v44 = vpop.f32.mrf.mxu3  ;;  %v1640_v48 = vand.u32 2147483648, %v1597_v6  ;;  %vm7485_vm7 = vmor %vm1619_vm6, %vm1620_vm4 }
 0x1eb   :  { %v1616_v62 = vsub.f32 1.0, %v1615_v35  ;;  %v1255_v51 = vadd.f32 %v1254_v44, %v1240_v43  ;;  %v1623_v43 = vand.u32 2147483647, %v7459_v52  ;;  %vm1634_vm8 = vweird.f32 %v1597_v6 }
 0x1ec   :  { %v1602_v27 = vmul.f32 %v5639_v53, %v1601_v0  ;;  %5646 = vrcp.f32 %v7466_v39  ;;  %v1641_v44 = vor.u32 1.1754944e-38, %v1640_v48  ;;  %vm1639_vm10 = vcmp.eq.f32.partialorder %v1638_v56, 8.507059e+37 }
 0x1ed   :  { %v1617_v8 = vmul.f32 %v7462_v15, %v1616_v62  ;;  %vm1624_vm11 = vcmp.eq.f32.partialorder %v1623_v43, 8.507059e+37  ;;  %vm1649_vm13 = vweird.f32 %v7466_v39 }
 0x1ee   :  { %v1603_v33 = vadd.f32 %v5639_v53, %v1602_v27 }
 0x1ef   :  { %v5645_v38 = vpop.eup %5644  ;;  %v1618_v22 = vadd.f32 %v7462_v15, %v1617_v8 }
 0x1f0   :  { %v1607_v35 = vsel %vm1606_vm2, %v5639_v53, %v1603_v33  ;;  %v1630_v0 = vmul.f32 %v5645_v38, %v1597_v6  ;;  %vm1635_vm5 = vweird.f32 %v5645_v38  ;;  %v1655_v6 = vand.u32 2147483648, %v7466_v39 }
 0x1f1   :  { %v1612_v40 = vsel %vm1609_vm3, %v1611_v3, %v1607_v35  ;;  %v1622_v8 = vsel %vm7485_vm7, %v7462_v15, %v1618_v22  ;;  %vm1636_vm9 = vmor %vm1634_vm8, %vm1635_vm5  ;;  %v1663_v35 = vadd.f32 %v7471_v16, %v1255_v51  ;;  %v1653_v22 = vand.u32 2147483647, %v7466_v39 }
 0x1f2   :  { %v5647_v2 = vpop.eup %5646  ;;  %v1664_v27 = vmul.f32 %v1662_v54, %v1612_v40  ;;  %v1631_v47 = vsub.f32 1.0, %v1630_v0  ;;  %v1576_v54 = vpop.f32.mrf.mxu2  ;;  %v1626_v0 = vor.u32 1.1754944e-38, %v1625_v1  ;;  %v1656_v48 = vor.u32 1.1754944e-38, %v1655_v6  ;;  %v9332_v6 = vld [vmem:[#allocation84_spill] sm:$0xff] }
 0x1f3   :  { %v1645_v62 = vmul.f32 %v5647_v2, %v7466_v39  ;;  %vm1650_vm12 = vweird.f32 %v5647_v2  ;;  %vm1654_vm15 = vcmp.eq.f32.partialorder %v1653_v22, 8.507059e+37  ;;  %v9335_v22 = vld [vmem:[#allocation87_spill] sm:$0xff] }
 0x1f4   :  { %v1666_v60 = vadd.f32 %v1664_v27, %v1575_v19  ;;  %v1632_v53 = vmul.f32 %v5645_v38, %v1631_v47  ;;  %v1627_v47 = vsel %vm1624_vm11, %v1626_v0, %v1622_v8  ;;  %vm1651_vm14 = vmor %vm1649_vm13, %vm1650_vm12 }
 0x1f5   :  { %v1646_v33 = vsub.f32 1.0, %v1645_v62  ;;  %v1577_v62 = vadd.f32 %v1576_v54, %v7474_v25  ;;  %v1670_v1 = vsub.f32 1.0, %v1627_v47  ;;  %v1674_v43 = vmul.f32 0.0, %v1627_v47  ;;  %v9331_v47 = vld [vmem:[#allocation81_spill] sm:$0xff] }
 0x1f6   :  { %5648 = vtanh.f32 %v1666_v60  ;;  %v1633_v40 = vadd.f32 %v5645_v38, %v1632_v53 }
 0x1f7   :  { %v1647_v3 = vmul.f32 %v5647_v2, %v1646_v33 }
 0x1f8   :  { %v1637_v52 = vsel %vm1636_vm9, %v5645_v38, %v1633_v40 }
 0x1f9   :  { %v1642_v19 = vsel %vm1639_vm10, %v1641_v44, %v1637_v52  ;;  %v1648_v27 = vadd.f32 %v5647_v2, %v1647_v3  ;;  %v9328_v52 = vld [vmem:[#allocation77_spill] sm:$0xff] }
 0x1fa   :  { %v1665_v60 = vmul.f32 %v1663_v35, %v1642_v19  ;;  %v9329_v19 = vld [vmem:[#allocation79_spill] sm:$0xff] }
 0x1fb   :  { %v1652_v38 = vsel %vm1651_vm14, %v5647_v2, %v1648_v27  ;;  %v9330_v27 = vld [vmem:[#allocation80_spill] sm:$0xff] }
 0x1fc   :  { %v5649_v15 = vpop.eup %5648  ;;  %v1667_v51 = vadd.f32 %v1665_v60, %v1577_v62  ;;  %v1657_v56 = vsel %vm1654_vm15, %v1656_v48, %v1652_v38  ;;  %v9333_v62 = vld [vmem:[#allocation85_spill] sm:$0xff]  ;;  %v9334_v60 = vld [vmem:[#allocation86_spill] sm:$0xff]  ;;  %v9339_v38 = vld [vmem:[#allocation95_spill] sm:$0xff] }
 0x1fd   :  { %v1672_v53 = vmul.f32 %v5649_v15, %v1670_v1  ;;  %v1671_v10 = vsub.f32 1.0, %v1657_v56  ;;  %v1675_v3 = vmul.f32 0.0, %v1657_v56  ;;  %v9336_v15 = vld [vmem:[#allocation91_spill] sm:$0xff]  ;;  %v9338_v1 = vld [vmem:[#allocation94_spill] sm:$0xff] }
 0x1fe   :  { %5650 = vtanh.f32 %v1667_v51  ;;  %v9337_v51 = vld [vmem:[#allocation92_spill] sm:$0xff]  ;;  %v9340_v48 = vld [vmem:[#allocation99_spill] sm:$0xff] }
 0x1ff   :  { %v7497_v33 = vadd.f32 %v1674_v43, %v1672_v53  ;;  %v9341_v53 = vld [vmem:[#allocation100_spill] sm:$0xff]  ;;  %v9342_v56 = vld [vmem:[#allocation103_spill] sm:$0xff] }
 0x200   :  { %v9343_v43 = vld [vmem:[#allocation104_spill] sm:$0xff] }
 0x201   :  { %v1678_v39 = vpack.c.bf16 %v7497_v33, %v7497_v33 }
 0x203   :  { %v1682_v44 = vunpack.c.l.b16 %v1678_v39  ;;  %v9348_v39 = vld [vmem:[#allocation112_spill] sm:$0xff] }
 0x204   :  { %v5651_v40 = vpop.eup %5650 }
 0x205   :  { %v1673_v8 = vmul.f32 %v5651_v40, %v1671_v10  ;;  %v9344_v10 = vld [vmem:[#allocation106_spill] sm:$0xff] }
 0x206   :  { %v9345_v40 = vld [vmem:[#allocation10_spill] sm:$0xff] }
 0x207   :  { %v7501_v54 = vadd.f32 %v1675_v3, %v1673_v8  ;;  %v9346_v8 = vld [vmem:[#allocation109_spill] sm:$0xff]  ;;  %v9347_v3 = vld [vmem:[#allocation11_spill] sm:$0xff] }
 0x209   :  { %v1679_v2 = vpack.c.bf16 %v7501_v54, %v7501_v54 }
 0x20b   :  { %v1683_v35 = vunpack.c.l.b16 %v1679_v2  ;;  %v9349_v2 = vld [vmem:[#allocation12_spill] sm:$0xff] }
 0x20d   :  { %v1684_v0 = vpack.c.b16 %v1683_v35, %v1682_v44  ;;  %v9350_v44 = vld [vmem:[#allocation116_spill] sm:$0xff]  ;;  %v9351_v35 = vld [vmem:[#allocation13_spill] sm:$0xff] }
 0x20f   :  { %1708 = vmatmul.bf16.vlgmr.msra.gmra.mxu0 %v1684_v0  ;;  %1736 = vmatmul.bf16.vlgmr.msra.gmra.mxu2 %v1684_v0 }
 0x210   :  { %1812 = vmatpush.bf16.msra.mxu0 %v9328_v52  ;;  %1840 = vmatpush.bf16.msra.mxu2 %v9329_v19 }
 0x214   :  { %1813 = vmatpush.bf16.msra.mxu0 %v9330_v27  ;;  %1841 = vmatpush.bf16.msra.mxu2 %v9331_v47 }
 0x218   :  { %1814 = vmatpush.bf16.msra.mxu0 %v9332_v6  ;;  %1842 = vmatpush.bf16.msra.mxu2 %v9333_v62 }
 0x21c   :  { %1815 = vmatpush.bf16.msra.mxu0 %v9334_v60  ;;  %1843 = vmatpush.bf16.msra.mxu2 %v9335_v22 }
 0x21f   :  { %1764 = vmatmul.bf16.vlgmr.msrb.gmra.mxu0 %v1684_v0  ;;  %1792 = vmatmul.bf16.vlgmr.msrb.gmra.mxu2 %v1684_v0 }
 0x220   :  { %1816 = vmatpush.bf16.msra.mxu0 %v9336_v15  ;;  %1844 = vmatpush.bf16.msra.mxu2 %v9337_v51 }
 0x224   :  { %1817 = vmatpush.bf16.msra.mxu0 %v9338_v1  ;;  %1845 = vmatpush.bf16.msra.mxu2 %v9339_v38 }
 0x228   :  { %1818 = vmatpush.bf16.msra.mxu0 %v9340_v48  ;;  %1846 = vmatpush.bf16.msra.mxu2 %v9341_v53  ;;  %v9375_v48 = vld [vmem:[#allocation124_spill] sm:$0xff] }
 0x22c   :  { %1819 = vmatpush.bf16.msra.mxu0 %v9342_v56  ;;  %1847 = vmatpush.bf16.msra.mxu2 %v9343_v43  ;;  %v9352_v56 = vld [vmem:[#allocation119_spill] sm:$0xff]  ;;  %v9353_v43 = vld [vmem:[#allocation14_spill] sm:$0xff] }
 0x22f   :  { %1820 = vmatmul.bf16.vlgmr.msra.gmra.mxu0 %v1684_v0  ;;  %1848 = vmatmul.bf16.vlgmr.msra.gmra.mxu2 %v1684_v0  ;;  %v9356_v0 = vld [vmem:[#allocation129_spill] sm:$0xff] }
 0x230   :  { %1979 = vmatpush.bf16.msrb.mxu0 %v9344_v10  ;;  %2111 = vmatpush.bf16.msrb.mxu2 %v9345_v40  ;;  %v9354_v10 = vld [vmem:[#allocation125_spill] sm:$0xff]  ;;  %v9355_v40 = vld [vmem:[#allocation15_spill] sm:$0xff] }
 0x234   :  { %1980 = vmatpush.bf16.msrb.mxu0 %v9346_v8  ;;  %2112 = vmatpush.bf16.msrb.mxu2 %v9347_v3  ;;  %v9357_v8 = vld [vmem:[#allocation16_spill] sm:$0xff]  ;;  %v9358_v3 = vld [vmem:[#allocation135_spill] sm:$0xff] }
 0x238   :  { %1981 = vmatpush.bf16.msrb.mxu0 %v9348_v39  ;;  %2113 = vmatpush.bf16.msrb.mxu2 %v9349_v2  ;;  %v9359_v39 = vld [vmem:[#allocation17_spill] sm:$0xff]  ;;  %v9360_v2 = vld [vmem:[#allocation34_spill] sm:$0xff] }
 0x23c   :  { %1982 = vmatpush.bf16.msrb.mxu0 %v9350_v44  ;;  %2114 = vmatpush.bf16.msrb.mxu2 %v9351_v35  ;;  %v9361_v44 = vld [vmem:[#allocation19_spill] sm:$0xff] }
 0x23d   :  { %v9362_v35 = vld [vmem:[#allocation35_spill] sm:$0xff] }
 0x240   :  { %1983 = vmatpush.bf16.msrb.mxu0 %v9352_v56  ;;  %2115 = vmatpush.bf16.msrb.mxu2 %v9353_v43  ;;  %v9363_v56 = vld [vmem:[#allocation22_spill] sm:$0xff]  ;;  %v9364_v43 = vld [vmem:[#allocation36_spill] sm:$0xff] }
 0x244   :  { %1984 = vmatpush.bf16.msrb.mxu0 %v9354_v10  ;;  %2116 = vmatpush.bf16.msrb.mxu2 %v9355_v40  ;;  %v9365_v10 = vld [vmem:[#allocation25_spill] sm:$0xff]  ;;  %v9366_v40 = vld [vmem:[#allocation39_spill] sm:$0xff] }
 0x248   :  { %1985 = vmatpush.bf16.msrb.mxu0 %v9356_v0  ;;  %2117 = vmatpush.bf16.msrb.mxu2 %v9357_v8  ;;  %v9367_v0 = vld [vmem:[#allocation30_spill] sm:$0xff]  ;;  %v9368_v8 = vld [vmem:[#allocation40_spill] sm:$0xff] }
 0x24c   :  { %1986 = vmatpush.bf16.msrb.mxu0 %v9358_v3  ;;  %2118 = vmatpush.bf16.msrb.mxu2 %v9359_v39  ;;  %v9369_v3 = vld [vmem:[#allocation37_spill] sm:$0xff] }
 0x24d   :  { %v9370_v39 = vld [vmem:[#allocation41_spill] sm:$0xff] }
 0x250   :  { %2139 = vmatpush.bf16.msra.mxu0 %v9360_v2  ;;  %2167 = vmatpush.bf16.msra.mxu2 %v9361_v44  ;;  %v9371_v2 = vld [vmem:[#allocation43_spill] sm:$0xff] }
 0x254   :  { %2140 = vmatpush.bf16.msra.mxu0 %v9362_v35  ;;  %2168 = vmatpush.bf16.msra.mxu2 %v9363_v56  ;;  %v9372_v35 = vld [vmem:[#allocation50_spill] sm:$0xff] }
 0x258   :  { %2141 = vmatpush.bf16.msra.mxu0 %v9364_v43  ;;  %2169 = vmatpush.bf16.msra.mxu2 %v9365_v10  ;;  %v1695_v10 = vpop.f32.mrf.mxu3  ;;  %v9373_v43 = vld [vmem:[#allocation110_spill] sm:$0xff] }
 0x25c   :  { %2142 = vmatpush.bf16.msra.mxu0 %v9366_v40  ;;  %2170 = vmatpush.bf16.msra.mxu2 %v9367_v0  ;;  %v9374_v0 = vld [vmem:[#allocation60_spill] sm:$0xff] }
 0x25d   :  { %v330_v56 = vadd.f32 %v9374_v0, %v9373_v43 }
 0x260   :  { %2143 = vmatpush.bf16.msra.mxu0 %v9368_v8  ;;  %2171 = vmatpush.bf16.msra.mxu2 %v9369_v3  ;;  %v1723_v3 = vpop.f32.mrf.mxu1 }
 0x264   :  { %2144 = vmatpush.bf16.msra.mxu0 %v9370_v39  ;;  %2172 = vmatpush.bf16.msra.mxu2 %v9371_v2  ;;  %v9376_v2 = vld [vmem:[#allocation61_spill] sm:$0xff] }
 0x265   :  { %v379_v38 = vadd.f32 %v9376_v2, %v9375_v48 }
 0x268   :  { %2145 = vmatpush.bf16.msra.mxu0 %v6409_v50  ;;  %2173 = vmatpush.bf16.msra.mxu2 %v9372_v35  ;;  %v1697_v35 = vpop.f32.mrf.mxu3 }
 0x26c   :  { %2146 = vmatpush.bf16.msra.mxu0 %v6441_v5  ;;  %2174 = vmatpush.bf16.msra.mxu2 %v6553_v57  ;;  %v9377_v5 = vld [vmem:[#allocation64_spill] sm:$0xff] }
 0x26d   :  { %v332_v57 = vadd.f32 %v9377_v5, %v9373_v43 }
 0x28c   :  { %v1709_v40 = vpop.f32.mrf.mxu0 }
 0x28d   :  { %v1710_v8 = vadd.f32 %v1709_v40, %v1695_v10  ;;  %v1725_v10 = vpop.f32.mrf.mxu1 }
 0x28f   :  { %v1861_v44 = vadd.f32 %v1710_v8, %v330_v56 }
 0x291   :  { %v5353_v53 = vmul.f32 -1.442695, %v1861_v44  ;;  %v9378_v44 = vld [vmem:[#allocation65_spill] sm:$0xff] }
 0x292   :  { %v1737_v39 = vpop.f32.mrf.mxu2  ;;  %v381_v2 = vadd.f32 %v9378_v44, %v9375_v48 }
 0x293   :  { %5652 = vpow2.f32 %v5353_v53  ;;  %v1738_v50 = vadd.f32 %v1737_v39, %v1723_v3 }
 0x294   :  { %v1711_v1 = vpop.f32.mrf.mxu0 }
 0x295   :  { %v1862_v51 = vadd.f32 %v1738_v50, %v379_v38  ;;  %v1712_v15 = vadd.f32 %v1711_v1, %v1697_v35 }
 0x297   :  { %v5354_v22 = vmul.f32 -1.442695, %v1862_v51  ;;  %v1863_v60 = vadd.f32 %v1712_v15, %v332_v57  ;;  %v1751_v15 = vpop.f32.mrf.mxu3 }
 0x299   :  { %v5653_v0 = vpop.eup %5652  ;;  %5654 = vpow2.f32 %v5354_v22  ;;  %v5355_v56 = vmul.f32 -1.442695, %v1863_v60 }
 0x29a   :  { %v1877_v40 = vadd.f32 1.0, %v5653_v0  ;;  %v1739_v8 = vpop.f32.mrf.mxu2 }
 0x29b   :  { %5656 = vpow2.f32 %v5355_v56  ;;  %v1740_v53 = vadd.f32 %v1739_v8, %v1725_v10 }
 0x29c   :  { %5658 = vrcp.f32 %v1877_v40  ;;  %v1765_v22 = vpop.f32.mrf.mxu0  ;;  %v1892_v38 = vand.u32 2147483648, %v1877_v40  ;;  %v1890_v10 = vand.u32 2147483647, %v1877_v40  ;;  %vm1886_vm1 = vweird.f32 %v1877_v40 }
 0x29d   :  { %v1864_v3 = vadd.f32 %v1740_v53, %v381_v2  ;;  %v1766_v0 = vadd.f32 %v1765_v22, %v1751_v15  ;;  %v428_v22 = vadd.f32 %v7293_v29, %v7243_v63 }
 0x29e   :  { %vm1891_vm3 = vcmp.eq.f32.partialorder %v1890_v10, 8.507059e+37 }
 0x29f   :  { %v5655_v39 = vpop.eup %5654  ;;  %v5356_v62 = vmul.f32 -1.442695, %v1864_v3  ;;  %v1753_v47 = vpop.f32.mrf.mxu3 }
 0x2a0   :  { %v1878_v5 = vadd.f32 1.0, %v5655_v39 }
 0x2a1   :  { %v5657_v50 = vpop.eup %5656  ;;  %5660 = vpow2.f32 %v5356_v62  ;;  %v1893_v62 = vor.u32 1.1754944e-38, %v1892_v38 }
 0x2a2   :  { %v5659_v51 = vpop.eup %5658  ;;  %5662 = vrcp.f32 %v1878_v5  ;;  %v1879_v57 = vadd.f32 1.0, %v5657_v50  ;;  %v1907_v43 = vand.u32 2147483648, %v1878_v5  ;;  %v1905_v48 = vand.u32 2147483647, %v1878_v5 }
 0x2a3   :  { %v1882_v60 = vmul.f32 %v5659_v51, %v1877_v40  ;;  %vm1887_vm0 = vweird.f32 %v5659_v51  ;;  %vm1901_vm5 = vweird.f32 %v1878_v5 }
 0x2a4   :  { %5664 = vrcp.f32 %v1879_v57  ;;  %vm1888_vm2 = vmor %vm1886_vm1, %vm1887_vm0  ;;  %v1767_v40 = vpop.f32.mrf.mxu0  ;;  %v1920_v29 = vand.u32 2147483647, %v1879_v57  ;;  %vm1906_vm8 = vcmp.eq.f32.partialorder %v1905_v48, 8.507059e+37  ;;  %vm1916_vm9 = vweird.f32 %v1879_v57 }
 0x2a5   :  { %v1883_v1 = vsub.f32 1.0, %v1882_v60  ;;  %v1941_v60 = vadd.f32 %v7250_v14, %v1766_v0  ;;  %v1768_v0 = vadd.f32 %v1767_v40, %v1753_v47 }
 0x2a6   :  { %vm1921_vm11 = vcmp.eq.f32.partialorder %v1920_v29, 8.507059e+37 }
 0x2a7   :  { %v5661_v35 = vpop.eup %5660  ;;  %v1884_v56 = vmul.f32 %v5659_v51, %v1883_v1 }
 0x2a8   :  { %v5663_v8 = vpop.eup %5662  ;;  %v7561_v44 = vadd.f32 1.0, %v5661_v35 }
 0x2a9   :  { %v1897_v2 = vmul.f32 %v5663_v8, %v1878_v5  ;;  %v1885_v53 = vadd.f32 %v5659_v51, %v1884_v56  ;;  %vm1902_vm4 = vweird.f32 %v5663_v8 }
 0x2aa   :  { %5666 = vrcp.f32 %v7561_v44  ;;  %v5665_v3 = vpop.eup %5664  ;;  %vm1903_vm6 = vmor %vm1901_vm5, %vm1902_vm4  ;;  %vm1931_vm13 = vweird.f32 %v7561_v44 }
 0x2ab   :  { %v1898_v39 = vsub.f32 1.0, %v1897_v2  ;;  %v1889_v50 = vsel %vm1888_vm2, %v5659_v51, %v1885_v53  ;;  %v1912_v1 = vmul.f32 %v5665_v3, %v1879_v57  ;;  %v1922_v51 = vand.u32 2147483648, %v1879_v57 }
 0x2ac   :  { %v1894_v15 = vsel %vm1891_vm3, %v1893_v62, %v1889_v50  ;;  %vm1917_vm7 = vweird.f32 %v5665_v3  ;;  %v1908_v62 = vor.u32 1.1754944e-38, %v1907_v43  ;;  %v430_v43 = vadd.f32 %v7322_v17, %v7243_v63 }
 0x2ad   :  { %v1899_v35 = vmul.f32 %v5663_v8, %v1898_v39  ;;  %v1943_v56 = vmul.f32 %v1941_v60, %v1894_v15  ;;  %v1913_v6 = vsub.f32 1.0, %v1912_v1  ;;  %vm1918_vm10 = vmor %vm1916_vm9, %vm1917_vm7  ;;  %v1923_v5 = vor.u32 1.1754944e-38, %v1922_v51 }
 0x2af   :  { %v1900_v38 = vadd.f32 %v5663_v8, %v1899_v35  ;;  %v1945_v2 = vadd.f32 %v1943_v56, %v428_v22  ;;  %v1914_v53 = vmul.f32 %v5665_v3, %v1913_v6  ;;  %v1942_v35 = vadd.f32 %v7250_v14, %v1768_v0 }
 0x2b0   :  { %v5667_v10 = vpop.eup %5666 }
 0x2b1   :  { %v1927_v39 = vmul.f32 %v5667_v10, %v7561_v44  ;;  %v1904_v50 = vsel %vm1903_vm6, %v5663_v8, %v1900_v38  ;;  %5668 = vtanh.f32 %v1945_v2  ;;  %v1915_v60 = vadd.f32 %v5665_v3, %v1914_v53 }
 0x2b2   :  { %v1909_v1 = vsel %vm1906_vm8, %v1908_v62, %v1904_v50  ;;  %vm1932_vm12 = vweird.f32 %v5667_v10  ;;  %v1937_v8 = vand.u32 2147483648, %v7561_v44  ;;  %v1935_v38 = vand.u32 2147483647, %v7561_v44 }
 0x2b3   :  { %v1928_v15 = vsub.f32 1.0, %v1927_v39  ;;  %v1919_v22 = vsel %vm1918_vm10, %v5665_v3, %v1915_v60  ;;  %v1949_v56 = vsub.f32 1.0, %v1909_v1  ;;  %vm1933_vm14 = vmor %vm1931_vm13, %vm1932_vm12  ;;  %v1953_v14 = vmul.f32 %v1909_v1, %v7325_v30 }
 0x2b4   :  { %v1924_v6 = vsel %vm1921_vm11, %v1923_v5, %v1919_v22  ;;  %v1938_v0 = vor.u32 1.1754944e-38, %v1937_v8  ;;  %vm1936_vm15 = vcmp.eq.f32.partialorder %v1935_v38, 8.507059e+37  ;;  %v9380_v5 = vld [vmem:[#allocation93_spill] sm:$0xff]  ;;  %v9381_v22 = vld [vmem:[#allocation122_spill] sm:$0xff]  ;;  %v9386_v8 = vld [vmem:[#allocation76_spill] sm:$0xff] }
 0x2b5   :  { %v1929_v47 = vmul.f32 %v5667_v10, %v1928_v15  ;;  %v1944_v48 = vmul.f32 %v1942_v35, %v1924_v6  ;;  %v9382_v35 = vld [vmem:[#allocation44_spill] sm:$0xff]  ;;  %v9384_v6 = vld [vmem:[#allocation101_spill] sm:$0xff] }
 0x2b6   :  { %v9391_v38 = vld [vmem:[#allocation140_spill] sm:$0xff] }
 0x2b7   :  { %v5669_v40 = vpop.eup %5668  ;;  %v1930_v57 = vadd.f32 %v5667_v10, %v1929_v47  ;;  %v1946_v2 = vadd.f32 %v1944_v48, %v430_v43  ;;  %v9383_v47 = vld [vmem:[#allocation51_spill] sm:$0xff]  ;;  %v9385_v43 = vld [vmem:[#allocation102_spill] sm:$0xff]  ;;  %v9388_v48 = vld [vmem:[#allocation108_spill] sm:$0xff] }
 0x2b8   :  { %v1951_v3 = vmul.f32 %v5669_v40, %v1949_v56  ;;  %v9387_v56 = vld [vmem:[#allocation133_spill] sm:$0xff]  ;;  %v9389_v40 = vld [vmem:[#allocation136_spill] sm:$0xff] }
 0x2b9   :  { %v1934_v51 = vsel %vm1933_vm14, %v5667_v10, %v1930_v57  ;;  %5670 = vtanh.f32 %v1946_v2  ;;  %v9390_v57 = vld [vmem:[#allocation111_spill] sm:$0xff]  ;;  %v9394_v2 = vld [vmem:[#allocation146_spill] sm:$0xff] }
 0x2ba   :  { %v7575_v53 = vadd.f32 %v1953_v14, %v1951_v3  ;;  %v1939_v17 = vsel %vm1936_vm15, %v1938_v0, %v1934_v51  ;;  %v9392_v3 = vld [vmem:[#allocation144_spill] sm:$0xff]  ;;  %v9393_v14 = vld [vmem:[#allocation118_spill] sm:$0xff]  ;;  %v9395_v51 = vld [vmem:[#allocation123_spill] sm:$0xff] }
 0x2bb   :  { %v1950_v29 = vsub.f32 1.0, %v1939_v17  ;;  %v1954_v50 = vmul.f32 %v1939_v17, %v7333_v36  ;;  %v9379_v36 = vld [vmem:[#allocation38_spill] sm:$0xff]  ;;  %v9397_v17 = vld [vmem:[#allocation127_spill] sm:$0xff] }
 0x2bc   :  { %v1957_v44 = vpack.c.bf16 %v7575_v53, %v7575_v53  ;;  %v9396_v0 = vld [vmem:[#allocation150_spill] sm:$0xff] }
 0x2be   :  { %v1961_v10 = vunpack.c.l.b16 %v1957_v44  ;;  %v9402_v44 = vld [vmem:[#allocation18_spill] sm:$0xff] }
 0x2bf   :  { %v5671_v62 = vpop.eup %5670 }
 0x2c0   :  { %v1952_v39 = vmul.f32 %v5671_v62, %v1950_v29  ;;  %v9398_v29 = vld [vmem:[#allocation152_spill] sm:$0xff] }
 0x2c1   :  { %v9399_v62 = vld [vmem:[#allocation132_spill] sm:$0xff] }
 0x2c2   :  { %v7580_v60 = vadd.f32 %v1954_v50, %v1952_v39  ;;  %v9400_v39 = vld [vmem:[#allocation134_spill] sm:$0xff] }
 0x2c3   :  { %v9401_v50 = vld [vmem:[#allocation154_spill] sm:$0xff] }
 0x2c4   :  { %v1958_v30 = vpack.c.bf16 %v7580_v60, %v7580_v60 }
 0x2c6   :  { %v1962_v15 = vunpack.c.l.b16 %v1958_v30  ;;  %v9403_v30 = vld [vmem:[#allocation138_spill] sm:$0xff] }
 0x2c8   :  { %v1963_v1 = vpack.c.b16 %v1962_v15, %v1961_v10  ;;  %v9404_v10 = vld [vmem:[#allocation21_spill] sm:$0xff] }
 0x2c9   :  { %v9405_v15 = vld [vmem:[#allocation141_spill] sm:$0xff] }
 0x2ca   :  { %1973 = vmatmul.bf16.vlgmr.msrb.gmra.mxu3 %v1963_v1  ;;  %1987 = vmatmul.bf16.vlgmr.msrb.gmra.mxu0 %v1963_v1 }
 0x2cb   :  { %2001 = vmatmul.bf16.vlgmr.msrb.gmra.mxu1 %v1963_v1  ;;  %2119 = vmatmul.bf16.vlgmr.msrb.gmra.mxu2 %v1963_v1 }
 0x2cc   :  { %2195 = vmatpush.bf16.msrb.mxu0 %v9273_v31  ;;  %2223 = vmatpush.bf16.msrb.mxu2 %v6909_v23 }
 0x2cd   :  { %2181 = vmatpush.bf16.msrb.mxu3 %v9275_v4  ;;  %2209 = vmatpush.bf16.msrb.mxu1 %v9276_v13 }
 0x2d0   :  { %2196 = vmatpush.bf16.msrb.mxu0 %v9277_v24  ;;  %2224 = vmatpush.bf16.msrb.mxu2 %v6952_v37 }
 0x2d1   :  { %2182 = vmatpush.bf16.msrb.mxu3 %v9278_v18  ;;  %2210 = vmatpush.bf16.msrb.mxu1 %v9279_v11 }
 0x2d4   :  { %2197 = vmatpush.bf16.msrb.mxu0 %v9280_v26  ;;  %2225 = vmatpush.bf16.msrb.mxu2 %v6986_v55 }
 0x2d5   :  { %2183 = vmatpush.bf16.msrb.mxu3 %v9281_v41  ;;  %2211 = vmatpush.bf16.msrb.mxu1 %v9282_v32 }
 0x2d8   :  { %2198 = vmatpush.bf16.msrb.mxu0 %v9284_v21  ;;  %2226 = vmatpush.bf16.msrb.mxu2 %v7018_v9 }
 0x2d9   :  { %2184 = vmatpush.bf16.msrb.mxu3 %v9285_v28  ;;  %2212 = vmatpush.bf16.msrb.mxu1 %v9286_v46 }
 0x2da   :  { %2147 = vmatmul.bf16.vlgmr.msra.gmra.mxu0 %v1963_v1 }
 0x2db   :  { %2175 = vmatmul.bf16.vlgmr.msra.gmra.mxu2 %v1963_v1 }
 0x2dc   :  { %2199 = vmatpush.bf16.msrb.mxu0 %v9287_v34  ;;  %2227 = vmatpush.bf16.msrb.mxu2 %v7042_v45 }
 0x2dd   :  { %2185 = vmatpush.bf16.msrb.mxu3 %v9379_v36  ;;  %2213 = vmatpush.bf16.msrb.mxu1 %v9289_v7 }
 0x2e0   :  { %2200 = vmatpush.bf16.msrb.mxu0 %v9380_v5  ;;  %2228 = vmatpush.bf16.msrb.mxu2 %v9381_v22 }
 0x2e1   :  { %2186 = vmatpush.bf16.msrb.mxu3 %v9382_v35  ;;  %2214 = vmatpush.bf16.msrb.mxu1 %v9293_v58 }
 0x2e4   :  { %2201 = vmatpush.bf16.msrb.mxu0 %v9294_v42  ;;  %2229 = vmatpush.bf16.msrb.mxu2 %v7097_v20 }
 0x2e5   :  { %2187 = vmatpush.bf16.msrb.mxu3 %v9383_v47  ;;  %2215 = vmatpush.bf16.msrb.mxu1 %v9296_v12 }
 0x2e8   :  { %2202 = vmatpush.bf16.msrb.mxu0 %v9384_v6  ;;  %2230 = vmatpush.bf16.msrb.mxu2 %v7128_v59 }
 0x2e9   :  { %2188 = vmatpush.bf16.msrb.mxu3 %v9299_v61  ;;  %2216 = vmatpush.bf16.msrb.mxu1 %v9386_v8 }
 0x2eb   :  { %2203 = vmatmul.bf16.vlgmr.msrb.gmra.mxu0 %v1963_v1  ;;  %2231 = vmatmul.bf16.vlgmr.msrb.gmra.mxu2 %v1963_v1 }
 0x2ec   :  { %2251 = vmatpush.bf16.msra.mxu0 %v9385_v43  ;;  %2390 = vmatpush.bf16.msra.mxu2 %v9387_v56 }
 0x2f0   :  { %2252 = vmatpush.bf16.msra.mxu0 %v9388_v48  ;;  %2391 = vmatpush.bf16.msra.mxu2 %v9389_v40 }
 0x2f4   :  { %2253 = vmatpush.bf16.msra.mxu0 %v9390_v57  ;;  %2392 = vmatpush.bf16.msra.mxu2 %v9391_v38  ;;  %v9426_v57 = vld [vmem:[#allocation66_spill] sm:$0xff] }
 0x2f8   :  { %2254 = vmatpush.bf16.msra.mxu0 %v7024_v49  ;;  %2393 = vmatpush.bf16.msra.mxu2 %v9392_v3 }
 0x2fc   :  { %2255 = vmatpush.bf16.msra.mxu0 %v9393_v14  ;;  %2394 = vmatpush.bf16.msra.mxu2 %v9394_v2 }
 0x300   :  { %2256 = vmatpush.bf16.msra.mxu0 %v9395_v51  ;;  %2395 = vmatpush.bf16.msra.mxu2 %v9396_v0  ;;  %v9406_v0 = vld [vmem:[#allocation24_spill] sm:$0xff]  ;;  %v9423_v51 = vld [vmem:[#allocation54_spill] sm:$0xff] }
 0x304   :  { %2257 = vmatpush.bf16.msra.mxu0 %v9397_v17  ;;  %2396 = vmatpush.bf16.msra.mxu2 %v9398_v29  ;;  %v9407_v17 = vld [vmem:[#allocation145_spill] sm:$0xff]  ;;  %v9408_v29 = vld [vmem:[#allocation27_spill] sm:$0xff] }
 0x308   :  { %2258 = vmatpush.bf16.msra.mxu0 %v9399_v62  ;;  %2397 = vmatpush.bf16.msra.mxu2 %v9401_v50  ;;  %v9409_v62 = vld [vmem:[#allocation147_spill] sm:$0xff] }
 0x309   :  { %v9411_v50 = vld [vmem:[#allocation151_spill] sm:$0xff] }
 0x30b   :  { %2259 = vmatmul.bf16.vlgmr.msra.gmra.mxu0 %v1963_v1  ;;  %v9413_v1 = vld [vmem:[#allocation153_spill] sm:$0xff] }
 0x30c   :  { %2418 = vmatpush.bf16.msrb.mxu0 %v9400_v39  ;;  %2550 = vmatpush.bf16.msrb.mxu2 %v9402_v44  ;;  %v9410_v39 = vld [vmem:[#allocation28_spill] sm:$0xff]  ;;  %v9412_v44 = vld [vmem:[#allocation29_spill] sm:$0xff] }
 0x310   :  { %2419 = vmatpush.bf16.msrb.mxu0 %v9403_v30  ;;  %2551 = vmatpush.bf16.msrb.mxu2 %v9404_v10  ;;  %v9414_v30 = vld [vmem:[#allocation31_spill] sm:$0xff] }
 0x311   :  { %v9415_v10 = vld [vmem:[#allocation155_spill] sm:$0xff] }
 0x314   :  { %2420 = vmatpush.bf16.msrb.mxu0 %v9405_v15  ;;  %2552 = vmatpush.bf16.msrb.mxu2 %v9406_v0  ;;  %v9416_v15 = vld [vmem:[#allocation46_spill] sm:$0xff]  ;;  %v9417_v0 = vld [vmem:[#allocation33_spill] sm:$0xff] }
 0x318   :  { %2421 = vmatpush.bf16.msrb.mxu0 %v9407_v17  ;;  %2553 = vmatpush.bf16.msrb.mxu2 %v9408_v29  ;;  %v9418_v17 = vld [vmem:[#allocation47_spill] sm:$0xff]  ;;  %v9419_v29 = vld [vmem:[#allocation48_spill] sm:$0xff] }
 0x31c   :  { %2422 = vmatpush.bf16.msrb.mxu0 %v9409_v62  ;;  %2554 = vmatpush.bf16.msrb.mxu2 %v9410_v39  ;;  %v9420_v62 = vld [vmem:[#allocation49_spill] sm:$0xff]  ;;  %v9421_v39 = vld [vmem:[#allocation52_spill] sm:$0xff] }
 0x320   :  { %2423 = vmatpush.bf16.msrb.mxu0 %v9411_v50  ;;  %2555 = vmatpush.bf16.msrb.mxu2 %v9412_v44  ;;  %v1821_v50 = vpop.f32.mrf.mxu0  ;;  %v9422_v44 = vld [vmem:[#allocation53_spill] sm:$0xff] }
 0x324   :  { %2424 = vmatpush.bf16.msrb.mxu0 %v9413_v1  ;;  %2556 = vmatpush.bf16.msrb.mxu2 %v9414_v30  ;;  %v1807_v1 = vpop.f32.mrf.mxu3 }
 0x325   :  { %v1822_v14 = vadd.f32 %v1821_v50, %v1807_v1 }
 0x328   :  { %2425 = vmatpush.bf16.msrb.mxu0 %v9415_v10  ;;  %2557 = vmatpush.bf16.msrb.mxu2 %v9417_v0  ;;  %v1823_v30 = vpop.f32.mrf.mxu0  ;;  %v9424_v10 = vld [vmem:[#allocation55_spill] sm:$0xff] }
 0x32c   :  { %2578 = vmatpush.bf16.msra.mxu0 %v9416_v15  ;;  %v1779_v15 = vpop.f32.mrf.mxu1  ;;  %v1809_v2 = vpop.f32.mrf.mxu3 }
 0x330   :  { %2579 = vmatpush.bf16.msra.mxu0 %v9418_v17  ;;  %v9425_v17 = vld [vmem:[#allocation89_spill] sm:$0xff] }
 0x334   :  { %2580 = vmatpush.bf16.msra.mxu0 %v9419_v29  ;;  %v1793_v29 = vpop.f32.mrf.mxu2  ;;  %v1781_v40 = vpop.f32.mrf.mxu1 }
 0x338   :  { %2581 = vmatpush.bf16.msra.mxu0 %v9420_v62 }
 0x33c   :  { %2582 = vmatpush.bf16.msra.mxu0 %v9421_v39  ;;  %v1794_v39 = vadd.f32 %v1793_v29, %v1779_v15  ;;  %v1795_v43 = vpop.f32.mrf.mxu2 }
 0x340   :  { %2583 = vmatpush.bf16.msra.mxu0 %v9422_v44 }
 0x344   :  { %2584 = vmatpush.bf16.msra.mxu0 %v9423_v51  ;;  %v1824_v51 = vadd.f32 %v1823_v30, %v1809_v2 }
 0x347   :  { %v1988_v0 = vpop.f32.mrf.mxu0 }
 0x348   :  { %2585 = vmatpush.bf16.msra.mxu0 %v9424_v10  ;;  %v1989_v3 = vadd.f32 %v1988_v0, %v9425_v17 }
 0x34a   :  { %v2008_v49 = vadd.f32 %v1989_v3, %v1822_v14  ;;  %v1796_v3 = vadd.f32 %v1795_v43, %v1781_v40 }
 0x34c   :  { %v5358_v62 = vmul.f32 -1.442695, %v2008_v49 }
 0x34d   :  { %v1974_v38 = vpop.f32.mrf.mxu3 }
 0x34e   :  { %5672 = vpow2.f32 %v5358_v62  ;;  %v1975_v44 = vadd.f32 %v1974_v38, %v9426_v57  ;;  %v1835_v38 = vpop.f32.mrf.mxu1 }
 0x34f   :  { %v1990_v48 = vpop.f32.mrf.mxu0 }
 0x350   :  { %v2007_v56 = vadd.f32 %v1975_v44, %v1794_v39  ;;  %v1991_v10 = vadd.f32 %v1990_v48, %v9425_v17 }
 0x352   :  { %v5357_v8 = vmul.f32 -1.442695, %v2007_v56  ;;  %v2010_v61 = vadd.f32 %v1991_v10, %v1824_v51 }
 0x354   :  { %v5673_v50 = vpop.eup %5672  ;;  %5674 = vpow2.f32 %v5357_v8  ;;  %v5360_v0 = vmul.f32 -1.442695, %v2010_v61  ;;  %v1849_v8 = vpop.f32.mrf.mxu2 }
 0x355   :  { %v1976_v1 = vpop.f32.mrf.mxu3  ;;  %v7659_v49 = vadd.f32 1.0, %v5673_v50 }
 0x356   :  { %5676 = vpow2.f32 %v5360_v0  ;;  %v1977_v14 = vadd.f32 %v1976_v1, %v9426_v57  ;;  %v1837_v43 = vpop.f32.mrf.mxu1 }
 0x357   :  { %5678 = vrcp.f32 %v7659_v49  ;;  %vm2047_vm6 = vweird.f32 %v7659_v49 }
 0x358   :  { %v2009_v29 = vadd.f32 %v1977_v14, %v1796_v3  ;;  %v1850_v3 = vadd.f32 %v1849_v8, %v1835_v38 }
 0x35a   :  { %v5675_v62 = vpop.eup %5674  ;;  %v5359_v2 = vmul.f32 -1.442695, %v2009_v29 }
 0x35b   :  { %v2023_v48 = vadd.f32 1.0, %v5675_v62 }
 0x35c   :  { %v5677_v56 = vpop.eup %5676  ;;  %5680 = vpow2.f32 %v5359_v2  ;;  %v1851_v57 = vpop.f32.mrf.mxu2 }
 0x35d   :  { %5682 = vrcp.f32 %v2023_v48  ;;  %v7663_v51 = vadd.f32 1.0, %v5677_v56  ;;  %v7665_v61 = vpop.eup %5678  ;;  %v2038_v1 = vand.u32 2147483648, %v2023_v48  ;;  %v2036_v29 = vand.u32 2147483647, %v2023_v48 }
 0x35e   :  { %v2043_v44 = vmul.f32 %v7665_v61, %v7659_v49  ;;  %v2002_v62 = vpop.f32.mrf.mxu1  ;;  %vm2032_vm1 = vweird.f32 %v2023_v48  ;;  %v1852_v6 = vadd.f32 %v1851_v57, %v1837_v43  ;;  %vm2048_vm4 = vweird.f32 %v7665_v61 }
 0x35f   :  { %5684 = vrcp.f32 %v7663_v51  ;;  %v2039_v59 = vor.u32 1.1754944e-38, %v2038_v1  ;;  %vm2037_vm3 = vcmp.eq.f32.partialorder %v2036_v29, 8.507059e+37  ;;  %v2003_v12 = vadd.f32 %v2002_v62, %v7474_v25  ;;  %vm7683_vm7 = vmor %vm2047_vm6, %vm2048_vm4 }
 0x360   :  { %v2044_v0 = vsub.f32 1.0, %v2043_v44  ;;  %v2088_v29 = vadd.f32 %v7471_v16, %v1852_v6  ;;  %vm2077_vm13 = vweird.f32 %v7663_v51 }
 0x362   :  { %v5681_v40 = vpop.eup %5680 }
 0x363   :  { %v5683_v39 = vpop.eup %5682  ;;  %v2025_v30 = vadd.f32 1.0, %v5681_v40  ;;  %v2045_v40 = vmul.f32 %v7665_v61, %v2044_v0  ;;  %v2053_v0 = vand.u32 2147483648, %v7659_v49 }
 0x364   :  { %v2028_v10 = vmul.f32 %v5683_v39, %v2023_v48  ;;  %vm2033_vm0 = vweird.f32 %v5683_v39 }
 0x365   :  { %5686 = vrcp.f32 %v2025_v30  ;;  %v7670_v15 = vpop.eup %5684  ;;  %vm2034_vm2 = vmor %vm2032_vm1, %vm2033_vm0  ;;  %v2046_v48 = vadd.f32 %v7665_v61, %v2045_v40  ;;  %vm2062_vm8 = vweird.f32 %v2025_v30  ;;  %v2054_v62 = vor.u32 1.1754944e-38, %v2053_v0 }
 0x366   :  { %v2029_v50 = vsub.f32 1.0, %v2028_v10  ;;  %v2073_v2 = vmul.f32 %v7670_v15, %v7663_v51  ;;  %v2087_v10 = vadd.f32 %v7471_v16, %v1850_v3  ;;  %vm2078_vm12 = vweird.f32 %v7670_v15 }
 0x367   :  { %vm2079_vm14 = vmor %vm2077_vm13, %vm2078_vm12 }
 0x368   :  { %v2030_v14 = vmul.f32 %v5683_v39, %v2029_v50  ;;  %v2074_v50 = vsub.f32 1.0, %v2073_v2 }
 0x36a   :  { %v2031_v56 = vadd.f32 %v5683_v39, %v2030_v14  ;;  %v2068_v14 = vand.u32 2147483648, %v2025_v30  ;;  %v2075_v57 = vmul.f32 %v7670_v15, %v2074_v50 }
 0x36b   :  { %v5687_v17 = vpop.eup %5686 }
 0x36c   :  { %v2035_v44 = vsel %vm2034_vm2, %v5683_v39, %v2031_v56  ;;  %v2058_v38 = vmul.f32 %v5687_v17, %v2025_v30  ;;  %vm2063_vm5 = vweird.f32 %v5687_v17  ;;  %v2066_v39 = vand.u32 2147483647, %v2025_v30 }
 0x36d   :  { %v2040_v8 = vsel %vm2037_vm3, %v2039_v59, %v2035_v44  ;;  %v2051_v59 = vand.u32 2147483647, %v7659_v49  ;;  %vm2064_vm9 = vmor %vm2062_vm8, %vm2063_vm5  ;;  %v2076_v2 = vadd.f32 %v7670_v15, %v2075_v57  ;;  %v2083_v30 = vand.u32 2147483648, %v7663_v51 }
 0x36e   :  { %v2089_v47 = vmul.f32 %v2087_v10, %v2040_v8  ;;  %v2059_v20 = vsub.f32 1.0, %v2058_v38  ;;  %vm2067_vm10 = vcmp.eq.f32.partialorder %v2066_v39, 8.507059e+37  ;;  %v2081_v10 = vand.u32 2147483647, %v7663_v51 }
 0x36f   :  { %vm2052_vm11 = vcmp.eq.f32.partialorder %v2051_v59, 8.507059e+37  ;;  %v2080_v44 = vsel %vm2079_vm14, %v7670_v15, %v2076_v2  ;;  %v2084_v38 = vor.u32 1.1754944e-38, %v2083_v30  ;;  %v9436_v2 = vld [vmem:[#allocation94_spill] sm:$0xff]  ;;  %v9439_v30 = vld [vmem:[#allocation100_spill] sm:$0xff] }
 0x370   :  { %v2091_v1 = vadd.f32 %v2089_v47, %v2003_v12  ;;  %v2060_v42 = vmul.f32 %v5687_v17, %v2059_v20  ;;  %v2050_v12 = vsel %vm7683_vm7, %v7665_v61, %v2046_v48  ;;  %v2004_v20 = vpop.f32.mrf.mxu1  ;;  %v2069_v47 = vor.u32 1.1754944e-38, %v2068_v14 }
 0x371   :  { %v2005_v40 = vadd.f32 %v2004_v20, %v7474_v25  ;;  %vm2082_vm15 = vcmp.eq.f32.partialorder %v2081_v10, 8.507059e+37  ;;  %v9431_v20 = vld [vmem:[#allocation85_spill] sm:$0xff]  ;;  %v9442_v10 = vld [vmem:[#allocation106_spill] sm:$0xff] }
 0x372   :  { %5688 = vtanh.f32 %v2091_v1  ;;  %v2061_v3 = vadd.f32 %v5687_v17, %v2060_v42  ;;  %v2055_v42 = vsel %vm2052_vm11, %v2054_v62, %v2050_v12  ;;  %v2085_v50 = vsel %vm2082_vm15, %v2084_v38, %v2080_v44  ;;  %v9434_v62 = vld [vmem:[#allocation91_spill] sm:$0xff]  ;;  %v9446_v44 = vld [vmem:[#allocation112_spill] sm:$0xff] }
 0x373   :  { %v2099_v48 = vmul.f32 %v2055_v42, %v7497_v33  ;;  %v2096_v0 = vsub.f32 1.0, %v2085_v50  ;;  %v2100_v39 = vmul.f32 %v2085_v50, %v7501_v54  ;;  %v9429_v33 = vld [vmem:[#allocation81_spill] sm:$0xff]  ;;  %v9430_v54 = vld [vmem:[#allocation84_spill] sm:$0xff] }
 0x374   :  { %v2065_v49 = vsel %vm2064_vm9, %v5687_v17, %v2061_v3  ;;  %v2095_v17 = vsub.f32 1.0, %v2055_v42  ;;  %v9438_v42 = vld [vmem:[#allocation99_spill] sm:$0xff]  ;;  %v9447_v38 = vld [vmem:[#allocation12_spill] sm:$0xff]  ;;  %v9449_v50 = vld [vmem:[#allocation13_spill] sm:$0xff] }
 0x375   :  { %v2070_v56 = vsel %vm2067_vm10, %v2069_v47, %v2065_v49  ;;  %v9432_v47 = vld [vmem:[#allocation86_spill] sm:$0xff]  ;;  %v9435_v49 = vld [vmem:[#allocation92_spill] sm:$0xff] }
 0x376   :  { %v2090_v61 = vmul.f32 %v2088_v29, %v2070_v56  ;;  %v9433_v29 = vld [vmem:[#allocation87_spill] sm:$0xff] }
 0x377   :  { %v9437_v56 = vld [vmem:[#allocation95_spill] sm:$0xff] }
 0x378   :  { %v5689_v16 = vpop.eup %5688  ;;  %v2092_v6 = vadd.f32 %v2090_v61, %v2005_v40  ;;  %v9440_v40 = vld [vmem:[#allocation103_spill] sm:$0xff]  ;;  %v9441_v61 = vld [vmem:[#allocation104_spill] sm:$0xff] }
 0x379   :  { %v2097_v8 = vmul.f32 %v5689_v16, %v2095_v17  ;;  %v9443_v16 = vld [vmem:[#allocation10_spill] sm:$0xff]  ;;  %v9445_v17 = vld [vmem:[#allocation11_spill] sm:$0xff] }
 0x37a   :  { %5690 = vtanh.f32 %v2092_v6  ;;  %v9444_v6 = vld [vmem:[#allocation109_spill] sm:$0xff] }
 0x37b   :  { %v7699_v14 = vadd.f32 %v2099_v48, %v2097_v8  ;;  %v9448_v8 = vld [vmem:[#allocation116_spill] sm:$0xff]  ;;  %v9450_v48 = vld [vmem:[#allocation119_spill] sm:$0xff] }
 0x37d   :  { %v2103_v57 = vpack.c.bf16 %v7699_v14, %v7699_v14 }
 0x37f   :  { %v2107_v43 = vunpack.c.l.b16 %v2103_v57  ;;  %v9455_v57 = vld [vmem:[#allocation16_spill] sm:$0xff] }
 0x380   :  { %v5691_v1 = vpop.eup %5690 }
 0x381   :  { %v2098_v51 = vmul.f32 %v5691_v1, %v2096_v0  ;;  %v9451_v0 = vld [vmem:[#allocation14_spill] sm:$0xff]  ;;  %v9452_v1 = vld [vmem:[#allocation125_spill] sm:$0xff] }
 0x383   :  { %v7702_v59 = vadd.f32 %v2100_v39, %v2098_v51  ;;  %v9453_v39 = vld [vmem:[#allocation15_spill] sm:$0xff]  ;;  %v9454_v51 = vld [vmem:[#allocation129_spill] sm:$0xff] }
 0x385   :  { %v2104_v15 = vpack.c.bf16 %v7702_v59, %v7702_v59 }
 0x387   :  { %v2108_v3 = vunpack.c.l.b16 %v2104_v15  ;;  %v9456_v15 = vld [vmem:[#allocation135_spill] sm:$0xff] }
 0x389   :  { %v2109_v12 = vpack.c.b16 %v2108_v3, %v2107_v43  ;;  %v9457_v43 = vld [vmem:[#allocation17_spill] sm:$0xff]  ;;  %v9458_v3 = vld [vmem:[#allocation34_spill] sm:$0xff] }
 0x38b   :  { %2133 = vmatmul.bf16.vlgmr.msra.gmra.mxu3 %v2109_v12  ;;  %2161 = vmatmul.bf16.vlgmr.msra.gmra.mxu1 %v2109_v12 }
 0x38c   :  { %2237 = vmatpush.bf16.msra.mxu3 %v9328_v52  ;;  %2265 = vmatpush.bf16.msra.mxu1 %v9329_v19 }
 0x390   :  { %2238 = vmatpush.bf16.msra.mxu3 %v9330_v27  ;;  %2266 = vmatpush.bf16.msra.mxu1 %v9429_v33 }
 0x394   :  { %2239 = vmatpush.bf16.msra.mxu3 %v9430_v54  ;;  %2267 = vmatpush.bf16.msra.mxu1 %v9431_v20 }
 0x398   :  { %2240 = vmatpush.bf16.msra.mxu3 %v9432_v47  ;;  %2268 = vmatpush.bf16.msra.mxu1 %v9433_v29 }
 0x39b   :  { %2189 = vmatmul.bf16.vlgmr.msrb.gmra.mxu3 %v2109_v12  ;;  %2217 = vmatmul.bf16.vlgmr.msrb.gmra.mxu1 %v2109_v12 }
 0x39c   :  { %2241 = vmatpush.bf16.msra.mxu3 %v9434_v62  ;;  %2269 = vmatpush.bf16.msra.mxu1 %v9435_v49 }
 0x3a0   :  { %2242 = vmatpush.bf16.msra.mxu3 %v9436_v2  ;;  %2270 = vmatpush.bf16.msra.mxu1 %v9437_v56 }
 0x3a4   :  { %2243 = vmatpush.bf16.msra.mxu3 %v9438_v42  ;;  %2271 = vmatpush.bf16.msra.mxu1 %v9439_v30 }
 0x3a8   :  { %2244 = vmatpush.bf16.msra.mxu3 %v9440_v40  ;;  %2272 = vmatpush.bf16.msra.mxu1 %v9441_v61 }
 0x3ab   :  { %2245 = vmatmul.bf16.vlgmr.msra.gmra.mxu3 %v2109_v12  ;;  %2273 = vmatmul.bf16.vlgmr.msra.gmra.mxu1 %v2109_v12  ;;  %v9459_v12 = vld [vmem:[#allocation19_spill] sm:$0xff] }
 0x3ac   :  { %2404 = vmatpush.bf16.msrb.mxu3 %v9442_v10  ;;  %2536 = vmatpush.bf16.msrb.mxu1 %v9443_v16 }
 0x3b0   :  { %2405 = vmatpush.bf16.msrb.mxu3 %v9444_v6  ;;  %2537 = vmatpush.bf16.msrb.mxu1 %v9445_v17  ;;  %v9476_v6 = vld [vmem:[#allocation110_spill] sm:$0xff] }
 0x3b4   :  { %2406 = vmatpush.bf16.msrb.mxu3 %v9446_v44  ;;  %2538 = vmatpush.bf16.msrb.mxu1 %v9447_v38 }
 0x3b8   :  { %2407 = vmatpush.bf16.msrb.mxu3 %v9448_v8  ;;  %2539 = vmatpush.bf16.msrb.mxu1 %v9449_v50  ;;  %v9460_v50 = vld [vmem:[#allocation35_spill] sm:$0xff]  ;;  %v9474_v8 = vld [vmem:[#allocation124_spill] sm:$0xff] }
 0x3bc   :  { %2408 = vmatpush.bf16.msrb.mxu3 %v9450_v48  ;;  %2540 = vmatpush.bf16.msrb.mxu1 %v9451_v0  ;;  %v9461_v48 = vld [vmem:[#allocation22_spill] sm:$0xff]  ;;  %v9462_v0 = vld [vmem:[#allocation36_spill] sm:$0xff] }
 0x3c0   :  { %2409 = vmatpush.bf16.msrb.mxu3 %v9452_v1  ;;  %2541 = vmatpush.bf16.msrb.mxu1 %v9453_v39  ;;  %v9463_v1 = vld [vmem:[#allocation25_spill] sm:$0xff]  ;;  %v9464_v39 = vld [vmem:[#allocation39_spill] sm:$0xff] }
 0x3c4   :  { %2410 = vmatpush.bf16.msrb.mxu3 %v9454_v51  ;;  %2542 = vmatpush.bf16.msrb.mxu1 %v9455_v57  ;;  %v9465_v51 = vld [vmem:[#allocation30_spill] sm:$0xff]  ;;  %v9466_v57 = vld [vmem:[#allocation40_spill] sm:$0xff] }
 0x3c8   :  { %2411 = vmatpush.bf16.msrb.mxu3 %v9456_v15  ;;  %2543 = vmatpush.bf16.msrb.mxu1 %v9457_v43  ;;  %v9467_v15 = vld [vmem:[#allocation37_spill] sm:$0xff] }
 0x3c9   :  { %v9468_v43 = vld [vmem:[#allocation41_spill] sm:$0xff] }
 0x3cc   :  { %2564 = vmatpush.bf16.msra.mxu3 %v9458_v3  ;;  %2592 = vmatpush.bf16.msra.mxu1 %v9459_v12  ;;  %v9469_v3 = vld [vmem:[#allocation43_spill] sm:$0xff]  ;;  %v9470_v12 = vld [vmem:[#allocation42_spill] sm:$0xff] }
 0x3d0   :  { %2565 = vmatpush.bf16.msra.mxu3 %v9460_v50  ;;  %2593 = vmatpush.bf16.msra.mxu1 %v9461_v48  ;;  %v9471_v50 = vld [vmem:[#allocation50_spill] sm:$0xff]  ;;  %v9472_v48 = vld [vmem:[#allocation45_spill] sm:$0xff] }
 0x3d4   :  { %2566 = vmatpush.bf16.msra.mxu3 %v9462_v0  ;;  %2594 = vmatpush.bf16.msra.mxu1 %v9463_v1  ;;  %v9473_v0 = vld [vmem:[#allocation56_spill] sm:$0xff]  ;;  %v2148_v1 = vpop.f32.mrf.mxu0 }
 0x3d8   :  { %2567 = vmatpush.bf16.msra.mxu3 %v9464_v39  ;;  %2595 = vmatpush.bf16.msra.mxu1 %v9465_v51  ;;  %v9475_v51 = vld [vmem:[#allocation71_spill] sm:$0xff] }
 0x3d9   :  { %v384_v38 = vadd.f32 %v9475_v51, %v9474_v8 }
 0x3dc   :  { %2568 = vmatpush.bf16.msra.mxu3 %v9466_v57  ;;  %2596 = vmatpush.bf16.msra.mxu1 %v9467_v15  ;;  %v2120_v15 = vpop.f32.mrf.mxu2 }
 0x3e0   :  { %2569 = vmatpush.bf16.msra.mxu3 %v9468_v43  ;;  %2597 = vmatpush.bf16.msra.mxu1 %v9469_v3  ;;  %v9477_v3 = vld [vmem:[#allocation70_spill] sm:$0xff] }
 0x3e1   :  { %v335_v16 = vadd.f32 %v9477_v3, %v9476_v6 }
 0x3e4   :  { %2570 = vmatpush.bf16.msra.mxu3 %v9470_v12  ;;  %2598 = vmatpush.bf16.msra.mxu1 %v9471_v50  ;;  %v2150_v50 = vpop.f32.mrf.mxu0 }
 0x3e8   :  { %2571 = vmatpush.bf16.msra.mxu3 %v9472_v48  ;;  %2599 = vmatpush.bf16.msra.mxu1 %v9473_v0  ;;  %v9478_v48 = vld [vmem:[#allocation75_spill] sm:$0xff] }
 0x3e9   :  { %v386_v0 = vadd.f32 %v9478_v48, %v9474_v8 }
 0x408   :  { %v2162_v39 = vpop.f32.mrf.mxu1 }
 0x409   :  { %v2163_v57 = vadd.f32 %v2162_v39, %v2148_v1  ;;  %v2122_v1 = vpop.f32.mrf.mxu2 }
 0x40b   :  { %v2287_v44 = vadd.f32 %v2163_v57, %v384_v38  ;;  %v9479_v57 = vld [vmem:[#allocation74_spill] sm:$0xff] }
 0x40d   :  { %v5362_v17 = vmul.f32 -1.442695, %v2287_v44 }
 0x40e   :  { %v2134_v43 = vpop.f32.mrf.mxu3 }
 0x40f   :  { %5692 = vpow2.f32 %v5362_v17  ;;  %v2135_v12 = vadd.f32 %v2134_v43, %v2120_v15  ;;  %v337_v17 = vadd.f32 %v9479_v57, %v9476_v6 }
 0x410   :  { %v2164_v10 = vpop.f32.mrf.mxu1 }
 0x411   :  { %v2286_v61 = vadd.f32 %v2135_v12, %v335_v16  ;;  %v2165_v40 = vadd.f32 %v2164_v10, %v2150_v50 }
 0x413   :  { %v5361_v30 = vmul.f32 -1.442695, %v2286_v61  ;;  %v2289_v42 = vadd.f32 %v2165_v40, %v386_v0 }
 0x415   :  { %v5693_v51 = vpop.eup %5692  ;;  %5694 = vpow2.f32 %v5361_v30  ;;  %v5364_v38 = vmul.f32 -1.442695, %v2289_v42 }
 0x416   :  { %v7762_v44 = vadd.f32 1.0, %v5693_v51  ;;  %v2136_v39 = vpop.f32.mrf.mxu3 }
 0x417   :  { %5696 = vpow2.f32 %v5364_v38  ;;  %v2137_v15 = vadd.f32 %v2136_v39, %v2122_v1  ;;  %v2176_v38 = vpop.f32.mrf.mxu2 }
 0x418   :  { %5698 = vrcp.f32 %v7762_v44  ;;  %vm2326_vm5 = vweird.f32 %v7762_v44  ;;  %v2330_v49 = vand.u32 2147483647, %v7762_v44 }
 0x419   :  { %v2288_v43 = vadd.f32 %v2137_v15, %v337_v17 }
 0x41a   :  { %vm2331_vm9 = vcmp.eq.f32.partialorder %v2330_v49, 8.507059e+37 }
 0x41b   :  { %v5695_v48 = vpop.eup %5694  ;;  %v5363_v16 = vmul.f32 -1.442695, %v2288_v43 }
 0x41c   :  { %v2302_v10 = vadd.f32 1.0, %v5695_v48 }
 0x41d   :  { %v5697_v61 = vpop.eup %5696  ;;  %5700 = vpow2.f32 %v5363_v16 }
 0x41e   :  { %5702 = vrcp.f32 %v2302_v10  ;;  %v7767_v30 = vadd.f32 1.0, %v5697_v61  ;;  %v5699_v42 = vpop.eup %5698  ;;  %v2190_v12 = vpop.f32.mrf.mxu3  ;;  %v2317_v17 = vand.u32 2147483648, %v2302_v10  ;;  %v2315_v48 = vand.u32 2147483647, %v2302_v10 }
 0x41f   :  { %v2322_v40 = vmul.f32 %v5699_v42, %v7762_v44  ;;  %v2191_v15 = vadd.f32 %v2190_v12, %v2176_v38  ;;  %vm2311_vm1 = vweird.f32 %v2302_v10  ;;  %vm2327_vm4 = vweird.f32 %v5699_v42 }
 0x420   :  { %5704 = vrcp.f32 %v7767_v30  ;;  %v2318_v8 = vor.u32 1.1754944e-38, %v2317_v17  ;;  %vm2316_vm3 = vcmp.eq.f32.partialorder %v2315_v48, 8.507059e+37  ;;  %v2332_v17 = vand.u32 2147483648, %v7762_v44  ;;  %v2178_v48 = vpop.f32.mrf.mxu2  ;;  %vm2328_vm6 = vmor %vm2326_vm5, %vm2327_vm4 }
 0x421   :  { %v2323_v1 = vsub.f32 1.0, %v2322_v40  ;;  %v7778_v40 = vld [vmem:[%s8842_s4] ss:$0 sm:$0xff]  ;;  %vm2356_vm13 = vweird.f32 %v7767_v30  ;;  %v2360_v49 = vand.u32 2147483647, %v7767_v30 }
 0x422   :  { %v2366_v12 = vadd.f32 %v7778_v40, %v2191_v15 }
 0x423   :  { %v5701_v50 = vpop.eup %5700  ;;  %v2324_v16 = vmul.f32 %v5699_v42, %v2323_v1  ;;  %vm2361_vm15 = vcmp.eq.f32.partialorder %v2360_v49, 8.507059e+37  ;;  %v9491_v49 = vld [vmem:[#allocation133_spill] sm:$0xff] }
 0x424   :  { %v5703_v0 = vpop.eup %5702  ;;  %v2304_v3 = vadd.f32 1.0, %v5701_v50 }
 0x425   :  { %v2307_v51 = vmul.f32 %v5703_v0, %v2302_v10  ;;  %vm2312_vm0 = vweird.f32 %v5703_v0  ;;  %v2325_v38 = vadd.f32 %v5699_v42, %v2324_v16  ;;  %v9480_v10 = vld [vmem:[#allocation156_spill] sm:$0xff] }
 0x426   :  { %5706 = vrcp.f32 %v2304_v3  ;;  %v7771_v39 = vpop.eup %5704  ;;  %vm2313_vm2 = vmor %vm2311_vm1, %vm2312_vm0  ;;  %v2192_v2 = vpop.f32.mrf.mxu3  ;;  %v2345_v62 = vand.u32 2147483647, %v2304_v3  ;;  %v2347_v15 = vand.u32 2147483648, %v2304_v3  ;;  %vm2341_vm8 = vweird.f32 %v2304_v3 }
 0x427   :  { %v2308_v57 = vsub.f32 1.0, %v2307_v51  ;;  %v2352_v61 = vmul.f32 %v7771_v39, %v7767_v30  ;;  %v2193_v29 = vadd.f32 %v2192_v2, %v2178_v48  ;;  %vm2357_vm12 = vweird.f32 %v7771_v39 }
 0x428   :  { %vm2346_vm11 = vcmp.eq.f32.partialorder %v2345_v62, 8.507059e+37  ;;  %vm2358_vm14 = vmor %vm2356_vm13, %vm2357_vm12 }
 0x429   :  { %v2309_v43 = vmul.f32 %v5703_v0, %v2308_v57  ;;  %v2353_v1 = vsub.f32 1.0, %v2352_v61  ;;  %v2367_v44 = vadd.f32 %v7778_v40, %v2193_v29 }
 0x42b   :  { %v2310_v6 = vadd.f32 %v5703_v0, %v2309_v43  ;;  %v433_v43 = vadd.f32 %v9480_v10, %v7243_v63  ;;  %v2333_v10 = vor.u32 1.1754944e-38, %v2332_v17 }
 0x42c   :  { %v5707_v50 = vpop.eup %5706 }
 0x42d   :  { %v2314_v56 = vsel %vm2313_vm2, %v5703_v0, %v2310_v6  ;;  %v2337_v51 = vmul.f32 %v5707_v50, %v2304_v3  ;;  %vm2342_vm7 = vweird.f32 %v5707_v50 }
 0x42e   :  { %v2319_v57 = vsel %vm2316_vm3, %v2318_v8, %v2314_v56  ;;  %v2354_v56 = vmul.f32 %v7771_v39, %v2353_v1  ;;  %v2329_v8 = vsel %vm2328_vm6, %v5699_v42, %v2325_v38  ;;  %vm2343_vm10 = vmor %vm2341_vm8, %vm2342_vm7  ;;  %v9481_v1 = vld [vmem:[#allocation58_spill] sm:$0xff]  ;;  %v2362_v38 = vand.u32 2147483648, %v7767_v30 }
 0x42f   :  { %v2368_v6 = vmul.f32 %v2366_v12, %v2319_v57  ;;  %v2338_v0 = vsub.f32 1.0, %v2337_v51  ;;  %v2348_v12 = vor.u32 1.1754944e-38, %v2347_v15  ;;  %v2334_v51 = vsel %vm2331_vm9, %v2333_v10, %v2329_v8 }
 0x430   :  { %v435_v42 = vadd.f32 %v9481_v1, %v7243_v63  ;;  %v2374_v3 = vsub.f32 1.0, %v2334_v51  ;;  %v9487_v1 = vld [vmem:[#allocation131_spill] sm:$0xff] }
 0x431   :  { %v2370_v16 = vadd.f32 %v2368_v6, %v433_v43  ;;  %v2339_v61 = vmul.f32 %v5707_v50, %v2338_v0  ;;  %v2355_v43 = vadd.f32 %v7771_v39, %v2354_v56  ;;  %v2363_v0 = vor.u32 1.1754944e-38, %v2362_v38  ;;  %v9489_v38 = vld [vmem:[#allocation57_spill] sm:$0xff] }
 0x433   :  { %5708 = vtanh.f32 %v2370_v16  ;;  %v2340_v47 = vadd.f32 %v5707_v50, %v2339_v61  ;;  %v2359_v6 = vsel %vm2358_vm14, %v7771_v39, %v2355_v43  ;;  %v9485_v43 = vld [vmem:[#allocation73_spill] sm:$0xff] }
 0x434   :  { %v2364_v15 = vsel %vm2361_vm15, %v2363_v0, %v2359_v6  ;;  %v9497_v6 = vld [vmem:[#allocation144_spill] sm:$0xff]  ;;  %v9498_v0 = vld [vmem:[#allocation118_spill] sm:$0xff] }
 0x435   :  { %v2344_v57 = vsel %vm2343_vm10, %v5707_v50, %v2340_v47  ;;  %v2378_v50 = vmul.f32 %v2334_v51, %v7575_v53  ;;  %v2375_v16 = vsub.f32 1.0, %v2364_v15  ;;  %v2379_v30 = vmul.f32 %v2364_v15, %v7580_v60  ;;  %v9482_v60 = vld [vmem:[#allocation97_spill] sm:$0xff]  ;;  %v9499_v15 = vld [vmem:[#allocation146_spill] sm:$0xff] }
 0x436   :  { %v2349_v2 = vsel %vm2346_vm11, %v2348_v12, %v2344_v57  ;;  %v9483_v57 = vld [vmem:[#allocation126_spill] sm:$0xff] }
 0x437   :  { %v2369_v17 = vmul.f32 %v2367_v44, %v2349_v2  ;;  %v9484_v44 = vld [vmem:[#allocation51_spill] sm:$0xff]  ;;  %v9486_v2 = vld [vmem:[#allocation101_spill] sm:$0xff] }
 0x439   :  { %v5709_v47 = vpop.eup %5708  ;;  %v2371_v62 = vadd.f32 %v2369_v17, %v435_v42  ;;  %v9488_v42 = vld [vmem:[#allocation102_spill] sm:$0xff]  ;;  %v9490_v17 = vld [vmem:[#allocation76_spill] sm:$0xff] }
 0x43a   :  { %v2376_v29 = vmul.f32 %v5709_v47, %v2374_v3  ;;  %v9492_v3 = vld [vmem:[#allocation108_spill] sm:$0xff] }
 0x43b   :  { %5710 = vtanh.f32 %v2371_v62  ;;  %v9493_v47 = vld [vmem:[#allocation136_spill] sm:$0xff]  ;;  %v9494_v62 = vld [vmem:[#allocation111_spill] sm:$0xff] }
 0x43c   :  { %v7797_v48 = vadd.f32 %v2378_v50, %v2376_v29  ;;  %v9495_v29 = vld [vmem:[#allocation140_spill] sm:$0xff]  ;;  %v9496_v50 = vld [vmem:[#allocation115_spill] sm:$0xff] }
 0x43e   :  { %v2382_v8 = vpack.c.bf16 %v7797_v48, %v7797_v48 }
 0x440   :  { %v2386_v39 = vunpack.c.l.b16 %v2382_v8  ;;  %v9504_v8 = vld [vmem:[#allocation132_spill] sm:$0xff] }
 0x441   :  { %v5711_v61 = vpop.eup %5710 }
 0x442   :  { %v2377_v56 = vmul.f32 %v5711_v61, %v2375_v16  ;;  %v9500_v16 = vld [vmem:[#allocation123_spill] sm:$0xff]  ;;  %v9501_v61 = vld [vmem:[#allocation150_spill] sm:$0xff] }
 0x444   :  { %v7802_v10 = vadd.f32 %v2379_v30, %v2377_v56  ;;  %v9502_v56 = vld [vmem:[#allocation127_spill] sm:$0xff]  ;;  %v9503_v30 = vld [vmem:[#allocation152_spill] sm:$0xff] }
 0x446   :  { %v2383_v53 = vpack.c.bf16 %v7802_v10, %v7802_v10 }
 0x448   :  { %v2387_v12 = vunpack.c.l.b16 %v2383_v53  ;;  %v9505_v53 = vld [vmem:[#allocation134_spill] sm:$0xff] }
 0x44a   :  { %v2388_v51 = vpack.c.b16 %v2387_v12, %v2386_v39  ;;  %v9506_v39 = vld [vmem:[#allocation154_spill] sm:$0xff] }
 0x44b   :  { %v9507_v12 = vld [vmem:[#allocation18_spill] sm:$0xff] }
 0x44c   :  { %2398 = vmatmul.bf16.vlgmr.msra.gmra.mxu2 %v2388_v51  ;;  %2412 = vmatmul.bf16.vlgmr.msrb.gmra.mxu3 %v2388_v51 }
 0x44d   :  { %2426 = vmatmul.bf16.vlgmr.msrb.gmra.mxu0 %v2388_v51  ;;  %2544 = vmatmul.bf16.vlgmr.msrb.gmra.mxu1 %v2388_v51 }
 0x44e   :  { %2620 = vmatpush.bf16.msrb.mxu3 %v9273_v31  ;;  %2648 = vmatpush.bf16.msrb.mxu1 %v6909_v23 }
 0x44f   :  { %2606 = vmatpush.bf16.msra.mxu2 %v9275_v4  ;;  %2634 = vmatpush.bf16.msrb.mxu0 %v9276_v13 }
 0x452   :  { %2621 = vmatpush.bf16.msrb.mxu3 %v9277_v24  ;;  %2649 = vmatpush.bf16.msrb.mxu1 %v6952_v37 }
 0x453   :  { %2607 = vmatpush.bf16.msra.mxu2 %v9278_v18  ;;  %2635 = vmatpush.bf16.msrb.mxu0 %v9279_v11 }
 0x456   :  { %2622 = vmatpush.bf16.msrb.mxu3 %v9280_v26  ;;  %2650 = vmatpush.bf16.msrb.mxu1 %v6986_v55 }
 0x457   :  { %2608 = vmatpush.bf16.msra.mxu2 %v9281_v41  ;;  %2636 = vmatpush.bf16.msrb.mxu0 %v9282_v32 }
 0x45a   :  { %2623 = vmatpush.bf16.msrb.mxu3 %v9284_v21  ;;  %2651 = vmatpush.bf16.msrb.mxu1 %v7018_v9 }
 0x45b   :  { %2609 = vmatpush.bf16.msra.mxu2 %v9285_v28  ;;  %2637 = vmatpush.bf16.msrb.mxu0 %v9286_v46 }
 0x45c   :  { %2572 = vmatmul.bf16.vlgmr.msra.gmra.mxu3 %v2388_v51 }
 0x45d   :  { %2600 = vmatmul.bf16.vlgmr.msra.gmra.mxu1 %v2388_v51 }
 0x45e   :  { %2624 = vmatpush.bf16.msrb.mxu3 %v9287_v34  ;;  %2652 = vmatpush.bf16.msrb.mxu1 %v7042_v45 }
 0x45f   :  { %2610 = vmatpush.bf16.msra.mxu2 %v9379_v36  ;;  %2638 = vmatpush.bf16.msrb.mxu0 %v9289_v7 }
 0x462   :  { %2625 = vmatpush.bf16.msrb.mxu3 %v9380_v5  ;;  %2653 = vmatpush.bf16.msrb.mxu1 %v9381_v22 }
 0x463   :  { %2611 = vmatpush.bf16.msra.mxu2 %v9382_v35  ;;  %2639 = vmatpush.bf16.msrb.mxu0 %v9293_v58 }
 0x466   :  { %2626 = vmatpush.bf16.msrb.mxu3 %v9482_v60  ;;  %2654 = vmatpush.bf16.msrb.mxu1 %v9483_v57 }
 0x467   :  { %2612 = vmatpush.bf16.msra.mxu2 %v9484_v44  ;;  %2640 = vmatpush.bf16.msrb.mxu0 %v9485_v43 }
 0x46a   :  { %2627 = vmatpush.bf16.msrb.mxu3 %v9486_v2  ;;  %2655 = vmatpush.bf16.msrb.mxu1 %v9487_v1 }
 0x46b   :  { %2613 = vmatpush.bf16.msra.mxu2 %v9489_v38  ;;  %2641 = vmatpush.bf16.msrb.mxu0 %v9490_v17 }
 0x46d   :  { %2628 = vmatmul.bf16.vlgmr.msrb.gmra.mxu3 %v2388_v51  ;;  %2656 = vmatmul.bf16.vlgmr.msrb.gmra.mxu1 %v2388_v51 }
 0x46e   :  { %2676 = vmatpush.bf16.msra.mxu3 %v9488_v42  ;;  %2815 = vmatpush.bf16.msra.mxu1 %v9491_v49 }
 0x472   :  { %2677 = vmatpush.bf16.msra.mxu3 %v9492_v3  ;;  %2816 = vmatpush.bf16.msra.mxu1 %v9493_v47  ;;  %v9530_v47 = vld [vmem:[#allocation66_spill] sm:$0xff]  ;;  %v9531_v3 = vld [vmem:[#allocation89_spill] sm:$0xff] }
 0x476   :  { %2678 = vmatpush.bf16.msra.mxu3 %v9494_v62  ;;  %2817 = vmatpush.bf16.msra.mxu1 %v9495_v29 }
 0x47a   :  { %2679 = vmatpush.bf16.msra.mxu3 %v9496_v50  ;;  %2818 = vmatpush.bf16.msra.mxu1 %v9497_v6  ;;  %v9528_v6 = vld [vmem:[#allocation54_spill] sm:$0xff] }
 0x47e   :  { %2680 = vmatpush.bf16.msra.mxu3 %v9498_v0  ;;  %2819 = vmatpush.bf16.msra.mxu1 %v9499_v15  ;;  %v9508_v0 = vld [vmem:[#allocation138_spill] sm:$0xff]  ;;  %v9509_v15 = vld [vmem:[#allocation21_spill] sm:$0xff] }
 0x482   :  { %2681 = vmatpush.bf16.msra.mxu3 %v9500_v16  ;;  %2820 = vmatpush.bf16.msra.mxu1 %v9501_v61  ;;  %v9510_v16 = vld [vmem:[#allocation141_spill] sm:$0xff]  ;;  %v9511_v61 = vld [vmem:[#allocation24_spill] sm:$0xff] }
 0x486   :  { %2682 = vmatpush.bf16.msra.mxu3 %v9502_v56  ;;  %2821 = vmatpush.bf16.msra.mxu1 %v9503_v30  ;;  %v9512_v56 = vld [vmem:[#allocation145_spill] sm:$0xff]  ;;  %v9513_v30 = vld [vmem:[#allocation27_spill] sm:$0xff] }
 0x48a   :  { %2683 = vmatpush.bf16.msra.mxu3 %v9504_v8  ;;  %2822 = vmatpush.bf16.msra.mxu1 %v9506_v39  ;;  %v9514_v8 = vld [vmem:[#allocation147_spill] sm:$0xff] }
 0x48b   :  { %v9516_v39 = vld [vmem:[#allocation151_spill] sm:$0xff] }
 0x48d   :  { %2684 = vmatmul.bf16.vlgmr.msra.gmra.mxu3 %v2388_v51  ;;  %v9518_v51 = vld [vmem:[#allocation153_spill] sm:$0xff] }
 0x48e   :  { %2843 = vmatpush.bf16.msrb.mxu3 %v9505_v53  ;;  %2975 = vmatpush.bf16.msrb.mxu1 %v9507_v12  ;;  %v9515_v53 = vld [vmem:[#allocation28_spill] sm:$0xff]  ;;  %v9517_v12 = vld [vmem:[#allocation29_spill] sm:$0xff] }
 0x492   :  { %2844 = vmatpush.bf16.msrb.mxu3 %v9508_v0  ;;  %2976 = vmatpush.bf16.msrb.mxu1 %v9509_v15  ;;  %v9519_v0 = vld [vmem:[#allocation31_spill] sm:$0xff] }
 0x493   :  { %v9520_v15 = vld [vmem:[#allocation155_spill] sm:$0xff] }
 0x496   :  { %2845 = vmatpush.bf16.msrb.mxu3 %v9510_v16  ;;  %2977 = vmatpush.bf16.msrb.mxu1 %v9511_v61  ;;  %v9521_v16 = vld [vmem:[#allocation46_spill] sm:$0xff]  ;;  %v9522_v61 = vld [vmem:[#allocation33_spill] sm:$0xff] }
 0x49a   :  { %2846 = vmatpush.bf16.msrb.mxu3 %v9512_v56  ;;  %2978 = vmatpush.bf16.msrb.mxu1 %v9513_v30  ;;  %v9523_v56 = vld [vmem:[#allocation47_spill] sm:$0xff]  ;;  %v9524_v30 = vld [vmem:[#allocation48_spill] sm:$0xff] }
 0x49e   :  { %2847 = vmatpush.bf16.msrb.mxu3 %v9514_v8  ;;  %2979 = vmatpush.bf16.msrb.mxu1 %v9515_v53  ;;  %v9525_v8 = vld [vmem:[#allocation49_spill] sm:$0xff]  ;;  %v9526_v53 = vld [vmem:[#allocation52_spill] sm:$0xff] }
 0x4a2   :  { %2848 = vmatpush.bf16.msrb.mxu3 %v9516_v39  ;;  %2980 = vmatpush.bf16.msrb.mxu1 %v9517_v12  ;;  %v9527_v39 = vld [vmem:[#allocation53_spill] sm:$0xff]  ;;  %v2232_v12 = vpop.f32.mrf.mxu2 }
 0x4a6   :  { %2849 = vmatpush.bf16.msrb.mxu3 %v9518_v51  ;;  %2981 = vmatpush.bf16.msrb.mxu1 %v9519_v0  ;;  %v2246_v51 = vpop.f32.mrf.mxu3  ;;  %v9529_v0 = vld [vmem:[#allocation55_spill] sm:$0xff] }
 0x4aa   :  { %2850 = vmatpush.bf16.msrb.mxu3 %v9520_v15  ;;  %2982 = vmatpush.bf16.msrb.mxu1 %v9522_v61  ;;  %v2204_v15 = vpop.f32.mrf.mxu0  ;;  %v2218_v61 = vpop.f32.mrf.mxu1 }
 0x4ab   :  { %v2219_v62 = vadd.f32 %v2218_v61, %v2204_v15 }
 0x4ae   :  { %3003 = vmatpush.bf16.msra.mxu3 %v9521_v16  ;;  %v2234_v16 = vpop.f32.mrf.mxu2  ;;  %v2248_v50 = vpop.f32.mrf.mxu3 }
 0x4af   :  { %v2249_v43 = vadd.f32 %v2248_v50, %v2234_v16 }
 0x4b2   :  { %3004 = vmatpush.bf16.msra.mxu3 %v9523_v56  ;;  %v2206_v49 = vpop.f32.mrf.mxu0 }
 0x4b6   :  { %3005 = vmatpush.bf16.msra.mxu3 %v9524_v30  ;;  %v2247_v30 = vadd.f32 %v2246_v51, %v2232_v12 }
 0x4ba   :  { %3006 = vmatpush.bf16.msra.mxu3 %v9525_v8  ;;  %v2260_v61 = vpop.f32.mrf.mxu0 }
 0x4be   :  { %3007 = vmatpush.bf16.msra.mxu3 %v9526_v53 }
 0x4c2   :  { %3008 = vmatpush.bf16.msra.mxu3 %v9527_v39 }
 0x4c6   :  { %3009 = vmatpush.bf16.msra.mxu3 %v9528_v6  ;;  %v2220_v6 = vpop.f32.mrf.mxu1 }
 0x4c7   :  { %v2221_v2 = vadd.f32 %v2220_v6, %v2206_v49 }
 0x4ca   :  { %3010 = vmatpush.bf16.msra.mxu3 %v9529_v0 }
 0x4cf   :  { %v2399_v29 = vpop.f32.mrf.mxu2  ;;  %v2413_v56 = vpop.f32.mrf.mxu3 }
 0x4d0   :  { %v2400_v8 = vadd.f32 %v2399_v29, %v9530_v47  ;;  %v2414_v53 = vadd.f32 %v2413_v56, %v9531_v3 }
 0x4d2   :  { %v2432_v39 = vadd.f32 %v2400_v8, %v2219_v62  ;;  %v2433_v17 = vadd.f32 %v2414_v53, %v2247_v30 }
 0x4d4   :  { %v5365_v38 = vmul.f32 -1.442695, %v2432_v39  ;;  %v5366_v42 = vmul.f32 -1.442695, %v2433_v17 }
 0x4d6   :  { %5712 = vpow2.f32 %v5365_v38  ;;  %v2262_v38 = vpop.f32.mrf.mxu0 }
 0x4d7   :  { %5714 = vpow2.f32 %v5366_v42  ;;  %v2401_v0 = vpop.f32.mrf.mxu2  ;;  %v2415_v1 = vpop.f32.mrf.mxu3 }
 0x4d8   :  { %v2402_v44 = vadd.f32 %v2401_v0, %v9530_v47  ;;  %v2416_v15 = vadd.f32 %v2415_v1, %v9531_v3  ;;  %v2274_v42 = vpop.f32.mrf.mxu1 }
 0x4d9   :  { %v2275_v53 = vadd.f32 %v2274_v42, %v2260_v61  ;;  %v7896_v61 = vld [vmem:[%s8845_s7] ss:$0 sm:$0xff] }
 0x4da   :  { %v2434_v29 = vadd.f32 %v2402_v44, %v2221_v2  ;;  %v2435_v12 = vadd.f32 %v2416_v15, %v2249_v43 }
 0x4db   :  { %v2512_v42 = vadd.f32 %v7896_v61, %v2275_v53 }
 0x4dc   :  { %v5713_v56 = vpop.eup %5712  ;;  %v5367_v51 = vmul.f32 -1.442695, %v2434_v29  ;;  %v5368_v8 = vmul.f32 -1.442695, %v2435_v12 }
 0x4dd   :  { %v5715_v62 = vpop.eup %5714  ;;  %v2448_v30 = vadd.f32 1.0, %v5713_v56 }
 0x4de   :  { %v7882_v17 = vadd.f32 1.0, %v5715_v62  ;;  %5716 = vpow2.f32 %v5367_v51  ;;  %v2427_v56 = vpop.f32.mrf.mxu0 }
 0x4df   :  { %5718 = vrcp.f32 %v2448_v30  ;;  %v2463_v39 = vand.u32 2147483648, %v2448_v30  ;;  %v2461_v12 = vand.u32 2147483647, %v2448_v30  ;;  %vm2457_vm1 = vweird.f32 %v2448_v30 }
 0x4e0   :  { %5720 = vrcp.f32 %v7882_v17  ;;  %v2276_v51 = vpop.f32.mrf.mxu1  ;;  %vm2472_vm6 = vweird.f32 %v7882_v17 }
 0x4e1   :  { %5722 = vpow2.f32 %v5368_v8  ;;  %vm2462_vm3 = vcmp.eq.f32.partialorder %v2461_v12, 8.507059e+37 }
 0x4e4   :  { %v5717_v49 = vpop.eup %5716 }
 0x4e5   :  { %v5719_v50 = vpop.eup %5718  ;;  %v2450_v1 = vadd.f32 1.0, %v5717_v49  ;;  %v2464_v49 = vor.u32 1.1754944e-38, %v2463_v39  ;;  %v2478_v39 = vand.u32 2147483648, %v7882_v17 }
 0x4e6   :  { %v7885_v6 = vpop.eup %5720  ;;  %v2453_v44 = vmul.f32 %v5719_v50, %v2448_v30  ;;  %vm2458_vm0 = vweird.f32 %v5719_v50  ;;  %v2428_v30 = vadd.f32 %v2427_v56, %v7474_v25 }
 0x4e7   :  { %v5723_v43 = vpop.eup %5722  ;;  %v2468_v2 = vmul.f32 %v7885_v6, %v7882_v17  ;;  %5724 = vrcp.f32 %v2450_v1  ;;  %vm2459_vm2 = vmor %vm2457_vm1, %vm2458_vm0  ;;  %vm2473_vm4 = vweird.f32 %v7885_v6  ;;  %v2493_v60 = vand.u32 2147483648, %v2450_v1 }
 0x4e8   :  { %v2454_v0 = vsub.f32 1.0, %v2453_v44  ;;  %v7889_v16 = vadd.f32 1.0, %v5723_v43  ;;  %v2491_v12 = vand.u32 2147483647, %v2450_v1  ;;  %vm7906_vm7 = vmor %vm2472_vm6, %vm2473_vm4  ;;  %vm2487_vm8 = vweird.f32 %v2450_v1 }
 0x4e9   :  { %v2469_v15 = vsub.f32 1.0, %v2468_v2  ;;  %v2277_v2 = vadd.f32 %v2276_v51, %v2262_v38  ;;  %v2476_v38 = vand.u32 2147483647, %v7882_v17 }
 0x4ea   :  { %v2455_v29 = vmul.f32 %v5719_v50, %v2454_v0  ;;  %5726 = vrcp.f32 %v7889_v16  ;;  %vm2492_vm10 = vcmp.eq.f32.partialorder %v2491_v12, 8.507059e+37  ;;  %vm2502_vm13 = vweird.f32 %v7889_v16 }
 0x4eb   :  { %v2470_v3 = vmul.f32 %v7885_v6, %v2469_v15  ;;  %vm2477_vm11 = vcmp.eq.f32.partialorder %v2476_v38, 8.507059e+37 }
 0x4ec   :  { %v2456_v62 = vadd.f32 %v5719_v50, %v2455_v29 }
 0x4ed   :  { %v5725_v8 = vpop.eup %5724  ;;  %v2471_v15 = vadd.f32 %v7885_v6, %v2470_v3 }
 0x4ee   :  { %v2460_v44 = vsel %vm2459_vm2, %v5719_v50, %v2456_v62  ;;  %v2483_v43 = vmul.f32 %v5725_v8, %v2450_v1  ;;  %vm2488_vm5 = vweird.f32 %v5725_v8 }
 0x4ef   :  { %v2465_v0 = vsel %vm2462_vm3, %v2464_v49, %v2460_v44  ;;  %v2475_v62 = vsel %vm7906_vm7, %v7885_v6, %v2471_v15  ;;  %v2429_v49 = vpop.f32.mrf.mxu0  ;;  %vm2489_vm9 = vmor %vm2487_vm8, %vm2488_vm5  ;;  %v2513_v44 = vadd.f32 %v7896_v61, %v2277_v2 }
 0x4f0   :  { %v5727_v47 = vpop.eup %5726  ;;  %v2514_v29 = vmul.f32 %v2512_v42, %v2465_v0  ;;  %v2484_v57 = vsub.f32 1.0, %v2483_v43  ;;  %v2479_v43 = vor.u32 1.1754944e-38, %v2478_v39  ;;  %v2430_v1 = vadd.f32 %v2429_v49, %v7474_v25 }
 0x4f1   :  { %v2498_v58 = vmul.f32 %v5727_v47, %v7889_v16  ;;  %vm2503_vm12 = vweird.f32 %v5727_v47 }
 0x4f2   :  { %v2516_v53 = vadd.f32 %v2514_v29, %v2428_v30  ;;  %v2485_v50 = vmul.f32 %v5725_v8, %v2484_v57  ;;  %v2494_v57 = vor.u32 1.1754944e-38, %v2493_v60  ;;  %v2480_v30 = vsel %vm2477_vm11, %v2479_v43, %v2475_v62  ;;  %vm2504_vm14 = vmor %vm2502_vm13, %vm2503_vm12 }
 0x4f3   :  { %v2499_v56 = vsub.f32 1.0, %v2498_v58  ;;  %v2506_v60 = vand.u32 2147483647, %v7889_v16  ;;  %v2520_v2 = vsub.f32 1.0, %v2480_v30  ;;  %v2524_v38 = vmul.f32 %v2480_v30, %v7699_v14  ;;  %v9534_v14 = vld [vmem:[#allocation86_spill] sm:$0xff]  ;;  %v9539_v30 = vld [vmem:[#allocation95_spill] sm:$0xff] }
 0x4f4   :  { %5728 = vtanh.f32 %v2516_v53  ;;  %v2486_v3 = vadd.f32 %v5725_v8, %v2485_v50  ;;  %v2508_v53 = vand.u32 2147483648, %v7889_v16 }
 0x4f5   :  { %v2500_v42 = vmul.f32 %v5727_v47, %v2499_v56  ;;  %vm2507_vm15 = vcmp.eq.f32.partialorder %v2506_v60, 8.507059e+37  ;;  %v9543_v60 = vld [vmem:[#allocation104_spill] sm:$0xff] }
 0x4f6   :  { %v2490_v17 = vsel %vm2489_vm9, %v5725_v8, %v2486_v3  ;;  %v2509_v39 = vor.u32 1.1754944e-38, %v2508_v53  ;;  %v9542_v53 = vld [vmem:[#allocation103_spill] sm:$0xff] }
 0x4f7   :  { %v2495_v58 = vsel %vm2492_vm10, %v2494_v57, %v2490_v17  ;;  %v2501_v0 = vadd.f32 %v5727_v47, %v2500_v42  ;;  %v9536_v17 = vld [vmem:[#allocation91_spill] sm:$0xff] }
 0x4f8   :  { %v2515_v29 = vmul.f32 %v2513_v44, %v2495_v58  ;;  %v9537_v58 = vld [vmem:[#allocation92_spill] sm:$0xff] }
 0x4f9   :  { %v2505_v8 = vsel %vm2504_vm14, %v5727_v47, %v2501_v0  ;;  %v9538_v0 = vld [vmem:[#allocation94_spill] sm:$0xff] }
 0x4fa   :  { %v5729_v6 = vpop.eup %5728  ;;  %v2517_v15 = vadd.f32 %v2515_v29, %v2430_v1  ;;  %v2510_v12 = vsel %vm2507_vm15, %v2509_v39, %v2505_v8  ;;  %v9540_v1 = vld [vmem:[#allocation99_spill] sm:$0xff]  ;;  %v9541_v29 = vld [vmem:[#allocation100_spill] sm:$0xff] }
 0x4fb   :  { %v2522_v50 = vmul.f32 %v5729_v6, %v2520_v2  ;;  %v2521_v56 = vsub.f32 1.0, %v2510_v12  ;;  %v2525_v62 = vmul.f32 %v2510_v12, %v7702_v59  ;;  %v9535_v59 = vld [vmem:[#allocation87_spill] sm:$0xff]  ;;  %v9544_v6 = vld [vmem:[#allocation106_spill] sm:$0xff]  ;;  %v9546_v2 = vld [vmem:[#allocation109_spill] sm:$0xff] }
 0x4fc   :  { %5730 = vtanh.f32 %v2517_v15  ;;  %v9545_v15 = vld [vmem:[#allocation10_spill] sm:$0xff]  ;;  %v9547_v8 = vld [vmem:[#allocation11_spill] sm:$0xff]  ;;  %v9548_v39 = vld [vmem:[#allocation112_spill] sm:$0xff] }
 0x4fd   :  { %v7919_v51 = vadd.f32 %v2524_v38, %v2522_v50  ;;  %v9549_v50 = vld [vmem:[#allocation12_spill] sm:$0xff]  ;;  %v9551_v38 = vld [vmem:[#allocation13_spill] sm:$0xff] }
 0x4fe   :  { %v9550_v12 = vld [vmem:[#allocation116_spill] sm:$0xff] }
 0x4ff   :  { %v2528_v57 = vpack.c.bf16 %v7919_v51, %v7919_v51 }
 0x501   :  { %v2532_v42 = vunpack.c.l.b16 %v2528_v57  ;;  %v9556_v57 = vld [vmem:[#allocation129_spill] sm:$0xff] }
 0x502   :  { %v5731_v3 = vpop.eup %5730 }
 0x503   :  { %v2523_v49 = vmul.f32 %v5731_v3, %v2521_v56  ;;  %v9552_v56 = vld [vmem:[#allocation119_spill] sm:$0xff]  ;;  %v9553_v3 = vld [vmem:[#allocation14_spill] sm:$0xff] }
 0x505   :  { %v7922_v16 = vadd.f32 %v2525_v62, %v2523_v49  ;;  %v9554_v62 = vld [vmem:[#allocation125_spill] sm:$0xff]  ;;  %v9555_v49 = vld [vmem:[#allocation15_spill] sm:$0xff] }
 0x507   :  { %v2529_v47 = vpack.c.bf16 %v7922_v16, %v7922_v16 }
 0x509   :  { %v2533_v44 = vunpack.c.l.b16 %v2529_v47  ;;  %v9557_v47 = vld [vmem:[#allocation16_spill] sm:$0xff] }
 0x50b   :  { %v2534_v43 = vpack.c.b16 %v2533_v44, %v2532_v42  ;;  %v9558_v42 = vld [vmem:[#allocation135_spill] sm:$0xff]  ;;  %v9559_v44 = vld [vmem:[#allocation17_spill] sm:$0xff] }
 0x50d   :  { %2558 = vmatmul.bf16.vlgmr.msrb.gmra.mxu2 %v2534_v43  ;;  %2586 = vmatmul.bf16.vlgmr.msra.gmra.mxu0 %v2534_v43 }
 0x50e   :  { %2662 = vmatpush.bf16.msrb.mxu2 %v9328_v52  ;;  %2690 = vmatpush.bf16.msra.mxu0 %v9329_v19 }
 0x512   :  { %2663 = vmatpush.bf16.msrb.mxu2 %v9330_v27  ;;  %2691 = vmatpush.bf16.msra.mxu0 %v9429_v33 }
 0x516   :  { %2664 = vmatpush.bf16.msrb.mxu2 %v9430_v54  ;;  %2692 = vmatpush.bf16.msra.mxu0 %v9431_v20 }
 0x51a   :  { %2665 = vmatpush.bf16.msrb.mxu2 %v9534_v14  ;;  %2693 = vmatpush.bf16.msra.mxu0 %v9535_v59 }
 0x51d   :  { %2614 = vmatmul.bf16.vlgmr.msra.gmra.mxu2 %v2534_v43  ;;  %2642 = vmatmul.bf16.vlgmr.msrb.gmra.mxu0 %v2534_v43 }
 0x51e   :  { %2666 = vmatpush.bf16.msrb.mxu2 %v9536_v17  ;;  %2694 = vmatpush.bf16.msra.mxu0 %v9537_v58 }
 0x522   :  { %2667 = vmatpush.bf16.msrb.mxu2 %v9538_v0  ;;  %2695 = vmatpush.bf16.msra.mxu0 %v9539_v30 }
 0x526   :  { %2668 = vmatpush.bf16.msrb.mxu2 %v9540_v1  ;;  %2696 = vmatpush.bf16.msra.mxu0 %v9541_v29 }
 0x52a   :  { %2669 = vmatpush.bf16.msrb.mxu2 %v9542_v53  ;;  %2697 = vmatpush.bf16.msra.mxu0 %v9543_v60 }
 0x52d   :  { %2670 = vmatmul.bf16.vlgmr.msrb.gmra.mxu2 %v2534_v43  ;;  %2698 = vmatmul.bf16.vlgmr.msra.gmra.mxu0 %v2534_v43  ;;  %v9560_v43 = vld [vmem:[#allocation34_spill] sm:$0xff] }
 0x52e   :  { %2829 = vmatpush.bf16.msra.mxu2 %v9544_v6  ;;  %2961 = vmatpush.bf16.msrb.mxu0 %v9545_v15  ;;  %v9578_v15 = vld [vmem:[#allocation110_spill] sm:$0xff] }
 0x532   :  { %2830 = vmatpush.bf16.msra.mxu2 %v9546_v2  ;;  %2962 = vmatpush.bf16.msrb.mxu0 %v9547_v8 }
 0x536   :  { %2831 = vmatpush.bf16.msra.mxu2 %v9548_v39  ;;  %2963 = vmatpush.bf16.msrb.mxu0 %v9549_v50  ;;  %v9576_v50 = vld [vmem:[#allocation124_spill] sm:$0xff] }
 0x53a   :  { %2832 = vmatpush.bf16.msra.mxu2 %v9550_v12  ;;  %2964 = vmatpush.bf16.msrb.mxu0 %v9551_v38  ;;  %v9561_v12 = vld [vmem:[#allocation19_spill] sm:$0xff] }
 0x53b   :  { %v9562_v38 = vld [vmem:[#allocation35_spill] sm:$0xff] }
 0x53e   :  { %2833 = vmatpush.bf16.msra.mxu2 %v9552_v56  ;;  %2965 = vmatpush.bf16.msrb.mxu0 %v9553_v3  ;;  %v9563_v56 = vld [vmem:[#allocation22_spill] sm:$0xff]  ;;  %v9564_v3 = vld [vmem:[#allocation36_spill] sm:$0xff] }
 0x542   :  { %2834 = vmatpush.bf16.msra.mxu2 %v9554_v62  ;;  %2966 = vmatpush.bf16.msrb.mxu0 %v9555_v49  ;;  %v9565_v62 = vld [vmem:[#allocation25_spill] sm:$0xff]  ;;  %v9566_v49 = vld [vmem:[#allocation39_spill] sm:$0xff] }
 0x546   :  { %2835 = vmatpush.bf16.msra.mxu2 %v9556_v57  ;;  %2967 = vmatpush.bf16.msrb.mxu0 %v9557_v47  ;;  %v9567_v57 = vld [vmem:[#allocation30_spill] sm:$0xff]  ;;  %v9568_v47 = vld [vmem:[#allocation40_spill] sm:$0xff] }
 0x54a   :  { %2836 = vmatpush.bf16.msra.mxu2 %v9558_v42  ;;  %2968 = vmatpush.bf16.msrb.mxu0 %v9559_v44  ;;  %v9569_v42 = vld [vmem:[#allocation37_spill] sm:$0xff] }
 0x54b   :  { %v9570_v44 = vld [vmem:[#allocation41_spill] sm:$0xff] }
 0x54e   :  { %2989 = vmatpush.bf16.msrb.mxu2 %v9560_v43  ;;  %3017 = vmatpush.bf16.msra.mxu0 %v9561_v12  ;;  %v9571_v43 = vld [vmem:[#allocation43_spill] sm:$0xff]  ;;  %v9572_v12 = vld [vmem:[#allocation42_spill] sm:$0xff] }
 0x552   :  { %2990 = vmatpush.bf16.msrb.mxu2 %v9562_v38  ;;  %3018 = vmatpush.bf16.msra.mxu0 %v9563_v56  ;;  %v9573_v38 = vld [vmem:[#allocation50_spill] sm:$0xff]  ;;  %v9574_v56 = vld [vmem:[#allocation45_spill] sm:$0xff] }
 0x556   :  { %2991 = vmatpush.bf16.msrb.mxu2 %v9564_v3  ;;  %3019 = vmatpush.bf16.msra.mxu0 %v9565_v62  ;;  %v9575_v3 = vld [vmem:[#allocation56_spill] sm:$0xff]  ;;  %v2573_v62 = vpop.f32.mrf.mxu3 }
 0x55a   :  { %2992 = vmatpush.bf16.msrb.mxu2 %v9566_v49  ;;  %3020 = vmatpush.bf16.msra.mxu0 %v9567_v57  ;;  %v9577_v57 = vld [vmem:[#allocation83_spill] sm:$0xff] }
 0x55b   :  { %v389_v39 = vadd.f32 %v9577_v57, %v9576_v50 }
 0x55e   :  { %2993 = vmatpush.bf16.msrb.mxu2 %v9568_v47  ;;  %3021 = vmatpush.bf16.msra.mxu0 %v9569_v42  ;;  %v2545_v42 = vpop.f32.mrf.mxu1 }
 0x562   :  { %2994 = vmatpush.bf16.msrb.mxu2 %v9570_v44  ;;  %3022 = vmatpush.bf16.msra.mxu0 %v9571_v43  ;;  %v9579_v43 = vld [vmem:[#allocation82_spill] sm:$0xff] }
 0x563   :  { %v340_v6 = vadd.f32 %v9579_v43, %v9578_v15 }
 0x566   :  { %2995 = vmatpush.bf16.msrb.mxu2 %v9572_v12  ;;  %3023 = vmatpush.bf16.msra.mxu0 %v9573_v38  ;;  %v2575_v38 = vpop.f32.mrf.mxu3 }
 0x56a   :  { %2996 = vmatpush.bf16.msrb.mxu2 %v9574_v56  ;;  %3024 = vmatpush.bf16.msra.mxu0 %v9575_v3  ;;  %v9580_v56 = vld [vmem:[#allocation90_spill] sm:$0xff] }
 0x56b   :  { %v391_v3 = vadd.f32 %v9580_v56, %v9576_v50 }
 0x58a   :  { %v2587_v49 = vpop.f32.mrf.mxu0 }
 0x58b   :  { %v2588_v47 = vadd.f32 %v2587_v49, %v2573_v62  ;;  %v2547_v62 = vpop.f32.mrf.mxu1 }
 0x58d   :  { %v2712_v8 = vadd.f32 %v2588_v47, %v389_v39  ;;  %v9581_v47 = vld [vmem:[#allocation88_spill] sm:$0xff] }
 0x58f   :  { %v5370_v2 = vmul.f32 -1.442695, %v2712_v8 }
 0x590   :  { %v2559_v44 = vpop.f32.mrf.mxu2 }
 0x591   :  { %5732 = vpow2.f32 %v5370_v2  ;;  %v2560_v12 = vadd.f32 %v2559_v44, %v2545_v42  ;;  %v342_v2 = vadd.f32 %v9581_v47, %v9578_v15 }
 0x592   :  { %v2589_v60 = vpop.f32.mrf.mxu0 }
 0x593   :  { %v2711_v53 = vadd.f32 %v2560_v12, %v340_v6  ;;  %v2590_v29 = vadd.f32 %v2589_v60, %v2575_v38 }
 0x595   :  { %v5369_v1 = vmul.f32 -1.442695, %v2711_v53  ;;  %v2714_v30 = vadd.f32 %v2590_v29, %v391_v3 }
 0x597   :  { %v5733_v57 = vpop.eup %5732  ;;  %5734 = vpow2.f32 %v5369_v1  ;;  %v5372_v39 = vmul.f32 -1.442695, %v2714_v30 }
 0x598   :  { %v7982_v8 = vadd.f32 1.0, %v5733_v57  ;;  %v2561_v49 = vpop.f32.mrf.mxu2 }
 0x599   :  { %5736 = vpow2.f32 %v5372_v39  ;;  %v2562_v42 = vadd.f32 %v2561_v49, %v2547_v62  ;;  %v2601_v39 = vpop.f32.mrf.mxu1 }
 0x59a   :  { %5738 = vrcp.f32 %v7982_v8  ;;  %v2757_v59 = vand.u32 2147483648, %v7982_v8  ;;  %vm2751_vm5 = vweird.f32 %v7982_v8 }
 0x59b   :  { %v2713_v44 = vadd.f32 %v2562_v42, %v342_v2 }
 0x59d   :  { %v5735_v56 = vpop.eup %5734  ;;  %v5371_v6 = vmul.f32 -1.442695, %v2713_v44 }
 0x59e   :  { %v2727_v60 = vadd.f32 1.0, %v5735_v56 }
 0x59f   :  { %v5737_v53 = vpop.eup %5736  ;;  %5740 = vpow2.f32 %v5371_v6 }
 0x5a0   :  { %5742 = vrcp.f32 %v2727_v60  ;;  %v7987_v1 = vadd.f32 1.0, %v5737_v53  ;;  %v5739_v30 = vpop.eup %5738  ;;  %v2615_v43 = vpop.f32.mrf.mxu2  ;;  %v2742_v2 = vand.u32 2147483648, %v2727_v60  ;;  %v2740_v56 = vand.u32 2147483647, %v2727_v60 }
 0x5a1   :  { %v2747_v29 = vmul.f32 %v5739_v30, %v7982_v8  ;;  %v2616_v42 = vadd.f32 %v2615_v43, %v2601_v39  ;;  %vm2736_vm1 = vweird.f32 %v2727_v60  ;;  %vm2752_vm4 = vweird.f32 %v5739_v30  ;;  %v2603_v14 = vpop.f32.mrf.mxu1 }
 0x5a2   :  { %5744 = vrcp.f32 %v7987_v1  ;;  %v2743_v15 = vor.u32 1.1754944e-38, %v2742_v2  ;;  %vm2741_vm3 = vcmp.eq.f32.partialorder %v2740_v56, 8.507059e+37  ;;  %vm2753_vm6 = vmor %vm2751_vm5, %vm2752_vm4  ;;  %vm2781_vm13 = vweird.f32 %v7987_v1 }
 0x5a3   :  { %v2748_v62 = vsub.f32 1.0, %v2747_v29  ;;  %v2791_v29 = vadd.f32 %v7778_v40, %v2616_v42 }
 0x5a5   :  { %v5741_v12 = vpop.eup %5740  ;;  %v2749_v6 = vmul.f32 %v5739_v30, %v2748_v62  ;;  %v9582_v62 = vld [vmem:[#allocation20_spill] sm:$0xff] }
 0x5a6   :  { %v5743_v38 = vpop.eup %5742  ;;  %v2729_v3 = vadd.f32 1.0, %v5741_v12  ;;  %v438_v17 = vadd.f32 %v9582_v62, %v7243_v63 }
 0x5a7   :  { %v2732_v57 = vmul.f32 %v5743_v38, %v2727_v60  ;;  %vm2737_vm0 = vweird.f32 %v5743_v38 }
 0x5a8   :  { %5746 = vrcp.f32 %v2729_v3  ;;  %v7991_v49 = vpop.eup %5744  ;;  %vm2738_vm2 = vmor %vm2736_vm1, %vm2737_vm0  ;;  %v2772_v2 = vand.u32 2147483648, %v2729_v3  ;;  %vm2766_vm8 = vweird.f32 %v2729_v3 }
 0x5a9   :  { %v2733_v47 = vsub.f32 1.0, %v2732_v57  ;;  %v2777_v53 = vmul.f32 %v7991_v49, %v7987_v1  ;;  %v2750_v57 = vadd.f32 %v5739_v30, %v2749_v6  ;;  %vm2782_vm12 = vweird.f32 %v7991_v49 }
 0x5aa   :  { %vm2783_vm14 = vmor %vm2781_vm13, %vm2782_vm12 }
 0x5ab   :  { %v2734_v44 = vmul.f32 %v5743_v38, %v2733_v47  ;;  %v2778_v43 = vsub.f32 1.0, %v2777_v53  ;;  %v2617_v47 = vpop.f32.mrf.mxu2  ;;  %v2758_v53 = vor.u32 1.1754944e-38, %v2757_v59  ;;  %v2787_v59 = vand.u32 2147483648, %v7987_v1 }
 0x5ac   :  { %v2618_v56 = vadd.f32 %v2617_v47, %v2603_v14 }
 0x5ad   :  { %v2735_v50 = vadd.f32 %v5743_v38, %v2734_v44 }
 0x5ae   :  { %v5747_v12 = vpop.eup %5746 }
 0x5af   :  { %v2739_v0 = vsel %vm2738_vm2, %v5743_v38, %v2735_v50  ;;  %v2762_v58 = vmul.f32 %v5747_v12, %v2729_v3  ;;  %v2755_v50 = vand.u32 2147483647, %v7982_v8  ;;  %v2770_v38 = vand.u32 2147483647, %v2729_v3 }
 0x5b0   :  { %v2744_v39 = vsel %vm2741_vm3, %v2743_v15, %v2739_v0  ;;  %vm2767_vm7 = vweird.f32 %v5747_v12  ;;  %v2779_v0 = vmul.f32 %v7991_v49, %v2778_v43  ;;  %v2754_v15 = vsel %vm2753_vm6, %v5739_v30, %v2750_v57  ;;  %v9583_v43 = vld [vmem:[#allocation59_spill] sm:$0xff] }
 0x5b1   :  { %v2793_v44 = vmul.f32 %v2791_v29, %v2744_v39  ;;  %v2763_v60 = vsub.f32 1.0, %v2762_v58  ;;  %vm2756_vm9 = vcmp.eq.f32.partialorder %v2755_v50, 8.507059e+37  ;;  %vm2768_vm10 = vmor %vm2766_vm8, %vm2767_vm7  ;;  %v2773_v58 = vor.u32 1.1754944e-38, %v2772_v2 }
 0x5b2   :  { %v2759_v29 = vsel %vm2756_vm9, %v2758_v53, %v2754_v15  ;;  %vm2771_vm11 = vcmp.eq.f32.partialorder %v2770_v38, 8.507059e+37  ;;  %v2792_v8 = vadd.f32 %v7778_v40, %v2618_v56  ;;  %v440_v30 = vadd.f32 %v9583_v43, %v7243_v63  ;;  %v9590_v43 = vld [vmem:[#allocation131_spill] sm:$0xff] }
 0x5b3   :  { %v2795_v42 = vadd.f32 %v2793_v44, %v438_v17  ;;  %v2764_v6 = vmul.f32 %v5747_v12, %v2763_v60  ;;  %v2780_v17 = vadd.f32 %v7991_v49, %v2779_v0  ;;  %v2785_v3 = vand.u32 2147483647, %v7987_v1 }
 0x5b4   :  { %v2799_v47 = vsub.f32 1.0, %v2759_v29  ;;  %v2803_v60 = vmul.f32 %v2759_v29, %v7797_v48  ;;  %v2788_v38 = vor.u32 1.1754944e-38, %v2787_v59  ;;  %v9585_v29 = vld [vmem:[#allocation97_spill] sm:$0xff] }
 0x5b5   :  { %5748 = vtanh.f32 %v2795_v42  ;;  %v2765_v62 = vadd.f32 %v5747_v12, %v2764_v6  ;;  %v2784_v50 = vsel %vm2783_vm14, %v7991_v49, %v2780_v17  ;;  %vm2786_vm15 = vcmp.eq.f32.partialorder %v2785_v3, 8.507059e+37  ;;  %v9588_v17 = vld [vmem:[#allocation73_spill] sm:$0xff] }
 0x5b6   :  { %v2789_v42 = vsel %vm2786_vm15, %v2788_v38, %v2784_v50  ;;  %v9592_v59 = vld [vmem:[#allocation57_spill] sm:$0xff]  ;;  %v9600_v50 = vld [vmem:[#allocation144_spill] sm:$0xff]  ;;  %v9601_v38 = vld [vmem:[#allocation118_spill] sm:$0xff] }
 0x5b7   :  { %v2769_v39 = vsel %vm2768_vm10, %v5747_v12, %v2765_v62  ;;  %v2800_v56 = vsub.f32 1.0, %v2789_v42  ;;  %v2804_v1 = vmul.f32 %v2789_v42, %v7802_v10  ;;  %v9584_v10 = vld [vmem:[#allocation72_spill] sm:$0xff]  ;;  %v9594_v3 = vld [vmem:[#allocation133_spill] sm:$0xff]  ;;  %v9602_v42 = vld [vmem:[#allocation146_spill] sm:$0xff] }
 0x5b8   :  { %v2774_v14 = vsel %vm2771_vm11, %v2773_v58, %v2769_v39  ;;  %v9586_v39 = vld [vmem:[#allocation126_spill] sm:$0xff] }
 0x5b9   :  { %v2794_v57 = vmul.f32 %v2792_v8, %v2774_v14  ;;  %v9587_v8 = vld [vmem:[#allocation51_spill] sm:$0xff]  ;;  %v9589_v14 = vld [vmem:[#allocation101_spill] sm:$0xff] }
 0x5bb   :  { %v5749_v12 = vpop.eup %5748  ;;  %v2796_v44 = vadd.f32 %v2794_v57, %v440_v30  ;;  %v9591_v30 = vld [vmem:[#allocation102_spill] sm:$0xff]  ;;  %v9593_v57 = vld [vmem:[#allocation76_spill] sm:$0xff] }
 0x5bc   :  { %v2801_v40 = vmul.f32 %v5749_v12, %v2799_v47  ;;  %v9595_v47 = vld [vmem:[#allocation108_spill] sm:$0xff] }
 0x5bd   :  { %5750 = vtanh.f32 %v2796_v44  ;;  %v9596_v12 = vld [vmem:[#allocation136_spill] sm:$0xff]  ;;  %v9597_v44 = vld [vmem:[#allocation111_spill] sm:$0xff] }
 0x5be   :  { %v8012_v2 = vadd.f32 %v2803_v60, %v2801_v40  ;;  %v9598_v40 = vld [vmem:[#allocation140_spill] sm:$0xff]  ;;  %v9599_v60 = vld [vmem:[#allocation115_spill] sm:$0xff] }
 0x5c0   :  { %v2807_v15 = vpack.c.bf16 %v8012_v2, %v8012_v2 }
 0x5c2   :  { %v2811_v49 = vunpack.c.l.b16 %v2807_v15  ;;  %v9607_v15 = vld [vmem:[#allocation132_spill] sm:$0xff] }
 0x5c3   :  { %v5751_v6 = vpop.eup %5750 }
 0x5c4   :  { %v2802_v0 = vmul.f32 %v5751_v6, %v2800_v56  ;;  %v9603_v56 = vld [vmem:[#allocation123_spill] sm:$0xff]  ;;  %v9604_v6 = vld [vmem:[#allocation150_spill] sm:$0xff] }
 0x5c6   :  { %v8017_v53 = vadd.f32 %v2804_v1, %v2802_v0  ;;  %v9605_v0 = vld [vmem:[#allocation127_spill] sm:$0xff]  ;;  %v9606_v1 = vld [vmem:[#allocation152_spill] sm:$0xff] }
 0x5c8   :  { %v2808_v48 = vpack.c.bf16 %v8017_v53, %v8017_v53 }
 0x5ca   :  { %v2812_v62 = vunpack.c.l.b16 %v2808_v48  ;;  %v9608_v48 = vld [vmem:[#allocation134_spill] sm:$0xff] }
 0x5cc   :  { %v2813_v58 = vpack.c.b16 %v2812_v62, %v2811_v49  ;;  %v9609_v49 = vld [vmem:[#allocation154_spill] sm:$0xff] }
 0x5cd   :  { %v9610_v62 = vld [vmem:[#allocation18_spill] sm:$0xff] }
 0x5ce   :  { %2823 = vmatmul.bf16.vlgmr.msra.gmra.mxu1 %v2813_v58  ;;  %2837 = vmatmul.bf16.vlgmr.msra.gmra.mxu2 %v2813_v58 }
 0x5cf   :  { %2851 = vmatmul.bf16.vlgmr.msrb.gmra.mxu3 %v2813_v58  ;;  %2969 = vmatmul.bf16.vlgmr.msrb.gmra.mxu0 %v2813_v58 }
 0x5d0   :  { %3045 = vmatpush.bf16.msra.mxu2 %v9273_v31  ;;  %3073 = vmatpush.bf16.msrb.mxu0 %v6909_v23 }
 0x5d1   :  { %3031 = vmatpush.bf16.msra.mxu1 %v9275_v4  ;;  %3059 = vmatpush.bf16.msrb.mxu3 %v9276_v13 }
 0x5d4   :  { %3046 = vmatpush.bf16.msra.mxu2 %v9277_v24  ;;  %3074 = vmatpush.bf16.msrb.mxu0 %v6952_v37 }
 0x5d5   :  { %3032 = vmatpush.bf16.msra.mxu1 %v9278_v18  ;;  %3060 = vmatpush.bf16.msrb.mxu3 %v9279_v11 }
 0x5d8   :  { %3047 = vmatpush.bf16.msra.mxu2 %v9280_v26  ;;  %3075 = vmatpush.bf16.msrb.mxu0 %v6986_v55 }
 0x5d9   :  { %3033 = vmatpush.bf16.msra.mxu1 %v9281_v41  ;;  %3061 = vmatpush.bf16.msrb.mxu3 %v9282_v32 }
 0x5dc   :  { %3048 = vmatpush.bf16.msra.mxu2 %v9284_v21  ;;  %3076 = vmatpush.bf16.msrb.mxu0 %v7018_v9 }
 0x5dd   :  { %3034 = vmatpush.bf16.msra.mxu1 %v9285_v28  ;;  %3062 = vmatpush.bf16.msrb.mxu3 %v9286_v46 }
 0x5de   :  { %2997 = vmatmul.bf16.vlgmr.msrb.gmra.mxu2 %v2813_v58 }
 0x5df   :  { %3025 = vmatmul.bf16.vlgmr.msra.gmra.mxu0 %v2813_v58 }
 0x5e0   :  { %3049 = vmatpush.bf16.msra.mxu2 %v9287_v34  ;;  %3077 = vmatpush.bf16.msrb.mxu0 %v7042_v45 }
 0x5e1   :  { %3035 = vmatpush.bf16.msra.mxu1 %v9379_v36  ;;  %3063 = vmatpush.bf16.msrb.mxu3 %v9289_v7 }
 0x5e4   :  { %3050 = vmatpush.bf16.msra.mxu2 %v9380_v5  ;;  %3078 = vmatpush.bf16.msrb.mxu0 %v9381_v22 }
 0x5e5   :  { %3036 = vmatpush.bf16.msra.mxu1 %v9382_v35  ;;  %3064 = vmatpush.bf16.msrb.mxu3 %v9584_v10 }
 0x5e8   :  { %3051 = vmatpush.bf16.msra.mxu2 %v9585_v29  ;;  %3079 = vmatpush.bf16.msrb.mxu0 %v9586_v39 }
 0x5e9   :  { %3037 = vmatpush.bf16.msra.mxu1 %v9587_v8  ;;  %3065 = vmatpush.bf16.msrb.mxu3 %v9588_v17 }
 0x5ec   :  { %3052 = vmatpush.bf16.msra.mxu2 %v9589_v14  ;;  %3080 = vmatpush.bf16.msrb.mxu0 %v9590_v43 }
 0x5ed   :  { %3038 = vmatpush.bf16.msra.mxu1 %v9592_v59  ;;  %3066 = vmatpush.bf16.msrb.mxu3 %v9593_v57 }
 0x5ef   :  { %3053 = vmatmul.bf16.vlgmr.msra.gmra.mxu2 %v2813_v58  ;;  %3081 = vmatmul.bf16.vlgmr.msrb.gmra.mxu0 %v2813_v58 }
 0x5f0   :  { %3101 = vmatpush.bf16.msrb.mxu2 %v9591_v30  ;;  %3240 = vmatpush.bf16.msra.mxu0 %v9594_v3 }
 0x5f4   :  { %3102 = vmatpush.bf16.msrb.mxu2 %v9595_v47  ;;  %3241 = vmatpush.bf16.msra.mxu0 %v9596_v12 }
 0x5f8   :  { %3103 = vmatpush.bf16.msrb.mxu2 %v9597_v44  ;;  %3242 = vmatpush.bf16.msra.mxu0 %v9598_v40  ;;  %v9633_v44 = vld [vmem:[#allocation66_spill] sm:$0xff] }
 0x5fc   :  { %3104 = vmatpush.bf16.msrb.mxu2 %v9599_v60  ;;  %3243 = vmatpush.bf16.msra.mxu0 %v9600_v50  ;;  %v9631_v50 = vld [vmem:[#allocation54_spill] sm:$0xff]  ;;  %v2643_v60 = vpop.f32.mrf.mxu0 }
 0x600   :  { %3105 = vmatpush.bf16.msrb.mxu2 %v9601_v38  ;;  %3244 = vmatpush.bf16.msra.mxu0 %v9602_v42  ;;  %v9611_v38 = vld [vmem:[#allocation138_spill] sm:$0xff]  ;;  %v9612_v42 = vld [vmem:[#allocation21_spill] sm:$0xff] }
 0x604   :  { %3106 = vmatpush.bf16.msrb.mxu2 %v9603_v56  ;;  %3245 = vmatpush.bf16.msra.mxu0 %v9604_v6  ;;  %v9613_v56 = vld [vmem:[#allocation141_spill] sm:$0xff]  ;;  %v9614_v6 = vld [vmem:[#allocation24_spill] sm:$0xff] }
 0x608   :  { %3107 = vmatpush.bf16.msrb.mxu2 %v9605_v0  ;;  %3246 = vmatpush.bf16.msra.mxu0 %v9606_v1  ;;  %v9615_v0 = vld [vmem:[#allocation145_spill] sm:$0xff]  ;;  %v9616_v1 = vld [vmem:[#allocation27_spill] sm:$0xff] }
 0x60c   :  { %3108 = vmatpush.bf16.msrb.mxu2 %v9607_v15  ;;  %3247 = vmatpush.bf16.msra.mxu0 %v9609_v49  ;;  %v9617_v15 = vld [vmem:[#allocation147_spill] sm:$0xff] }
 0x60d   :  { %v9619_v49 = vld [vmem:[#allocation151_spill] sm:$0xff] }
 0x60f   :  { %3109 = vmatmul.bf16.vlgmr.msrb.gmra.mxu2 %v2813_v58  ;;  %v9621_v58 = vld [vmem:[#allocation153_spill] sm:$0xff] }
 0x610   :  { %3268 = vmatpush.bf16.msra.mxu2 %v9608_v48  ;;  %3400 = vmatpush.bf16.msrb.mxu0 %v9610_v62  ;;  %v9618_v48 = vld [vmem:[#allocation28_spill] sm:$0xff]  ;;  %v9620_v62 = vld [vmem:[#allocation29_spill] sm:$0xff] }
 0x614   :  { %3269 = vmatpush.bf16.msra.mxu2 %v9611_v38  ;;  %3401 = vmatpush.bf16.msrb.mxu0 %v9612_v42  ;;  %v9622_v38 = vld [vmem:[#allocation31_spill] sm:$0xff] }
 0x615   :  { %v9623_v42 = vld [vmem:[#allocation155_spill] sm:$0xff] }
 0x618   :  { %3270 = vmatpush.bf16.msra.mxu2 %v9613_v56  ;;  %3402 = vmatpush.bf16.msrb.mxu0 %v9614_v6  ;;  %v9624_v56 = vld [vmem:[#allocation46_spill] sm:$0xff]  ;;  %v9625_v6 = vld [vmem:[#allocation33_spill] sm:$0xff] }
 0x61c   :  { %3271 = vmatpush.bf16.msra.mxu2 %v9615_v0  ;;  %3403 = vmatpush.bf16.msrb.mxu0 %v9616_v1  ;;  %v9626_v0 = vld [vmem:[#allocation47_spill] sm:$0xff]  ;;  %v9627_v1 = vld [vmem:[#allocation48_spill] sm:$0xff] }
 0x620   :  { %3272 = vmatpush.bf16.msra.mxu2 %v9617_v15  ;;  %3404 = vmatpush.bf16.msrb.mxu0 %v9618_v48  ;;  %v9628_v15 = vld [vmem:[#allocation49_spill] sm:$0xff]  ;;  %v9629_v48 = vld [vmem:[#allocation52_spill] sm:$0xff] }
 0x624   :  { %3273 = vmatpush.bf16.msra.mxu2 %v9619_v49  ;;  %3405 = vmatpush.bf16.msrb.mxu0 %v9620_v62  ;;  %v2657_v49 = vpop.f32.mrf.mxu1  ;;  %v9630_v62 = vld [vmem:[#allocation53_spill] sm:$0xff] }
 0x628   :  { %3274 = vmatpush.bf16.msra.mxu2 %v9621_v58  ;;  %3406 = vmatpush.bf16.msrb.mxu0 %v9622_v38  ;;  %v2671_v58 = vpop.f32.mrf.mxu2 }
 0x629   :  { %v2672_v57 = vadd.f32 %v2671_v58, %v2657_v49 }
 0x62c   :  { %3275 = vmatpush.bf16.msra.mxu2 %v9623_v42  ;;  %3407 = vmatpush.bf16.msrb.mxu0 %v9625_v6  ;;  %v2659_v38 = vpop.f32.mrf.mxu1  ;;  %v9632_v42 = vld [vmem:[#allocation55_spill] sm:$0xff] }
 0x630   :  { %3428 = vmatpush.bf16.msrb.mxu2 %v9624_v56  ;;  %v2629_v56 = vpop.f32.mrf.mxu3  ;;  %v2673_v6 = vpop.f32.mrf.mxu2 }
 0x634   :  { %3429 = vmatpush.bf16.msrb.mxu2 %v9626_v0  ;;  %v2644_v0 = vadd.f32 %v2643_v60, %v2629_v56 }
 0x638   :  { %3430 = vmatpush.bf16.msrb.mxu2 %v9627_v1  ;;  %v2631_v12 = vpop.f32.mrf.mxu3 }
 0x63c   :  { %3431 = vmatpush.bf16.msrb.mxu2 %v9628_v15 }
 0x640   :  { %3432 = vmatpush.bf16.msrb.mxu2 %v9629_v48  ;;  %v2645_v48 = vpop.f32.mrf.mxu0  ;;  %v2685_v14 = vpop.f32.mrf.mxu3 }
 0x641   :  { %v2646_v30 = vadd.f32 %v2645_v48, %v2631_v12 }
 0x644   :  { %3433 = vmatpush.bf16.msrb.mxu2 %v9630_v62  ;;  %v9634_v62 = vld [vmem:[#allocation89_spill] sm:$0xff] }
 0x648   :  { %3434 = vmatpush.bf16.msrb.mxu2 %v9631_v50 }
 0x64b   :  { %v2824_v40 = vpop.f32.mrf.mxu1 }
 0x64c   :  { %3435 = vmatpush.bf16.msrb.mxu2 %v9632_v42  ;;  %v2825_v1 = vadd.f32 %v2824_v40, %v9633_v44 }
 0x64e   :  { %v2857_v15 = vadd.f32 %v2825_v1, %v2644_v0  ;;  %v2674_v1 = vadd.f32 %v2673_v6, %v2659_v38 }
 0x650   :  { %v5373_v47 = vmul.f32 -1.442695, %v2857_v15 }
 0x651   :  { %v2838_v3 = vpop.f32.mrf.mxu2 }
 0x652   :  { %5752 = vpow2.f32 %v5373_v47  ;;  %v2839_v59 = vadd.f32 %v2838_v3, %v9634_v62 }
 0x653   :  { %v2826_v50 = vpop.f32.mrf.mxu1 }
 0x654   :  { %v2858_v43 = vadd.f32 %v2839_v59, %v2672_v57  ;;  %v2827_v42 = vadd.f32 %v2826_v50, %v9633_v44  ;;  %v2687_v57 = vpop.f32.mrf.mxu3  ;;  %v2699_v50 = vpop.f32.mrf.mxu0 }
 0x655   :  { %v2700_v6 = vadd.f32 %v2699_v50, %v2685_v14 }
 0x656   :  { %v5374_v17 = vmul.f32 -1.442695, %v2858_v43  ;;  %v2859_v8 = vadd.f32 %v2827_v42, %v2646_v30 }
 0x658   :  { %v5753_v60 = vpop.eup %5752  ;;  %5754 = vpow2.f32 %v5374_v17  ;;  %v5375_v40 = vmul.f32 -1.442695, %v2859_v8 }
 0x659   :  { %v2873_v56 = vadd.f32 1.0, %v5753_v60  ;;  %v2840_v0 = vpop.f32.mrf.mxu2 }
 0x65a   :  { %5756 = vpow2.f32 %v5375_v40  ;;  %v2841_v15 = vadd.f32 %v2840_v0, %v9634_v62 }
 0x65b   :  { %5758 = vrcp.f32 %v2873_v56  ;;  %v2888_v38 = vand.u32 2147483648, %v2873_v56  ;;  %v2886_v58 = vand.u32 2147483647, %v2873_v56  ;;  %vm2882_vm1 = vweird.f32 %v2873_v56 }
 0x65c   :  { %v2860_v47 = vadd.f32 %v2841_v15, %v2674_v1  ;;  %v2852_v1 = vpop.f32.mrf.mxu3 }
 0x65d   :  { %vm2887_vm3 = vcmp.eq.f32.partialorder %v2886_v58, 8.507059e+37  ;;  %v2853_v62 = vadd.f32 %v2852_v1, %v7474_v25 }
 0x65e   :  { %v5755_v3 = vpop.eup %5754  ;;  %v5376_v49 = vmul.f32 -1.442695, %v2860_v47  ;;  %v2889_v47 = vor.u32 1.1754944e-38, %v2888_v38 }
 0x65f   :  { %v8097_v12 = vadd.f32 1.0, %v5755_v3 }
 0x660   :  { %v5757_v59 = vpop.eup %5756  ;;  %5760 = vpow2.f32 %v5376_v49  ;;  %v2937_v49 = vadd.f32 %v7896_v61, %v2700_v6 }
 0x661   :  { %v5759_v43 = vpop.eup %5758  ;;  %5762 = vrcp.f32 %v8097_v12  ;;  %v2875_v17 = vadd.f32 1.0, %v5757_v59  ;;  %v2701_v59 = vpop.f32.mrf.mxu0  ;;  %v2903_v35 = vand.u32 2147483648, %v8097_v12  ;;  %vm2897_vm6 = vweird.f32 %v8097_v12 }
 0x662   :  { %v2878_v8 = vmul.f32 %v5759_v43, %v2873_v56  ;;  %vm2883_vm0 = vweird.f32 %v5759_v43  ;;  %v2702_v39 = vadd.f32 %v2701_v59, %v2687_v57 }
 0x663   :  { %5764 = vrcp.f32 %v2875_v17  ;;  %vm2884_vm2 = vmor %vm2882_vm1, %vm2883_vm0  ;;  %v2918_v29 = vand.u32 2147483648, %v2875_v17  ;;  %vm2912_vm8 = vweird.f32 %v2875_v17  ;;  %v2904_v59 = vor.u32 1.1754944e-38, %v2903_v35 }
 0x664   :  { %v2879_v30 = vsub.f32 1.0, %v2878_v8 }
 0x666   :  { %v5761_v42 = vpop.eup %5760  ;;  %v2880_v48 = vmul.f32 %v5759_v43, %v2879_v30 }
 0x667   :  { %v5763_v60 = vpop.eup %5762  ;;  %v8100_v40 = vadd.f32 1.0, %v5761_v42 }
 0x668   :  { %v2893_v0 = vmul.f32 %v5763_v60, %v8097_v12  ;;  %v2881_v15 = vadd.f32 %v5759_v43, %v2880_v48  ;;  %vm2898_vm4 = vweird.f32 %v5763_v60 }
 0x669   :  { %5766 = vrcp.f32 %v8100_v40  ;;  %v5765_v3 = vpop.eup %5764  ;;  %vm8110_vm7 = vmor %vm2897_vm6, %vm2898_vm4  ;;  %vm2927_vm13 = vweird.f32 %v8100_v40 }
 0x66a   :  { %v2894_v14 = vsub.f32 1.0, %v2893_v0  ;;  %v2885_v50 = vsel %vm2884_vm2, %v5759_v43, %v2881_v15  ;;  %v2908_v30 = vmul.f32 %v5765_v3, %v2875_v17  ;;  %vm2913_vm5 = vweird.f32 %v5765_v3  ;;  %v2854_v15 = vpop.f32.mrf.mxu3 }
 0x66b   :  { %v2890_v8 = vsel %vm2887_vm3, %v2889_v47, %v2885_v50  ;;  %v2916_v0 = vand.u32 2147483647, %v2875_v17  ;;  %v2901_v43 = vand.u32 2147483647, %v8097_v12  ;;  %vm2914_vm9 = vmor %vm2912_vm8, %vm2913_vm5  ;;  %v2919_v47 = vor.u32 1.1754944e-38, %v2918_v29 }
 0x66c   :  { %v2895_v42 = vmul.f32 %v5763_v60, %v2894_v14  ;;  %v2939_v44 = vmul.f32 %v2937_v49, %v2890_v8  ;;  %v2909_v48 = vsub.f32 1.0, %v2908_v30  ;;  %v2938_v49 = vadd.f32 %v7896_v61, %v2702_v39 }
 0x66d   :  { %vm2917_vm10 = vcmp.eq.f32.partialorder %v2916_v0, 8.507059e+37  ;;  %vm2902_vm11 = vcmp.eq.f32.partialorder %v2901_v43, 8.507059e+37  ;;  %v2933_v30 = vand.u32 2147483648, %v8100_v40  ;;  %v2855_v17 = vadd.f32 %v2854_v15, %v7474_v25 }
 0x66e   :  { %v2896_v56 = vadd.f32 %v5763_v60, %v2895_v42  ;;  %v2941_v38 = vadd.f32 %v2939_v44, %v2853_v62  ;;  %v2910_v6 = vmul.f32 %v5765_v3, %v2909_v48  ;;  %v2931_v29 = vand.u32 2147483647, %v8100_v40 }
 0x66f   :  { %v5767_v10 = vpop.eup %5766 }
 0x670   :  { %v2923_v58 = vmul.f32 %v5767_v10, %v8100_v40  ;;  %5768 = vtanh.f32 %v2941_v38  ;;  %v2911_v57 = vadd.f32 %v5765_v3, %v2910_v6  ;;  %v2900_v44 = vsel %vm8110_vm7, %v5763_v60, %v2896_v56 }
 0x671   :  { %vm2928_vm12 = vweird.f32 %v5767_v10  ;;  %v2905_v8 = vsel %vm2902_vm11, %v2904_v59, %v2900_v44  ;;  %vm2932_vm15 = vcmp.eq.f32.partialorder %v2931_v29, 8.507059e+37  ;;  %v9640_v59 = vld [vmem:[#allocation92_spill] sm:$0xff]  ;;  %v9649_v29 = vld [vmem:[#allocation109_spill] sm:$0xff] }
 0x672   :  { %v2924_v62 = vsub.f32 1.0, %v2923_v58  ;;  %v2915_v12 = vsel %vm2914_vm9, %v5765_v3, %v2911_v57  ;;  %vm2929_vm14 = vmor %vm2927_vm13, %vm2928_vm12  ;;  %v2945_v61 = vsub.f32 1.0, %v2905_v8  ;;  %v2934_v3 = vor.u32 1.1754944e-38, %v2933_v30  ;;  %v9645_v30 = vld [vmem:[#allocation103_spill] sm:$0xff] }
 0x673   :  { %v2920_v50 = vsel %vm2917_vm10, %v2919_v47, %v2915_v12  ;;  %v2949_v6 = vmul.f32 %v2905_v8, %v7919_v51  ;;  %v9637_v51 = vld [vmem:[#allocation86_spill] sm:$0xff]  ;;  %v9644_v8 = vld [vmem:[#allocation100_spill] sm:$0xff] }
 0x674   :  { %v2925_v14 = vmul.f32 %v5767_v10, %v2924_v62  ;;  %v2940_v42 = vmul.f32 %v2938_v49, %v2920_v50  ;;  %v9639_v49 = vld [vmem:[#allocation91_spill] sm:$0xff]  ;;  %v9641_v12 = vld [vmem:[#allocation94_spill] sm:$0xff] }
 0x675   :  { %v9643_v50 = vld [vmem:[#allocation99_spill] sm:$0xff] }
 0x676   :  { %v2926_v60 = vadd.f32 %v5767_v10, %v2925_v14  ;;  %v5769_v48 = vpop.eup %5768  ;;  %v2942_v35 = vadd.f32 %v2940_v42, %v2855_v17  ;;  %v9642_v14 = vld [vmem:[#allocation95_spill] sm:$0xff]  ;;  %v9646_v17 = vld [vmem:[#allocation104_spill] sm:$0xff]  ;;  %v9647_v42 = vld [vmem:[#allocation106_spill] sm:$0xff] }
 0x677   :  { %v2947_v56 = vmul.f32 %v5769_v48, %v2945_v61  ;;  %v9650_v48 = vld [vmem:[#allocation11_spill] sm:$0xff]  ;;  %v9652_v61 = vld [vmem:[#allocation12_spill] sm:$0xff] }
 0x678   :  { %v2930_v39 = vsel %vm2929_vm14, %v5767_v10, %v2926_v60  ;;  %5770 = vtanh.f32 %v2942_v35  ;;  %v9648_v60 = vld [vmem:[#allocation10_spill] sm:$0xff]  ;;  %v9651_v35 = vld [vmem:[#allocation112_spill] sm:$0xff] }
 0x679   :  { %v2935_v38 = vsel %vm2932_vm15, %v2934_v3, %v2930_v39  ;;  %v8122_v0 = vadd.f32 %v2949_v6, %v2947_v56  ;;  %v9653_v39 = vld [vmem:[#allocation116_spill] sm:$0xff]  ;;  %v9654_v3 = vld [vmem:[#allocation13_spill] sm:$0xff]  ;;  %v9655_v56 = vld [vmem:[#allocation119_spill] sm:$0xff] }
 0x67a   :  { %v2946_v43 = vsub.f32 1.0, %v2935_v38  ;;  %v2950_v57 = vmul.f32 %v2935_v38, %v7922_v16  ;;  %v9638_v16 = vld [vmem:[#allocation87_spill] sm:$0xff]  ;;  %v9656_v38 = vld [vmem:[#allocation14_spill] sm:$0xff]  ;;  %v9657_v6 = vld [vmem:[#allocation125_spill] sm:$0xff] }
 0x67b   :  { %v2953_v40 = vpack.c.bf16 %v8122_v0, %v8122_v0 }
 0x67d   :  { %v2957_v62 = vunpack.c.l.b16 %v2953_v40  ;;  %v9662_v40 = vld [vmem:[#allocation17_spill] sm:$0xff] }
 0x67e   :  { %v5771_v58 = vpop.eup %5770 }
 0x67f   :  { %v2948_v1 = vmul.f32 %v5771_v58, %v2946_v43  ;;  %v9658_v43 = vld [vmem:[#allocation15_spill] sm:$0xff]  ;;  %v9659_v58 = vld [vmem:[#allocation129_spill] sm:$0xff] }
 0x681   :  { %v8127_v44 = vadd.f32 %v2950_v57, %v2948_v1  ;;  %v9660_v1 = vld [vmem:[#allocation16_spill] sm:$0xff]  ;;  %v9661_v57 = vld [vmem:[#allocation135_spill] sm:$0xff] }
 0x683   :  { %v2954_v10 = vpack.c.bf16 %v8127_v44, %v8127_v44 }
 0x685   :  { %v2958_v15 = vunpack.c.l.b16 %v2954_v10  ;;  %v9663_v10 = vld [vmem:[#allocation34_spill] sm:$0xff] }
 0x687   :  { %v2959_v47 = vpack.c.b16 %v2958_v15, %v2957_v62  ;;  %v9664_v62 = vld [vmem:[#allocation19_spill] sm:$0xff] }
 0x688   :  { %v9665_v15 = vld [vmem:[#allocation35_spill] sm:$0xff] }
 0x689   :  { %2983 = vmatmul.bf16.vlgmr.msrb.gmra.mxu1 %v2959_v47  ;;  %3011 = vmatmul.bf16.vlgmr.msra.gmra.mxu3 %v2959_v47 }
 0x68a   :  { %3087 = vmatpush.bf16.msrb.mxu1 %v9328_v52  ;;  %3115 = vmatpush.bf16.msra.mxu3 %v9329_v19 }
 0x68e   :  { %3088 = vmatpush.bf16.msrb.mxu1 %v9330_v27  ;;  %3116 = vmatpush.bf16.msra.mxu3 %v9429_v33 }
 0x692   :  { %3089 = vmatpush.bf16.msrb.mxu1 %v9430_v54  ;;  %3117 = vmatpush.bf16.msra.mxu3 %v9431_v20 }
 0x696   :  { %3090 = vmatpush.bf16.msrb.mxu1 %v9637_v51  ;;  %3118 = vmatpush.bf16.msra.mxu3 %v9638_v16 }
 0x699   :  { %3039 = vmatmul.bf16.vlgmr.msra.gmra.mxu1 %v2959_v47  ;;  %3067 = vmatmul.bf16.vlgmr.msrb.gmra.mxu3 %v2959_v47 }
 0x69a   :  { %3091 = vmatpush.bf16.msrb.mxu1 %v9639_v49  ;;  %3119 = vmatpush.bf16.msra.mxu3 %v9640_v59 }
 0x69e   :  { %3092 = vmatpush.bf16.msrb.mxu1 %v9641_v12  ;;  %3120 = vmatpush.bf16.msra.mxu3 %v9642_v14 }
 0x6a2   :  { %3093 = vmatpush.bf16.msrb.mxu1 %v9643_v50  ;;  %3121 = vmatpush.bf16.msra.mxu3 %v9644_v8 }
 0x6a6   :  { %3094 = vmatpush.bf16.msrb.mxu1 %v9645_v30  ;;  %3122 = vmatpush.bf16.msra.mxu3 %v9646_v17 }
 0x6a9   :  { %3095 = vmatmul.bf16.vlgmr.msrb.gmra.mxu1 %v2959_v47  ;;  %3123 = vmatmul.bf16.vlgmr.msra.gmra.mxu3 %v2959_v47  ;;  %v9666_v47 = vld [vmem:[#allocation22_spill] sm:$0xff] }
 0x6aa   :  { %3254 = vmatpush.bf16.msra.mxu1 %v9647_v42  ;;  %3386 = vmatpush.bf16.msrb.mxu3 %v9648_v60 }
 0x6ae   :  { %3255 = vmatpush.bf16.msra.mxu1 %v9649_v29  ;;  %3387 = vmatpush.bf16.msrb.mxu3 %v9650_v48 }
 0x6b2   :  { %3256 = vmatpush.bf16.msra.mxu1 %v9651_v35  ;;  %3388 = vmatpush.bf16.msrb.mxu3 %v9652_v61  ;;  %v9681_v35 = vld [vmem:[#allocation124_spill] sm:$0xff] }
 0x6b6   :  { %3257 = vmatpush.bf16.msra.mxu1 %v9653_v39  ;;  %3389 = vmatpush.bf16.msrb.mxu3 %v9654_v3 }
 0x6ba   :  { %3258 = vmatpush.bf16.msra.mxu1 %v9655_v56  ;;  %3390 = vmatpush.bf16.msrb.mxu3 %v9656_v38  ;;  %v9667_v38 = vld [vmem:[#allocation36_spill] sm:$0xff]  ;;  %v9679_v56 = vld [vmem:[#allocation110_spill] sm:$0xff] }
 0x6be   :  { %3259 = vmatpush.bf16.msra.mxu1 %v9657_v6  ;;  %3391 = vmatpush.bf16.msrb.mxu3 %v9658_v43  ;;  %v9668_v6 = vld [vmem:[#allocation25_spill] sm:$0xff]  ;;  %v9669_v43 = vld [vmem:[#allocation39_spill] sm:$0xff] }
 0x6c2   :  { %3260 = vmatpush.bf16.msra.mxu1 %v9659_v58  ;;  %3392 = vmatpush.bf16.msrb.mxu3 %v9660_v1  ;;  %v9670_v58 = vld [vmem:[#allocation30_spill] sm:$0xff]  ;;  %v9671_v1 = vld [vmem:[#allocation40_spill] sm:$0xff] }
 0x6c6   :  { %3261 = vmatpush.bf16.msra.mxu1 %v9661_v57  ;;  %3393 = vmatpush.bf16.msrb.mxu3 %v9662_v40  ;;  %v9672_v57 = vld [vmem:[#allocation37_spill] sm:$0xff] }
 0x6c7   :  { %v9673_v40 = vld [vmem:[#allocation41_spill] sm:$0xff] }
 0x6ca   :  { %3414 = vmatpush.bf16.msrb.mxu1 %v9663_v10  ;;  %3442 = vmatpush.bf16.msra.mxu3 %v9664_v62  ;;  %v9674_v10 = vld [vmem:[#allocation43_spill] sm:$0xff]  ;;  %v9675_v62 = vld [vmem:[#allocation42_spill] sm:$0xff] }
 0x6ce   :  { %3415 = vmatpush.bf16.msrb.mxu1 %v9665_v15  ;;  %3443 = vmatpush.bf16.msra.mxu3 %v9666_v47  ;;  %v9676_v15 = vld [vmem:[#allocation50_spill] sm:$0xff]  ;;  %v9677_v47 = vld [vmem:[#allocation45_spill] sm:$0xff] }
 0x6d2   :  { %3416 = vmatpush.bf16.msrb.mxu1 %v9667_v38  ;;  %3444 = vmatpush.bf16.msra.mxu3 %v9668_v6  ;;  %v9678_v38 = vld [vmem:[#allocation56_spill] sm:$0xff]  ;;  %v2970_v6 = vpop.f32.mrf.mxu0 }
 0x6d6   :  { %3417 = vmatpush.bf16.msrb.mxu1 %v9669_v43  ;;  %3445 = vmatpush.bf16.msra.mxu3 %v9670_v58  ;;  %v9680_v58 = vld [vmem:[#allocation96_spill] sm:$0xff] }
 0x6d7   :  { %v345_v3 = vadd.f32 %v9680_v58, %v9679_v56 }
 0x6da   :  { %3418 = vmatpush.bf16.msrb.mxu1 %v9671_v1  ;;  %3446 = vmatpush.bf16.msra.mxu3 %v9672_v57  ;;  %v2998_v57 = vpop.f32.mrf.mxu2 }
 0x6de   :  { %3419 = vmatpush.bf16.msrb.mxu1 %v9673_v40  ;;  %3447 = vmatpush.bf16.msra.mxu3 %v9674_v10  ;;  %v9682_v10 = vld [vmem:[#allocation98_spill] sm:$0xff] }
 0x6df   :  { %v394_v48 = vadd.f32 %v9682_v10, %v9681_v35 }
 0x6e2   :  { %3420 = vmatpush.bf16.msrb.mxu1 %v9675_v62  ;;  %3448 = vmatpush.bf16.msra.mxu3 %v9676_v15  ;;  %v2972_v15 = vpop.f32.mrf.mxu0 }
 0x6e6   :  { %3421 = vmatpush.bf16.msrb.mxu1 %v9677_v47  ;;  %3449 = vmatpush.bf16.msra.mxu3 %v9678_v38  ;;  %v9683_v47 = vld [vmem:[#allocation105_spill] sm:$0xff] }
 0x6e7   :  { %v347_v38 = vadd.f32 %v9683_v47, %v9679_v56 }
 0x706   :  { %v2984_v43 = vpop.f32.mrf.mxu1 }
 0x707   :  { %v2985_v1 = vadd.f32 %v2984_v43, %v2970_v6  ;;  %v3000_v6 = vpop.f32.mrf.mxu2 }
 0x709   :  { %v3136_v39 = vadd.f32 %v2985_v1, %v345_v3  ;;  %v9684_v1 = vld [vmem:[#allocation107_spill] sm:$0xff] }
 0x70a   :  { %v396_v10 = vadd.f32 %v9684_v1, %v9681_v35 }
 0x70b   :  { %v5377_v61 = vmul.f32 -1.442695, %v3136_v39 }
 0x70c   :  { %v3012_v40 = vpop.f32.mrf.mxu3 }
 0x70d   :  { %5772 = vpow2.f32 %v5377_v61  ;;  %v3013_v62 = vadd.f32 %v3012_v40, %v2998_v57 }
 0x70e   :  { %v2986_v29 = vpop.f32.mrf.mxu1 }
 0x70f   :  { %v3137_v60 = vadd.f32 %v3013_v62, %v394_v48  ;;  %v2987_v42 = vadd.f32 %v2986_v29, %v2972_v15  ;;  %v3026_v29 = vpop.f32.mrf.mxu0 }
 0x711   :  { %v5378_v17 = vmul.f32 -1.442695, %v3137_v60  ;;  %v3138_v30 = vadd.f32 %v2987_v42, %v347_v38 }
 0x713   :  { %v5773_v58 = vpop.eup %5772  ;;  %5774 = vpow2.f32 %v5378_v17  ;;  %v5379_v3 = vmul.f32 -1.442695, %v3138_v30 }
 0x714   :  { %v3152_v39 = vadd.f32 1.0, %v5773_v58  ;;  %v3014_v43 = vpop.f32.mrf.mxu3 }
 0x715   :  { %5776 = vpow2.f32 %v5379_v3  ;;  %v3015_v61 = vadd.f32 %v3014_v43, %v3000_v6 }
 0x716   :  { %5778 = vrcp.f32 %v3152_v39  ;;  %v3040_v17 = vpop.f32.mrf.mxu1  ;;  %v3167_v62 = vand.u32 2147483648, %v3152_v39  ;;  %v3165_v6 = vand.u32 2147483647, %v3152_v39  ;;  %vm3161_vm1 = vweird.f32 %v3152_v39 }
 0x717   :  { %v3139_v57 = vadd.f32 %v3015_v61, %v396_v10  ;;  %v3041_v58 = vadd.f32 %v3040_v17, %v3026_v29  ;;  %v8193_v17 = vld [vmem:[%s8842_s4] ss:$0 sm:$0xff]  ;;  %v9685_v29 = vld [vmem:[#allocation67_spill] sm:$0xff] }
 0x718   :  { %vm3166_vm3 = vcmp.eq.f32.partialorder %v3165_v6, 8.507059e+37  ;;  %v3028_v6 = vpop.f32.mrf.mxu0 }
 0x719   :  { %v5775_v40 = vpop.eup %5774  ;;  %v5380_v8 = vmul.f32 -1.442695, %v3139_v57 }
 0x71a   :  { %v3153_v47 = vadd.f32 1.0, %v5775_v40 }
 0x71b   :  { %v5777_v48 = vpop.eup %5776  ;;  %5780 = vpow2.f32 %v5380_v8  ;;  %v3168_v8 = vor.u32 1.1754944e-38, %v3167_v62 }
 0x71c   :  { %v5779_v60 = vpop.eup %5778  ;;  %5782 = vrcp.f32 %v3153_v47  ;;  %v3154_v42 = vadd.f32 1.0, %v5777_v48  ;;  %v3182_v35 = vand.u32 2147483648, %v3153_v47  ;;  %vm3176_vm5 = vweird.f32 %v3153_v47 }
 0x71d   :  { %v3157_v30 = vmul.f32 %v5779_v60, %v3152_v39  ;;  %vm3162_vm0 = vweird.f32 %v5779_v60 }
 0x71e   :  { %5784 = vrcp.f32 %v3154_v42  ;;  %vm3163_vm2 = vmor %vm3161_vm1, %vm3162_vm0  ;;  %v3042_v56 = vpop.f32.mrf.mxu1  ;;  %v3197_v14 = vand.u32 2147483648, %v3154_v42  ;;  %vm3191_vm9 = vweird.f32 %v3154_v42 }
 0x71f   :  { %v3158_v38 = vsub.f32 1.0, %v3157_v30  ;;  %v3216_v30 = vadd.f32 %v8193_v17, %v3041_v58  ;;  %v3043_v58 = vadd.f32 %v3042_v56, %v3028_v6 }
 0x721   :  { %v5781_v15 = vpop.eup %5780  ;;  %v3159_v3 = vmul.f32 %v5779_v60, %v3158_v38  ;;  %v443_v38 = vadd.f32 %v9685_v29, %v7243_v63  ;;  %v3195_v29 = vand.u32 2147483647, %v3154_v42 }
 0x722   :  { %v5783_v43 = vpop.eup %5782  ;;  %v8187_v1 = vadd.f32 1.0, %v5781_v15 }
 0x723   :  { %v3172_v10 = vmul.f32 %v5783_v43, %v3153_v47  ;;  %v3160_v61 = vadd.f32 %v5779_v60, %v3159_v3  ;;  %vm3177_vm4 = vweird.f32 %v5783_v43  ;;  %vm3196_vm11 = vcmp.eq.f32.partialorder %v3195_v29, 8.507059e+37 }
 0x724   :  { %5786 = vrcp.f32 %v8187_v1  ;;  %v5785_v57 = vpop.eup %5784  ;;  %vm3178_vm6 = vmor %vm3176_vm5, %vm3177_vm4  ;;  %vm3206_vm13 = vweird.f32 %v8187_v1 }
 0x725   :  { %v3173_v40 = vsub.f32 1.0, %v3172_v10  ;;  %v3164_v48 = vsel %vm3163_vm2, %v5779_v60, %v3160_v61  ;;  %v3187_v39 = vmul.f32 %v5785_v57, %v3154_v42  ;;  %v3180_v10 = vand.u32 2147483647, %v3153_v47 }
 0x726   :  { %v3169_v15 = vsel %vm3166_vm3, %v3168_v8, %v3164_v48  ;;  %vm3192_vm7 = vweird.f32 %v5785_v57  ;;  %v3183_v8 = vor.u32 1.1754944e-38, %v3182_v35  ;;  %v3198_v47 = vor.u32 1.1754944e-38, %v3197_v14  ;;  %v9686_v35 = vld [vmem:[#allocation23_spill] sm:$0xff] }
 0x727   :  { %v3174_v3 = vmul.f32 %v5783_v43, %v3173_v40  ;;  %v3218_v62 = vmul.f32 %v3216_v30, %v3169_v15  ;;  %v3188_v60 = vsub.f32 1.0, %v3187_v39  ;;  %vm3181_vm8 = vcmp.eq.f32.partialorder %v3180_v10, 8.507059e+37  ;;  %vm3193_vm10 = vmor %vm3191_vm9, %vm3192_vm7 }
 0x728   :  { %v3210_v14 = vand.u32 2147483647, %v8187_v1 }
 0x729   :  { %v3175_v61 = vadd.f32 %v5783_v43, %v3174_v3  ;;  %v3220_v50 = vadd.f32 %v3218_v62, %v443_v38  ;;  %v3189_v59 = vmul.f32 %v5785_v57, %v3188_v60  ;;  %v3217_v3 = vadd.f32 %v8193_v17, %v3043_v58 }
 0x72a   :  { %v5787_v12 = vpop.eup %5786  ;;  %v445_v60 = vadd.f32 %v9686_v35, %v7243_v63  ;;  %vm3211_vm15 = vcmp.eq.f32.partialorder %v3210_v14, 8.507059e+37  ;;  %v9690_v35 = vld [vmem:[#allocation126_spill] sm:$0xff]  ;;  %v9697_v14 = vld [vmem:[#allocation76_spill] sm:$0xff] }
 0x72b   :  { %v3202_v40 = vmul.f32 %v5787_v12, %v8187_v1  ;;  %v3179_v48 = vsel %vm3178_vm6, %v5783_v43, %v3175_v61  ;;  %5788 = vtanh.f32 %v3220_v50  ;;  %v3190_v30 = vadd.f32 %v5785_v57, %v3189_v59 }
 0x72c   :  { %v3184_v39 = vsel %vm3181_vm8, %v3183_v8, %v3179_v48  ;;  %vm3207_vm12 = vweird.f32 %v5787_v12  ;;  %v3212_v43 = vand.u32 2147483648, %v8187_v1 }
 0x72d   :  { %v3203_v15 = vsub.f32 1.0, %v3202_v40  ;;  %v3194_v38 = vsel %vm3193_vm10, %v5785_v57, %v3190_v30  ;;  %v3224_v50 = vsub.f32 1.0, %v3184_v39  ;;  %vm3208_vm14 = vmor %vm3206_vm13, %vm3207_vm12  ;;  %v3228_v6 = vmul.f32 %v3184_v39, %v8012_v2 }
 0x72e   :  { %v3199_v62 = vsel %vm3196_vm11, %v3198_v47, %v3194_v38  ;;  %v3213_v29 = vor.u32 1.1754944e-38, %v3212_v43  ;;  %v9692_v43 = vld [vmem:[#allocation73_spill] sm:$0xff] }
 0x72f   :  { %v3204_v56 = vmul.f32 %v5787_v12, %v3203_v15  ;;  %v3219_v10 = vmul.f32 %v3217_v3, %v3199_v62  ;;  %v9689_v62 = vld [vmem:[#allocation97_spill] sm:$0xff] }
 0x731   :  { %v5789_v59 = vpop.eup %5788  ;;  %v3205_v42 = vadd.f32 %v5787_v12, %v3204_v56  ;;  %v3221_v61 = vadd.f32 %v3219_v10, %v445_v60  ;;  %v9688_v56 = vld [vmem:[#allocation72_spill] sm:$0xff]  ;;  %v9691_v60 = vld [vmem:[#allocation51_spill] sm:$0xff] }
 0x732   :  { %v3226_v57 = vmul.f32 %v5789_v59, %v3224_v50  ;;  %v9693_v50 = vld [vmem:[#allocation101_spill] sm:$0xff]  ;;  %v9694_v10 = vld [vmem:[#allocation131_spill] sm:$0xff]  ;;  %v9695_v59 = vld [vmem:[#allocation102_spill] sm:$0xff] }
 0x733   :  { %v3209_v58 = vsel %vm3208_vm14, %v5787_v12, %v3205_v42  ;;  %5790 = vtanh.f32 %v3221_v61  ;;  %v9696_v42 = vld [vmem:[#allocation57_spill] sm:$0xff]  ;;  %v9700_v61 = vld [vmem:[#allocation136_spill] sm:$0xff] }
 0x734   :  { %v8206_v8 = vadd.f32 %v3228_v6, %v3226_v57  ;;  %v3214_v40 = vsel %vm3211_vm15, %v3213_v29, %v3209_v58  ;;  %v9698_v57 = vld [vmem:[#allocation133_spill] sm:$0xff]  ;;  %v9699_v6 = vld [vmem:[#allocation108_spill] sm:$0xff]  ;;  %v9701_v58 = vld [vmem:[#allocation111_spill] sm:$0xff] }
 0x735   :  { %v3225_v48 = vsub.f32 1.0, %v3214_v40  ;;  %v3229_v47 = vmul.f32 %v3214_v40, %v8017_v53  ;;  %v9687_v53 = vld [vmem:[#allocation44_spill] sm:$0xff]  ;;  %v9703_v40 = vld [vmem:[#allocation115_spill] sm:$0xff] }
 0x736   :  { %v3232_v1 = vpack.c.bf16 %v8206_v8, %v8206_v8  ;;  %v9702_v29 = vld [vmem:[#allocation140_spill] sm:$0xff] }
 0x738   :  { %v3236_v12 = vunpack.c.l.b16 %v3232_v1  ;;  %v9708_v1 = vld [vmem:[#allocation150_spill] sm:$0xff] }
 0x739   :  { %v5791_v30 = vpop.eup %5790 }
 0x73a   :  { %v3227_v15 = vmul.f32 %v5791_v30, %v3225_v48  ;;  %v9704_v48 = vld [vmem:[#allocation144_spill] sm:$0xff]  ;;  %v9705_v30 = vld [vmem:[#allocation118_spill] sm:$0xff] }
 0x73c   :  { %v8211_v38 = vadd.f32 %v3229_v47, %v3227_v15  ;;  %v9706_v15 = vld [vmem:[#allocation146_spill] sm:$0xff]  ;;  %v9707_v47 = vld [vmem:[#allocation123_spill] sm:$0xff] }
 0x73e   :  { %v3233_v2 = vpack.c.bf16 %v8211_v38, %v8211_v38 }
 0x740   :  { %v3237_v39 = vunpack.c.l.b16 %v3233_v2  ;;  %v9709_v2 = vld [vmem:[#allocation127_spill] sm:$0xff] }
 0x742   :  { %v3238_v3 = vpack.c.b16 %v3237_v39, %v3236_v12  ;;  %v9710_v12 = vld [vmem:[#allocation152_spill] sm:$0xff] }
 0x743   :  { %v9711_v39 = vld [vmem:[#allocation132_spill] sm:$0xff] }
 0x744   :  { %3248 = vmatmul.bf16.vlgmr.msra.gmra.mxu0 %v3238_v3  ;;  %3262 = vmatmul.bf16.vlgmr.msra.gmra.mxu1 %v3238_v3 }
 0x745   :  { %3276 = vmatmul.bf16.vlgmr.msra.gmra.mxu2 %v3238_v3  ;;  %3394 = vmatmul.bf16.vlgmr.msrb.gmra.mxu3 %v3238_v3 }
 0x746   :  { %3470 = vmatpush.bf16.msra.mxu1 %v9273_v31  ;;  %3498 = vmatpush.bf16.msrb.mxu3 %v6909_v23 }
 0x747   :  { %3456 = vmatpush.bf16.msra.mxu0 %v9275_v4  ;;  %3484 = vmatpush.bf16.msra.mxu2 %v9276_v13 }
 0x74a   :  { %3471 = vmatpush.bf16.msra.mxu1 %v9277_v24  ;;  %3499 = vmatpush.bf16.msrb.mxu3 %v6952_v37 }
 0x74b   :  { %3457 = vmatpush.bf16.msra.mxu0 %v9278_v18  ;;  %3485 = vmatpush.bf16.msra.mxu2 %v9279_v11 }
 0x74e   :  { %3472 = vmatpush.bf16.msra.mxu1 %v9280_v26  ;;  %3500 = vmatpush.bf16.msrb.mxu3 %v6986_v55 }
 0x74f   :  { %3458 = vmatpush.bf16.msra.mxu0 %v9281_v41  ;;  %3486 = vmatpush.bf16.msra.mxu2 %v9282_v32 }
 0x752   :  { %3473 = vmatpush.bf16.msra.mxu1 %v9284_v21  ;;  %3501 = vmatpush.bf16.msrb.mxu3 %v7018_v9 }
 0x753   :  { %3459 = vmatpush.bf16.msra.mxu0 %v9285_v28  ;;  %3487 = vmatpush.bf16.msra.mxu2 %v9286_v46 }
 0x754   :  { %3422 = vmatmul.bf16.vlgmr.msrb.gmra.mxu1 %v3238_v3 }
 0x755   :  { %3450 = vmatmul.bf16.vlgmr.msra.gmra.mxu3 %v3238_v3 }
 0x756   :  { %3474 = vmatpush.bf16.msra.mxu1 %v9287_v34  ;;  %3502 = vmatpush.bf16.msrb.mxu3 %v7042_v45 }
 0x757   :  { %3460 = vmatpush.bf16.msra.mxu0 %v9379_v36  ;;  %3488 = vmatpush.bf16.msra.mxu2 %v9289_v7 }
 0x75a   :  { %3475 = vmatpush.bf16.msra.mxu1 %v9380_v5  ;;  %3503 = vmatpush.bf16.msrb.mxu3 %v9381_v22 }
 0x75b   :  { %3461 = vmatpush.bf16.msra.mxu0 %v9687_v53  ;;  %3489 = vmatpush.bf16.msra.mxu2 %v9688_v56 }
 0x75e   :  { %3476 = vmatpush.bf16.msra.mxu1 %v9689_v62  ;;  %3504 = vmatpush.bf16.msrb.mxu3 %v9690_v35 }
 0x75f   :  { %3462 = vmatpush.bf16.msra.mxu0 %v9691_v60  ;;  %3490 = vmatpush.bf16.msra.mxu2 %v9692_v43 }
 0x762   :  { %3477 = vmatpush.bf16.msra.mxu1 %v9693_v50  ;;  %3505 = vmatpush.bf16.msrb.mxu3 %v9694_v10 }
 0x763   :  { %3463 = vmatpush.bf16.msra.mxu0 %v9696_v42  ;;  %3491 = vmatpush.bf16.msra.mxu2 %v9697_v14  ;;  %v9737_v14 = vld [vmem:[#allocation66_spill] sm:$0xff]  ;;  %v9738_v42 = vld [vmem:[#allocation89_spill] sm:$0xff] }
 0x765   :  { %3478 = vmatmul.bf16.vlgmr.msra.gmra.mxu1 %v3238_v3  ;;  %3506 = vmatmul.bf16.vlgmr.msrb.gmra.mxu3 %v3238_v3 }
 0x766   :  { %3526 = vmatpush.bf16.msrb.mxu1 %v9695_v59  ;;  %3665 = vmatpush.bf16.msra.mxu3 %v9698_v57 }
 0x76a   :  { %3527 = vmatpush.bf16.msrb.mxu1 %v9699_v6  ;;  %3666 = vmatpush.bf16.msra.mxu3 %v9700_v61 }
 0x76e   :  { %3528 = vmatpush.bf16.msrb.mxu1 %v9701_v58  ;;  %3667 = vmatpush.bf16.msra.mxu3 %v9702_v29  ;;  %v9712_v58 = vld [vmem:[#allocation134_spill] sm:$0xff] }
 0x76f   :  { %v9713_v29 = vld [vmem:[#allocation154_spill] sm:$0xff] }
 0x772   :  { %3529 = vmatpush.bf16.msrb.mxu1 %v9703_v40  ;;  %3668 = vmatpush.bf16.msra.mxu3 %v9704_v48  ;;  %v9714_v40 = vld [vmem:[#allocation18_spill] sm:$0xff]  ;;  %v9734_v48 = vld [vmem:[#allocation53_spill] sm:$0xff] }
 0x776   :  { %3530 = vmatpush.bf16.msrb.mxu1 %v9705_v30  ;;  %3669 = vmatpush.bf16.msra.mxu3 %v9706_v15  ;;  %v9715_v30 = vld [vmem:[#allocation138_spill] sm:$0xff]  ;;  %v9716_v15 = vld [vmem:[#allocation21_spill] sm:$0xff] }
 0x77a   :  { %3531 = vmatpush.bf16.msrb.mxu1 %v9707_v47  ;;  %3670 = vmatpush.bf16.msra.mxu3 %v9708_v1  ;;  %v9717_v47 = vld [vmem:[#allocation141_spill] sm:$0xff]  ;;  %v9718_v1 = vld [vmem:[#allocation24_spill] sm:$0xff] }
 0x77e   :  { %3532 = vmatpush.bf16.msrb.mxu1 %v9709_v2  ;;  %3671 = vmatpush.bf16.msra.mxu3 %v9710_v12  ;;  %v9719_v2 = vld [vmem:[#allocation145_spill] sm:$0xff]  ;;  %v9720_v12 = vld [vmem:[#allocation27_spill] sm:$0xff] }
 0x782   :  { %3533 = vmatpush.bf16.msrb.mxu1 %v9711_v39  ;;  %3672 = vmatpush.bf16.msra.mxu3 %v9713_v29  ;;  %v9721_v39 = vld [vmem:[#allocation147_spill] sm:$0xff] }
 0x783   :  { %v9723_v29 = vld [vmem:[#allocation151_spill] sm:$0xff] }
 0x785   :  { %3534 = vmatmul.bf16.vlgmr.msrb.gmra.mxu1 %v3238_v3  ;;  %v9725_v3 = vld [vmem:[#allocation153_spill] sm:$0xff] }
 0x786   :  { %3693 = vmatpush.bf16.msra.mxu1 %v9712_v58  ;;  %3825 = vmatpush.bf16.msrb.mxu3 %v9714_v40  ;;  %v9722_v58 = vld [vmem:[#allocation28_spill] sm:$0xff]  ;;  %v9724_v40 = vld [vmem:[#allocation29_spill] sm:$0xff] }
 0x78a   :  { %3694 = vmatpush.bf16.msra.mxu1 %v9715_v30  ;;  %3826 = vmatpush.bf16.msrb.mxu3 %v9716_v15  ;;  %v9726_v30 = vld [vmem:[#allocation31_spill] sm:$0xff] }
 0x78b   :  { %v9727_v15 = vld [vmem:[#allocation155_spill] sm:$0xff] }
 0x78e   :  { %3695 = vmatpush.bf16.msra.mxu1 %v9717_v47  ;;  %3827 = vmatpush.bf16.msrb.mxu3 %v9718_v1  ;;  %v9728_v47 = vld [vmem:[#allocation46_spill] sm:$0xff]  ;;  %v9729_v1 = vld [vmem:[#allocation33_spill] sm:$0xff] }
 0x792   :  { %3696 = vmatpush.bf16.msra.mxu1 %v9719_v2  ;;  %3828 = vmatpush.bf16.msrb.mxu3 %v9720_v12  ;;  %v9730_v2 = vld [vmem:[#allocation47_spill] sm:$0xff]  ;;  %v9731_v12 = vld [vmem:[#allocation48_spill] sm:$0xff] }
 0x796   :  { %3697 = vmatpush.bf16.msra.mxu1 %v9721_v39  ;;  %3829 = vmatpush.bf16.msrb.mxu3 %v9722_v58  ;;  %v9732_v39 = vld [vmem:[#allocation49_spill] sm:$0xff]  ;;  %v9733_v58 = vld [vmem:[#allocation52_spill] sm:$0xff] }
 0x79a   :  { %3698 = vmatpush.bf16.msra.mxu1 %v9723_v29  ;;  %3830 = vmatpush.bf16.msrb.mxu3 %v9724_v40  ;;  %v3082_v29 = vpop.f32.mrf.mxu0  ;;  %v3096_v40 = vpop.f32.mrf.mxu1 }
 0x79e   :  { %3699 = vmatpush.bf16.msra.mxu1 %v9725_v3  ;;  %3831 = vmatpush.bf16.msrb.mxu3 %v9726_v30  ;;  %v9735_v3 = vld [vmem:[#allocation54_spill] sm:$0xff]  ;;  %v3054_v30 = vpop.f32.mrf.mxu2 }
 0x7a2   :  { %3700 = vmatpush.bf16.msra.mxu1 %v9727_v15  ;;  %3832 = vmatpush.bf16.msrb.mxu3 %v9729_v1  ;;  %v3084_v15 = vpop.f32.mrf.mxu0  ;;  %v3098_v61 = vpop.f32.mrf.mxu1 }
 0x7a3   :  { %v3068_v1 = vpop.f32.mrf.mxu3  ;;  %v3099_v62 = vadd.f32 %v3098_v61, %v3084_v15 }
 0x7a4   :  { %v3069_v57 = vadd.f32 %v3068_v1, %v3054_v30 }
 0x7a6   :  { %3853 = vmatpush.bf16.msrb.mxu1 %v9728_v47  ;;  %v9736_v47 = vld [vmem:[#allocation55_spill] sm:$0xff]  ;;  %v3056_v59 = vpop.f32.mrf.mxu2 }
 0x7aa   :  { %3854 = vmatpush.bf16.msrb.mxu1 %v9730_v2 }
 0x7ae   :  { %3855 = vmatpush.bf16.msrb.mxu1 %v9731_v12  ;;  %v3097_v12 = vadd.f32 %v3096_v40, %v3082_v29  ;;  %v3110_v40 = vpop.f32.mrf.mxu2 }
 0x7b2   :  { %3856 = vmatpush.bf16.msrb.mxu1 %v9732_v39 }
 0x7b6   :  { %3857 = vmatpush.bf16.msrb.mxu1 %v9733_v58 }
 0x7ba   :  { %3858 = vmatpush.bf16.msrb.mxu1 %v9734_v48 }
 0x7be   :  { %3859 = vmatpush.bf16.msrb.mxu1 %v9735_v3  ;;  %v3070_v3 = vpop.f32.mrf.mxu3 }
 0x7c1   :  { %v3249_v6 = vpop.f32.mrf.mxu0  ;;  %v3263_v2 = vpop.f32.mrf.mxu1 }
 0x7c2   :  { %3860 = vmatpush.bf16.msrb.mxu1 %v9736_v47  ;;  %v3250_v39 = vadd.f32 %v3249_v6, %v9737_v14  ;;  %v3264_v58 = vadd.f32 %v3263_v2, %v9738_v42  ;;  %v3071_v47 = vadd.f32 %v3070_v3, %v3056_v59  ;;  %v3112_v59 = vpop.f32.mrf.mxu2 }
 0x7c4   :  { %v3282_v10 = vadd.f32 %v3250_v39, %v3069_v57  ;;  %v3283_v50 = vadd.f32 %v3264_v58, %v3097_v12 }
 0x7c6   :  { %v5381_v48 = vmul.f32 -1.442695, %v3282_v10  ;;  %v5382_v43 = vmul.f32 -1.442695, %v3283_v50 }
 0x7c8   :  { %5792 = vpow2.f32 %v5381_v48 }
 0x7c9   :  { %5794 = vpow2.f32 %v5382_v43  ;;  %v3251_v60 = vpop.f32.mrf.mxu0  ;;  %v3265_v35 = vpop.f32.mrf.mxu1 }
 0x7ca   :  { %v3252_v56 = vadd.f32 %v3251_v60, %v9737_v14  ;;  %v3266_v29 = vadd.f32 %v3265_v35, %v9738_v42  ;;  %v3124_v43 = vpop.f32.mrf.mxu3 }
 0x7cb   :  { %v3125_v39 = vadd.f32 %v3124_v43, %v3110_v40  ;;  %v8305_v40 = vld [vmem:[%s8845_s7] ss:$0 sm:$0xff] }
 0x7cc   :  { %v3284_v6 = vadd.f32 %v3252_v56, %v3071_v47  ;;  %v3285_v30 = vadd.f32 %v3266_v29, %v3099_v62 }
 0x7cd   :  { %v3362_v43 = vadd.f32 %v8305_v40, %v3125_v39 }
 0x7ce   :  { %v5793_v1 = vpop.eup %5792  ;;  %v5383_v2 = vmul.f32 -1.442695, %v3284_v6  ;;  %v5384_v10 = vmul.f32 -1.442695, %v3285_v30 }
 0x7cf   :  { %v5795_v57 = vpop.eup %5794  ;;  %v3298_v58 = vadd.f32 1.0, %v5793_v1  ;;  %v3277_v1 = vpop.f32.mrf.mxu2 }
 0x7d0   :  { %v8291_v50 = vadd.f32 1.0, %v5795_v57  ;;  %5796 = vpow2.f32 %v5383_v2 }
 0x7d1   :  { %5798 = vrcp.f32 %v3298_v58  ;;  %v3313_v29 = vand.u32 2147483648, %v3298_v58  ;;  %v3311_v30 = vand.u32 2147483647, %v3298_v58  ;;  %vm3307_vm1 = vweird.f32 %v3298_v58 }
 0x7d2   :  { %5800 = vrcp.f32 %v8291_v50  ;;  %v3126_v2 = vpop.f32.mrf.mxu3  ;;  %vm3322_vm6 = vweird.f32 %v8291_v50 }
 0x7d3   :  { %5802 = vpow2.f32 %v5384_v10  ;;  %v3314_v14 = vor.u32 1.1754944e-38, %v3313_v29  ;;  %vm3312_vm3 = vcmp.eq.f32.partialorder %v3311_v30, 8.507059e+37 }
 0x7d6   :  { %v5797_v60 = vpop.eup %5796 }
 0x7d7   :  { %v5799_v61 = vpop.eup %5798  ;;  %v3300_v35 = vadd.f32 1.0, %v5797_v60 }
 0x7d8   :  { %v8294_v48 = vpop.eup %5800  ;;  %v3303_v56 = vmul.f32 %v5799_v61, %v3298_v58  ;;  %vm3308_vm0 = vweird.f32 %v5799_v61  ;;  %v3328_v58 = vand.u32 2147483648, %v8291_v50 }
 0x7d9   :  { %v5803_v62 = vpop.eup %5802  ;;  %v3318_v15 = vmul.f32 %v8294_v48, %v8291_v50  ;;  %5804 = vrcp.f32 %v3300_v35  ;;  %vm3309_vm2 = vmor %vm3307_vm1, %vm3308_vm0  ;;  %vm3323_vm4 = vweird.f32 %v8294_v48  ;;  %v3343_v5 = vand.u32 2147483648, %v3300_v35 }
 0x7da   :  { %v3304_v47 = vsub.f32 1.0, %v3303_v56  ;;  %v8298_v12 = vadd.f32 1.0, %v5803_v62  ;;  %v3341_v30 = vand.u32 2147483647, %v3300_v35  ;;  %vm8315_vm7 = vmor %vm3322_vm6, %vm3323_vm4  ;;  %vm3337_vm8 = vweird.f32 %v3300_v35 }
 0x7db   :  { %v3319_v3 = vsub.f32 1.0, %v3318_v15  ;;  %v3127_v15 = vadd.f32 %v3126_v2, %v3112_v59 }
 0x7dc   :  { %v3305_v6 = vmul.f32 %v5799_v61, %v3304_v47  ;;  %5806 = vrcp.f32 %v8298_v12  ;;  %vm3342_vm10 = vcmp.eq.f32.partialorder %v3341_v30, 8.507059e+37  ;;  %vm3352_vm13 = vweird.f32 %v8298_v12 }
 0x7dd   :  { %v3320_v60 = vmul.f32 %v8294_v48, %v3319_v3 }
 0x7de   :  { %v3306_v57 = vadd.f32 %v5799_v61, %v3305_v6  ;;  %v3278_v6 = vadd.f32 %v3277_v1, %v7474_v25 }
 0x7df   :  { %v5805_v10 = vpop.eup %5804  ;;  %v3321_v29 = vadd.f32 %v8294_v48, %v3320_v60 }
 0x7e0   :  { %v3310_v56 = vsel %vm3309_vm2, %v5799_v61, %v3306_v57  ;;  %v3333_v62 = vmul.f32 %v5805_v10, %v3300_v35  ;;  %vm3338_vm5 = vweird.f32 %v5805_v10  ;;  %v3358_v35 = vand.u32 2147483648, %v8298_v12 }
 0x7e1   :  { %v3315_v47 = vsel %vm3312_vm3, %v3314_v14, %v3310_v56  ;;  %v3326_v14 = vand.u32 2147483647, %v8291_v50  ;;  %v3325_v57 = vsel %vm8315_vm7, %v8294_v48, %v3321_v29  ;;  %vm3339_vm9 = vmor %vm3337_vm8, %vm3338_vm5  ;;  %v3363_v56 = vadd.f32 %v8305_v40, %v3127_v15 }
 0x7e2   :  { %v5807_v42 = vpop.eup %5806  ;;  %v3364_v3 = vmul.f32 %v3362_v43, %v3315_v47  ;;  %v3334_v53 = vsub.f32 1.0, %v3333_v62  ;;  %v3344_v43 = vor.u32 1.1754944e-38, %v3343_v5  ;;  %v3329_v62 = vor.u32 1.1754944e-38, %v3328_v58 }
 0x7e3   :  { %v3348_v22 = vmul.f32 %v5807_v42, %v8298_v12  ;;  %vm3327_vm11 = vcmp.eq.f32.partialorder %v3326_v14, 8.507059e+37  ;;  %vm3353_vm12 = vweird.f32 %v5807_v42  ;;  %v3356_v48 = vand.u32 2147483647, %v8298_v12 }
 0x7e4   :  { %v3366_v39 = vadd.f32 %v3364_v3, %v3278_v6  ;;  %v3335_v61 = vmul.f32 %v5805_v10, %v3334_v53  ;;  %v3279_v53 = vpop.f32.mrf.mxu2  ;;  %v3330_v6 = vsel %vm3327_vm11, %v3329_v62, %v3325_v57  ;;  %vm3354_vm14 = vmor %vm3352_vm13, %vm3353_vm12  ;;  %v3359_v29 = vor.u32 1.1754944e-38, %v3358_v35  ;;  %v9747_v35 = vld [vmem:[#allocation104_spill] sm:$0xff] }
 0x7e5   :  { %v3349_v59 = vsub.f32 1.0, %v3348_v22  ;;  %v3280_v3 = vadd.f32 %v3279_v53, %v7474_v25  ;;  %v3370_v58 = vsub.f32 1.0, %v3330_v6  ;;  %vm3357_vm15 = vcmp.eq.f32.partialorder %v3356_v48, 8.507059e+37  ;;  %v9750_v48 = vld [vmem:[#allocation109_spill] sm:$0xff] }
 0x7e6   :  { %5808 = vtanh.f32 %v3366_v39  ;;  %v3336_v2 = vadd.f32 %v5805_v10, %v3335_v61  ;;  %v3374_v14 = vmul.f32 %v3330_v6, %v8122_v0  ;;  %v9741_v0 = vld [vmem:[#allocation92_spill] sm:$0xff]  ;;  %v9746_v6 = vld [vmem:[#allocation103_spill] sm:$0xff] }
 0x7e7   :  { %v3350_v60 = vmul.f32 %v5807_v42, %v3349_v59 }
 0x7e8   :  { %v3340_v50 = vsel %vm3339_vm9, %v5805_v10, %v3336_v2 }
 0x7e9   :  { %v3345_v22 = vsel %vm3342_vm10, %v3344_v43, %v3340_v50  ;;  %v3351_v47 = vadd.f32 %v5807_v42, %v3350_v60  ;;  %v9743_v50 = vld [vmem:[#allocation95_spill] sm:$0xff] }
 0x7ea   :  { %v3365_v39 = vmul.f32 %v3363_v56, %v3345_v22  ;;  %v9744_v22 = vld [vmem:[#allocation99_spill] sm:$0xff] }
 0x7eb   :  { %v3355_v10 = vsel %vm3354_vm14, %v5807_v42, %v3351_v47  ;;  %v9745_v47 = vld [vmem:[#allocation100_spill] sm:$0xff] }
 0x7ec   :  { %v5809_v5 = vpop.eup %5808  ;;  %v3367_v15 = vadd.f32 %v3365_v39, %v3280_v3  ;;  %v3360_v30 = vsel %vm3357_vm15, %v3359_v29, %v3355_v10  ;;  %v9748_v3 = vld [vmem:[#allocation106_spill] sm:$0xff]  ;;  %v9754_v10 = vld [vmem:[#allocation116_spill] sm:$0xff]  ;;  %v9755_v29 = vld [vmem:[#allocation13_spill] sm:$0xff] }
 0x7ed   :  { %v3372_v61 = vmul.f32 %v5809_v5, %v3370_v58  ;;  %v3371_v1 = vsub.f32 1.0, %v3360_v30  ;;  %v3375_v60 = vmul.f32 %v3360_v30, %v8127_v44  ;;  %v9742_v44 = vld [vmem:[#allocation94_spill] sm:$0xff]  ;;  %v9751_v5 = vld [vmem:[#allocation11_spill] sm:$0xff]  ;;  %v9753_v58 = vld [vmem:[#allocation12_spill] sm:$0xff] }
 0x7ee   :  { %5810 = vtanh.f32 %v3367_v15  ;;  %v9749_v39 = vld [vmem:[#allocation10_spill] sm:$0xff]  ;;  %v9752_v15 = vld [vmem:[#allocation112_spill] sm:$0xff] }
 0x7ef   :  { %v8328_v59 = vadd.f32 %v3374_v14, %v3372_v61  ;;  %v9756_v61 = vld [vmem:[#allocation119_spill] sm:$0xff]  ;;  %v9757_v30 = vld [vmem:[#allocation14_spill] sm:$0xff]  ;;  %v9758_v14 = vld [vmem:[#allocation125_spill] sm:$0xff] }
 0x7f1   :  { %v3378_v12 = vpack.c.bf16 %v8328_v59, %v8328_v59 }
 0x7f3   :  { %v3382_v43 = vunpack.c.l.b16 %v3378_v12  ;;  %v9763_v12 = vld [vmem:[#allocation17_spill] sm:$0xff] }
 0x7f4   :  { %v5811_v2 = vpop.eup %5810 }
 0x7f5   :  { %v3373_v57 = vmul.f32 %v5811_v2, %v3371_v1  ;;  %v9759_v1 = vld [vmem:[#allocation15_spill] sm:$0xff]  ;;  %v9760_v2 = vld [vmem:[#allocation129_spill] sm:$0xff] }
 0x7f7   :  { %v8333_v53 = vadd.f32 %v3375_v60, %v3373_v57  ;;  %v9761_v57 = vld [vmem:[#allocation16_spill] sm:$0xff]  ;;  %v9762_v60 = vld [vmem:[#allocation135_spill] sm:$0xff] }
 0x7f9   :  { %v3379_v42 = vpack.c.bf16 %v8333_v53, %v8333_v53 }
 0x7fb   :  { %v3383_v56 = vunpack.c.l.b16 %v3379_v42  ;;  %v9764_v42 = vld [vmem:[#allocation34_spill] sm:$0xff] }
 0x7fd   :  { %v3384_v62 = vpack.c.b16 %v3383_v56, %v3382_v43  ;;  %v9765_v43 = vld [vmem:[#allocation19_spill] sm:$0xff] }
 0x7fe   :  { %v9766_v56 = vld [vmem:[#allocation35_spill] sm:$0xff] }
 0x7ff   :  { %3408 = vmatmul.bf16.vlgmr.msrb.gmra.mxu0 %v3384_v62  ;;  %3436 = vmatmul.bf16.vlgmr.msrb.gmra.mxu2 %v3384_v62 }
 0x800   :  { %3512 = vmatpush.bf16.msrb.mxu0 %v9328_v52  ;;  %3540 = vmatpush.bf16.msrb.mxu2 %v9329_v19 }
 0x804   :  { %3513 = vmatpush.bf16.msrb.mxu0 %v9330_v27  ;;  %3541 = vmatpush.bf16.msrb.mxu2 %v9429_v33 }
 0x808   :  { %3514 = vmatpush.bf16.msrb.mxu0 %v9430_v54  ;;  %3542 = vmatpush.bf16.msrb.mxu2 %v9431_v20 }
 0x80c   :  { %3515 = vmatpush.bf16.msrb.mxu0 %v9637_v51  ;;  %3543 = vmatpush.bf16.msrb.mxu2 %v9638_v16 }
 0x80f   :  { %3464 = vmatmul.bf16.vlgmr.msra.gmra.mxu0 %v3384_v62  ;;  %3492 = vmatmul.bf16.vlgmr.msra.gmra.mxu2 %v3384_v62 }
 0x810   :  { %3516 = vmatpush.bf16.msrb.mxu0 %v9639_v49  ;;  %3544 = vmatpush.bf16.msrb.mxu2 %v9741_v0 }
 0x814   :  { %3517 = vmatpush.bf16.msrb.mxu0 %v9742_v44  ;;  %3545 = vmatpush.bf16.msrb.mxu2 %v9743_v50 }
 0x818   :  { %3518 = vmatpush.bf16.msrb.mxu0 %v9744_v22  ;;  %3546 = vmatpush.bf16.msrb.mxu2 %v9745_v47 }
 0x81c   :  { %3519 = vmatpush.bf16.msrb.mxu0 %v9746_v6  ;;  %3547 = vmatpush.bf16.msrb.mxu2 %v9747_v35 }
 0x81f   :  { %3520 = vmatmul.bf16.vlgmr.msrb.gmra.mxu0 %v3384_v62  ;;  %3548 = vmatmul.bf16.vlgmr.msrb.gmra.mxu2 %v3384_v62  ;;  %v9767_v62 = vld [vmem:[#allocation22_spill] sm:$0xff] }
 0x820   :  { %3679 = vmatpush.bf16.msra.mxu0 %v9748_v3  ;;  %3811 = vmatpush.bf16.msra.mxu2 %v9749_v39 }
 0x824   :  { %3680 = vmatpush.bf16.msra.mxu0 %v9750_v48  ;;  %3812 = vmatpush.bf16.msra.mxu2 %v9751_v5 }
 0x828   :  { %3681 = vmatpush.bf16.msra.mxu0 %v9752_v15  ;;  %3813 = vmatpush.bf16.msra.mxu2 %v9753_v58  ;;  %v9782_v15 = vld [vmem:[#allocation124_spill] sm:$0xff] }
 0x82c   :  { %3682 = vmatpush.bf16.msra.mxu0 %v9754_v10  ;;  %3814 = vmatpush.bf16.msra.mxu2 %v9755_v29 }
 0x830   :  { %3683 = vmatpush.bf16.msra.mxu0 %v9756_v61  ;;  %3815 = vmatpush.bf16.msra.mxu2 %v9757_v30  ;;  %v9768_v30 = vld [vmem:[#allocation36_spill] sm:$0xff]  ;;  %v9780_v61 = vld [vmem:[#allocation110_spill] sm:$0xff] }
 0x834   :  { %3684 = vmatpush.bf16.msra.mxu0 %v9758_v14  ;;  %3816 = vmatpush.bf16.msra.mxu2 %v9759_v1  ;;  %v9769_v14 = vld [vmem:[#allocation25_spill] sm:$0xff]  ;;  %v9770_v1 = vld [vmem:[#allocation39_spill] sm:$0xff] }
 0x838   :  { %3685 = vmatpush.bf16.msra.mxu0 %v9760_v2  ;;  %3817 = vmatpush.bf16.msra.mxu2 %v9761_v57  ;;  %v9771_v2 = vld [vmem:[#allocation30_spill] sm:$0xff]  ;;  %v9772_v57 = vld [vmem:[#allocation40_spill] sm:$0xff] }
 0x83c   :  { %3686 = vmatpush.bf16.msra.mxu0 %v9762_v60  ;;  %3818 = vmatpush.bf16.msra.mxu2 %v9763_v12  ;;  %v9773_v60 = vld [vmem:[#allocation37_spill] sm:$0xff] }
 0x83d   :  { %v9774_v12 = vld [vmem:[#allocation41_spill] sm:$0xff] }
 0x840   :  { %3839 = vmatpush.bf16.msrb.mxu0 %v9764_v42  ;;  %3867 = vmatpush.bf16.msrb.mxu2 %v9765_v43  ;;  %v9775_v42 = vld [vmem:[#allocation43_spill] sm:$0xff]  ;;  %v9776_v43 = vld [vmem:[#allocation42_spill] sm:$0xff] }
 0x844   :  { %3840 = vmatpush.bf16.msrb.mxu0 %v9766_v56  ;;  %3868 = vmatpush.bf16.msrb.mxu2 %v9767_v62  ;;  %v9777_v56 = vld [vmem:[#allocation50_spill] sm:$0xff]  ;;  %v9778_v62 = vld [vmem:[#allocation45_spill] sm:$0xff] }
 0x848   :  { %3841 = vmatpush.bf16.msrb.mxu0 %v9768_v30  ;;  %3869 = vmatpush.bf16.msrb.mxu2 %v9769_v14  ;;  %v9779_v30 = vld [vmem:[#allocation56_spill] sm:$0xff]  ;;  %v3395_v14 = vpop.f32.mrf.mxu3 }
 0x84c   :  { %3842 = vmatpush.bf16.msrb.mxu0 %v9770_v1  ;;  %3870 = vmatpush.bf16.msrb.mxu2 %v9771_v2  ;;  %v9781_v2 = vld [vmem:[#allocation113_spill] sm:$0xff] }
 0x84d   :  { %v350_v29 = vadd.f32 %v9781_v2, %v9780_v61 }
 0x850   :  { %3843 = vmatpush.bf16.msrb.mxu0 %v9772_v57  ;;  %3871 = vmatpush.bf16.msrb.mxu2 %v9773_v60  ;;  %v3423_v60 = vpop.f32.mrf.mxu1 }
 0x854   :  { %3844 = vmatpush.bf16.msrb.mxu0 %v9774_v12  ;;  %3872 = vmatpush.bf16.msrb.mxu2 %v9775_v42  ;;  %v9783_v42 = vld [vmem:[#allocation114_spill] sm:$0xff] }
 0x855   :  { %v399_v5 = vadd.f32 %v9783_v42, %v9782_v15 }
 0x858   :  { %3845 = vmatpush.bf16.msrb.mxu0 %v9776_v43  ;;  %3873 = vmatpush.bf16.msrb.mxu2 %v9777_v56  ;;  %v3397_v56 = vpop.f32.mrf.mxu3 }
 0x85c   :  { %3846 = vmatpush.bf16.msrb.mxu0 %v9778_v62  ;;  %3874 = vmatpush.bf16.msrb.mxu2 %v9779_v30  ;;  %v9784_v62 = vld [vmem:[#allocation120_spill] sm:$0xff] }
 0x85d   :  { %v352_v30 = vadd.f32 %v9784_v62, %v9780_v61 }
 0x87c   :  { %v3409_v1 = vpop.f32.mrf.mxu0 }
 0x87d   :  { %v3410_v57 = vadd.f32 %v3409_v1, %v3395_v14  ;;  %v3425_v14 = vpop.f32.mrf.mxu1 }
 0x87f   :  { %v3561_v10 = vadd.f32 %v3410_v57, %v350_v29  ;;  %v9785_v57 = vld [vmem:[#allocation121_spill] sm:$0xff] }
 0x880   :  { %v401_v42 = vadd.f32 %v9785_v57, %v9782_v15 }
 0x881   :  { %v5385_v58 = vmul.f32 -1.442695, %v3561_v10 }
 0x882   :  { %v3437_v12 = vpop.f32.mrf.mxu2 }
 0x883   :  { %5812 = vpow2.f32 %v5385_v58  ;;  %v3438_v43 = vadd.f32 %v3437_v12, %v3423_v60 }
 0x884   :  { %v3411_v48 = vpop.f32.mrf.mxu0 }
 0x885   :  { %v3562_v39 = vadd.f32 %v3438_v43, %v399_v5  ;;  %v3412_v3 = vadd.f32 %v3411_v48, %v3397_v56  ;;  %v3451_v48 = vpop.f32.mrf.mxu3 }
 0x887   :  { %v5386_v35 = vmul.f32 -1.442695, %v3562_v39  ;;  %v3563_v6 = vadd.f32 %v3412_v3, %v352_v30 }
 0x889   :  { %v5813_v2 = vpop.eup %5812  ;;  %5814 = vpow2.f32 %v5386_v35  ;;  %v5387_v29 = vmul.f32 -1.442695, %v3563_v6 }
 0x88a   :  { %v3577_v10 = vadd.f32 1.0, %v5813_v2  ;;  %v3439_v1 = vpop.f32.mrf.mxu2 }
 0x88b   :  { %5816 = vpow2.f32 %v5387_v29  ;;  %v3440_v58 = vadd.f32 %v3439_v1, %v3425_v14 }
 0x88c   :  { %5818 = vrcp.f32 %v3577_v10  ;;  %v3465_v35 = vpop.f32.mrf.mxu0  ;;  %v3592_v43 = vand.u32 2147483648, %v3577_v10  ;;  %v3590_v14 = vand.u32 2147483647, %v3577_v10  ;;  %vm3586_vm1 = vweird.f32 %v3577_v10 }
 0x88d   :  { %v3564_v60 = vadd.f32 %v3440_v58, %v401_v42  ;;  %v3466_v2 = vadd.f32 %v3465_v35, %v3451_v48  ;;  %v9786_v35 = vld [vmem:[#allocation62_spill] sm:$0xff]  ;;  %v3453_v44 = vpop.f32.mrf.mxu3 }
 0x88e   :  { %vm3591_vm3 = vcmp.eq.f32.partialorder %v3590_v14, 8.507059e+37  ;;  %v448_v48 = vadd.f32 %v9786_v35, %v7243_v63 }
 0x88f   :  { %v5815_v12 = vpop.eup %5814  ;;  %v5388_v47 = vmul.f32 -1.442695, %v3564_v60 }
 0x890   :  { %v3578_v62 = vadd.f32 1.0, %v5815_v12 }
 0x891   :  { %v5817_v5 = vpop.eup %5816  ;;  %5820 = vpow2.f32 %v5388_v47  ;;  %v3593_v47 = vor.u32 1.1754944e-38, %v3592_v43 }
 0x892   :  { %v5819_v39 = vpop.eup %5818  ;;  %5822 = vrcp.f32 %v3578_v62  ;;  %v3579_v3 = vadd.f32 1.0, %v5817_v5  ;;  %v3607_v15 = vand.u32 2147483648, %v3578_v62  ;;  %v3605_v22 = vand.u32 2147483647, %v3578_v62 }
 0x893   :  { %v3582_v6 = vmul.f32 %v5819_v39, %v3577_v10  ;;  %vm3587_vm0 = vweird.f32 %v5819_v39  ;;  %vm3601_vm5 = vweird.f32 %v3578_v62 }
 0x894   :  { %5824 = vrcp.f32 %v3579_v3  ;;  %vm3588_vm2 = vmor %vm3586_vm1, %vm3587_vm0  ;;  %v3467_v10 = vpop.f32.mrf.mxu0  ;;  %v3620_v35 = vand.u32 2147483647, %v3579_v3  ;;  %vm3606_vm8 = vcmp.eq.f32.partialorder %v3605_v22, 8.507059e+37  ;;  %vm3616_vm9 = vweird.f32 %v3579_v3 }
 0x895   :  { %v3583_v30 = vsub.f32 1.0, %v3582_v6  ;;  %v3641_v6 = vadd.f32 %v8193_v17, %v3466_v2  ;;  %v3468_v2 = vadd.f32 %v3467_v10, %v3453_v44 }
 0x896   :  { %vm3621_vm11 = vcmp.eq.f32.partialorder %v3620_v35, 8.507059e+37 }
 0x897   :  { %v5821_v56 = vpop.eup %5820  ;;  %v3584_v29 = vmul.f32 %v5819_v39, %v3583_v30 }
 0x898   :  { %v5823_v1 = vpop.eup %5822  ;;  %v8393_v57 = vadd.f32 1.0, %v5821_v56 }
 0x899   :  { %v3597_v42 = vmul.f32 %v5823_v1, %v3578_v62  ;;  %v3585_v58 = vadd.f32 %v5819_v39, %v3584_v29  ;;  %vm3602_vm4 = vweird.f32 %v5823_v1 }
 0x89a   :  { %5826 = vrcp.f32 %v8393_v57  ;;  %v5825_v60 = vpop.eup %5824  ;;  %vm3603_vm6 = vmor %vm3601_vm5, %vm3602_vm4  ;;  %vm3631_vm13 = vweird.f32 %v8393_v57 }
 0x89b   :  { %v3598_v12 = vsub.f32 1.0, %v3597_v42  ;;  %v3589_v5 = vsel %vm3588_vm2, %v5819_v39, %v3585_v58  ;;  %v3612_v61 = vmul.f32 %v5825_v60, %v3579_v3  ;;  %v3622_v39 = vand.u32 2147483648, %v3579_v3 }
 0x89c   :  { %v3594_v30 = vsel %vm3591_vm3, %v3593_v47, %v3589_v5  ;;  %vm3617_vm7 = vweird.f32 %v5825_v60  ;;  %v3608_v47 = vor.u32 1.1754944e-38, %v3607_v15  ;;  %v9787_v15 = vld [vmem:[#allocation69_spill] sm:$0xff] }
 0x89d   :  { %v3599_v56 = vmul.f32 %v5823_v1, %v3598_v12  ;;  %v3643_v29 = vmul.f32 %v3641_v6, %v3594_v30  ;;  %v3613_v50 = vsub.f32 1.0, %v3612_v61  ;;  %vm3618_vm10 = vmor %vm3616_vm9, %vm3617_vm7  ;;  %v3623_v62 = vor.u32 1.1754944e-38, %v3622_v39 }
 0x89f   :  { %v3600_v43 = vadd.f32 %v5823_v1, %v3599_v56  ;;  %v3645_v42 = vadd.f32 %v3643_v29, %v448_v48  ;;  %v3614_v58 = vmul.f32 %v5825_v60, %v3613_v50  ;;  %v3642_v56 = vadd.f32 %v8193_v17, %v3468_v2 }
 0x8a0   :  { %v5827_v14 = vpop.eup %5826  ;;  %v450_v29 = vadd.f32 %v9787_v15, %v7243_v63  ;;  %v9792_v15 = vld [vmem:[#allocation97_spill] sm:$0xff] }
 0x8a1   :  { %v3627_v12 = vmul.f32 %v5827_v14, %v8393_v57  ;;  %v3604_v5 = vsel %vm3603_vm6, %v5823_v1, %v3600_v43  ;;  %5828 = vtanh.f32 %v3645_v42  ;;  %v3615_v6 = vadd.f32 %v5825_v60, %v3614_v58 }
 0x8a2   :  { %v3609_v30 = vsel %vm3606_vm8, %v3608_v47, %v3604_v5  ;;  %vm3632_vm12 = vweird.f32 %v5827_v14  ;;  %v3637_v1 = vand.u32 2147483648, %v8393_v57  ;;  %v3635_v42 = vand.u32 2147483647, %v8393_v57 }
 0x8a3   :  { %v3628_v61 = vsub.f32 1.0, %v3627_v12  ;;  %v3619_v48 = vsel %vm3618_vm10, %v5825_v60, %v3615_v6  ;;  %v3649_v10 = vsub.f32 1.0, %v3609_v30  ;;  %vm3633_vm14 = vmor %vm3631_vm13, %vm3632_vm12  ;;  %v3653_v17 = vmul.f32 %v3609_v30, %v8206_v8 }
 0x8a4   :  { %v3624_v50 = vsel %vm3621_vm11, %v3623_v62, %v3619_v48  ;;  %v3638_v58 = vor.u32 1.1754944e-38, %v3637_v1  ;;  %vm3636_vm15 = vcmp.eq.f32.partialorder %v3635_v42, 8.507059e+37  ;;  %v9794_v1 = vld [vmem:[#allocation51_spill] sm:$0xff]  ;;  %v9799_v42 = vld [vmem:[#allocation57_spill] sm:$0xff] }
 0x8a5   :  { %v3629_v44 = vmul.f32 %v5827_v14, %v3628_v61  ;;  %v3644_v22 = vmul.f32 %v3642_v56, %v3624_v50  ;;  %v9789_v56 = vld [vmem:[#allocation122_spill] sm:$0xff]  ;;  %v9791_v50 = vld [vmem:[#allocation72_spill] sm:$0xff] }
 0x8a7   :  { %v5829_v43 = vpop.eup %5828  ;;  %v3630_v3 = vadd.f32 %v5827_v14, %v3629_v44  ;;  %v3646_v39 = vadd.f32 %v3644_v22, %v450_v29  ;;  %v9790_v44 = vld [vmem:[#allocation44_spill] sm:$0xff]  ;;  %v9793_v29 = vld [vmem:[#allocation126_spill] sm:$0xff]  ;;  %v9796_v22 = vld [vmem:[#allocation101_spill] sm:$0xff] }
 0x8a8   :  { %v3651_v60 = vmul.f32 %v5829_v43, %v3649_v10  ;;  %v9795_v10 = vld [vmem:[#allocation73_spill] sm:$0xff]  ;;  %v9797_v43 = vld [vmem:[#allocation131_spill] sm:$0xff] }
 0x8a9   :  { %v3634_v2 = vsel %vm3633_vm14, %v5827_v14, %v3630_v3  ;;  %5830 = vtanh.f32 %v3646_v39  ;;  %v9798_v3 = vld [vmem:[#allocation102_spill] sm:$0xff]  ;;  %v9802_v39 = vld [vmem:[#allocation108_spill] sm:$0xff] }
 0x8aa   :  { %v8407_v35 = vadd.f32 %v3653_v17, %v3651_v60  ;;  %v3639_v47 = vsel %vm3636_vm15, %v3638_v58, %v3634_v2  ;;  %v9800_v60 = vld [vmem:[#allocation76_spill] sm:$0xff]  ;;  %v9801_v17 = vld [vmem:[#allocation133_spill] sm:$0xff]  ;;  %v9804_v58 = vld [vmem:[#allocation111_spill] sm:$0xff] }
 0x8ab   :  { %v3650_v12 = vsub.f32 1.0, %v3639_v47  ;;  %v3654_v61 = vmul.f32 %v3639_v47, %v8211_v38  ;;  %v9788_v38 = vld [vmem:[#allocation93_spill] sm:$0xff]  ;;  %v9803_v2 = vld [vmem:[#allocation136_spill] sm:$0xff] }
 0x8ac   :  { %v3657_v57 = vpack.c.bf16 %v8407_v35, %v8407_v35  ;;  %v9805_v47 = vld [vmem:[#allocation140_spill] sm:$0xff] }
 0x8ae   :  { %v3661_v14 = vunpack.c.l.b16 %v3657_v57  ;;  %v9810_v57 = vld [vmem:[#allocation123_spill] sm:$0xff] }
 0x8af   :  { %v5831_v5 = vpop.eup %5830 }
 0x8b0   :  { %v3652_v6 = vmul.f32 %v5831_v5, %v3650_v12  ;;  %v9806_v12 = vld [vmem:[#allocation115_spill] sm:$0xff]  ;;  %v9807_v5 = vld [vmem:[#allocation144_spill] sm:$0xff] }
 0x8b2   :  { %v8412_v62 = vadd.f32 %v3654_v61, %v3652_v6  ;;  %v9808_v6 = vld [vmem:[#allocation118_spill] sm:$0xff] }
 0x8b3   :  { %v9809_v61 = vld [vmem:[#allocation146_spill] sm:$0xff] }
 0x8b4   :  { %v3658_v8 = vpack.c.bf16 %v8412_v62, %v8412_v62 }
 0x8b6   :  { %v3662_v30 = vunpack.c.l.b16 %v3658_v8  ;;  %v9811_v8 = vld [vmem:[#allocation150_spill] sm:$0xff] }
 0x8b8   :  { %v3663_v48 = vpack.c.b16 %v3662_v30, %v3661_v14  ;;  %v9812_v14 = vld [vmem:[#allocation127_spill] sm:$0xff]  ;;  %v9813_v30 = vld [vmem:[#allocation152_spill] sm:$0xff] }
 0x8ba   :  { %3673 = vmatmul.bf16.vlgmr.msra.gmra.mxu3 %v3663_v48  ;;  %3687 = vmatmul.bf16.vlgmr.msra.gmra.mxu0 %v3663_v48 }
 0x8bb   :  { %3701 = vmatmul.bf16.vlgmr.msra.gmra.mxu1 %v3663_v48  ;;  %3819 = vmatmul.bf16.vlgmr.msra.gmra.mxu2 %v3663_v48 }
 0x8bc   :  { %3895 = vmatpush.bf16.msra.mxu0 %v9273_v31  ;;  %3923 = vmatpush.bf16.msra.mxu2 %v6909_v23 }
 0x8bd   :  { %3881 = vmatpush.bf16.msra.mxu3 %v9275_v4  ;;  %3909 = vmatpush.bf16.msra.mxu1 %v9276_v13 }
 0x8c0   :  { %3896 = vmatpush.bf16.msra.mxu0 %v9277_v24  ;;  %3924 = vmatpush.bf16.msra.mxu2 %v6952_v37 }
 0x8c1   :  { %3882 = vmatpush.bf16.msra.mxu3 %v9278_v18  ;;  %3910 = vmatpush.bf16.msra.mxu1 %v9279_v11 }
 0x8c4   :  { %3897 = vmatpush.bf16.msra.mxu0 %v9280_v26  ;;  %3925 = vmatpush.bf16.msra.mxu2 %v6986_v55 }
 0x8c5   :  { %3883 = vmatpush.bf16.msra.mxu3 %v9281_v41  ;;  %3911 = vmatpush.bf16.msra.mxu1 %v9282_v32 }
 0x8c8   :  { %3898 = vmatpush.bf16.msra.mxu0 %v9284_v21  ;;  %3926 = vmatpush.bf16.msra.mxu2 %v7018_v9 }
 0x8c9   :  { %3884 = vmatpush.bf16.msra.mxu3 %v9285_v28  ;;  %3912 = vmatpush.bf16.msra.mxu1 %v9286_v46 }
 0x8ca   :  { %3847 = vmatmul.bf16.vlgmr.msrb.gmra.mxu0 %v3663_v48 }
 0x8cb   :  { %3875 = vmatmul.bf16.vlgmr.msrb.gmra.mxu2 %v3663_v48 }
 0x8cc   :  { %3899 = vmatpush.bf16.msra.mxu0 %v9287_v34  ;;  %3927 = vmatpush.bf16.msra.mxu2 %v7042_v45 }
 0x8cd   :  { %3885 = vmatpush.bf16.msra.mxu3 %v9379_v36  ;;  %3913 = vmatpush.bf16.msra.mxu1 %v9289_v7 }
 0x8d0   :  { %3900 = vmatpush.bf16.msra.mxu0 %v9788_v38  ;;  %3928 = vmatpush.bf16.msra.mxu2 %v9789_v56 }
 0x8d1   :  { %3886 = vmatpush.bf16.msra.mxu3 %v9790_v44  ;;  %3914 = vmatpush.bf16.msra.mxu1 %v9791_v50 }
 0x8d4   :  { %3901 = vmatpush.bf16.msra.mxu0 %v9792_v15  ;;  %3929 = vmatpush.bf16.msra.mxu2 %v9793_v29 }
 0x8d5   :  { %3887 = vmatpush.bf16.msra.mxu3 %v9794_v1  ;;  %3915 = vmatpush.bf16.msra.mxu1 %v9795_v10 }
 0x8d8   :  { %3902 = vmatpush.bf16.msra.mxu0 %v9796_v22  ;;  %3930 = vmatpush.bf16.msra.mxu2 %v9797_v43  ;;  %v9841_v43 = vld [vmem:[#allocation66_spill] sm:$0xff] }
 0x8d9   :  { %3888 = vmatpush.bf16.msra.mxu3 %v9799_v42  ;;  %3916 = vmatpush.bf16.msra.mxu1 %v9800_v60 }
 0x8db   :  { %3903 = vmatmul.bf16.vlgmr.msra.gmra.mxu0 %v3663_v48  ;;  %3931 = vmatmul.bf16.vlgmr.msra.gmra.mxu2 %v3663_v48 }
 0x8dc   :  { %3951 = vmatpush.bf16.msrb.mxu0 %v9798_v3  ;;  %4090 = vmatpush.bf16.msrb.mxu2 %v9801_v17 }
 0x8e0   :  { %3952 = vmatpush.bf16.msrb.mxu0 %v9802_v39  ;;  %4091 = vmatpush.bf16.msrb.mxu2 %v9803_v2  ;;  %v9814_v2 = vld [vmem:[#allocation132_spill] sm:$0xff] }
 0x8e4   :  { %3953 = vmatpush.bf16.msrb.mxu0 %v9804_v58  ;;  %4092 = vmatpush.bf16.msrb.mxu2 %v9805_v47  ;;  %v9815_v58 = vld [vmem:[#allocation134_spill] sm:$0xff] }
 0x8e5   :  { %v9816_v47 = vld [vmem:[#allocation154_spill] sm:$0xff] }
 0x8e8   :  { %3954 = vmatpush.bf16.msrb.mxu0 %v9806_v12  ;;  %4093 = vmatpush.bf16.msrb.mxu2 %v9807_v5  ;;  %v9817_v12 = vld [vmem:[#allocation18_spill] sm:$0xff] }
 0x8e9   :  { %v9838_v5 = vld [vmem:[#allocation54_spill] sm:$0xff] }
 0x8ec   :  { %3955 = vmatpush.bf16.msrb.mxu0 %v9808_v6  ;;  %4094 = vmatpush.bf16.msrb.mxu2 %v9809_v61  ;;  %v9818_v6 = vld [vmem:[#allocation138_spill] sm:$0xff]  ;;  %v9819_v61 = vld [vmem:[#allocation21_spill] sm:$0xff] }
 0x8f0   :  { %3956 = vmatpush.bf16.msrb.mxu0 %v9810_v57  ;;  %4095 = vmatpush.bf16.msrb.mxu2 %v9811_v8  ;;  %v9820_v57 = vld [vmem:[#allocation141_spill] sm:$0xff]  ;;  %v9821_v8 = vld [vmem:[#allocation24_spill] sm:$0xff] }
 0x8f4   :  { %3957 = vmatpush.bf16.msrb.mxu0 %v9812_v14  ;;  %4096 = vmatpush.bf16.msrb.mxu2 %v9813_v30  ;;  %v9822_v14 = vld [vmem:[#allocation145_spill] sm:$0xff]  ;;  %v9823_v30 = vld [vmem:[#allocation27_spill] sm:$0xff] }
 0x8f8   :  { %3958 = vmatpush.bf16.msrb.mxu0 %v9814_v2  ;;  %4097 = vmatpush.bf16.msrb.mxu2 %v9816_v47  ;;  %v9824_v2 = vld [vmem:[#allocation147_spill] sm:$0xff] }
 0x8f9   :  { %v9826_v47 = vld [vmem:[#allocation151_spill] sm:$0xff] }
 0x8fb   :  { %3959 = vmatmul.bf16.vlgmr.msrb.gmra.mxu0 %v3663_v48  ;;  %v9828_v48 = vld [vmem:[#allocation153_spill] sm:$0xff] }
 0x8fc   :  { %4118 = vmatpush.bf16.msra.mxu0 %v9815_v58  ;;  %4250 = vmatpush.bf16.msra.mxu2 %v9817_v12  ;;  %v9825_v58 = vld [vmem:[#allocation28_spill] sm:$0xff]  ;;  %v9827_v12 = vld [vmem:[#allocation29_spill] sm:$0xff] }
 0x900   :  { %4119 = vmatpush.bf16.msra.mxu0 %v9818_v6  ;;  %4251 = vmatpush.bf16.msra.mxu2 %v9819_v61  ;;  %v9829_v6 = vld [vmem:[#allocation31_spill] sm:$0xff] }
 0x901   :  { %v9830_v61 = vld [vmem:[#allocation155_spill] sm:$0xff] }
 0x904   :  { %4120 = vmatpush.bf16.msra.mxu0 %v9820_v57  ;;  %4252 = vmatpush.bf16.msra.mxu2 %v9821_v8  ;;  %v9831_v57 = vld [vmem:[#allocation46_spill] sm:$0xff]  ;;  %v9832_v8 = vld [vmem:[#allocation33_spill] sm:$0xff] }
 0x908   :  { %4121 = vmatpush.bf16.msra.mxu0 %v9822_v14  ;;  %4253 = vmatpush.bf16.msra.mxu2 %v9823_v30  ;;  %v9833_v14 = vld [vmem:[#allocation47_spill] sm:$0xff]  ;;  %v9834_v30 = vld [vmem:[#allocation48_spill] sm:$0xff] }
 0x90c   :  { %4122 = vmatpush.bf16.msra.mxu0 %v9824_v2  ;;  %4254 = vmatpush.bf16.msra.mxu2 %v9825_v58  ;;  %v9835_v2 = vld [vmem:[#allocation49_spill] sm:$0xff]  ;;  %v9836_v58 = vld [vmem:[#allocation52_spill] sm:$0xff] }
 0x910   :  { %4123 = vmatpush.bf16.msra.mxu0 %v9826_v47  ;;  %4255 = vmatpush.bf16.msra.mxu2 %v9827_v12  ;;  %v3521_v47 = vpop.f32.mrf.mxu0  ;;  %v9837_v12 = vld [vmem:[#allocation53_spill] sm:$0xff] }
 0x914   :  { %4124 = vmatpush.bf16.msra.mxu0 %v9828_v48  ;;  %4256 = vmatpush.bf16.msra.mxu2 %v9829_v6  ;;  %v3507_v48 = vpop.f32.mrf.mxu3 }
 0x915   :  { %v3522_v17 = vadd.f32 %v3521_v47, %v3507_v48 }
 0x918   :  { %4125 = vmatpush.bf16.msra.mxu0 %v9830_v61  ;;  %4257 = vmatpush.bf16.msra.mxu2 %v9832_v8  ;;  %v3523_v6 = vpop.f32.mrf.mxu0  ;;  %v9839_v61 = vld [vmem:[#allocation55_spill] sm:$0xff] }
 0x91c   :  { %4278 = vmatpush.bf16.msrb.mxu0 %v9831_v57  ;;  %v3479_v57 = vpop.f32.mrf.mxu1  ;;  %v3509_v39 = vpop.f32.mrf.mxu3 }
 0x920   :  { %4279 = vmatpush.bf16.msrb.mxu0 %v9833_v14  ;;  %v9840_v14 = vld [vmem:[#allocation89_spill] sm:$0xff] }
 0x924   :  { %4280 = vmatpush.bf16.msrb.mxu0 %v9834_v30  ;;  %v3493_v30 = vpop.f32.mrf.mxu2  ;;  %v3481_v22 = vpop.f32.mrf.mxu1 }
 0x928   :  { %4281 = vmatpush.bf16.msrb.mxu0 %v9835_v2 }
 0x92c   :  { %4282 = vmatpush.bf16.msrb.mxu0 %v9836_v58  ;;  %v3494_v58 = vadd.f32 %v3493_v30, %v3479_v57  ;;  %v3495_v50 = vpop.f32.mrf.mxu2 }
 0x930   :  { %4283 = vmatpush.bf16.msrb.mxu0 %v9837_v12 }
 0x934   :  { %4284 = vmatpush.bf16.msrb.mxu0 %v9838_v5  ;;  %v3524_v5 = vadd.f32 %v3523_v6, %v3509_v39 }
 0x937   :  { %v3688_v8 = vpop.f32.mrf.mxu0 }
 0x938   :  { %4285 = vmatpush.bf16.msrb.mxu0 %v9839_v61  ;;  %v3689_v60 = vadd.f32 %v3688_v8, %v9840_v14 }
 0x93a   :  { %v3708_v42 = vadd.f32 %v3689_v60, %v3522_v17  ;;  %v3496_v60 = vadd.f32 %v3495_v50, %v3481_v22 }
 0x93c   :  { %v5390_v2 = vmul.f32 -1.442695, %v3708_v42 }
 0x93d   :  { %v3674_v3 = vpop.f32.mrf.mxu3 }
 0x93e   :  { %5832 = vpow2.f32 %v5390_v2  ;;  %v3675_v12 = vadd.f32 %v3674_v3, %v9841_v43  ;;  %v3535_v3 = vpop.f32.mrf.mxu1 }
 0x93f   :  { %v3690_v10 = vpop.f32.mrf.mxu0 }
 0x940   :  { %v3707_v1 = vadd.f32 %v3675_v12, %v3494_v58  ;;  %v3691_v61 = vadd.f32 %v3690_v10, %v9840_v14 }
 0x942   :  { %v5389_v29 = vmul.f32 -1.442695, %v3707_v1  ;;  %v3710_v15 = vadd.f32 %v3691_v61, %v3524_v5 }
 0x944   :  { %v5833_v47 = vpop.eup %5832  ;;  %5834 = vpow2.f32 %v5389_v29  ;;  %v5392_v48 = vmul.f32 -1.442695, %v3710_v15  ;;  %v3549_v29 = vpop.f32.mrf.mxu2 }
 0x945   :  { %v3676_v8 = vpop.f32.mrf.mxu3  ;;  %v8491_v42 = vadd.f32 1.0, %v5833_v47 }
 0x946   :  { %5836 = vpow2.f32 %v5392_v48  ;;  %v3677_v17 = vadd.f32 %v3676_v8, %v9841_v43  ;;  %v3537_v50 = vpop.f32.mrf.mxu1 }
 0x947   :  { %5838 = vrcp.f32 %v8491_v42  ;;  %vm3747_vm6 = vweird.f32 %v8491_v42 }
 0x948   :  { %v3709_v57 = vadd.f32 %v3677_v17, %v3496_v60  ;;  %v3550_v60 = vadd.f32 %v3549_v29, %v3535_v3 }
 0x94a   :  { %v5835_v30 = vpop.eup %5834  ;;  %v5391_v39 = vmul.f32 -1.442695, %v3709_v57 }
 0x94b   :  { %v3723_v10 = vadd.f32 1.0, %v5835_v30 }
 0x94c   :  { %v5837_v1 = vpop.eup %5836  ;;  %5840 = vpow2.f32 %v5391_v39  ;;  %v3551_v43 = vpop.f32.mrf.mxu2 }
 0x94d   :  { %5842 = vrcp.f32 %v3723_v10  ;;  %v8495_v6 = vadd.f32 1.0, %v5837_v1  ;;  %v8497_v15 = vpop.eup %5838  ;;  %v3738_v8 = vand.u32 2147483648, %v3723_v10  ;;  %v3736_v57 = vand.u32 2147483647, %v3723_v10 }
 0x94e   :  { %v3743_v58 = vmul.f32 %v8497_v15, %v8491_v42  ;;  %v3702_v30 = vpop.f32.mrf.mxu1  ;;  %vm3732_vm1 = vweird.f32 %v3723_v10  ;;  %v3552_v56 = vadd.f32 %v3551_v43, %v3537_v50  ;;  %vm3748_vm4 = vweird.f32 %v8497_v15 }
 0x94f   :  { %5844 = vrcp.f32 %v8495_v6  ;;  %v3739_v44 = vor.u32 1.1754944e-38, %v3738_v8  ;;  %vm3737_vm3 = vcmp.eq.f32.partialorder %v3736_v57, 8.507059e+37  ;;  %v3703_v38 = vadd.f32 %v3702_v30, %v7474_v25  ;;  %vm8515_vm7 = vmor %vm3747_vm6, %vm3748_vm4 }
 0x950   :  { %v3744_v48 = vsub.f32 1.0, %v3743_v58  ;;  %v3788_v57 = vadd.f32 %v8305_v40, %v3552_v56  ;;  %vm3777_vm13 = vweird.f32 %v8495_v6 }
 0x952   :  { %v5841_v22 = vpop.eup %5840 }
 0x953   :  { %v5843_v2 = vpop.eup %5842  ;;  %v3725_v12 = vadd.f32 1.0, %v5841_v22  ;;  %v3745_v22 = vmul.f32 %v8497_v15, %v3744_v48  ;;  %v3753_v48 = vand.u32 2147483648, %v8491_v42 }
 0x954   :  { %v3728_v5 = vmul.f32 %v5843_v2, %v3723_v10  ;;  %vm3733_vm0 = vweird.f32 %v5843_v2 }
 0x955   :  { %5846 = vrcp.f32 %v3725_v12  ;;  %v8502_v61 = vpop.eup %5844  ;;  %vm3734_vm2 = vmor %vm3732_vm1, %vm3733_vm0  ;;  %v3746_v10 = vadd.f32 %v8497_v15, %v3745_v22  ;;  %vm3762_vm8 = vweird.f32 %v3725_v12  ;;  %v3754_v30 = vor.u32 1.1754944e-38, %v3753_v48 }
 0x956   :  { %v3729_v47 = vsub.f32 1.0, %v3728_v5  ;;  %v3773_v39 = vmul.f32 %v8502_v61, %v8495_v6  ;;  %v3787_v5 = vadd.f32 %v8305_v40, %v3550_v60  ;;  %vm3778_vm12 = vweird.f32 %v8502_v61 }
 0x957   :  { %vm3779_vm14 = vmor %vm3777_vm13, %vm3778_vm12 }
 0x958   :  { %v3730_v17 = vmul.f32 %v5843_v2, %v3729_v47  ;;  %v3774_v47 = vsub.f32 1.0, %v3773_v39 }
 0x95a   :  { %v3731_v1 = vadd.f32 %v5843_v2, %v3730_v17  ;;  %v3768_v17 = vand.u32 2147483648, %v3725_v12  ;;  %v3775_v43 = vmul.f32 %v8502_v61, %v3774_v47 }
 0x95b   :  { %v5847_v14 = vpop.eup %5846 }
 0x95c   :  { %v3735_v58 = vsel %vm3734_vm2, %v5843_v2, %v3731_v1  ;;  %v3758_v3 = vmul.f32 %v5847_v14, %v3725_v12  ;;  %vm3763_vm5 = vweird.f32 %v5847_v14  ;;  %v3766_v2 = vand.u32 2147483647, %v3725_v12 }
 0x95d   :  { %v3740_v29 = vsel %vm3737_vm3, %v3739_v44, %v3735_v58  ;;  %v3751_v44 = vand.u32 2147483647, %v8491_v42  ;;  %vm3764_vm9 = vmor %vm3762_vm8, %vm3763_vm5  ;;  %v3776_v39 = vadd.f32 %v8502_v61, %v3775_v43  ;;  %v3783_v12 = vand.u32 2147483648, %v8495_v6 }
 0x95e   :  { %v3789_v7 = vmul.f32 %v3787_v5, %v3740_v29  ;;  %v3759_v36 = vsub.f32 1.0, %v3758_v3  ;;  %vm3767_vm10 = vcmp.eq.f32.partialorder %v3766_v2, 8.507059e+37  ;;  %v3781_v5 = vand.u32 2147483647, %v8495_v6 }
 0x95f   :  { %vm3752_vm11 = vcmp.eq.f32.partialorder %v3751_v44, 8.507059e+37  ;;  %v3780_v58 = vsel %vm3779_vm14, %v8502_v61, %v3776_v39  ;;  %v3784_v3 = vor.u32 1.1754944e-38, %v3783_v12  ;;  %v9851_v39 = vld [vmem:[#allocation10_spill] sm:$0xff]  ;;  %v9854_v12 = vld [vmem:[#allocation112_spill] sm:$0xff] }
 0x960   :  { %v3791_v8 = vadd.f32 %v3789_v7, %v3703_v38  ;;  %v3760_v45 = vmul.f32 %v5847_v14, %v3759_v36  ;;  %v3750_v7 = vsel %vm8515_vm7, %v8497_v15, %v3746_v10  ;;  %v3704_v36 = vpop.f32.mrf.mxu1  ;;  %v3769_v38 = vor.u32 1.1754944e-38, %v3768_v17 }
 0x961   :  { %v3705_v22 = vadd.f32 %v3704_v36, %v7474_v25  ;;  %vm3782_vm15 = vcmp.eq.f32.partialorder %v3781_v5, 8.507059e+37  ;;  %v9846_v36 = vld [vmem:[#allocation99_spill] sm:$0xff]  ;;  %v9857_v5 = vld [vmem:[#allocation13_spill] sm:$0xff] }
 0x962   :  { %5848 = vtanh.f32 %v3791_v8  ;;  %v3761_v60 = vadd.f32 %v5847_v14, %v3760_v45  ;;  %v3755_v45 = vsel %vm3752_vm11, %v3754_v30, %v3750_v7  ;;  %v3785_v47 = vsel %vm3782_vm15, %v3784_v3, %v3780_v58  ;;  %v9849_v30 = vld [vmem:[#allocation104_spill] sm:$0xff]  ;;  %v9861_v58 = vld [vmem:[#allocation15_spill] sm:$0xff]  ;;  %v9862_v3 = vld [vmem:[#allocation129_spill] sm:$0xff] }
 0x963   :  { %v3799_v10 = vmul.f32 %v3755_v45, %v8328_v59  ;;  %v3796_v48 = vsub.f32 1.0, %v3785_v47  ;;  %v3800_v2 = vmul.f32 %v3785_v47, %v8333_v53  ;;  %v9844_v59 = vld [vmem:[#allocation94_spill] sm:$0xff]  ;;  %v9845_v53 = vld [vmem:[#allocation95_spill] sm:$0xff] }
 0x964   :  { %v3765_v42 = vsel %vm3764_vm9, %v5847_v14, %v3761_v60  ;;  %v3795_v14 = vsub.f32 1.0, %v3755_v45  ;;  %v9853_v45 = vld [vmem:[#allocation11_spill] sm:$0xff] }
 0x965   :  { %v3770_v1 = vsel %vm3767_vm10, %v3769_v38, %v3765_v42  ;;  %v9847_v38 = vld [vmem:[#allocation100_spill] sm:$0xff]  ;;  %v9850_v42 = vld [vmem:[#allocation106_spill] sm:$0xff]  ;;  %v9864_v47 = vld [vmem:[#allocation135_spill] sm:$0xff] }
 0x966   :  { %v3790_v15 = vmul.f32 %v3788_v57, %v3770_v1  ;;  %v9848_v57 = vld [vmem:[#allocation103_spill] sm:$0xff]  ;;  %v9852_v1 = vld [vmem:[#allocation109_spill] sm:$0xff] }
 0x968   :  { %v5849_v40 = vpop.eup %5848  ;;  %v3792_v56 = vadd.f32 %v3790_v15, %v3705_v22  ;;  %v9855_v22 = vld [vmem:[#allocation12_spill] sm:$0xff] }
 0x969   :  { %v3797_v29 = vmul.f32 %v5849_v40, %v3795_v14  ;;  %v9856_v15 = vld [vmem:[#allocation116_spill] sm:$0xff]  ;;  %v9858_v40 = vld [vmem:[#allocation119_spill] sm:$0xff]  ;;  %v9860_v14 = vld [vmem:[#allocation125_spill] sm:$0xff] }
 0x96a   :  { %5850 = vtanh.f32 %v3792_v56  ;;  %v9859_v56 = vld [vmem:[#allocation14_spill] sm:$0xff] }
 0x96b   :  { %v8531_v17 = vadd.f32 %v3799_v10, %v3797_v29  ;;  %v9863_v29 = vld [vmem:[#allocation16_spill] sm:$0xff]  ;;  %v9865_v10 = vld [vmem:[#allocation17_spill] sm:$0xff] }
 0x96d   :  { %v3803_v43 = vpack.c.bf16 %v8531_v17, %v8531_v17 }
 0x96f   :  { %v3807_v50 = vunpack.c.l.b16 %v3803_v43  ;;  %v9870_v43 = vld [vmem:[#allocation36_spill] sm:$0xff] }
 0x970   :  { %v5851_v8 = vpop.eup %5850 }
 0x971   :  { %v3798_v6 = vmul.f32 %v5851_v8, %v3796_v48  ;;  %v9866_v48 = vld [vmem:[#allocation34_spill] sm:$0xff]  ;;  %v9867_v8 = vld [vmem:[#allocation19_spill] sm:$0xff] }
 0x973   :  { %v8534_v44 = vadd.f32 %v3800_v2, %v3798_v6  ;;  %v9868_v2 = vld [vmem:[#allocation35_spill] sm:$0xff]  ;;  %v9869_v6 = vld [vmem:[#allocation22_spill] sm:$0xff] }
 0x975   :  { %v3804_v61 = vpack.c.bf16 %v8534_v44, %v8534_v44 }
 0x977   :  { %v3808_v60 = vunpack.c.l.b16 %v3804_v61  ;;  %v9871_v61 = vld [vmem:[#allocation25_spill] sm:$0xff] }
 0x979   :  { %v3809_v7 = vpack.c.b16 %v3808_v60, %v3807_v50  ;;  %v9872_v50 = vld [vmem:[#allocation39_spill] sm:$0xff]  ;;  %v9873_v60 = vld [vmem:[#allocation30_spill] sm:$0xff] }
 0x97b   :  { %3833 = vmatmul.bf16.vlgmr.msrb.gmra.mxu3 %v3809_v7  ;;  %3861 = vmatmul.bf16.vlgmr.msrb.gmra.mxu1 %v3809_v7 }
 0x97c   :  { %3937 = vmatpush.bf16.msrb.mxu3 %v9328_v52  ;;  %3965 = vmatpush.bf16.msrb.mxu1 %v9329_v19 }
 0x980   :  { %3938 = vmatpush.bf16.msrb.mxu3 %v9330_v27  ;;  %3966 = vmatpush.bf16.msrb.mxu1 %v9429_v33 }
 0x984   :  { %3939 = vmatpush.bf16.msrb.mxu3 %v9430_v54  ;;  %3967 = vmatpush.bf16.msrb.mxu1 %v9431_v20 }
 0x988   :  { %3940 = vmatpush.bf16.msrb.mxu3 %v9637_v51  ;;  %3968 = vmatpush.bf16.msrb.mxu1 %v9638_v16 }
 0x98b   :  { %3889 = vmatmul.bf16.vlgmr.msra.gmra.mxu3 %v3809_v7  ;;  %3917 = vmatmul.bf16.vlgmr.msra.gmra.mxu1 %v3809_v7 }
 0x98c   :  { %3941 = vmatpush.bf16.msrb.mxu3 %v9639_v49  ;;  %3969 = vmatpush.bf16.msrb.mxu1 %v9741_v0 }
 0x990   :  { %3942 = vmatpush.bf16.msrb.mxu3 %v9844_v59  ;;  %3970 = vmatpush.bf16.msrb.mxu1 %v9845_v53 }
 0x994   :  { %3943 = vmatpush.bf16.msrb.mxu3 %v9846_v36  ;;  %3971 = vmatpush.bf16.msrb.mxu1 %v9847_v38 }
 0x998   :  { %3944 = vmatpush.bf16.msrb.mxu3 %v9848_v57  ;;  %3972 = vmatpush.bf16.msrb.mxu1 %v9849_v30 }
 0x99b   :  { %3945 = vmatmul.bf16.vlgmr.msrb.gmra.mxu3 %v3809_v7  ;;  %3973 = vmatmul.bf16.vlgmr.msrb.gmra.mxu1 %v3809_v7  ;;  %v9874_v7 = vld [vmem:[#allocation40_spill] sm:$0xff] }
 0x99c   :  { %4104 = vmatpush.bf16.msra.mxu3 %v9850_v42  ;;  %4236 = vmatpush.bf16.msra.mxu1 %v9851_v39  ;;  %v9875_v39 = vld [vmem:[#allocation37_spill] sm:$0xff] }
 0x9a0   :  { %4105 = vmatpush.bf16.msra.mxu3 %v9852_v1  ;;  %4237 = vmatpush.bf16.msra.mxu1 %v9853_v45  ;;  %v9876_v45 = vld [vmem:[#allocation41_spill] sm:$0xff] }
 0x9a4   :  { %4106 = vmatpush.bf16.msra.mxu3 %v9854_v12  ;;  %4238 = vmatpush.bf16.msra.mxu1 %v9855_v22  ;;  %v9877_v22 = vld [vmem:[#allocation43_spill] sm:$0xff] }
 0x9a8   :  { %4107 = vmatpush.bf16.msra.mxu3 %v9856_v15  ;;  %4239 = vmatpush.bf16.msra.mxu1 %v9857_v5  ;;  %v9878_v5 = vld [vmem:[#allocation42_spill] sm:$0xff] }
 0x9ac   :  { %4108 = vmatpush.bf16.msra.mxu3 %v9858_v40  ;;  %4240 = vmatpush.bf16.msra.mxu1 %v9859_v56  ;;  %v9879_v56 = vld [vmem:[#allocation50_spill] sm:$0xff] }
 0x9b0   :  { %4109 = vmatpush.bf16.msra.mxu3 %v9860_v14  ;;  %4241 = vmatpush.bf16.msra.mxu1 %v9861_v58  ;;  %v9880_v58 = vld [vmem:[#allocation45_spill] sm:$0xff] }
 0x9b4   :  { %4110 = vmatpush.bf16.msra.mxu3 %v9862_v3  ;;  %4242 = vmatpush.bf16.msra.mxu1 %v9863_v29  ;;  %v9881_v29 = vld [vmem:[#allocation56_spill] sm:$0xff] }
 0x9b8   :  { %4111 = vmatpush.bf16.msra.mxu3 %v9864_v47  ;;  %4243 = vmatpush.bf16.msra.mxu1 %v9865_v10  ;;  %v3848_v10 = vpop.f32.mrf.mxu0 }
 0x9bc   :  { %4264 = vmatpush.bf16.msrb.mxu3 %v9866_v48  ;;  %4292 = vmatpush.bf16.msrb.mxu1 %v9867_v8  ;;  %v9882_v8 = vld [vmem:[#allocation124_spill] sm:$0xff] }
 0x9c0   :  { %4265 = vmatpush.bf16.msrb.mxu3 %v9868_v2  ;;  %4293 = vmatpush.bf16.msrb.mxu1 %v9869_v6  ;;  %v9883_v2 = vld [vmem:[#allocation130_spill] sm:$0xff] }
 0x9c1   :  { %v404_v6 = vadd.f32 %v9883_v2, %v9882_v8 }
 0x9c4   :  { %4266 = vmatpush.bf16.msrb.mxu3 %v9870_v43  ;;  %4294 = vmatpush.bf16.msrb.mxu1 %v9871_v61 }
 0x9c8   :  { %4267 = vmatpush.bf16.msrb.mxu3 %v9872_v50  ;;  %4295 = vmatpush.bf16.msrb.mxu1 %v9873_v60  ;;  %v3820_v50 = vpop.f32.mrf.mxu2 }
 0x9cc   :  { %4268 = vmatpush.bf16.msrb.mxu3 %v9874_v7  ;;  %4296 = vmatpush.bf16.msrb.mxu1 %v9875_v39  ;;  %v9884_v39 = vld [vmem:[#allocation110_spill] sm:$0xff] }
 0x9d0   :  { %4269 = vmatpush.bf16.msrb.mxu3 %v9876_v45  ;;  %4297 = vmatpush.bf16.msrb.mxu1 %v9877_v22  ;;  %v9885_v45 = vld [vmem:[#allocation128_spill] sm:$0xff] }
 0x9d1   :  { %v355_v22 = vadd.f32 %v9885_v45, %v9884_v39 }
 0x9d4   :  { %4270 = vmatpush.bf16.msrb.mxu3 %v9878_v5  ;;  %4298 = vmatpush.bf16.msrb.mxu1 %v9879_v56  ;;  %v3850_v56 = vpop.f32.mrf.mxu0 }
 0x9d8   :  { %4271 = vmatpush.bf16.msrb.mxu3 %v9880_v58  ;;  %4299 = vmatpush.bf16.msrb.mxu1 %v9881_v29  ;;  %v9886_v58 = vld [vmem:[#allocation139_spill] sm:$0xff] }
 0x9d9   :  { %v406_v29 = vadd.f32 %v9886_v58, %v9882_v8 }
 0x9f8   :  { %v3862_v48 = vpop.f32.mrf.mxu1 }
 0x9f9   :  { %v3863_v43 = vadd.f32 %v3862_v48, %v3848_v10  ;;  %v3822_v48 = vpop.f32.mrf.mxu2 }
 0x9fb   :  { %v3987_v61 = vadd.f32 %v3863_v43, %v404_v6 }
 0x9fd   :  { %v5394_v60 = vmul.f32 -1.442695, %v3987_v61  ;;  %v9887_v61 = vld [vmem:[#allocation137_spill] sm:$0xff] }
 0x9fe   :  { %v3834_v7 = vpop.f32.mrf.mxu3 }
 0x9ff   :  { %5852 = vpow2.f32 %v5394_v60  ;;  %v3835_v5 = vadd.f32 %v3834_v7, %v3820_v50  ;;  %v357_v60 = vadd.f32 %v9887_v61, %v9884_v39 }
 0xa00   :  { %v3864_v47 = vpop.f32.mrf.mxu1 }
 0xa01   :  { %v3986_v3 = vadd.f32 %v3835_v5, %v355_v22  ;;  %v3865_v14 = vadd.f32 %v3864_v47, %v3850_v56 }
 0xa03   :  { %v5393_v40 = vmul.f32 -1.442695, %v3986_v3  ;;  %v3989_v15 = vadd.f32 %v3865_v14, %v406_v29 }
 0xa05   :  { %v5853_v2 = vpop.eup %5852  ;;  %5854 = vpow2.f32 %v5393_v40  ;;  %v5396_v10 = vmul.f32 -1.442695, %v3989_v15 }
 0xa06   :  { %v8594_v6 = vadd.f32 1.0, %v5853_v2  ;;  %v3836_v43 = vpop.f32.mrf.mxu3 }
 0xa07   :  { %5856 = vpow2.f32 %v5396_v10  ;;  %v3837_v50 = vadd.f32 %v3836_v43, %v3822_v48  ;;  %v3876_v10 = vpop.f32.mrf.mxu2 }
 0xa08   :  { %5858 = vrcp.f32 %v8594_v6  ;;  %vm4026_vm5 = vweird.f32 %v8594_v6  ;;  %v4030_v42 = vand.u32 2147483647, %v8594_v6 }
 0xa09   :  { %v3988_v7 = vadd.f32 %v3837_v50, %v357_v60 }
 0xa0a   :  { %vm4031_vm9 = vcmp.eq.f32.partialorder %v4030_v42, 8.507059e+37 }
 0xa0b   :  { %v5855_v45 = vpop.eup %5854  ;;  %v5395_v22 = vmul.f32 -1.442695, %v3988_v7 }
 0xa0c   :  { %v4002_v47 = vadd.f32 1.0, %v5855_v45 }
 0xa0d   :  { %v5857_v3 = vpop.eup %5856  ;;  %5860 = vpow2.f32 %v5395_v22 }
 0xa0e   :  { %5862 = vrcp.f32 %v4002_v47  ;;  %v8599_v40 = vadd.f32 1.0, %v5857_v3  ;;  %v5859_v15 = vpop.eup %5858  ;;  %v3890_v29 = vpop.f32.mrf.mxu3  ;;  %v4017_v60 = vand.u32 2147483648, %v4002_v47  ;;  %v4015_v45 = vand.u32 2147483647, %v4002_v47 }
 0xa0f   :  { %v4022_v14 = vmul.f32 %v5859_v15, %v8594_v6  ;;  %v3891_v50 = vadd.f32 %v3890_v29, %v3876_v10  ;;  %vm4011_vm1 = vweird.f32 %v4002_v47  ;;  %vm4027_vm4 = vweird.f32 %v5859_v15 }
 0xa10   :  { %5864 = vrcp.f32 %v8599_v40  ;;  %v4018_v8 = vor.u32 1.1754944e-38, %v4017_v60  ;;  %vm4016_vm3 = vcmp.eq.f32.partialorder %v4015_v45, 8.507059e+37  ;;  %v4032_v60 = vand.u32 2147483648, %v8594_v6  ;;  %v3878_v45 = vpop.f32.mrf.mxu2  ;;  %vm4028_vm6 = vmor %vm4026_vm5, %vm4027_vm4 }
 0xa11   :  { %v4023_v48 = vsub.f32 1.0, %v4022_v14  ;;  %v8610_v14 = vld [vmem:[%s8842_s4] ss:$0 sm:$0xff]  ;;  %vm4056_vm13 = vweird.f32 %v8599_v40  ;;  %v4060_v42 = vand.u32 2147483647, %v8599_v40 }
 0xa12   :  { %v4066_v29 = vadd.f32 %v8610_v14, %v3891_v50 }
 0xa13   :  { %v5861_v5 = vpop.eup %5860  ;;  %v4024_v22 = vmul.f32 %v5859_v15, %v4023_v48  ;;  %vm4061_vm15 = vcmp.eq.f32.partialorder %v4060_v42, 8.507059e+37  ;;  %v9916_v42 = vld [vmem:[#allocation150_spill] sm:$0xff] }
 0xa14   :  { %v5863_v56 = vpop.eup %5862  ;;  %v4004_v58 = vadd.f32 1.0, %v5861_v5 }
 0xa15   :  { %v4007_v2 = vmul.f32 %v5863_v56, %v4002_v47  ;;  %vm4012_vm0 = vweird.f32 %v5863_v56  ;;  %v4025_v10 = vadd.f32 %v5859_v15, %v4024_v22  ;;  %v9888_v47 = vld [vmem:[#allocation26_spill] sm:$0xff] }
 0xa16   :  { %5866 = vrcp.f32 %v4004_v58  ;;  %v8603_v43 = vpop.eup %5864  ;;  %vm4013_vm2 = vmor %vm4011_vm1, %vm4012_vm0  ;;  %v3892_v1 = vpop.f32.mrf.mxu3  ;;  %v4045_v30 = vand.u32 2147483647, %v4004_v58  ;;  %v4047_v50 = vand.u32 2147483648, %v4004_v58  ;;  %vm4041_vm8 = vweird.f32 %v4004_v58 }
 0xa17   :  { %v4008_v61 = vsub.f32 1.0, %v4007_v2  ;;  %v4052_v3 = vmul.f32 %v8603_v43, %v8599_v40  ;;  %v3893_v57 = vadd.f32 %v3892_v1, %v3878_v45  ;;  %vm4057_vm12 = vweird.f32 %v8603_v43 }
 0xa18   :  { %vm4046_vm11 = vcmp.eq.f32.partialorder %v4045_v30, 8.507059e+37  ;;  %vm4058_vm14 = vmor %vm4056_vm13, %vm4057_vm12 }
 0xa19   :  { %v4009_v7 = vmul.f32 %v5863_v56, %v4008_v61  ;;  %v4053_v48 = vsub.f32 1.0, %v4052_v3  ;;  %v4067_v6 = vadd.f32 %v8610_v14, %v3893_v57 }
 0xa1b   :  { %v4010_v39 = vadd.f32 %v5863_v56, %v4009_v7  ;;  %v453_v7 = vadd.f32 %v9888_v47, %v7243_v63  ;;  %v4033_v47 = vor.u32 1.1754944e-38, %v4032_v60 }
 0xa1c   :  { %v5867_v5 = vpop.eup %5866 }
 0xa1d   :  { %v4014_v12 = vsel %vm4013_vm2, %v5863_v56, %v4010_v39  ;;  %v4037_v2 = vmul.f32 %v5867_v5, %v4004_v58  ;;  %vm4042_vm7 = vweird.f32 %v5867_v5 }
 0xa1e   :  { %v4019_v61 = vsel %vm4016_vm3, %v4018_v8, %v4014_v12  ;;  %v4054_v12 = vmul.f32 %v8603_v43, %v4053_v48  ;;  %v4029_v8 = vsel %vm4028_vm6, %v5859_v15, %v4025_v10  ;;  %vm4043_vm10 = vmor %vm4041_vm8, %vm4042_vm7  ;;  %v9889_v48 = vld [vmem:[#allocation63_spill] sm:$0xff]  ;;  %v4062_v10 = vand.u32 2147483648, %v8599_v40 }
 0xa1f   :  { %v4068_v39 = vmul.f32 %v4066_v29, %v4019_v61  ;;  %v4038_v56 = vsub.f32 1.0, %v4037_v2  ;;  %v4048_v29 = vor.u32 1.1754944e-38, %v4047_v50  ;;  %v4034_v2 = vsel %vm4031_vm9, %v4033_v47, %v4029_v8 }
 0xa20   :  { %v455_v15 = vadd.f32 %v9889_v48, %v7243_v63  ;;  %v4074_v58 = vsub.f32 1.0, %v4034_v2  ;;  %v9912_v48 = vld [vmem:[#allocation144_spill] sm:$0xff] }
 0xa21   :  { %v4070_v22 = vadd.f32 %v4068_v39, %v453_v7  ;;  %v4039_v3 = vmul.f32 %v5867_v5, %v4038_v56  ;;  %v4055_v7 = vadd.f32 %v8603_v43, %v4054_v12  ;;  %v4063_v56 = vor.u32 1.1754944e-38, %v4062_v10  ;;  %v9914_v10 = vld [vmem:[#allocation146_spill] sm:$0xff] }
 0xa23   :  { %5868 = vtanh.f32 %v4070_v22  ;;  %v4040_v38 = vadd.f32 %v5867_v5, %v4039_v3  ;;  %v4059_v39 = vsel %vm4058_vm14, %v8603_v43, %v4055_v7  ;;  %v9910_v7 = vld [vmem:[#allocation140_spill] sm:$0xff] }
 0xa24   :  { %v4064_v50 = vsel %vm4061_vm15, %v4063_v56, %v4059_v39  ;;  %v9922_v39 = vld [vmem:[#allocation138_spill] sm:$0xff]  ;;  %v9923_v56 = vld [vmem:[#allocation141_spill] sm:$0xff] }
 0xa25   :  { %v4044_v61 = vsel %vm4043_vm10, %v5867_v5, %v4040_v38  ;;  %v4078_v5 = vmul.f32 %v4034_v2, %v8407_v35  ;;  %v4075_v22 = vsub.f32 1.0, %v4064_v50  ;;  %v4079_v40 = vmul.f32 %v4064_v50, %v8412_v62  ;;  %v9907_v62 = vld [vmem:[#allocation108_spill] sm:$0xff]  ;;  %v9924_v50 = vld [vmem:[#allocation145_spill] sm:$0xff] }
 0xa26   :  { %v4049_v1 = vsel %vm4046_vm11, %v4048_v29, %v4044_v61  ;;  %v9908_v61 = vld [vmem:[#allocation136_spill] sm:$0xff] }
 0xa27   :  { %v4069_v60 = vmul.f32 %v4067_v6, %v4049_v1  ;;  %v9909_v6 = vld [vmem:[#allocation111_spill] sm:$0xff] }
 0xa28   :  { %v9911_v1 = vld [vmem:[#allocation115_spill] sm:$0xff] }
 0xa29   :  { %v5869_v38 = vpop.eup %5868  ;;  %v4071_v30 = vadd.f32 %v4069_v60, %v455_v15  ;;  %v9913_v15 = vld [vmem:[#allocation118_spill] sm:$0xff]  ;;  %v9915_v60 = vld [vmem:[#allocation123_spill] sm:$0xff] }
 0xa2a   :  { %v4076_v57 = vmul.f32 %v5869_v38, %v4074_v58  ;;  %v9917_v58 = vld [vmem:[#allocation127_spill] sm:$0xff]  ;;  %v9918_v38 = vld [vmem:[#allocation152_spill] sm:$0xff] }
 0xa2b   :  { %5870 = vtanh.f32 %v4071_v30  ;;  %v9919_v30 = vld [vmem:[#allocation132_spill] sm:$0xff] }
 0xa2c   :  { %v8629_v45 = vadd.f32 %v4078_v5, %v4076_v57  ;;  %v9920_v57 = vld [vmem:[#allocation134_spill] sm:$0xff] }
 0xa2d   :  { %v9921_v5 = vld [vmem:[#allocation154_spill] sm:$0xff] }
 0xa2e   :  { %v4082_v8 = vpack.c.bf16 %v8629_v45, %v8629_v45 }
 0xa30   :  { %v4086_v43 = vunpack.c.l.b16 %v4082_v8  ;;  %v3932_v8 = vpop.f32.mrf.mxu2 }
 0xa31   :  { %v5871_v3 = vpop.eup %5870 }
 0xa32   :  { %v4077_v12 = vmul.f32 %v5871_v3, %v4075_v22  ;;  %v9925_v22 = vld [vmem:[#allocation147_spill] sm:$0xff] }
 0xa33   :  { %v9926_v3 = vld [vmem:[#allocation151_spill] sm:$0xff] }
 0xa34   :  { %v8634_v47 = vadd.f32 %v4079_v40, %v4077_v12  ;;  %v9927_v12 = vld [vmem:[#allocation153_spill] sm:$0xff]  ;;  %v9928_v40 = vld [vmem:[#allocation155_spill] sm:$0xff] }
 0xa36   :  { %v4083_v35 = vpack.c.bf16 %v8634_v47, %v8634_v47 }
 0xa38   :  { %v4087_v29 = vunpack.c.l.b16 %v4083_v35  ;;  %v3946_v35 = vpop.f32.mrf.mxu3 }
 0xa3a   :  { %v4088_v2 = vpack.c.b16 %v4087_v29, %v4086_v43  ;;  %v3904_v43 = vpop.f32.mrf.mxu0  ;;  %v3934_v29 = vpop.f32.mrf.mxu2 }
 0xa3c   :  { %4098 = vmatmul.bf16.vlgmr.msrb.gmra.mxu2 %v4088_v2  ;;  %4112 = vmatmul.bf16.vlgmr.msra.gmra.mxu3 %v4088_v2 }
 0xa3d   :  { %4126 = vmatmul.bf16.vlgmr.msra.gmra.mxu0 %v4088_v2  ;;  %4244 = vmatmul.bf16.vlgmr.msra.gmra.mxu1 %v4088_v2 }
 0xa3e   :  { %4320 = vmatpush.bf16.msra.mxu3 %v9273_v31  ;;  %4348 = vmatpush.bf16.msra.mxu1 %v6909_v23  ;;  %v9890_v23 = vld [vmem:[#allocation117_spill] sm:$0xff] }
 0xa3f   :  { %4306 = vmatpush.bf16.msrb.mxu2 %v9275_v4  ;;  %4334 = vmatpush.bf16.msra.mxu0 %v9276_v13  ;;  %v9893_v31 = vld [vmem:[#allocation93_spill] sm:$0xff]  ;;  %v9894_v4 = vld [vmem:[#allocation122_spill] sm:$0xff]  ;;  %v9895_v13 = vld [vmem:[#allocation44_spill] sm:$0xff] }
 0xa42   :  { %4321 = vmatpush.bf16.msra.mxu3 %v9277_v24  ;;  %4349 = vmatpush.bf16.msra.mxu1 %v6952_v37  ;;  %v9891_v37 = vld [vmem:[#allocation38_spill] sm:$0xff]  ;;  %v9897_v24 = vld [vmem:[#allocation97_spill] sm:$0xff] }
 0xa43   :  { %4307 = vmatpush.bf16.msrb.mxu2 %v9278_v18  ;;  %4335 = vmatpush.bf16.msra.mxu0 %v9279_v11  ;;  %v9898_v18 = vld [vmem:[#allocation126_spill] sm:$0xff]  ;;  %v9899_v11 = vld [vmem:[#allocation51_spill] sm:$0xff] }
 0xa46   :  { %4322 = vmatpush.bf16.msra.mxu3 %v9280_v26  ;;  %4350 = vmatpush.bf16.msra.mxu1 %v6986_v55  ;;  %v9892_v55 = vld [vmem:[#allocation68_spill] sm:$0xff]  ;;  %v9900_v26 = vld [vmem:[#allocation73_spill] sm:$0xff] }
 0xa47   :  { %4308 = vmatpush.bf16.msrb.mxu2 %v9281_v41  ;;  %4336 = vmatpush.bf16.msra.mxu0 %v9282_v32  ;;  %v9901_v41 = vld [vmem:[#allocation101_spill] sm:$0xff]  ;;  %v9902_v32 = vld [vmem:[#allocation131_spill] sm:$0xff] }
 0xa4a   :  { %4323 = vmatpush.bf16.msra.mxu3 %v9284_v21  ;;  %4351 = vmatpush.bf16.msra.mxu1 %v7018_v9  ;;  %v9896_v9 = vld [vmem:[#allocation72_spill] sm:$0xff]  ;;  %v9903_v21 = vld [vmem:[#allocation102_spill] sm:$0xff] }
 0xa4b   :  { %4309 = vmatpush.bf16.msrb.mxu2 %v9285_v28  ;;  %4337 = vmatpush.bf16.msra.mxu0 %v9286_v46  ;;  %v9904_v28 = vld [vmem:[#allocation57_spill] sm:$0xff]  ;;  %v9905_v46 = vld [vmem:[#allocation76_spill] sm:$0xff] }
 0xa4c   :  { %4272 = vmatmul.bf16.vlgmr.msrb.gmra.mxu3 %v4088_v2 }
 0xa4d   :  { %4300 = vmatmul.bf16.vlgmr.msrb.gmra.mxu1 %v4088_v2 }
 0xa4e   :  { %4324 = vmatpush.bf16.msra.mxu3 %v9287_v34  ;;  %4352 = vmatpush.bf16.msra.mxu1 %v9890_v23  ;;  %v9906_v34 = vld [vmem:[#allocation133_spill] sm:$0xff]  ;;  %v3948_v23 = vpop.f32.mrf.mxu3 }
 0xa4f   :  { %4310 = vmatpush.bf16.msrb.mxu2 %v9891_v37  ;;  %4338 = vmatpush.bf16.msra.mxu0 %v9892_v55 }
 0xa52   :  { %4325 = vmatpush.bf16.msra.mxu3 %v9893_v31  ;;  %4353 = vmatpush.bf16.msra.mxu1 %v9894_v4  ;;  %v3947_v4 = vadd.f32 %v3946_v35, %v3932_v8 }
 0xa53   :  { %4311 = vmatpush.bf16.msrb.mxu2 %v9895_v13  ;;  %4339 = vmatpush.bf16.msra.mxu0 %v9896_v9  ;;  %v9929_v13 = vld [vmem:[#allocation66_spill] sm:$0xff] }
 0xa56   :  { %4326 = vmatpush.bf16.msra.mxu3 %v9897_v24  ;;  %4354 = vmatpush.bf16.msra.mxu1 %v9898_v18  ;;  %v9930_v24 = vld [vmem:[#allocation89_spill] sm:$0xff] }
 0xa57   :  { %4312 = vmatpush.bf16.msrb.mxu2 %v9899_v11  ;;  %4340 = vmatpush.bf16.msra.mxu0 %v9900_v26  ;;  %v3906_v11 = vpop.f32.mrf.mxu0 }
 0xa5a   :  { %4327 = vmatpush.bf16.msra.mxu3 %v9901_v41  ;;  %4355 = vmatpush.bf16.msra.mxu1 %v9902_v32 }
 0xa5b   :  { %4313 = vmatpush.bf16.msrb.mxu2 %v9904_v28  ;;  %4341 = vmatpush.bf16.msra.mxu0 %v9905_v46 }
 0xa5d   :  { %4328 = vmatmul.bf16.vlgmr.msra.gmra.mxu3 %v4088_v2  ;;  %4356 = vmatmul.bf16.vlgmr.msra.gmra.mxu1 %v4088_v2 }
 0xa5e   :  { %4376 = vmatpush.bf16.msrb.mxu3 %v9903_v21  ;;  %4508 = vmatpush.bf16.msrb.mxu1 %v9906_v34 }
 0xa62   :  { %4377 = vmatpush.bf16.msrb.mxu3 %v9907_v62  ;;  %4509 = vmatpush.bf16.msrb.mxu1 %v9908_v61  ;;  %v3949_v61 = vadd.f32 %v3948_v23, %v3934_v29 }
 0xa66   :  { %4378 = vmatpush.bf16.msrb.mxu3 %v9909_v6  ;;  %4510 = vmatpush.bf16.msrb.mxu1 %v9910_v7 }
 0xa6a   :  { %4379 = vmatpush.bf16.msrb.mxu3 %v9911_v1  ;;  %4511 = vmatpush.bf16.msrb.mxu1 %v9912_v48  ;;  %v3960_v1 = vpop.f32.mrf.mxu0 }
 0xa6e   :  { %4380 = vmatpush.bf16.msrb.mxu3 %v9913_v15  ;;  %4512 = vmatpush.bf16.msrb.mxu1 %v9914_v10 }
 0xa72   :  { %4381 = vmatpush.bf16.msrb.mxu3 %v9915_v60  ;;  %4513 = vmatpush.bf16.msrb.mxu1 %v9916_v42 }
 0xa76   :  { %4382 = vmatpush.bf16.msrb.mxu3 %v9917_v58  ;;  %4514 = vmatpush.bf16.msrb.mxu1 %v9918_v38 }
 0xa7a   :  { %4383 = vmatpush.bf16.msrb.mxu3 %v9919_v30  ;;  %4515 = vmatpush.bf16.msrb.mxu1 %v9921_v5  ;;  %v3962_v5 = vpop.f32.mrf.mxu0 }
 0xa7d   :  { %4384 = vmatmul.bf16.vlgmr.msrb.gmra.mxu3 %v4088_v2  ;;  %v3918_v2 = vpop.f32.mrf.mxu1 }
 0xa7e   :  { %4536 = vmatpush.bf16.msra.mxu3 %v9920_v57  ;;  %v3919_v31 = vadd.f32 %v3918_v2, %v3904_v43 }
 0xa82   :  { %4537 = vmatpush.bf16.msra.mxu3 %v9922_v39 }
 0xa85   :  { %v3920_v28 = vpop.f32.mrf.mxu1 }
 0xa86   :  { %4538 = vmatpush.bf16.msra.mxu3 %v9923_v56  ;;  %v3921_v62 = vadd.f32 %v3920_v28, %v3906_v11 }
 0xa8a   :  { %4539 = vmatpush.bf16.msra.mxu3 %v9924_v50 }
 0xa8d   :  { %v3974_v57 = vpop.f32.mrf.mxu1 }
 0xa8e   :  { %4540 = vmatpush.bf16.msra.mxu3 %v9925_v22  ;;  %v3975_v43 = vadd.f32 %v3974_v57, %v3960_v1  ;;  %v9946_v57 = vld [vmem:[#allocation110_spill] sm:$0xff] }
 0xa92   :  { %4541 = vmatpush.bf16.msra.mxu3 %v9926_v3 }
 0xa96   :  { %4542 = vmatpush.bf16.msra.mxu3 %v9927_v12 }
 0xa9a   :  { %4543 = vmatpush.bf16.msra.mxu3 %v9928_v40 }
 0xabf   :  { %v4099_v37 = vpop.f32.mrf.mxu2  ;;  %v4113_v55 = vpop.f32.mrf.mxu3 }
 0xac0   :  { %v4100_v9 = vadd.f32 %v4099_v37, %v9929_v13  ;;  %v4114_v18 = vadd.f32 %v4113_v55, %v9930_v24  ;;  %v4127_v55 = vpop.f32.mrf.mxu0 }
 0xac2   :  { %v4132_v26 = vadd.f32 %v4100_v9, %v3919_v31  ;;  %v4133_v41 = vadd.f32 %v4114_v18, %v3947_v4  ;;  %v3976_v31 = vpop.f32.mrf.mxu1 }
 0xac3   :  { %v3977_v28 = vadd.f32 %v3976_v31, %v3962_v5 }
 0xac4   :  { %v5397_v32 = vmul.f32 -1.442695, %v4132_v26  ;;  %v5398_v21 = vmul.f32 -1.442695, %v4133_v41  ;;  %v8712_v26 = vld [vmem:[%s8845_s7] ss:$0 sm:$0xff] }
 0xac5   :  { %v4212_v41 = vadd.f32 %v8712_v26, %v3975_v43 }
 0xac6   :  { %5872 = vpow2.f32 %v5397_v32 }
 0xac7   :  { %5874 = vpow2.f32 %v5398_v21  ;;  %v4101_v46 = vpop.f32.mrf.mxu2  ;;  %v4115_v34 = vpop.f32.mrf.mxu3 }
 0xac8   :  { %v4102_v6 = vadd.f32 %v4101_v46, %v9929_v13  ;;  %v4116_v7 = vadd.f32 %v4115_v34, %v9930_v24 }
 0xaca   :  { %v4134_v48 = vadd.f32 %v4102_v6, %v3921_v62  ;;  %v4135_v15 = vadd.f32 %v4116_v7, %v3949_v61  ;;  %v4128_v62 = vadd.f32 %v4127_v55, %v7474_v25 }
 0xacc   :  { %v5873_v10 = vpop.eup %5872  ;;  %v5399_v60 = vmul.f32 -1.442695, %v4134_v48  ;;  %v5400_v38 = vmul.f32 -1.442695, %v4135_v15 }
 0xacd   :  { %v5875_v42 = vpop.eup %5874  ;;  %v4148_v58 = vadd.f32 1.0, %v5873_v10 }
 0xace   :  { %v8698_v30 = vadd.f32 1.0, %v5875_v42  ;;  %5876 = vpow2.f32 %v5399_v60 }
 0xacf   :  { %5878 = vrcp.f32 %v4148_v58  ;;  %v4163_v29 = vand.u32 2147483648, %v4148_v58  ;;  %v4161_v37 = vand.u32 2147483647, %v4148_v58  ;;  %vm4157_vm1 = vweird.f32 %v4148_v58 }
 0xad0   :  { %5880 = vrcp.f32 %v8698_v30  ;;  %v4178_v6 = vand.u32 2147483648, %v8698_v30  ;;  %vm4172_vm6 = vweird.f32 %v8698_v30 }
 0xad1   :  { %5882 = vpow2.f32 %v5400_v38  ;;  %v4164_v18 = vor.u32 1.1754944e-38, %v4163_v29  ;;  %vm4162_vm3 = vcmp.eq.f32.partialorder %v4161_v37, 8.507059e+37 }
 0xad4   :  { %v5877_v39 = vpop.eup %5876 }
 0xad5   :  { %v5879_v56 = vpop.eup %5878  ;;  %v4150_v50 = vadd.f32 1.0, %v5877_v39 }
 0xad6   :  { %v8701_v22 = vpop.eup %5880  ;;  %v4153_v3 = vmul.f32 %v5879_v56, %v4148_v58  ;;  %vm4158_vm0 = vweird.f32 %v5879_v56  ;;  %v4176_v58 = vand.u32 2147483647, %v8698_v30 }
 0xad7   :  { %v5883_v12 = vpop.eup %5882  ;;  %v4168_v40 = vmul.f32 %v8701_v22, %v8698_v30  ;;  %5884 = vrcp.f32 %v4150_v50  ;;  %vm4159_vm2 = vmor %vm4157_vm1, %vm4158_vm0  ;;  %vm4173_vm4 = vweird.f32 %v8701_v22  ;;  %v4193_v48 = vand.u32 2147483648, %v4150_v50 }
 0xad8   :  { %v4154_v8 = vsub.f32 1.0, %v4153_v3  ;;  %v8705_v35 = vadd.f32 1.0, %v5883_v12  ;;  %v4191_v42 = vand.u32 2147483647, %v4150_v50  ;;  %vm8722_vm7 = vmor %vm4172_vm6, %vm4173_vm4  ;;  %vm4187_vm8 = vweird.f32 %v4150_v50 }
 0xad9   :  { %v4169_v23 = vsub.f32 1.0, %v4168_v40  ;;  %v4194_v3 = vor.u32 1.1754944e-38, %v4193_v48  ;;  %v4213_v40 = vadd.f32 %v8712_v26, %v3977_v28  ;;  %vm4177_vm11 = vcmp.eq.f32.partialorder %v4176_v58, 8.507059e+37 }
 0xada   :  { %v4155_v2 = vmul.f32 %v5879_v56, %v4154_v8  ;;  %5886 = vrcp.f32 %v8705_v35  ;;  %v4179_v8 = vor.u32 1.1754944e-38, %v4178_v6  ;;  %vm4192_vm10 = vcmp.eq.f32.partialorder %v4191_v42, 8.507059e+37  ;;  %v4245_v42 = vpop.f32.mrf.mxu1 }
 0xadb   :  { %v4170_v11 = vmul.f32 %v8701_v22, %v4169_v23  ;;  %v4208_v37 = vand.u32 2147483648, %v8705_v35  ;;  %vm4202_vm13 = vweird.f32 %v8705_v35 }
 0xadc   :  { %v4156_v4 = vadd.f32 %v5879_v56, %v4155_v2 }
 0xadd   :  { %v5885_v9 = vpop.eup %5884  ;;  %v4171_v1 = vadd.f32 %v8701_v22, %v4170_v11 }
 0xade   :  { %v4160_v32 = vsel %vm4159_vm2, %v5879_v56, %v4156_v4  ;;  %v4183_v21 = vmul.f32 %v5885_v9, %v4150_v50  ;;  %vm4188_vm5 = vweird.f32 %v5885_v9  ;;  %v4129_v56 = vpop.f32.mrf.mxu0 }
 0xadf   :  { %v4165_v46 = vsel %vm4162_vm3, %v4164_v18, %v4160_v32  ;;  %v4175_v39 = vsel %vm8722_vm7, %v8701_v22, %v4171_v1  ;;  %vm4189_vm9 = vmor %vm4187_vm8, %vm4188_vm5  ;;  %v4130_v50 = vadd.f32 %v4129_v56, %v7474_v25  ;;  %v4206_v22 = vand.u32 2147483647, %v8705_v35 }
 0xae0   :  { %v5887_v34 = vpop.eup %5886  ;;  %v4214_v61 = vmul.f32 %v4212_v41, %v4165_v46  ;;  %v4184_v7 = vsub.f32 1.0, %v4183_v21  ;;  %v4180_v23 = vsel %vm4177_vm11, %v4179_v8, %v4175_v39  ;;  %v4209_v18 = vor.u32 1.1754944e-38, %v4208_v37 }
 0xae1   :  { %v4198_v15 = vmul.f32 %v5887_v34, %v8705_v35  ;;  %vm4203_vm12 = vweird.f32 %v5887_v34  ;;  %v4220_v4 = vsub.f32 1.0, %v4180_v23  ;;  %vm4207_vm15 = vcmp.eq.f32.partialorder %v4206_v22, 8.507059e+37 }
 0xae2   :  { %v4216_v10 = vadd.f32 %v4214_v61, %v4128_v62  ;;  %v4185_v60 = vmul.f32 %v5885_v9, %v4184_v7  ;;  %vm4204_vm14 = vmor %vm4202_vm13, %vm4203_vm12  ;;  %v4224_v32 = vmul.f32 %v4180_v23, %v8531_v17  ;;  %v9943_v17 = vld [vmem:[#allocation135_spill] sm:$0xff]  ;;  %v4247_v37 = vpop.f32.mrf.mxu1 }
 0xae3   :  { %v4199_v38 = vsub.f32 1.0, %v4198_v15 }
 0xae4   :  { %5888 = vtanh.f32 %v4216_v10  ;;  %v4186_v5 = vadd.f32 %v5885_v9, %v4185_v60 }
 0xae5   :  { %v4200_v12 = vmul.f32 %v5887_v34, %v4199_v38 }
 0xae6   :  { %v4190_v30 = vsel %vm4189_vm9, %v5885_v9, %v4186_v5  ;;  %v9947_v5 = vld [vmem:[#allocation142_spill] sm:$0xff] }
 0xae7   :  { %v4195_v43 = vsel %vm4192_vm10, %v4194_v3, %v4190_v30  ;;  %v4201_v29 = vadd.f32 %v5887_v34, %v4200_v12  ;;  %v360_v39 = vadd.f32 %v9947_v5, %v9946_v57 }
 0xae8   :  { %v4215_v2 = vmul.f32 %v4213_v40, %v4195_v43  ;;  %v9948_v40 = vld [vmem:[#allocation149_spill] sm:$0xff] }
 0xae9   :  { %v4205_v9 = vsel %vm4204_vm14, %v5887_v34, %v4201_v29 }
 0xaea   :  { %v5889_v55 = vpop.eup %5888  ;;  %v4217_v31 = vadd.f32 %v4215_v2, %v4130_v50  ;;  %v4210_v41 = vsel %vm4207_vm15, %v4209_v18, %v4205_v9 }
 0xaeb   :  { %v4222_v11 = vmul.f32 %v5889_v55, %v4220_v4  ;;  %v4221_v21 = vsub.f32 1.0, %v4210_v41  ;;  %v4225_v61 = vmul.f32 %v4210_v41, %v8534_v44  ;;  %v4273_v44 = vpop.f32.mrf.mxu3 }
 0xaec   :  { %5890 = vtanh.f32 %v4217_v31  ;;  %v9949_v31 = vld [vmem:[#allocation148_spill] sm:$0xff] }
 0xaed   :  { %v8735_v28 = vadd.f32 %v4224_v32, %v4222_v11  ;;  %v362_v4 = vadd.f32 %v9949_v31, %v9946_v57 }
 0xaef   :  { %v4228_v6 = vpack.c.bf16 %v8735_v28, %v8735_v28 }
 0xaf1   :  { %v4232_v7 = vunpack.c.l.b16 %v4228_v6 }
 0xaf2   :  { %v5891_v46 = vpop.eup %5890 }
 0xaf3   :  { %v4223_v62 = vmul.f32 %v5891_v46, %v4221_v21  ;;  %v4275_v3 = vpop.f32.mrf.mxu3 }
 0xaf5   :  { %v8738_v35 = vadd.f32 %v4225_v61, %v4223_v62 }
 0xaf7   :  { %v4229_v34 = vpack.c.bf16 %v8738_v35, %v8738_v35 }
 0xaf9   :  { %v4233_v1 = vunpack.c.l.b16 %v4229_v34 }
 0xafb   :  { %v4234_v48 = vpack.c.b16 %v4233_v1, %v4232_v7 }
 0xafd   :  { %4258 = vmatmul.bf16.vlgmr.msra.gmra.mxu2 %v4234_v48  ;;  %4286 = vmatmul.bf16.vlgmr.msrb.gmra.mxu0 %v4234_v48 }
 0xafe   :  { %4362 = vmatpush.bf16.msra.mxu2 %v9328_v52  ;;  %4390 = vmatpush.bf16.msrb.mxu0 %v9329_v19  ;;  %v9933_v52 = vld [vmem:[#allocation100_spill] sm:$0xff]  ;;  %v9934_v19 = vld [vmem:[#allocation103_spill] sm:$0xff] }
 0xb02   :  { %4363 = vmatpush.bf16.msra.mxu2 %v9330_v27  ;;  %4391 = vmatpush.bf16.msrb.mxu0 %v9429_v33  ;;  %v9935_v27 = vld [vmem:[#allocation104_spill] sm:$0xff]  ;;  %v9936_v33 = vld [vmem:[#allocation106_spill] sm:$0xff] }
 0xb06   :  { %4364 = vmatpush.bf16.msra.mxu2 %v9430_v54  ;;  %4392 = vmatpush.bf16.msrb.mxu0 %v9431_v20  ;;  %v9937_v54 = vld [vmem:[#allocation109_spill] sm:$0xff]  ;;  %v9938_v20 = vld [vmem:[#allocation112_spill] sm:$0xff] }
 0xb0a   :  { %4365 = vmatpush.bf16.msra.mxu2 %v9637_v51  ;;  %4393 = vmatpush.bf16.msrb.mxu0 %v9638_v16  ;;  %v9939_v51 = vld [vmem:[#allocation116_spill] sm:$0xff]  ;;  %v9940_v16 = vld [vmem:[#allocation119_spill] sm:$0xff] }
 0xb0d   :  { %4314 = vmatmul.bf16.vlgmr.msrb.gmra.mxu2 %v4234_v48  ;;  %4342 = vmatmul.bf16.vlgmr.msra.gmra.mxu0 %v4234_v48 }
 0xb0e   :  { %4366 = vmatpush.bf16.msra.mxu2 %v9639_v49  ;;  %4394 = vmatpush.bf16.msrb.mxu0 %v9741_v0  ;;  %v9941_v49 = vld [vmem:[#allocation125_spill] sm:$0xff] }
 0xb0f   :  { %v9942_v0 = vld [vmem:[#allocation129_spill] sm:$0xff] }
 0xb12   :  { %4367 = vmatpush.bf16.msra.mxu2 %v9844_v59  ;;  %4395 = vmatpush.bf16.msrb.mxu0 %v9845_v53  ;;  %v9944_v53 = vld [vmem:[#allocation124_spill] sm:$0xff] }
 0xb13   :  { %v411_v8 = vadd.f32 %v9948_v40, %v9944_v53 }
 0xb16   :  { %4368 = vmatpush.bf16.msra.mxu2 %v9846_v36  ;;  %4396 = vmatpush.bf16.msrb.mxu0 %v9933_v52  ;;  %v9945_v36 = vld [vmem:[#allocation143_spill] sm:$0xff]  ;;  %v4301_v52 = vpop.f32.mrf.mxu1 }
 0xb17   :  { %v409_v15 = vadd.f32 %v9945_v36, %v9944_v53 }
 0xb1a   :  { %4369 = vmatpush.bf16.msra.mxu2 %v9934_v19  ;;  %4397 = vmatpush.bf16.msrb.mxu0 %v9935_v27 }
 0xb1d   :  { %4370 = vmatmul.bf16.vlgmr.msra.gmra.mxu2 %v4234_v48  ;;  %4398 = vmatmul.bf16.vlgmr.msrb.gmra.mxu0 %v4234_v48 }
 0xb1e   :  { %4522 = vmatpush.bf16.msrb.mxu2 %v9936_v33 }
 0xb22   :  { %4523 = vmatpush.bf16.msrb.mxu2 %v9937_v54 }
 0xb26   :  { %4524 = vmatpush.bf16.msrb.mxu2 %v9938_v20 }
 0xb2a   :  { %4525 = vmatpush.bf16.msrb.mxu2 %v9939_v51 }
 0xb2e   :  { %4526 = vmatpush.bf16.msrb.mxu2 %v9940_v16 }
 0xb32   :  { %4527 = vmatpush.bf16.msrb.mxu2 %v9941_v49 }
 0xb36   :  { %4528 = vmatpush.bf16.msrb.mxu2 %v9942_v0 }
 0xb3a   :  { %4529 = vmatpush.bf16.msrb.mxu2 %v9943_v17 }
 0xb7a   :  { %v4287_v59 = vpop.f32.mrf.mxu0 }
 0xb7b   :  { %v4288_v10 = vadd.f32 %v4287_v59, %v4273_v44 }
 0xb7d   :  { %v4412_v60 = vadd.f32 %v4288_v10, %v409_v15 }
 0xb7f   :  { %v5402_v58 = vmul.f32 -1.442695, %v4412_v60 }
 0xb80   :  { %v4259_v38 = vpop.f32.mrf.mxu2 }
 0xb81   :  { %5892 = vpow2.f32 %v5402_v58  ;;  %v4260_v56 = vadd.f32 %v4259_v38, %v4245_v42  ;;  %v9950_v38 = vld [vmem:[#allocation78_spill] sm:$0xff] }
 0xb82   :  { %v4289_v12 = vpop.f32.mrf.mxu0  ;;  %v458_v57 = vadd.f32 %v9950_v38, %v7243_v63 }
 0xb83   :  { %v4411_v30 = vadd.f32 %v4260_v56, %v360_v39  ;;  %v4290_v43 = vadd.f32 %v4289_v12, %v4275_v3  ;;  %v4303_v3 = vpop.f32.mrf.mxu1 }
 0xb85   :  { %v5401_v29 = vmul.f32 -1.442695, %v4411_v30  ;;  %v4414_v23 = vadd.f32 %v4290_v43, %v411_v8 }
 0xb87   :  { %v5893_v50 = vpop.eup %5892  ;;  %5894 = vpow2.f32 %v5401_v29  ;;  %v5404_v2 = vmul.f32 -1.442695, %v4414_v23 }
 0xb88   :  { %v8774_v22 = vadd.f32 1.0, %v5893_v50  ;;  %v4261_v55 = vpop.f32.mrf.mxu2 }
 0xb89   :  { %5896 = vpow2.f32 %v5404_v2  ;;  %v4262_v9 = vadd.f32 %v4261_v55, %v4247_v37 }
 0xb8a   :  { %5898 = vrcp.f32 %v8774_v22  ;;  %v4457_v5 = vand.u32 2147483648, %v8774_v22  ;;  %vm4451_vm5 = vweird.f32 %v8774_v22  ;;  %v4455_v12 = vand.u32 2147483647, %v8774_v22 }
 0xb8b   :  { %v4413_v18 = vadd.f32 %v4262_v9, %v362_v4 }
 0xb8c   :  { %v4458_v2 = vor.u32 1.1754944e-38, %v4457_v5  ;;  %vm4456_vm9 = vcmp.eq.f32.partialorder %v4455_v12, 8.507059e+37 }
 0xb8d   :  { %v5895_v11 = vpop.eup %5894  ;;  %v5403_v41 = vmul.f32 -1.442695, %v4413_v18 }
 0xb8e   :  { %v4427_v32 = vadd.f32 1.0, %v5895_v11  ;;  %v9951_v11 = vld [vmem:[#allocation32_spill] sm:$0xff] }
 0xb8f   :  { %v5897_v21 = vpop.eup %5896  ;;  %5900 = vpow2.f32 %v5403_v41  ;;  %v460_v41 = vadd.f32 %v9951_v11, %v7243_v63 }
 0xb90   :  { %5902 = vrcp.f32 %v4427_v32  ;;  %v8779_v46 = vadd.f32 1.0, %v5897_v21  ;;  %v5899_v62 = vpop.eup %5898  ;;  %v4315_v1 = vpop.f32.mrf.mxu2  ;;  %v4442_v54 = vand.u32 2147483648, %v4427_v32  ;;  %v4440_v16 = vand.u32 2147483647, %v4427_v32 }
 0xb91   :  { %v4447_v61 = vmul.f32 %v5899_v62, %v8774_v22  ;;  %v4316_v20 = vadd.f32 %v4315_v1, %v4301_v52  ;;  %vm4436_vm1 = vweird.f32 %v4427_v32  ;;  %vm4452_vm4 = vweird.f32 %v5899_v62 }
 0xb92   :  { %5904 = vrcp.f32 %v8779_v46  ;;  %v4443_v59 = vor.u32 1.1754944e-38, %v4442_v54  ;;  %vm4441_vm3 = vcmp.eq.f32.partialorder %v4440_v16, 8.507059e+37  ;;  %vm4453_vm6 = vmor %vm4451_vm5, %vm4452_vm4  ;;  %vm4481_vm13 = vweird.f32 %v8779_v46  ;;  %v4357_v16 = vpop.f32.mrf.mxu1 }
 0xb93   :  { %v4448_v19 = vsub.f32 1.0, %v4447_v61  ;;  %v4491_v36 = vadd.f32 %v8610_v14, %v4316_v20 }
 0xb95   :  { %v5901_v6 = vpop.eup %5900  ;;  %v4449_v49 = vmul.f32 %v5899_v62, %v4448_v19 }
 0xb96   :  { %v5903_v34 = vpop.eup %5902  ;;  %v4429_v7 = vadd.f32 1.0, %v5901_v6 }
 0xb97   :  { %v4432_v48 = vmul.f32 %v5903_v34, %v4427_v32  ;;  %vm4437_vm0 = vweird.f32 %v5903_v34  ;;  %v4450_v10 = vadd.f32 %v5899_v62, %v4449_v49  ;;  %v4487_v32 = vand.u32 2147483648, %v8779_v46 }
 0xb98   :  { %5906 = vrcp.f32 %v4429_v7  ;;  %v8783_v27 = vpop.eup %5904  ;;  %vm4438_vm2 = vmor %vm4436_vm1, %vm4437_vm0  ;;  %v4317_v58 = vpop.f32.mrf.mxu2  ;;  %v4470_v40 = vand.u32 2147483647, %v4429_v7  ;;  %v4472_v8 = vand.u32 2147483648, %v4429_v7  ;;  %vm4466_vm8 = vweird.f32 %v4429_v7 }
 0xb99   :  { %v4433_v33 = vsub.f32 1.0, %v4432_v48  ;;  %v4477_v0 = vmul.f32 %v8783_v27, %v8779_v46  ;;  %v4318_v43 = vadd.f32 %v4317_v58, %v4303_v3  ;;  %v4454_v50 = vsel %vm4453_vm6, %v5899_v62, %v4450_v10 }
 0xb9a   :  { %v4473_v55 = vor.u32 1.1754944e-38, %v4472_v8  ;;  %v4459_v31 = vsel %vm4456_vm9, %v4458_v2, %v4454_v50  ;;  %vm4471_vm11 = vcmp.eq.f32.partialorder %v4470_v40, 8.507059e+37  ;;  %vm4482_vm12 = vweird.f32 %v8783_v27  ;;  %v5597_v40 = vld [vmem:[#allocation7 + $0x20] sm:$0xff]  ;;  %v5596_v50 = vld [vmem:[#allocation7 + $0x18] sm:$0xff] }
 0xb9b   :  { %v4434_v51 = vmul.f32 %v5903_v34, %v4433_v33  ;;  %v4478_v60 = vsub.f32 1.0, %v4477_v0  ;;  %v4492_v22 = vadd.f32 %v8610_v14, %v4318_v43  ;;  %v4485_v62 = vand.u32 2147483647, %v8779_v46  ;;  %vm4483_vm14 = vmor %vm4481_vm13, %vm4482_vm12  ;;  %v4329_v0 = vpop.f32.mrf.mxu3 }
 0xb9c   :  { %v4499_v61 = vsub.f32 1.0, %v4459_v31  ;;  %v4503_v1 = vmul.f32 %v4459_v31, %v8629_v45  ;;  %v4488_v48 = vor.u32 1.1754944e-38, %v4487_v32  ;;  %v4343_v45 = vpop.f32.mrf.mxu0 }
 0xb9d   :  { %v4435_v17 = vadd.f32 %v5903_v34, %v4434_v51  ;;  %v4479_v23 = vmul.f32 %v8783_v27, %v4478_v60  ;;  %vm4486_vm15 = vcmp.eq.f32.partialorder %v4485_v62, 8.507059e+37 }
 0xb9e   :  { %v5907_v44 = vpop.eup %5906 }
 0xb9f   :  { %v4439_v53 = vsel %vm4438_vm2, %v5903_v34, %v4435_v17  ;;  %v4462_v15 = vmul.f32 %v5907_v44, %v4429_v7  ;;  %vm4467_vm7 = vweird.f32 %v5907_v44  ;;  %v4480_v9 = vadd.f32 %v8783_v27, %v4479_v23  ;;  %v5600_v17 = vld [vmem:[#allocation7 + $0x38] sm:$0xff] }
 0xba0   :  { %v4444_v42 = vsel %vm4441_vm3, %v4443_v59, %v4439_v53  ;;  %vm4468_vm10 = vmor %vm4466_vm8, %vm4467_vm7  ;;  %v4371_v49 = vpop.f32.mrf.mxu2  ;;  %4715 = vmatpush.bf16.msra.mxu0 %v5600_v17  ;;  %v4344_v53 = vadd.f32 %v4343_v45, %v4329_v0 }
 0xba1   :  { %v4493_v39 = vmul.f32 %v4491_v36, %v4444_v42  ;;  %v4463_v56 = vsub.f32 1.0, %v4462_v15  ;;  %v4484_v7 = vsel %vm4483_vm14, %v8783_v27, %v4480_v9  ;;  %v4359_v27 = vpop.f32.mrf.mxu1  ;;  %v5599_v15 = vld [vmem:[#allocation7 + $0x30] sm:$0xff]  ;;  %v5598_v42 = vld [vmem:[#allocation7 + $0x28] sm:$0xff] }
 0xba2   :  { %v4489_v52 = vsel %vm4486_vm15, %v4488_v48, %v4484_v7 }
 0xba3   :  { %v4495_v30 = vadd.f32 %v4493_v39, %v458_v57  ;;  %v4464_v29 = vmul.f32 %v5907_v44, %v4463_v56  ;;  %v4500_v19 = vsub.f32 1.0, %v4489_v52  ;;  %v4504_v20 = vmul.f32 %v4489_v52, %v8634_v47  ;;  %v4331_v10 = vpop.f32.mrf.mxu3 }
 0xba4   :  { %4716 = vmatpush.bf16.msra.mxu0 %v5599_v15  ;;  %v4345_v58 = vpop.f32.mrf.mxu0  ;;  %v4372_v57 = vadd.f32 %v4371_v49, %v4357_v16 }
 0xba5   :  { %5908 = vtanh.f32 %v4495_v30  ;;  %v4465_v37 = vadd.f32 %v5907_v44, %v4464_v29  ;;  %v4346_v56 = vadd.f32 %v4345_v58, %v4331_v10 }
 0xba7   :  { %v4469_v4 = vsel %vm4468_vm10, %v5907_v44, %v4465_v37 }
 0xba8   :  { %v4474_v18 = vsel %vm4471_vm11, %v4473_v55, %v4469_v4  ;;  %v4373_v44 = vpop.f32.mrf.mxu2  ;;  %4717 = vmatpush.bf16.msra.mxu0 %v5598_v42 }
 0xba9   :  { %v4494_v21 = vmul.f32 %v4492_v22, %v4474_v18  ;;  %v4374_v55 = vadd.f32 %v4373_v44, %v4359_v27  ;;  %v5595_v22 = vld [vmem:[#allocation7 + $0x10] sm:$0xff] }
 0xbab   :  { %v5909_v6 = vpop.eup %5908  ;;  %v4496_v34 = vadd.f32 %v4494_v21, %v460_v41  ;;  %v4385_v8 = vpop.f32.mrf.mxu3  ;;  %v5594_v21 = vld [vmem:[#allocation7 + $0x8] sm:$0xff] }
 0xbac   :  { %v4501_v14 = vmul.f32 %v5909_v6, %v4499_v61  ;;  %4718 = vmatpush.bf16.msra.mxu0 %v5597_v40  ;;  %v4399_v32 = vpop.f32.mrf.mxu0 }
 0xbad   :  { %5910 = vtanh.f32 %v4496_v34  ;;  %v4400_v52 = vadd.f32 %v4399_v32, %v4385_v8 }
 0xbae   :  { %v4505_v63 = vadd.f32 %v4503_v1, %v4501_v14 }
 0xbaf   :  { %v4630_v0 = vadd.f32 %v8712_v26, %v4400_v52 }
 0xbb0   :  { %4719 = vmatpush.bf16.msra.mxu0 %v5596_v50 }
 0xbb3   :  { %v5911_v33 = vpop.eup %5910  ;;  %v4387_v41 = vpop.f32.mrf.mxu3 }
 0xbb4   :  { %v4502_v54 = vmul.f32 %v5911_v33, %v4500_v19  ;;  %4720 = vmatpush.bf16.msra.mxu0 %v5595_v22  ;;  %v4401_v16 = vpop.f32.mrf.mxu0 }
 0xbb5   :  { %v4402_v44 = vadd.f32 %v4401_v16, %v4387_v41 }
 0xbb6   :  { %v4506_v46 = vadd.f32 %v4504_v20, %v4502_v54 }
 0xbb8   :  { %v4507_v51 = vpack.c.bf16 %v4506_v46, %v4505_v63  ;;  %4721 = vmatpush.bf16.msra.mxu0 %v5594_v21 }
 0xbba   :  { %4516 = vmatmul.bf16.vlgmr.msrb.gmra.mxu1 %v4507_v51  ;;  %4530 = vmatmul.bf16.vlgmr.msrb.gmra.mxu2 %v4507_v51 }
 0xbbb   :  { %4544 = vmatmul.bf16.vlgmr.msra.gmra.mxu3 %v4507_v51 }
 0xc37   :  { %v4517_v59 = vpop.f32.mrf.mxu1 }
 0xc38   :  { %v4518_v36 = vadd.f32 %v4517_v59, %v9929_v13 }
 0xc3a   :  { %v4550_v47 = vadd.f32 %v4518_v36, %v4344_v53 }
 0xc3c   :  { %v5405_v60 = vmul.f32 -1.442695, %v4550_v47 }
 0xc3d   :  { %v4531_v38 = vpop.f32.mrf.mxu2 }
 0xc3e   :  { %5912 = vpow2.f32 %v5405_v60  ;;  %v4532_v5 = vadd.f32 %v4531_v38, %v9930_v24  ;;  %v4545_v54 = vpop.f32.mrf.mxu3  ;;  %v4631_v38 = vadd.f32 %v8712_v26, %v4402_v44 }
 0xc3f   :  { %v4519_v39 = vpop.f32.mrf.mxu1  ;;  %v4546_v47 = vadd.f32 %v4545_v54, %v7474_v25 }
 0xc40   :  { %v4551_v3 = vadd.f32 %v4532_v5, %v4372_v57  ;;  %v4520_v12 = vadd.f32 %v4519_v39, %v9929_v13 }
 0xc42   :  { %v5406_v30 = vmul.f32 -1.442695, %v4551_v3  ;;  %v4552_v43 = vadd.f32 %v4520_v12, %v4346_v56 }
 0xc44   :  { %v5913_v29 = vpop.eup %5912  ;;  %5914 = vpow2.f32 %v5406_v30  ;;  %v5407_v23 = vmul.f32 -1.442695, %v4552_v43 }
 0xc45   :  { %v4566_v2 = vadd.f32 1.0, %v5913_v29  ;;  %v4533_v37 = vpop.f32.mrf.mxu2 }
 0xc46   :  { %5916 = vpow2.f32 %v5407_v23  ;;  %v4534_v31 = vadd.f32 %v4533_v37, %v9930_v24  ;;  %v5593_v24 = vld [vmem:[#allocation7] sm:$0xff]  ;;  %v4547_v3 = vpop.f32.mrf.mxu3 }
 0xc47   :  { %5918 = vrcp.f32 %v4566_v2  ;;  %v4581_v14 = vand.u32 2147483648, %v4566_v2  ;;  %v4579_v48 = vand.u32 2147483647, %v4566_v2  ;;  %4722 = vmatpush.bf16.msra.mxu0 %v5593_v24  ;;  %vm4575_vm1 = vweird.f32 %v4566_v2 }
 0xc48   :  { %v4553_v4 = vadd.f32 %v4534_v31, %v4374_v55  ;;  %v4548_v23 = vadd.f32 %v4547_v3, %v7474_v25 }
 0xc49   :  { %v4582_v46 = vor.u32 1.1754944e-38, %v4581_v14  ;;  %vm4580_vm3 = vcmp.eq.f32.partialorder %v4579_v48, 8.507059e+37 }
 0xc4a   :  { %v5915_v13 = vpop.eup %5914  ;;  %v5408_v9 = vmul.f32 -1.442695, %v4553_v4 }
 0xc4b   :  { %v8809_v18 = vadd.f32 1.0, %v5915_v13 }
 0xc4c   :  { %v5917_v11 = vpop.eup %5916  ;;  %5920 = vpow2.f32 %v5408_v9 }
 0xc4d   :  { %v5919_v62 = vpop.eup %5918  ;;  %5922 = vrcp.f32 %v8809_v18  ;;  %v4568_v6 = vadd.f32 1.0, %v5917_v11  ;;  %vm4590_vm8 = vweird.f32 %v8809_v18  ;;  %v4596_v40 = vand.u32 2147483648, %v8809_v18 }
 0xc4e   :  { %v4571_v61 = vmul.f32 %v5919_v62, %v4566_v2  ;;  %vm4576_vm0 = vweird.f32 %v5919_v62  ;;  %v4594_v30 = vand.u32 2147483647, %v8809_v18 }
 0xc4f   :  { %5924 = vrcp.f32 %v4568_v6  ;;  %vm4577_vm2 = vmor %vm4575_vm1, %vm4576_vm0  ;;  %v4611_v15 = vand.u32 2147483648, %v4568_v6  ;;  %v4609_v42 = vand.u32 2147483647, %v4568_v6  ;;  %vm4605_vm5 = vweird.f32 %v4568_v6 }
 0xc50   :  { %v4572_v34 = vsub.f32 1.0, %v4571_v61  ;;  %v4597_v31 = vor.u32 1.1754944e-38, %v4596_v40  ;;  %vm4595_vm14 = vcmp.eq.f32.partialorder %v4594_v30, 8.507059e+37 }
 0xc51   :  { %v4612_v12 = vor.u32 1.1754944e-38, %v4611_v15  ;;  %vm4610_vm9 = vcmp.eq.f32.partialorder %v4609_v42, 8.507059e+37 }
 0xc52   :  { %v5921_v7 = vpop.eup %5920  ;;  %v4573_v1 = vmul.f32 %v5919_v62, %v4572_v34 }
 0xc53   :  { %v8812_v63 = vpop.eup %5922  ;;  %v4569_v19 = vadd.f32 1.0, %v5921_v7  ;;  %v5611_v7 = vld [vmem:[%s8847_s9] ss:$0 sm:$0xff] }
 0xc54   :  { %v4586_v33 = vmul.f32 %v8812_v63, %v8809_v18  ;;  %v4574_v20 = vadd.f32 %v5919_v62, %v4573_v1  ;;  %vm4591_vm6 = vweird.f32 %v8812_v63 }
 0xc55   :  { %5926 = vrcp.f32 %v4569_v19  ;;  %v5925_v51 = vpop.eup %5924  ;;  %vm4592_vm11 = vmor %vm4590_vm8, %vm4591_vm6  ;;  %v4626_v29 = vand.u32 2147483648, %v4569_v19  ;;  %vm4620_vm12 = vweird.f32 %v4569_v19  ;;  %v4624_v55 = vand.u32 2147483647, %v4569_v19 }
 0xc56   :  { %v4587_v49 = vsub.f32 1.0, %v4586_v33  ;;  %v4578_v27 = vsel %vm4577_vm2, %v5919_v62, %v4574_v20  ;;  %v4601_v17 = vmul.f32 %v5925_v51, %v4568_v6  ;;  %vm4606_vm4 = vweird.f32 %v5925_v51 }
 0xc57   :  { %v4583_v45 = vsel %vm4580_vm3, %v4582_v46, %v4578_v27  ;;  %vm4607_vm7 = vmor %vm4605_vm5, %vm4606_vm4  ;;  %v4627_v9 = vor.u32 1.1754944e-38, %v4626_v29  ;;  %vm4625_vm15 = vcmp.eq.f32.partialorder %v4624_v55, 8.507059e+37 }
 0xc58   :  { %v4632_v59 = vmul.f32 %v4630_v0, %v4583_v45  ;;  %v4602_v53 = vsub.f32 1.0, %v4601_v17  ;;  %v4588_v36 = vmul.f32 %v8812_v63, %v4587_v49 }
 0xc5a   :  { %v4603_v60 = vmul.f32 %v5925_v51, %v4602_v53  ;;  %v4634_v57 = vadd.f32 %v4632_v59, %v4546_v47  ;;  %v4589_v39 = vadd.f32 %v8812_v63, %v4588_v36 }
 0xc5b   :  { %v5927_v10 = vpop.eup %5926 }
 0xc5c   :  { %v4616_v58 = vmul.f32 %v5927_v10, %v4569_v19  ;;  %v4604_v5 = vadd.f32 %v5925_v51, %v4603_v60  ;;  %vm4621_vm10 = vweird.f32 %v5927_v10  ;;  %5928 = vtanh.f32 %v4634_v57 }
 0xc5d   :  { %v4593_v2 = vsel %vm4592_vm11, %v8812_v63, %v4589_v39  ;;  %vm4622_vm13 = vmor %vm4620_vm12, %vm4621_vm10 }
 0xc5e   :  { %v4617_v56 = vsub.f32 1.0, %v4616_v58  ;;  %v4608_v8 = vsel %vm4607_vm7, %v5925_v51, %v4604_v5  ;;  %v4598_v13 = vsel %vm4595_vm14, %v4597_v31, %v4593_v2 }
 0xc5f   :  { %v4613_v43 = vsel %vm4610_vm9, %v4612_v12, %v4608_v8  ;;  %v4638_v41 = vsub.f32 1.0, %v4598_v13  ;;  %v4642_v62 = vmul.f32 %v4598_v13, %v8735_v28 }
 0xc60   :  { %v4618_v26 = vmul.f32 %v5927_v10, %v4617_v56  ;;  %v4633_v50 = vmul.f32 %v4631_v38, %v4613_v43 }
 0xc62   :  { %v4619_v37 = vadd.f32 %v5927_v10, %v4618_v26  ;;  %v4635_v4 = vadd.f32 %v4633_v50, %v4548_v23  ;;  %v5929_v18 = vpop.eup %5928 }
 0xc63   :  { %v4640_v32 = vmul.f32 %v5929_v18, %v4638_v41 }
 0xc64   :  { %v4623_v22 = vsel %vm4622_vm13, %v5927_v10, %v4619_v37  ;;  %5930 = vtanh.f32 %v4635_v4 }
 0xc65   :  { %v4628_v11 = vsel %vm4625_vm15, %v4627_v9, %v4623_v22  ;;  %v4644_v24 = vadd.f32 %v4642_v62, %v4640_v32 }
 0xc66   :  { %v4639_v25 = vsub.f32 1.0, %v4628_v11  ;;  %v4643_v6 = vmul.f32 %v4628_v11, %v8738_v35 }
 0xc6a   :  { %v5931_v21 = vpop.eup %5930 }
 0xc6b   :  { %v4641_v61 = vmul.f32 %v5931_v21, %v4639_v25 }
 0xc6d   :  { %v4645_v34 = vadd.f32 %v4643_v6, %v4641_v61 }
 0xc6f   :  { %v4646_v14 = vpack.c.bf16 %v4645_v34, %v4644_v24 }
 0xc71   :  { %4723 = vmatmul.bf16.vlgmr.msra.gmra.mxu0 %v4646_v14 }
 0xcee   :  { %v4724_v1 = vpop.f32.mrf.mxu0 }
 0xcef   :  { %v4725_v48 = vadd.f32 %v5611_v7, %v4724_v1 }
 0xcf1   :  { %4729 = vst [vmem:[%s8848_s10] sm:$0xff] %v4725_v48 }
 0xcf6   :  { %v4726_v63 = vpop.f32.mrf.mxu0 }
 0xcf7   :  { %v4727_v52 = vadd.f32 %v5611_v7, %v4726_v63 }
 0xcf9   :  { %4730 = vst [vmem:[%s8848_s10 + $0x8] sm:$0xff] %v4727_v52 }
 0xcfa   :  { %4735 = vsyncpa [#allocation4], 1 }
 0xcfb   :  { %4736 = vsyncpa [#allocation6], 1 }

</bundles_post_ra>
